<compile_context>
chip_gen: v5e
topology: v5e:2x2
jax: 0.10.0
libtpu: 0.0.40
codegen_flags: <defaults>
</compile_context>

<pallas_src>
import functools

import numpy as np
import jax
import jax.numpy as jnp
from jax.experimental import pallas as pl
from jax.experimental.pallas import tpu as pltpu


# ----------------------------------------------------------------------------
# VMEM budgeting / tiling helpers
# ----------------------------------------------------------------------------
@functools.lru_cache(maxsize=None)
def _vmem_limit_bytes():
    """Per-generation VMEM budget (~56 MiB on v7x, capped at 100 MiB on v5e/v6e)."""
    try:
        cap = pltpu.get_tpu_info().vmem_capacity_bytes
    except Exception:
        cap = 64 * 1024 * 1024          # conservative default (v7x per-TC VMEM)
    return int(min(cap * 0.85, 100 * 1024 * 1024))


def _pick_tile(m, n, resident_bytes, budget_bytes):
    """Largest row tile tm dividing m such that the double-buffered streamed
    bf16 tile plus ~4 live f32 (tm, n) intermediates fit next to residents."""
    for tm in (512, 256, 128, 64, 32, 16, 8):
        if m % tm != 0:
            continue
        if resident_bytes + 2 * tm * n * 2 + 4 * tm * n * 4 <= budget_bytes:
            return tm
    return m


@functools.lru_cache(maxsize=None)
def _buffered_one_supported():
    """Probe pipeline_mode=pl.Buffered(1) support (single-buffer residents)."""
    try:
        def _k(x_ref, o_ref):
            o_ref[...] = x_ref[...]
        x = jnp.zeros((8, 128), jnp.float32)
        out = pl.pallas_call(
            _k,
            out_shape=jax.ShapeDtypeStruct((8, 128), jnp.float32),
            grid=(1,),
            in_specs=[pl.BlockSpec((8, 128), lambda i: (0, 0),
                                   pipeline_mode=pl.Buffered(1))],
            out_specs=pl.BlockSpec((8, 128), lambda i: (0, 0)),
        )(x)
        jax.block_until_ready(out)
        return True
    except Exception:
        return False


def _single_buffered(block_shape, index_map):
    """Single-buffered BlockSpec for resident / rarely-changing operands."""
    if _buffered_one_supported():
        return pl.BlockSpec(block_shape, index_map, pipeline_mode=pl.Buffered(1))
    return pl.BlockSpec(block_shape, index_map)


# ----------------------------------------------------------------------------
# Pallas kernels
# ----------------------------------------------------------------------------
def _diag_rh_kernel(rin_t_ref, h_ref, d_ref, *, rin_batched):
    """Lane-dense tile of diag(Rin H Rin^T), one MXU matmul per tile.

    ct = Rin^T[:, tile]  (N, tm)  streamed column tile
    d  = sum_k (H @ ct)[k, :] * ct[k, :]    -> (1, tm), already lane-major.
    Clamped >= 0 (H is PSD) so downstream salience is guaranteed non-negative.
    """
    ct = rin_t_ref[0] if rin_batched else rin_t_ref[...]            # (N, tm) bf16
    hc = jnp.dot(h_ref[0], ct, preferred_element_type=jnp.float32)  # (N, tm) f32
    d = jnp.sum(hc * ct.astype(jnp.float32), axis=0, keepdims=True)  # (1, tm)
    d_ref[...] = jnp.maximum(d, 0.0).reshape(d_ref.shape)


def _rowent_kernel(w_ref, rin_t_ref, d_ref, out_ref):
    """Row-entropy-sum of sal = (W_tile @ Rin^T)^2 * d for one (batch, row-tile)
    grid cell.  Rows are complete within the tile, so each cell writes its own
    lane-dense partial -> no cross-step state -> both grid axes 'parallel'."""
    w = w_ref[0]                                                     # (tm, K) bf16
    wp = jnp.dot(w, rin_t_ref[...], preferred_element_type=jnp.float32)  # (tm, N)
    sal = wp * wp * d_ref[0]                    # d broadcasts: (1, N) or (tm, 1)
    sal = sal.astype(jnp.bfloat16).astype(jnp.float32)               # module dtype
    # d >= 0 (clamped upstream) => sal >= 0: one min() replaces nan_to_num.
    sal = jnp.minimum(sal, 100000.0)
    xlogx = jnp.where(sal > 0.0, sal * jnp.log(sal), 0.0)
    s = jnp.sum(sal, axis=1, keepdims=True)                          # (tm, 1)
    t = jnp.sum(xlogx, axis=1, keepdims=True)
    ent = jnp.where(s > 0.0, jnp.log(s) - t / s, 0.0)
    lane = jax.lax.broadcasted_iota(jnp.int32, out_ref.shape, len(out_ref.shape) - 1)
    out_ref[...] = jnp.where(lane == 0, jnp.sum(ent), 0.0)


def _bient_kernel(rout_ref, w_ref, rin_t_ref, d_ref, rowent_ref, colent_ref,
                  col_s_ref, col_t_ref):
    """Fused salience + BOTH entropy orientations, row-tiled over Rout rows.

    sal tile = (Rout_tile @ W @ Rin^T)^2 * d.  Row entropies finalize per tile;
    column statistics accumulate in VMEM scratch across the (arbitrary) row
    axis and finalize on the last step.  Salience never touches HBM.
    """
    i = pl.program_id(0)

    @pl.when(i == 0)
    def _init():
        rowent_ref[...] = jnp.zeros_like(rowent_ref)
        colent_ref[...] = jnp.zeros_like(colent_ref)
        col_s_ref[...] = jnp.zeros_like(col_s_ref)
        col_t_ref[...] = jnp.zeros_like(col_t_ref)

    rw = jnp.dot(rout_ref[...], w_ref[...], preferred_element_type=jnp.float32)
    wp = jnp.dot(rw.astype(jnp.bfloat16), rin_t_ref[...],
                 preferred_element_type=jnp.float32)                 # (tm, N) f32
    sal = wp * wp * d_ref[...]
    sal = sal.astype(jnp.bfloat16).astype(jnp.float32)
    sal = jnp.minimum(sal, 100000.0)            # sal >= 0 (d clamped upstream)
    xlogx = jnp.where(sal > 0.0, sal * jnp.log(sal), 0.0)

    s_row = jnp.sum(sal, axis=1, keepdims=True)
    t_row = jnp.sum(xlogx, axis=1, keepdims=True)
    ent_row = jnp.where(s_row > 0.0, jnp.log(s_row) - t_row / s_row, 0.0)
    rowent_ref[...] += jnp.sum(ent_row, axis=0, keepdims=True)

    col_s_ref[...] += jnp.sum(sal, axis=0, keepdims=True)
    col_t_ref[...] += jnp.sum(xlogx, axis=0, keepdims=True)

    @pl.when(i == pl.num_programs(0) - 1)
    def _finalize():
        s_col = col_s_ref[...]
        t_col = col_t_ref[...]
        ent_col = jnp.where(s_col > 0.0, jnp.log(s_col) - t_col / s_col, 0.0)
        colent_ref[...] = jnp.sum(ent_col, axis=1, keepdims=True)


# ----------------------------------------------------------------------------
# Pallas wrappers
# ----------------------------------------------------------------------------
def diag_rotated_hessian(rin_t, h_stack):
    """Batched diag(Rin_b @ H_b @ Rin_b^T) -> lane-dense (B, 1, N) f32, >= 0.

    rin_t: pre-transposed rotation, (N, N) shared or (B, N, N) per batch, bf16.
    h_stack: (B, N, N) bf16 Hessians (kept resident per batch step).
    """
    b, n = h_stack.shape[0], h_stack.shape[1]
    budget = _vmem_limit_bytes()
    resident = n * n * 2                               # H (single-buffered)
    tm = _pick_tile(n, n, resident, budget)
    rin_batched = (rin_t.ndim == 3)
    if rin_batched:
        rin_spec = pl.BlockSpec((1, n, tm), lambda bb, i: (bb, 0, i))
    else:
        rin_spec = pl.BlockSpec((n, tm), lambda bb, i: (0, i))
    # TODO(synk): for very large N on v7x also tile H columns instead of
    # keeping the whole Hessian resident.
    return pl.pallas_call(
        functools.partial(_diag_rh_kernel, rin_batched=rin_batched),
        out_shape=jax.ShapeDtypeStruct((b, 1, n), jnp.float32),
        grid=(b, n // tm),
        in_specs=[rin_spec,
                  _single_buffered((1, n, n), lambda bb, i: (bb, 0, 0))],
        out_specs=pl.BlockSpec((1, 1, tm), lambda bb, i: (bb, 0, i)),
        compiler_params=pltpu.CompilerParams(
            dimension_semantics=("parallel", "parallel"),
            vmem_limit_bytes=budget),
    )(rin_t, h_stack)


def rowent_batched(w_stack, rin_t, d_stack):
    """Per-batch row-entropy sums of sal_b = (W_b @ Rin^T)^2 * d_b.

    w_stack: (B, M, K) bf16 (row-tiled and streamed), rin_t: (K, N) bf16
    resident, d_stack: (B, 1, N) (per-column d) or (B, M, 1) (per-row d) f32.
    Returns (B,) f32.  Used for q/k/gate/up and for down_proj routed via W^T,
    batched across layers and same-shaped projections.
    """
    bsz, m, k = w_stack.shape
    n = rin_t.shape[1]
    budget = _vmem_limit_bytes()
    resident = k * n * 2                               # Rin^T (single-buffered)
    tm = _pick_tile(m, max(k, n), resident, budget)
    g = m // tm
    d_per_row = (d_stack.shape[-1] == 1)
    if d_per_row:
        d_spec = pl.BlockSpec((1, tm, 1), lambda b, i: (b, i, 0))
    else:
        d_spec = pl.BlockSpec((1, 1, n), lambda b, i: (b, 0, 0))
    out = pl.pallas_call(
        _rowent_kernel,
        out_shape=jax.ShapeDtypeStruct((bsz, 1, g * 128), jnp.float32),
        grid=(bsz, g),
        in_specs=[pl.BlockSpec((1, tm, k), lambda b, i: (b, i, 0)),
                  _single_buffered((k, n), lambda b, i: (0, 0)),
                  d_spec],
        out_specs=pl.BlockSpec((1, 1, 128), lambda b, i: (b, 0, i)),
        compiler_params=pltpu.CompilerParams(
            dimension_semantics=("parallel", "parallel"),
            vmem_limit_bytes=budget),
    )(w_stack, rin_t, d_stack)
    return jnp.sum(out, axis=(1, 2))


def bient(rout, w, rin_t, d):
    """Both entropy orientations of sal = (Rout @ W @ Rin^T)^2 * d[None, :].

    Returns (rowent, colent) scalars.  Used for v_proj / o_proj where both
    orientations are consumed; W / Rin^T / d stay resident (single-buffered),
    Rout rows are streamed.
    """
    mo, kc = rout.shape
    n = w.shape[1]
    budget = _vmem_limit_bytes()
    resident = kc * n * 2 + n * n * 2 + n * 4 + 2 * n * 4
    tm = _pick_tile(mo, max(kc, n), resident, budget)
    rowent, colent = pl.pallas_call(
        _bient_kernel,
        out_shape=(jax.ShapeDtypeStruct((1, 1), jnp.float32),
                   jax.ShapeDtypeStruct((1, 1), jnp.float32)),
        grid=(mo // tm,),
        in_specs=[pl.BlockSpec((tm, kc), lambda i: (i, 0)),
                  _single_buffered((kc, n), lambda i: (0, 0)),     # W resident
                  _single_buffered((n, n), lambda i: (0, 0)),      # Rin^T resident
                  _single_buffered((1, n), lambda i: (0, 0))],     # d resident
        out_specs=(pl.BlockSpec((1, 1), lambda i: (0, 0)),
                   pl.BlockSpec((1, 1), lambda i: (0, 0))),
        scratch_shapes=[pltpu.VMEM((1, n), jnp.float32),
                        pltpu.VMEM((1, n), jnp.float32)],
        compiler_params=pltpu.CompilerParams(
            dimension_semantics=("arbitrary",),        # column stats accumulate
            vmem_limit_bytes=budget),
    )(rout, w, rin_t, d)
    return rowent[0, 0], colent[0, 0]


# ----------------------------------------------------------------------------
# Forward pass (mirrors RotatorOptimizer.forward with indices_dict=None)
# ----------------------------------------------------------------------------
WR_1RX_LIST = ['self_attn.q_proj', 'self_attn.k_proj', 'mlp.gate_proj', 'mlp.up_proj']
RWX_LIST = ['mlp.down_proj']
R2WR_1RX_LIST = ['self_attn.v_proj']
RWR2_1R2X_LIST = ['self_attn.o_proj']


def _get_rotations(A_list, B_list_list):
    # get_orthogonal_matrix(): R = block_diag(QR(A_i)) cast to bf16
    # TODO(synk): no Pallas QR primitive; jnp.linalg.qr runs outside the kernels.
    R1_list = [jnp.linalg.qr(A)[0] for A in A_list]
    R = jax.scipy.linalg.block_diag(*R1_list).astype(jnp.bfloat16)
    R2_blocks = []
    for Bl in B_list_list:
        qs = [jnp.linalg.qr(B)[0].astype(jnp.bfloat16) for B in Bl]
        R2_blocks.append(jax.scipy.linalg.block_diag(*qs).astype(jnp.bfloat16))
    return R, R2_blocks


def rotator_optimizer_forward(weight_dict_list, hessian_dict_list,
                              A_list, B_list_list, positive=True):
    num_layer = len(weight_dict_list)
    R, R2_blocks = _get_rotations(A_list, B_list_list)
    R_t = R.T                                   # pre-transposed once (canonical MXU)
    R2_t = [r2.T for r2 in R2_blocks]
    # TODO(synk): exploit the block-diagonal structure of R / R2 (per-piece /
    # per-kv-head batched matmuls) instead of dense rotation matrices.

    # ---- batched diag(R H R^T) for every projection whose Rin is R ----------
    shared = WR_1RX_LIST + R2WR_1RX_LIST                     # q, k, gate, up, v
    s = len(shared)
    h_stack = jnp.stack([hessian_dict_list[idx][nm]
                         for idx in range(num_layer) for nm in shared])
    d_R = diag_rotated_hessian(R_t, h_stack)                 # (L*s, 1, hidden)

    # ---- batched diag(R2 H R2^T) for o_proj (per-layer R2) ------------------
    h_o = jnp.stack([hessian_dict_list[idx]['self_attn.o_proj']
                     for idx in range(num_layer)])
    d_R2 = diag_rotated_hessian(jnp.stack(R2_t), h_o)        # (L, 1, kv_dim)

    loss = jnp.float32(0.0)

    # ---- rowent-only projections (Kernel A), batched/grouped by shape -------
    groups = {}
    for idx in range(num_layer):
        for k_i, nm in enumerate(WR_1RX_LIST):
            w = weight_dict_list[idx][nm]
            groups.setdefault(('col', w.shape), []).append((w, d_R[idx * s + k_i]))
        # down_proj (RWX): row_entropy_sum(sal.T) with sal = (R W)^2 * diag(H)
        # is computed as rowent of (W^T R^T)^2 * diag(H)[:, None]; W is streamed
        # as W^T row tiles instead of being kept resident.
        w_dn = weight_dict_list[idx]['mlp.down_proj']
        h_dn = hessian_dict_list[idx]['mlp.down_proj']
        d_dn = jnp.maximum(jnp.diagonal(h_dn).astype(jnp.float32), 0.0)[:, None]
        groups.setdefault(('row', w_dn.T.shape), []).append((w_dn.T, d_dn))
        # TODO(synk): a column-tiled colent kernel variant would avoid the W^T copy.

    for (_kind, _shape), items in groups.items():
        w_stack = jnp.stack([w for w, _ in items])
        d_stack = jnp.stack([d for _, d in items])
        loss = loss + jnp.sum(rowent_batched(w_stack, R_t, d_stack))

    # ---- both-orientation projections (Kernel B), per layer -----------------
    # TODO(synk): v/o could also be batched across layers with a stacked R2.
    for idx in range(num_layer):
        w_v = weight_dict_list[idx]['self_attn.v_proj']
        er, ec = bient(R2_blocks[idx], w_v, R_t, d_R[idx * s + (s - 1)])
        loss = loss + er + ec
        w_o = weight_dict_list[idx]['self_attn.o_proj']
        er, ec = bient(R, w_o, R2_t[idx], d_R2[idx])
        loss = loss + er + ec

    return loss if positive else -loss


# ----------------------------------------------------------------------------
# Pure-JAX reference (torch-faithful formulation, same dtype policy)
# ----------------------------------------------------------------------------
def _salience_ref(w, h, rout=None, rin=None):
    if rout is not None:
        t = jnp.dot(rout, w, preferred_element_type=jnp.float32)
    else:
        t = w
    if rin is not None:
        t_in = t.astype(jnp.bfloat16)
        wp = jnp.dot(t_in, rin.T, preferred_element_type=jnp.float32)
        rh = jnp.dot(rin, h, preferred_element_type=jnp.float32)
        hp = jnp.dot(rh, rin.astype(jnp.float32).T,
                     precision=jax.lax.Precision.HIGHEST)
        d = jnp.diagonal(hp)
    else:
        wp = t.astype(jnp.float32)
        d = jnp.diagonal(h).astype(jnp.float32)
    return (wp * wp * d[None, :]).astype(jnp.bfloat16)


def _row_entropy_sum_ref(matrix):
    x = jnp.nan_to_num(matrix.astype(jnp.float32), nan=0.0, posinf=100000.0, neginf=0.0)
    row_sums = jnp.sum(x, axis=1, keepdims=True)
    row_sums = jnp.where(row_sums == 0, jnp.ones_like(row_sums), row_sums)
    probs = x / row_sums
    probs = jnp.nan_to_num(probs, nan=0.0, posinf=100000.0, neginf=0.0)
    probs = jnp.where(probs > 0, probs, jnp.ones_like(probs))
    lp = jnp.nan_to_num(jnp.log(probs), nan=0.0, posinf=100000.0, neginf=0.0)
    ent = -jnp.sum(probs * lp, axis=1)
    return jnp.nan_to_num(jnp.sum(ent), nan=0.0, posinf=0.0, neginf=0.0)


def _reference_forward(weight_dict_list, hessian_dict_list,
                       A_list, B_list_list, positive=True):
    R, R2_blocks = _get_rotations(A_list, B_list_list)
    loss = None
    for idx in range(len(weight_dict_list)):
        wd, hd = weight_dict_list[idx], hessian_dict_list[idx]
        R2 = R2_blocks[idx]
        for name in RWX_LIST:
            sal = _salience_ref(wd[name], hd[name], rout=R, rin=None)
            l = _row_entropy_sum_ref(sal.T)
            loss = l if loss is None else loss + l
        for name in WR_1RX_LIST:
            sal = _salience_ref(wd[name], hd[name], rout=None, rin=R)
            loss = loss + _row_entropy_sum_ref(sal)
        for name in R2WR_1RX_LIST:
            sal = _salience_ref(wd[name], hd[name], rout=R2, rin=R)
            loss = loss + _row_entropy_sum_ref(sal) + _row_entropy_sum_ref(sal.T)
        for name in RWR2_1R2X_LIST:
            sal = _salience_ref(wd[name], hd[name], rout=R, rin=R2)
            loss = loss + _row_entropy_sum_ref(sal) + _row_entropy_sum_ref(sal.T)
    return loss if positive else -loss


# ----------------------------------------------------------------------------
# main
# ----------------------------------------------------------------------------
if __name__ == "__main__":
    # Small Llama-shaped config (128-aligned so the tiled/batched kernel paths
    # and the lane-dense partial outputs are actually exercised).
    hidden = 512            # r_dim
    intermediate = 1024
    num_key_value_heads = 4
    head_dim = 128          # num_kv_heads * head_dim == hidden
    num_piece = 2
    A_dim = hidden // num_piece
    num_layer = 2
    positive = True

    keys = iter(jax.random.split(jax.random.PRNGKey(0), 64))

    # Module __init__ uses eye(); add a small deterministic perturbation so the
    # QR rotations are non-trivial.
    A_list = [jnp.eye(A_dim, dtype=jnp.float32)
              + 0.02 * jax.random.normal(next(keys), (A_dim, A_dim), jnp.float32)
              for _ in range(num_piece)]
    B_list_list = [[jnp.eye(head_dim, dtype=jnp.float32)
                    + 0.02 * jax.random.normal(next(keys), (head_dim, head_dim), jnp.float32)
                    for _ in range(num_key_value_heads)]
                   for _ in range(num_layer)]

    def make_weight(out_f, in_f):
        return (0.05 * jax.random.normal(next(keys), (out_f, in_f), jnp.float32)
                ).astype(jnp.bfloat16)

    def make_hessian(in_f):
        g = jax.random.normal(next(keys), (in_f, in_f), jnp.float32)
        return ((g @ g.T) / in_f).astype(jnp.bfloat16)   # symmetric PSD

    kv_dim = num_key_value_heads * head_dim
    weight_dict_list, hessian_dict_list = [], []
    for _ in range(num_layer):
        wd = {
            'self_attn.q_proj': make_weight(hidden, hidden),
            'self_attn.k_proj': make_weight(kv_dim, hidden),
            'self_attn.v_proj': make_weight(kv_dim, hidden),
            'self_attn.o_proj': make_weight(hidden, kv_dim),
            'mlp.gate_proj': make_weight(intermediate, hidden),
            'mlp.up_proj': make_weight(intermediate, hidden),
            'mlp.down_proj': make_weight(hidden, intermediate),
        }
        hd = {
            'self_attn.q_proj': make_hessian(hidden),
            'self_attn.k_proj': make_hessian(hidden),
            'self_attn.v_proj': make_hessian(hidden),
            'self_attn.o_proj': make_hessian(kv_dim),
            'mlp.gate_proj': make_hessian(hidden),
            'mlp.up_proj': make_hessian(hidden),
            'mlp.down_proj': make_hessian(intermediate),
        }
        weight_dict_list.append(wd)
        hessian_dict_list.append(hd)

    # Pallas forward
    loss = rotator_optimizer_forward(weight_dict_list, hessian_dict_list,
                                     A_list, B_list_list, positive=positive)
    loss = jax.block_until_ready(loss)

    # Pure-JAX reference forward
    loss_ref = _reference_forward(weight_dict_list, hessian_dict_list,
                                  A_list, B_list_list, positive=positive)
    loss_ref = jax.block_until_ready(loss_ref)

    np.testing.assert_allclose(np.asarray(loss), np.asarray(loss_ref),
                               rtol=3e-2, atol=1.0)
    print("KERNEL_OK")
</pallas_src>

<mosaic_0001>
module attributes {stable_mosaic.version = 11 : i64} {
  func.func @_k(%arg0: i32, %arg1: memref<8x128xf32, #tpu.memory_space<vmem>>, %arg2: memref<8x128xf32, #tpu.memory_space<vmem>>) attributes {dimension_semantics = [#tpu.dimension_semantics<arbitrary>], iteration_bounds = array<i64: 1>, scalar_prefetch = 0 : i64, scratch_operands = 0 : i64, tpu.core_type = #tpu.core_type<tc>, window_params = [{pipeline_mode = #tpu.pipeline_mode<synchronous>, transform_indices = @transform_0, window_bounds = array<i64: 8, 128>}, {pipeline_mode = #tpu.pipeline_mode<synchronous>, transform_indices = @transform_1, window_bounds = array<i64: 8, 128>}]} {
    %c0 = arith.constant 0 : index
    %c0_0 = arith.constant 0 : index
    %0 = vector.load %arg1[%c0, %c0_0] : memref<8x128xf32, #tpu.memory_space<vmem>>, vector<8x128xf32>
    %c0_1 = arith.constant 0 : index
    %c0_2 = arith.constant 0 : index
    %1 = vector.load %arg2[%c0_1, %c0_2] : memref<8x128xf32, #tpu.memory_space<vmem>>, vector<8x128xf32>
    tpu.vector_store %arg2[%c0_1, %c0_2], %0 {strides = array<i32>} : memref<8x128xf32, #tpu.memory_space<vmem>>, vector<8x128xf32>,
    return
  }
  func.func @transform_0(%arg0: i32) -> (i32, i32) {
    %c0_i32 = arith.constant 0 : i32
    %c0_i32_0 = arith.constant 0 : i32
    %c0_i32_1 = arith.constant 0 : i32
    return %c0_i32, %c0_i32_0 : i32, i32
  }
  func.func @transform_1(%arg0: i32) -> (i32, i32) {
    %c0_i32 = arith.constant 0 : i32
    %c0_i32_0 = arith.constant 0 : i32
    %c0_i32_1 = arith.constant 0 : i32
    return %c0_i32, %c0_i32_0 : i32, i32
  }
}

module attributes {stable_mosaic.version = 11 : i64} {
  func.func @_diag_rh_kernel(%arg0: i32, %arg1: i32, %arg2: memref<512x512xbf16, #tpu.memory_space<vmem>>, %arg3: memref<1x512x512xbf16, #tpu.memory_space<vmem>>, %arg4: memref<1x1x512xf32, #tpu.memory_space<vmem>>) attributes {dimension_semantics = [#tpu.dimension_semantics<parallel>, #tpu.dimension_semantics<parallel>], iteration_bounds = array<i64: 10, 1>, scalar_prefetch = 0 : i64, scratch_operands = 0 : i64, tpu.core_type = #tpu.core_type<tc>, window_params = [{transform_indices = @transform_0, window_bounds = array<i64: 512, 512>}, {transform_indices = @transform_1, window_bounds = array<i64: 1, 512, 512>}, {transform_indices = @transform_2, window_bounds = array<i64: 1, 1, 512>}]} {
    %c0 = arith.constant 0 : index
    %c0_0 = arith.constant 0 : index
    %0 = vector.load %arg2[%c0, %c0_0] : memref<512x512xbf16, #tpu.memory_space<vmem>>, vector<512x512xbf16>
    %c0_1 = arith.constant 0 : index
    %c0_2 = arith.constant 0 : index
    %c0_3 = arith.constant 0 : index
    %1 = vector.load %arg3[%c0_1, %c0_2, %c0_3] : memref<1x512x512xbf16, #tpu.memory_space<vmem>>, vector<1x512x512xbf16>
    %2 = vector.shape_cast %1 : vector<1x512x512xbf16> to vector<512x512xbf16>
    %cst = arith.constant dense<0.000000e+00> : vector<512x512xf32>
    %3 = tpu.matmul %2, %0, %cst {dimension_numbers = #tpu.dot_dimension_numbers<[1], [0], [0], [1], [0, 0, 1, 1], [], []>} : vector<512x512xbf16>, vector<512x512xbf16>, vector<512x512xf32> -> vector<512x512xf32>
    %4 = arith.extf %0 : vector<512x512xbf16> to vector<512x512xf32>
    %5 = arith.mulf %3, %4 : vector<512x512xf32>
    %cst_4 = arith.constant dense<0.000000e+00> : vector<512xf32>
    %6 = vector.multi_reduction <add>, %5, %cst_4 [0] : vector<512x512xf32> to vector<512xf32>
    %7 = vector.shape_cast %6 : vector<512xf32> to vector<1x512xf32>
    %cst_5 = arith.constant 0.000000e+00 : f32
    %8 = vector.broadcast %cst_5 : f32 to vector<1x512xf32>
    %9 = arith.maximumf %7, %8 : vector<1x512xf32>
    %10 = vector.shape_cast %9 : vector<1x512xf32> to vector<1x1x512xf32>
    %c0_6 = arith.constant 0 : index
    %c0_7 = arith.constant 0 : index
    %c0_8 = arith.constant 0 : index
    %11 = vector.load %arg4[%c0_6, %c0_7, %c0_8] : memref<1x1x512xf32, #tpu.memory_space<vmem>>, vector<1x1x512xf32>
    tpu.vector_store %arg4[%c0_6, %c0_7, %c0_8], %10 {strides = array<i32>} : memref<1x1x512xf32, #tpu.memory_space<vmem>>, vector<1x1x512xf32>,
    return
  }
  func.func @transform_0(%arg0: i32, %arg1: i32) -> (i32, i32) {
    %c0_i32 = arith.constant 0 : i32
    %c0_i32_0 = arith.constant 0 : i32
    return %c0_i32, %arg1 : i32, i32
  }
  func.func @transform_1(%arg0: i32, %arg1: i32) -> (i32, i32, i32) {
    %c0_i32 = arith.constant 0 : i32
    %c0_i32_0 = arith.constant 0 : i32
    %c0_i32_1 = arith.constant 0 : i32
    return %arg0, %c0_i32, %c0_i32_0 : i32, i32, i32
  }
  func.func @transform_2(%arg0: i32, %arg1: i32) -> (i32, i32, i32) {
    %c0_i32 = arith.constant 0 : i32
    %c0_i32_0 = arith.constant 0 : i32
    return %arg0, %c0_i32, %arg1 : i32, i32, i32
  }
}

</mosaic_0001>

<bundles_post_ra>
// kernel: tpu_custom_call.1
= control target key start
LH: loop header
LB: loop body
LE: loop exit
PB: predicated region body
PF: predicated region fallthrough
CT: control target
= control target key end

     0   :  { %6 = vsyncpa [#allocation3], 0  ;;  %s114_s0 = inlined_call_operand.hbm [shape: f32[8,128], index: 0, kind: input, shape index: {}]   ;;  %s115_s1 = inlined_call_operand.hbm [shape: f32[8,128], index: 1, kind: output, shape index: {}]  }
   0x1   :  { %7 = vsyncpa [#allocation4], 0  ;;  %s13_s8 = sshll.u32 %s114_s0, 4  ;;  %s96_s9 = smov [#allocation2]   ;;  %s14_s8 = int_to_ptr.hbm [resolvable:$true] %s13_s8 }
   0x2   :  { %s15_s10 = sshll.u32 %s96_s9, 4  ;;  %s16_s10 = int_to_ptr.vmem [resolvable:$true] %s15_s10 }
   0x3   :  { %18 = dma.hbm_to_vmem [thread:$0]  %s14_s8, 128, %s16_s10, [#allocation3]  }
   0x4   :  { %92 = dma.done.wait [#allocation3], 128  }
   0x5   :  { %93 = vsyncadd [#allocation3], 4294967168  ;;  %s97_s11 = smov [#allocation5]   ;;  %s32_s15 = sshll.u32 %s115_s1, 4  ;;  %v23_v0 = vld [vmem:[#allocation2] sm:$0xff]  ;;  %s33_s15 = int_to_ptr.hbm [resolvable:$true] %s32_s15 }
   0x6   :  { %s30_s12 = sshll.u32 %s97_s11, 4  ;;  %24 = vst [vmem:[#allocation5] sm:$0xff] %v23_v0  ;;  %s31_s12 = int_to_ptr.vmem [resolvable:$true] %s30_s12 }
   0x7   :  { %35 = dma.vmem_to_hbm [thread:$0]  %s31_s12, 128, %s33_s15, [#allocation4]  }
   0x8   :  { %94 = dma.done.wait [#allocation4], 128  }
   0x9   :  { %95 = vsyncadd [#allocation4], 4294967168 }
   0xa   :  { %40 = vsyncpa [#allocation3], 1 }
   0xb   :  { %41 = vsyncpa [#allocation4], 1 }

// kernel: tpu_custom_call.1
= control target key start
LH: loop header
LB: loop body
LE: loop exit
PB: predicated region body
PF: predicated region fallthrough
CT: control target
= control target key end

     0   :  { %7 = vsyncpa [#allocation3], 0  ;;  %s8228_s0 = inlined_call_operand.hbm [shape: bf16[512,512], index: 0, kind: input, shape index: {}]   ;;  %s8229_s1 = inlined_call_operand.hbm [shape: bf16[10,512,512], index: 1, kind: input, shape index: {}]   ;;  %s8230_s2 = inlined_call_operand.hbm [shape: f32[10,1,512], index: 2, kind: output, shape index: {}]  }
   0x1   :  { %8 = vsyncpa [#allocation6], 0 }
   0x2   :  { %10 = vsyncpa [#allocation6 + $0x1], 0 }
   0x3   :  { %11 = vsyncpa [#allocation4], 0 }
   0x4   :  { %13 = vsyncpa [#allocation4 + $0x1], 0  ;;  %s7034_s9 = smov 0   ;;  %s7036_s10 = smov 0  }
   0x5   :  { %s7038_s11 = smov 0   ;;  %s7040_s12 = smov 0  }
   0x6   :  { %s7042_s13 = smov 0   ;;  %s7044_s14 = smov 0  }
   0x7 LB: > { %s5368_s15 = sadd.s32 4294967295, %s7014_s14   ;;  %s5369_s16 = sadd.s32 4294967294, %s7014_s14   ;;  %s7014_s14 = sphi %s7044_s14, %s19_s14   ;;  %s7010_s13 = sphi %s7042_s13, %s8787_s13   ;;  %s7006_s12 = sphi %s7040_s12, %s8786_s12   ;;  %s7002_s11 = sphi %s7038_s11, %s8785_s11   ;;  %s6998_s10 = sphi %s7036_s10, %s8784_s10   ;;  %s6994_s9 = sphi %s7034_s9, %s8783_s9  }
   0x8   : > { %p77_p0 = scmp.ne.s32.totalorder %s6998_s10, %s6994_s9  ;;  %p7068_p1 = scmp.eq.s32.totalorder %s5368_s15, 0 }
   0x9   : > { %p7072_p2 = scmp.eq.s32.totalorder %s5368_s15, 9  ;;  %p109_p3 = scmp.eq.s32.totalorder %s5369_s16, 9 }
   0xa   : > { %p7078_p4 = por %p7068_p1, %p77_p0  ;;  %p5370_p5 = scmp.ge.s32.totalorder %s7014_s14, 1 }
   0xb   : > { %p7083_p6 = por %p109_p3, %p77_p0  ;;  %p116_p7 = scmp.lt.s32.totalorder %s7014_s14, 11 }
   0xc   : > { %s130_s23 = sshll.u32 %s8228_s0, 4  ;;  %s7016_s25 = smov [#allocation2]   ;;  %s131_s23 = int_to_ptr.hbm [resolvable:$true] %s130_s23 }
   0xd   : > { %p7091_p8 = pnand %p5370_p5, %p116_p7  ;;  %s132_s26 = sshll.u32 %s7016_s25, 4  ;;  %s133_s26 = int_to_ptr.vmem [resolvable:$true] %s132_s26 }
   0xe   : > { %s7017_s27 = smov 256   ;;  %s7018_s28 = smov 16  }
   0xf   : > { %p6673_p9 = pneg %p7091_p8  ;;  %s31_s29 = sadd.s32 1, %s7010_s13 }
  0x10   : > { %p33_p11 = scmp.ge.s32.totalorder %s31_s29, 10  ;;  %s64_s30 = sadd.s32 1, %s7002_s11 }
  0x11   : > { %p6674_p10 = pnand %p6673_p9, %p7068_p1  ;;  %p71_p12 = scmp.ne.s32.totalorder %s7002_s11, %s6998_s10 }
  0x12   : > { %p72_p13 = scmp.eq.s32.totalorder %s7014_s14, 0  ;;  %s8789_s29 = smov (%p33_p11, %s31_s29), 0 }
  0x13   : > { %6676 = dma.hbm_to_vmem [thread:$0]  (!%p6674_p10), %s131_s23, 16384, %s133_s26, [#allocation3], %s7017_s27, %s7017_s27, %s7018_s28  }
  0x14   : > { %p7109_p0 = por %p72_p13, %p71_p12  ;;  %p7115_p3 = por %p7072_p2, %p71_p12 }
  0x15   : > { %s61_s5 = ssub.s32 %s7010_s13, %s8789_s29  ;;  %p6686_p5 = scmp.lt.s32.totalorder %s7014_s14, 10 }
  0x16   : > { %p62_p7 = scmp.eq.s32.totalorder %s61_s5, 0  ;;  %s146_s6 = sand.u32 1, %s7002_s11  }
  0x17   : > { %s5373_s7 = sshll.u32 %s146_s6, 10  ;;  %s6408_s15 = sshll.u32 %s7010_s13, 10 }
  0x18   : > { %s7124_s8 = scalar_select %p62_p7, %s7002_s11, %s64_s30  }
  0x19   : > { %s155_s22 = scalar_lea.hbm %s8229_s1, %s6408_s15  ;;  %s150_s23 = scalar_lea.vmem [#allocation5], %s5373_s7 }
  0x1a   : > { %s158_s25 = sshll.u32 %s150_s23, 4  ;;  %s156_s18 = sshll.u32 %s155_s22, 4  ;;  %s159_s25 = int_to_ptr.vmem [resolvable:$true] %s158_s25  ;;  %s157_s18 = int_to_ptr.hbm [resolvable:$true] %s156_s18 }
  0x1b   : > { %p6678_p2 = pnand %p6686_p5, %p7109_p0  ;;  %s147_s26 = scalar_lea.sflag [#allocation6], %s146_s6 }
  0x1c   : > { %170 = sbr.rel (%p7091_p8) target bundleno = 2275 (0x8e3), region = 28 }
  0x1d   : > { %6680 = dma.hbm_to_vmem [thread:$0]  (!%p6678_p2), %s157_s18, 16384, %s159_s25, %s147_s26, %s7017_s27, %s7017_s27, %s7018_s28  }
  0x21   : > { %6981 = dma.done.wait (%p7068_p1), [#allocation3], 16384  }
  0x22   : > { %6983 = vsyncadd (%p7068_p1), [#allocation3], 4294950912  ;;  %s7142_s30 = sand.u32 1, %s6998_s10  }
  0x23   : > { %s5378_s3 = sshll.u32 %s7142_s30, 10  ;;  %s178_s5 = scalar_lea.sflag [#allocation6], %s7142_s30 }
  0x24   : > { %s7146_s6 = scalar_lea.vmem [#allocation5], %s5378_s3 }
  0x25   : > { %6985 = dma.done.wait (%p7078_p4), %s178_s5, 16384  }
  0x26   : > { %6987 = vsyncadd (%p7078_p4), %s178_s5, 4294950912  ;;  %v6006_v0 = vld [vmem:[#allocation2 + $0xe0] sm:$0xf]  ;;  %v6439_v1 = vld [vmem:[#allocation2 + $0xec] sm:$0xf0]  ;;  %vm5244_vm0 = vcmask 1040384  }
  0x27   : > { %v6134_v2 = vld [vmem:[#allocation2 + $0x1e0] sm:$0xf]  ;;  %v6007_v3 = vor.u32 %v6439_v1, %v6006_v0  ;;  %v6471_v4 = vld [vmem:[#allocation2 + $0x1ec] sm:$0xf0]  ;;  %s5379_s17 = sshll.u32 %s7142_s30, 2  ;;  %s6405_s19 = sshll.u32 %s7006_s12, 2 }
  0x28   : > { %v6262_v5 = vld [vmem:[#allocation2 + $0x2e0] sm:$0xf]  ;;  %v6503_v6 = vld [vmem:[#allocation2 + $0x2ec] sm:$0xf0]  ;;  %v6135_v7 = vor.u32 %v6471_v4, %v6134_v2  ;;  %s5269_s28 = scalar_lea.hbm %s8230_s2, %s6405_s19  ;;  %vm5246_vm1 = vcmask 1042434   ;;  %s202_s7 = scalar_lea.vmem [#allocation7], %s5379_s17 }
  0x29   : > { %v6263_v8 = vor.u32 %v6503_v6, %v6262_v5  ;;  %v6390_v9 = vld [vmem:[#allocation2 + $0x3e0] sm:$0xf]  ;;  %v6535_v10 = vld [vmem:[#allocation2 + $0x3ec] sm:$0xf0]  ;;  %1741 = vmatpush.bf16.msra.mxu0 %v6007_v3  ;;  %s5271_s15 = sshll.u32 %s202_s7, 4  ;;  %s5273_s16 = sshll.u32 %s5269_s28, 4  ;;  %s5272_s15 = int_to_ptr.vmem [resolvable:$true] %s5271_s15  ;;  %s5274_s16 = int_to_ptr.hbm [resolvable:$true] %s5273_s16 }
  0x2a   : > { %v5990_v11 = vld [vmem:[#allocation2 + $0xc0] sm:$0xf]  ;;  %v6391_v12 = vor.u32 %v6535_v10, %v6390_v9  ;;  %v6435_v13 = vld [vmem:[#allocation2 + $0xcc] sm:$0xf0]  ;;  %1910 = vmatpush.bf16.msra.mxu1 %v6135_v7  ;;  %vm5248_vm2 = vcmask 1041408   ;;  %s5257_s12 = scalar_lea.sflag [#allocation4], %s7142_s30 }
  0x2b   : > { %v6118_v14 = vld [vmem:[#allocation2 + $0x1c0] sm:$0xf]  ;;  %v6467_v15 = vld [vmem:[#allocation2 + $0x1cc] sm:$0xf0]  ;;  %2079 = vmatpush.bf16.msra.mxu2 %v6263_v8  ;;  %v5991_v16 = vor.u32 %v6435_v13, %v5990_v11  ;;  %s6942_s21 = sshra.s32 %s5274_s16, 4  ;;  %s6948_s18 = scalar_lea.hbm %s8230_s2, 40  ;;  %s6943_s21 = int_to_ptr.hbm [resolvable:$true] %s6942_s21 }
  0x2c   : > { %v6119_v17 = vor.u32 %v6467_v15, %v6118_v14  ;;  %v6246_v18 = vld [vmem:[#allocation2 + $0x2c0] sm:$0xf]  ;;  %v6499_v19 = vld [vmem:[#allocation2 + $0x2cc] sm:$0xf0]  ;;  %2248 = vmatpush.bf16.msra.mxu3 %v6391_v12  ;;  %s6944_s22 = scalar_lea.hbm %s6943_s21, 4  ;;  %p6949_p9 = scmp.lt.s32.totalorder %s6943_s21, %s8230_s2 }
  0x2d   : > { %v6374_v20 = vld [vmem:[#allocation2 + $0x3c0] sm:$0xf]  ;;  %v6247_v21 = vor.u32 %v6499_v19, %v6246_v18  ;;  %v6531_v22 = vld [vmem:[#allocation2 + $0x3cc] sm:$0xf0]  ;;  %1742 = vmatpush.bf16.msra.mxu0 %v5991_v16  ;;  %p6945_p1 = scmp.ne.s32.totalorder %s6943_s21, %s6944_s22  ;;  %p6950_p10 = scmp.lt.s32.totalorder %s6948_s18, %s6944_s22 }
  0x2e   : > { %v5974_v23 = vld [vmem:[#allocation2 + $0xa0] sm:$0xf]  ;;  %v6431_v24 = vld [vmem:[#allocation2 + $0xac] sm:$0xf0]  ;;  %v6375_v25 = vor.u32 %v6531_v22, %v6374_v20  ;;  %1911 = vmatpush.bf16.msra.mxu1 %v6119_v17 }
  0x2f   : > { %v6102_v26 = vld [vmem:[#allocation2 + $0x1a0] sm:$0xf]  ;;  %v6463_v27 = vld [vmem:[#allocation2 + $0x1ac] sm:$0xf0]  ;;  %v5975_v29 = vor.u32 %v6431_v24, %v5974_v23  ;;  %2080 = vmatpush.bf16.msra.mxu2 %v6247_v21  ;;  %p6946_p4 = pnand %p6945_p1, %p7115_p3  ;;  %p6951_p11 = por %p6950_p10, %p6949_p9 }
  0x30   : > { %v6230_v28 = vld [vmem:[#allocation2 + $0x2a0] sm:$0xf]  ;;  %v6495_v30 = vld [vmem:[#allocation2 + $0x2ac] sm:$0xf0]  ;;  %v6103_v33 = vor.u32 %v6463_v27, %v6102_v26  ;;  %2249 = vmatpush.bf16.msra.mxu3 %v6375_v25 }
  0x31   : > { %v6358_v31 = vld [vmem:[#allocation2 + $0x3a0] sm:$0xf]  ;;  %v6527_v32 = vld [vmem:[#allocation2 + $0x3ac] sm:$0xf0]  ;;  %v6231_v34 = vor.u32 %v6495_v30, %v6230_v28  ;;  %1743 = vmatpush.bf16.msra.mxu0 %v5975_v29  ;;  %v6537_v30 = vld [vmem:[%s7146_s6 + $0x4] sm:$0xf]  ;;  %p6947_p8 = pneg %p6946_p4 }
  0x32   : > { %v5958_v35 = vld [vmem:[#allocation2 + $0x80] sm:$0xf]  ;;  %v6427_v36 = vld [vmem:[#allocation2 + $0x8c] sm:$0xf0]  ;;  %v6359_v38 = vor.u32 %v6527_v32, %v6358_v31  ;;  %1912 = vmatpush.bf16.msra.mxu1 %v6103_v33  ;;  %v6501_v31 = vld [vmem:[#allocation2 + $0x2e4] sm:$0xf] }
  0x33   : > { %v6086_v37 = vld [vmem:[#allocation2 + $0x180] sm:$0xf]  ;;  %v6459_v39 = vld [vmem:[#allocation2 + $0x18c] sm:$0xf0]  ;;  %v5959_v44 = vor.u32 %v6427_v36, %v5958_v35  ;;  %2081 = vmatpush.bf16.msra.mxu2 %v6231_v34  ;;  %v6264_v32 = vld [vmem:[#allocation2 + $0x2f0] sm:$0xf0]  ;;  %p6952_p12 = pnand %p6951_p11, %p6947_p8 }
  0x34   : > { %v6214_v40 = vld [vmem:[#allocation2 + $0x280] sm:$0xf]  ;;  %v6491_v41 = vld [vmem:[#allocation2 + $0x28c] sm:$0xf0]  ;;  %v6087_v45 = vor.u32 %v6459_v39, %v6086_v37  ;;  %2250 = vmatpush.bf16.msra.mxu3 %v6359_v38  ;;  %v5384_v34 = vld [vmem:[%s7146_s6 + $0x10] sm:$0xf0] }
  0x35   : > { %v6342_v42 = vld [vmem:[#allocation2 + $0x380] sm:$0xf]  ;;  %v6523_v43 = vld [vmem:[#allocation2 + $0x38c] sm:$0xf0]  ;;  %v6215_v46 = vor.u32 %v6491_v41, %v6214_v40  ;;  %1744 = vmatpush.bf16.msra.mxu0 %v5959_v44  ;;  %v6533_v35 = vld [vmem:[#allocation2 + $0x3e4] sm:$0xf]  ;;  %v6267_v44 = vor.u32 %v6501_v31, %v6264_v32 }
  0x36   : > { %v5942_v47 = vld [vmem:[#allocation2 + $0x60] sm:$0xf]  ;;  %v6423_v48 = vld [vmem:[#allocation2 + $0x6c] sm:$0xf0]  ;;  %v6343_v50 = vor.u32 %v6523_v43, %v6342_v42  ;;  %1913 = vmatpush.bf16.msra.mxu1 %v6087_v45  ;;  %v6392_v36 = vld [vmem:[#allocation2 + $0x3f0] sm:$0xf0] }
  0x37   : > { %v6070_v49 = vld [vmem:[#allocation2 + $0x160] sm:$0xf]  ;;  %v6455_v51 = vld [vmem:[#allocation2 + $0x16c] sm:$0xf0]  ;;  %v5943_v56 = vor.u32 %v6423_v48, %v5942_v47  ;;  %2082 = vmatpush.bf16.msra.mxu2 %v6215_v46  ;;  %v5390_v39 = vld [vmem:[%s7146_s6 + $0x8] sm:$0xf]  ;;  %v6395_v48 = vor.u32 %v6533_v35, %v6392_v36 }
  0x38   : > { %v6198_v52 = vld [vmem:[#allocation2 + $0x260] sm:$0xf]  ;;  %v6487_v53 = vld [vmem:[#allocation2 + $0x26c] sm:$0xf0]  ;;  %v6071_v57 = vor.u32 %v6455_v51, %v6070_v49  ;;  %2251 = vmatpush.bf16.msra.mxu3 %v6343_v50  ;;  %v6540_v40 = vld [vmem:[%s7146_s6 + $0x14] sm:$0xf0]  ;;  %v7162_v51 = vor.u32 %v6537_v30, %v5384_v34 }
  0x39   : > { %v6326_v54 = vld [vmem:[#allocation2 + $0x360] sm:$0xf]  ;;  %v6519_v55 = vld [vmem:[#allocation2 + $0x36c] sm:$0xf0]  ;;  %v6199_v58 = vor.u32 %v6487_v53, %v6198_v52  ;;  %1745 = vmatpush.bf16.msra.mxu0 %v5943_v56  ;;  %v6538_v41 = vld [vmem:[%s7146_s6 + $0xc] sm:$0xf]  ;;  %v7164_v52 = vor.u32 %v6540_v40, %v5390_v39 }
  0x3a   : > { %v5926_v59 = vld [vmem:[#allocation2 + $0x40] sm:$0xf]  ;;  %v6419_v60 = vld [vmem:[#allocation2 + $0x4c] sm:$0xf0]  ;;  %v6327_v62 = vor.u32 %v6519_v55, %v6326_v54  ;;  %1914 = vmatpush.bf16.msra.mxu1 %v6071_v57  ;;  %v5392_v43 = vld [vmem:[%s7146_s6 + $0x18] sm:$0xf0] }
  0x3b   : > { %v6054_v61 = vld [vmem:[#allocation2 + $0x140] sm:$0xf]  ;;  %v6451_v63 = vld [vmem:[#allocation2 + $0x14c] sm:$0xf0]  ;;  %v5927_v4 = vor.u32 %v6419_v60, %v5926_v59  ;;  %2083 = vmatpush.bf16.msra.mxu2 %v6199_v58  ;;  %v6437_v45 = vld [vmem:[#allocation2 + $0xe4] sm:$0xf]  ;;  %v7166_v53 = vor.u32 %v6538_v41, %v5392_v43 }
  0x3c   : > { %v6182_v0 = vld [vmem:[#allocation2 + $0x240] sm:$0xf]  ;;  %v6483_v1 = vld [vmem:[#allocation2 + $0x24c] sm:$0xf0]  ;;  %v6055_v5 = vor.u32 %v6451_v63, %v6054_v61  ;;  %2252 = vmatpush.bf16.msra.mxu3 %v6327_v62  ;;  %v6008_v46 = vld [vmem:[#allocation2 + $0xf0] sm:$0xf0] }
  0x3d   : > { %v6310_v2 = vld [vmem:[#allocation2 + $0x340] sm:$0xf]  ;;  %v6515_v3 = vld [vmem:[#allocation2 + $0x34c] sm:$0xf0]  ;;  %v6183_v6 = vor.u32 %v6483_v1, %v6182_v0  ;;  %1746 = vmatpush.bf16.msra.mxu0 %v5927_v4  ;;  %v6469_v49 = vld [vmem:[#allocation2 + $0x1e4] sm:$0xf]  ;;  %v6011_v54 = vor.u32 %v6437_v45, %v6008_v46 }
  0x3e   : > { %v5910_v7 = vld [vmem:[#allocation2 + $0x20] sm:$0xf]  ;;  %v6415_v8 = vld [vmem:[#allocation2 + $0x2c] sm:$0xf0]  ;;  %v6311_v10 = vor.u32 %v6515_v3, %v6310_v2  ;;  %1915 = vmatpush.bf16.msra.mxu1 %v6055_v5  ;;  %v6136_v50 = vld [vmem:[#allocation2 + $0x1f0] sm:$0xf0] }
  0x3f   : > { %v6038_v9 = vld [vmem:[#allocation2 + $0x120] sm:$0xf]  ;;  %v6447_v11 = vld [vmem:[#allocation2 + $0x12c] sm:$0xf0]  ;;  %v5911_v17 = vor.u32 %v6415_v8, %v5910_v7  ;;  %2084 = vmatpush.bf16.msra.mxu2 %v6183_v6  ;;  %v6139_v55 = vor.u32 %v6469_v49, %v6136_v50  ;;  %v6541_v58 = vld [vmem:[%s7146_s6 + $0x24] sm:$0xf] }
  0x40   : > { %v6166_v12 = vld [vmem:[#allocation2 + $0x220] sm:$0xf]  ;;  %v6479_v13 = vld [vmem:[#allocation2 + $0x22c] sm:$0xf0]  ;;  %v6039_v21 = vor.u32 %v6447_v11, %v6038_v9  ;;  %2253 = vmatpush.bf16.msra.mxu3 %v6311_v10  ;;  %v5400_v59 = vld [vmem:[%s7146_s6 + $0x30] sm:$0xf0] }
  0x41   : > { %v6294_v14 = vld [vmem:[#allocation2 + $0x320] sm:$0xf]  ;;  %v6511_v15 = vld [vmem:[#allocation2 + $0x32c] sm:$0xf0]  ;;  %v6167_v22 = vor.u32 %v6479_v13, %v6166_v12  ;;  %1747 = vmatpush.bf16.msra.mxu0 %v5911_v17  ;;  %v5406_v60 = vld [vmem:[%s7146_s6 + $0x28] sm:$0xf]  ;;  %v7182_v1 = vor.u32 %v6541_v58, %v5400_v59 }
  0x42   : > { %v5894_v16 = vld [vmem:[#allocation2] sm:$0xf]  ;;  %v6411_v18 = vld [vmem:[#allocation2 + $0xc] sm:$0xf0]  ;;  %v6295_v26 = vor.u32 %v6511_v15, %v6294_v14  ;;  %1916 = vmatpush.bf16.msra.mxu1 %v6039_v21  ;;  %v6544_v61 = vld [vmem:[%s7146_s6 + $0x34] sm:$0xf0] }
  0x43   : > { %v6022_v19 = vld [vmem:[#allocation2 + $0x100] sm:$0xf]  ;;  %v6443_v20 = vld [vmem:[#allocation2 + $0x10c] sm:$0xf0]  ;;  %v5895_v33 = vor.u32 %v6411_v18, %v5894_v16  ;;  %2085 = vmatpush.bf16.msra.mxu2 %v6167_v22  ;;  %v6542_v62 = vld [vmem:[%s7146_s6 + $0x2c] sm:$0xf]  ;;  %v7184_v2 = vor.u32 %v6544_v61, %v5406_v60 }
  0x44   : > { %v6150_v23 = vld [vmem:[#allocation2 + $0x200] sm:$0xf]  ;;  %v6475_v24 = vld [vmem:[#allocation2 + $0x20c] sm:$0xf0]  ;;  %v6023_v37 = vor.u32 %v6443_v20, %v6022_v19  ;;  %2254 = vmatpush.bf16.msra.mxu3 %v6295_v26  ;;  %v5408_v63 = vld [vmem:[%s7146_s6 + $0x38] sm:$0xf0] }
  0x45   : > { %v6278_v25 = vld [vmem:[#allocation2 + $0x300] sm:$0xf]  ;;  %v6507_v27 = vld [vmem:[#allocation2 + $0x30c] sm:$0xf0]  ;;  %v6151_v38 = vor.u32 %v6475_v24, %v6150_v23  ;;  %1748 = vmatpush.bf16.msra.mxu0 %v5895_v33  ;;  %v7186_v3 = vor.u32 %v6542_v62, %v5408_v63  ;;  %v6545_v6 = vld [vmem:[%s7146_s6 + $0x44] sm:$0xf] }
  0x46   : > { %v5382_v28 = vld [vmem:[%s7146_s6] sm:$0xf]  ;;  %v6539_v29 = vld [vmem:[%s7146_s6 + $0xc] sm:$0xf0]  ;;  %v6279_v42 = vor.u32 %v6507_v27, %v6278_v25  ;;  %1917 = vmatpush.bf16.msra.mxu1 %v6023_v37  ;;  %v5416_v7 = vld [vmem:[%s7146_s6 + $0x50] sm:$0xf0] }
  0x47   : > { %v7160_v47 = vor.u32 %v6539_v29, %v5382_v28  ;;  %2086 = vmatpush.bf16.msra.mxu2 %v6151_v38  ;;  %v5398_v56 = vld [vmem:[%s7146_s6 + $0x20] sm:$0xf]  ;;  %v6543_v57 = vld [vmem:[%s7146_s6 + $0x2c] sm:$0xf0]  ;;  %v5422_v8 = vld [vmem:[%s7146_s6 + $0x48] sm:$0xf]  ;;  %v7202_v13 = vor.u32 %v6545_v6, %v5416_v7 }
  0x48   : > { %2255 = vmatpush.bf16.msra.mxu3 %v6279_v42  ;;  %v7180_v0 = vor.u32 %v6543_v57, %v5398_v56  ;;  %v5414_v4 = vld [vmem:[%s7146_s6 + $0x40] sm:$0xf]  ;;  %v6547_v5 = vld [vmem:[%s7146_s6 + $0x4c] sm:$0xf0]  ;;  %v6548_v9 = vld [vmem:[%s7146_s6 + $0x54] sm:$0xf0] }
  0x49   : > { %1749 = vmatmul.bf16.vlgmr.msra.gmra.mxu0 %v7160_v47  ;;  %1918 = vmatmul.bf16.vlgmr.msra.gmra.mxu1 %v7162_v51  ;;  %v6546_v10 = vld [vmem:[%s7146_s6 + $0x4c] sm:$0xf]  ;;  %v5424_v11 = vld [vmem:[%s7146_s6 + $0x58] sm:$0xf0]  ;;  %v7200_v12 = vor.u32 %v6547_v5, %v5414_v4  ;;  %v7204_v14 = vor.u32 %v6548_v9, %v5422_v8  ;;  %v6497_v16 = vld [vmem:[#allocation2 + $0x2c4] sm:$0xf] }
  0x4a   : > { %2087 = vmatmul.bf16.vlgmr.msra.gmra.mxu2 %v7164_v52  ;;  %2417 = vmatpush.bf16.msrb.mxu0 %v6011_v54  ;;  %v7206_v15 = vor.u32 %v6546_v10, %v5424_v11  ;;  %v6248_v17 = vld [vmem:[#allocation2 + $0x2d0] sm:$0xf0]  ;;  %v6529_v18 = vld [vmem:[#allocation2 + $0x3c4] sm:$0xf]  ;;  %v5430_v28 = vld [vmem:[%s7146_s6 + $0x60] sm:$0xf] }
  0x4b   : > { %2755 = vmatpush.bf16.msrb.mxu2 %v6267_v44  ;;  %2256 = vmatmul.bf16.vlgmr.msra.gmra.mxu3 %v7166_v53  ;;  %v6251_v19 = vor.u32 %v6497_v16, %v6248_v17  ;;  %v6376_v20 = vld [vmem:[#allocation2 + $0x3d0] sm:$0xf0]  ;;  %v6433_v21 = vld [vmem:[#allocation2 + $0xc4] sm:$0xf]  ;;  %v6551_v29 = vld [vmem:[%s7146_s6 + $0x6c] sm:$0xf0] }
  0x4c   : > { %2924 = vmatpush.bf16.msrb.mxu3 %v6395_v48  ;;  %2586 = vmatpush.bf16.msrb.mxu1 %v6139_v55  ;;  %8421 = vst [vmem:[#allocation11_spill] sm:$0xff] %v7206_v15  ;;  %v5992_v22 = vld [vmem:[#allocation2 + $0xd0] sm:$0xf0]  ;;  %v6379_v23 = vor.u32 %v6529_v18, %v6376_v20  ;;  %v6465_v25 = vld [vmem:[#allocation2 + $0x1c4] sm:$0xf]  ;;  %v7220_v36 = vor.u32 %v6551_v29, %v5430_v28 }
  0x4d   : > { %v5995_v24 = vor.u32 %v6433_v21, %v5992_v22  ;;  %v6120_v26 = vld [vmem:[#allocation2 + $0x1d0] sm:$0xf0]  ;;  %v6549_v30 = vld [vmem:[%s7146_s6 + $0x64] sm:$0xf]  ;;  %v5438_v32 = vld [vmem:[%s7146_s6 + $0x68] sm:$0xf] }
  0x4e   : > { %v6123_v27 = vor.u32 %v6465_v25, %v6120_v26  ;;  %v5432_v31 = vld [vmem:[%s7146_s6 + $0x70] sm:$0xf0]  ;;  %v6552_v33 = vld [vmem:[%s7146_s6 + $0x74] sm:$0xf0]  ;;  %v6550_v34 = vld [vmem:[%s7146_s6 + $0x6c] sm:$0xf] }
  0x4f   : > { %2756 = vmatpush.bf16.msrb.mxu2 %v6251_v19  ;;  %2418 = vmatpush.bf16.msrb.mxu0 %v5995_v24  ;;  %v5440_v35 = vld [vmem:[%s7146_s6 + $0x78] sm:$0xf0]  ;;  %v7222_v37 = vor.u32 %v6549_v30, %v5432_v31  ;;  %v7224_v38 = vor.u32 %v6552_v33, %v5438_v32  ;;  %v5446_v40 = vld [vmem:[%s7146_s6 + $0x80] sm:$0xf]  ;;  %v6555_v41 = vld [vmem:[%s7146_s6 + $0x8c] sm:$0xf0] }
  0x50   : > { %2925 = vmatpush.bf16.msrb.mxu3 %v6379_v23  ;;  %2587 = vmatpush.bf16.msrb.mxu1 %v6123_v27  ;;  %v7226_v39 = vor.u32 %v6550_v34, %v5440_v35  ;;  %v6553_v42 = vld [vmem:[%s7146_s6 + $0x84] sm:$0xf]  ;;  %v5448_v43 = vld [vmem:[%s7146_s6 + $0x90] sm:$0xf0]  ;;  %v5454_v44 = vld [vmem:[%s7146_s6 + $0x88] sm:$0xf]  ;;  %v7240_v49 = vor.u32 %v6555_v41, %v5446_v40 }
  0x51   : > { %v6556_v45 = vld [vmem:[%s7146_s6 + $0x94] sm:$0xf0]  ;;  %v6554_v46 = vld [vmem:[%s7146_s6 + $0x8c] sm:$0xf]  ;;  %v5456_v48 = vld [vmem:[%s7146_s6 + $0x98] sm:$0xf0]  ;;  %v7242_v50 = vor.u32 %v6553_v42, %v5448_v43 }
  0x52   : > { %v7244_v54 = vor.u32 %v6556_v45, %v5454_v44  ;;  %v7246_v55 = vor.u32 %v6554_v46, %v5456_v48  ;;  %v5462_v56 = vld [vmem:[%s7146_s6 + $0xa0] sm:$0xf]  ;;  %v6559_v57 = vld [vmem:[%s7146_s6 + $0xac] sm:$0xf0]  ;;  %v6557_v58 = vld [vmem:[%s7146_s6 + $0xa4] sm:$0xf] }
  0x53   : > { %v5464_v59 = vld [vmem:[%s7146_s6 + $0xb0] sm:$0xf0]  ;;  %v5470_v60 = vld [vmem:[%s7146_s6 + $0xa8] sm:$0xf]  ;;  %v6560_v61 = vld [vmem:[%s7146_s6 + $0xb4] sm:$0xf0]  ;;  %v7260_v4 = vor.u32 %v6559_v57, %v5462_v56 }
  0x54   : > { %v6558_v62 = vld [vmem:[%s7146_s6 + $0xac] sm:$0xf]  ;;  %v5472_v63 = vld [vmem:[%s7146_s6 + $0xb8] sm:$0xf0]  ;;  %v7262_v5 = vor.u32 %v6557_v58, %v5464_v59  ;;  %v7264_v6 = vor.u32 %v6560_v61, %v5470_v60  ;;  %v5478_v8 = vld [vmem:[%s7146_s6 + $0xc0] sm:$0xf] }
  0x55   : > { %v7266_v7 = vor.u32 %v6558_v62, %v5472_v63  ;;  %v6563_v9 = vld [vmem:[%s7146_s6 + $0xcc] sm:$0xf0]  ;;  %v6561_v10 = vld [vmem:[%s7146_s6 + $0xc4] sm:$0xf]  ;;  %v5480_v11 = vld [vmem:[%s7146_s6 + $0xd0] sm:$0xf0] }
  0x56   : > { %v5486_v16 = vld [vmem:[%s7146_s6 + $0xc8] sm:$0xf]  ;;  %v6564_v17 = vld [vmem:[%s7146_s6 + $0xd4] sm:$0xf0]  ;;  %v6562_v18 = vld [vmem:[%s7146_s6 + $0xcc] sm:$0xf]  ;;  %v7280_v20 = vor.u32 %v6563_v9, %v5478_v8  ;;  %v7282_v21 = vor.u32 %v6561_v10, %v5480_v11 }
  0x57   : > { %v5488_v19 = vld [vmem:[%s7146_s6 + $0xd8] sm:$0xf0]  ;;  %v7284_v22 = vor.u32 %v6564_v17, %v5486_v16  ;;  %v6493_v24 = vld [vmem:[#allocation2 + $0x2a4] sm:$0xf]  ;;  %v6232_v25 = vld [vmem:[#allocation2 + $0x2b0] sm:$0xf0] }
  0x58   : > { %v7286_v23 = vor.u32 %v6562_v18, %v5488_v19  ;;  %v6525_v26 = vld [vmem:[#allocation2 + $0x3a4] sm:$0xf]  ;;  %v6235_v27 = vor.u32 %v6493_v24, %v6232_v25  ;;  %v6360_v28 = vld [vmem:[#allocation2 + $0x3b0] sm:$0xf0]  ;;  %v5494_v30 = vld [vmem:[%s7146_s6 + $0xe0] sm:$0xf] }
  0x59   : > { %1754 = vmatmul.bf16.gmra.mxu0 %v7180_v0  ;;  %1923 = vmatmul.bf16.gmra.mxu1 %v7182_v1  ;;  %v6363_v29 = vor.u32 %v6525_v26, %v6360_v28  ;;  %v6567_v31 = vld [vmem:[%s7146_s6 + $0xec] sm:$0xf0]  ;;  %v6565_v32 = vld [vmem:[%s7146_s6 + $0xe4] sm:$0xf]  ;;  %v5496_v33 = vld [vmem:[%s7146_s6 + $0xf0] sm:$0xf0] }
  0x5a   : > { %2092 = vmatmul.bf16.gmra.mxu2 %v7184_v2  ;;  %v6429_v34 = vld [vmem:[#allocation2 + $0xa4] sm:$0xf]  ;;  %v5976_v35 = vld [vmem:[#allocation2 + $0xb0] sm:$0xf0]  ;;  %v5502_v41 = vld [vmem:[%s7146_s6 + $0xe8] sm:$0xf]  ;;  %v7300_v56 = vor.u32 %v6567_v31, %v5494_v30  ;;  %v7302_v57 = vor.u32 %v6565_v32, %v5496_v33 }
  0x5b   : > { %2261 = vmatmul.bf16.gmra.mxu3 %v7186_v3  ;;  %2757 = vmatpush.bf16.msrb.mxu2 %v6235_v27  ;;  %v6461_v40 = vld [vmem:[#allocation2 + $0x1a4] sm:$0xf]  ;;  %v6568_v42 = vld [vmem:[%s7146_s6 + $0xf4] sm:$0xf0]  ;;  %v5979_v43 = vor.u32 %v6429_v34, %v5976_v35  ;;  %v6104_v44 = vld [vmem:[#allocation2 + $0x1b0] sm:$0xf0] }
  0x5c   : > { %2926 = vmatpush.bf16.msrb.mxu3 %v6363_v29  ;;  %v6566_v45 = vld [vmem:[%s7146_s6 + $0xec] sm:$0xf]  ;;  %v5504_v46 = vld [vmem:[%s7146_s6 + $0xf8] sm:$0xf0]  ;;  %v6107_v48 = vor.u32 %v6461_v40, %v6104_v44  ;;  %v7304_v58 = vor.u32 %v6568_v42, %v5502_v41  ;;  %v5510_v60 = vld [vmem:[%s7146_s6 + $0x100] sm:$0xf] }
  0x5d   : > { %2419 = vmatpush.bf16.msrb.mxu0 %v5979_v43  ;;  %v7306_v59 = vor.u32 %v6566_v45, %v5504_v46  ;;  %v6571_v61 = vld [vmem:[%s7146_s6 + $0x10c] sm:$0xf0]  ;;  %v6569_v62 = vld [vmem:[%s7146_s6 + $0x104] sm:$0xf]  ;;  %v5512_v63 = vld [vmem:[%s7146_s6 + $0x110] sm:$0xf0] }
  0x5e   : > { %2588 = vmatpush.bf16.msrb.mxu1 %v6107_v48  ;;  %v5518_v8 = vld [vmem:[%s7146_s6 + $0x108] sm:$0xf]  ;;  %v6572_v9 = vld [vmem:[%s7146_s6 + $0x114] sm:$0xf0]  ;;  %v6570_v10 = vld [vmem:[%s7146_s6 + $0x10c] sm:$0xf]  ;;  %v7320_v16 = vor.u32 %v6571_v61, %v5510_v60  ;;  %v7322_v18 = vor.u32 %v6569_v62, %v5512_v63 }
  0x5f   : > { %v5520_v11 = vld [vmem:[%s7146_s6 + $0x118] sm:$0xf0]  ;;  %v7324_v19 = vor.u32 %v6572_v9, %v5518_v8  ;;  %v205_v34 = vld [vmem:[#allocation2] sm:$0xff]  ;;  %v207_v35 = vld [vmem:[#allocation2 + $0x10] sm:$0xff] }
  0x60   : > { %8422 = vst [vmem:[#allocation12_spill] sm:$0xff] %v7322_v18  ;;  %v7326_v25 = vor.u32 %v6570_v10, %v5520_v11  ;;  %v5526_v40 = vld [vmem:[%s7146_s6 + $0x120] sm:$0xf]  ;;  %v6575_v41 = vld [vmem:[%s7146_s6 + $0x12c] sm:$0xf0]  ;;  %v4445_v60 = vunpack.c.l.bf16 %v205_v34  ;;  %v4449_v9 = vunpack.c.l.bf16 %v207_v35 }
  0x61   : > { %8423 = vst [vmem:[#allocation13_spill] sm:$0xff] %v7324_v19  ;;  %v6573_v42 = vld [vmem:[%s7146_s6 + $0x124] sm:$0xf]  ;;  %v5528_v43 = vld [vmem:[%s7146_s6 + $0x130] sm:$0xf0]  ;;  %v7340_v62 = vor.u32 %v6575_v41, %v5526_v40 }
  0x62   : > { %8424 = vst [vmem:[#allocation14_spill] sm:$0xff] %v7326_v25  ;;  %v5534_v44 = vld [vmem:[%s7146_s6 + $0x128] sm:$0xf]  ;;  %v6576_v45 = vld [vmem:[%s7146_s6 + $0x134] sm:$0xf0]  ;;  %v7342_v11 = vor.u32 %v6573_v42, %v5528_v43 }
  0x63   : > { %v6574_v46 = vld [vmem:[%s7146_s6 + $0x12c] sm:$0xf]  ;;  %v5536_v48 = vld [vmem:[%s7146_s6 + $0x138] sm:$0xf0]  ;;  %8425 = vst [vmem:[#allocation15_spill] sm:$0xff] %v7340_v62 }
  0x64   : > { %8426 = vst [vmem:[#allocation16_spill] sm:$0xff] %v7342_v11 }
  0x69   : > { %1759 = vmatmul.bf16.gmra.mxu0 %v7200_v12  ;;  %1928 = vmatmul.bf16.gmra.mxu1 %v7202_v13 }
  0x6a   : > { %2097 = vmatmul.bf16.gmra.mxu2 %v7204_v14 }
  0x6b   : > { %2266 = vmatmul.bf16.gmra.mxu3 %v7206_v15 }
  0x79   : > { %1764 = vmatmul.bf16.gmra.mxu0 %v7220_v36  ;;  %1933 = vmatmul.bf16.gmra.mxu1 %v7222_v37 }
  0x7a   : > { %2102 = vmatmul.bf16.gmra.mxu2 %v7224_v38 }
  0x7b   : > { %2271 = vmatmul.bf16.gmra.mxu3 %v7226_v39 }
  0x89   : > { %1769 = vmatmul.bf16.gmra.mxu0 %v7240_v49  ;;  %1938 = vmatmul.bf16.gmra.mxu1 %v7242_v50 }
  0x8a   : > { %2107 = vmatmul.bf16.gmra.mxu2 %v7244_v54 }
  0x8b   : > { %2276 = vmatmul.bf16.gmra.mxu3 %v7246_v55 }
  0x99   : > { %1774 = vmatmul.bf16.gmra.mxu0 %v7260_v4  ;;  %1943 = vmatmul.bf16.gmra.mxu1 %v7262_v5 }
  0x9a   : > { %2112 = vmatmul.bf16.gmra.mxu2 %v7264_v6 }
  0x9b   : > { %2281 = vmatmul.bf16.gmra.mxu3 %v7266_v7 }
  0xa9   : > { %1779 = vmatmul.bf16.gmra.mxu0 %v7280_v20  ;;  %1948 = vmatmul.bf16.gmra.mxu1 %v7282_v21 }
  0xaa   : > { %2117 = vmatmul.bf16.gmra.mxu2 %v7284_v22 }
  0xab   : > { %2286 = vmatmul.bf16.gmra.mxu3 %v7286_v23 }
  0xb9   : > { %1784 = vmatmul.bf16.gmra.mxu0 %v7300_v56  ;;  %1953 = vmatmul.bf16.gmra.mxu1 %v7302_v57 }
  0xba   : > { %2122 = vmatmul.bf16.gmra.mxu2 %v7304_v58 }
  0xbb   : > { %2291 = vmatmul.bf16.gmra.mxu3 %v7306_v59 }
  0xc6   : > { %v1750_v17 = vpop.f32.mrf.mxu0  ;;  %v1919_v24 = vpop.f32.mrf.mxu1 }
  0xc7   : > { %v1920_v26 = vadd.f32 %v1919_v24, %v1750_v17  ;;  %v7344_v17 = vor.u32 %v6576_v45, %v5534_v44  ;;  %v211_v45 = vld [vmem:[#allocation2 + $0x30] sm:$0xff] }
  0xc9   : > { %1789 = vmatmul.bf16.gmra.mxu0 %v7320_v16  ;;  %1958 = vmatmul.bf16.gmra.mxu1 %v7322_v18  ;;  %8427 = vst [vmem:[#allocation17_spill] sm:$0xff] %v7344_v17 }
  0xca   : > { %2127 = vmatmul.bf16.gmra.mxu2 %v7324_v19 }
  0xcb   : > { %2296 = vmatmul.bf16.gmra.mxu3 %v7326_v25 }
  0xcd   : > { %v2088_v27 = vpop.f32.mrf.mxu2 }
  0xce   : > { %v2089_v28 = vadd.f32 %v2088_v27, %v1920_v26  ;;  %v2257_v29 = vpop.f32.mrf.mxu3  ;;  %v1752_v30 = vpop.f32.mrf.mxu0  ;;  %v7346_v26 = vor.u32 %v6574_v46, %v5536_v48  ;;  %v5542_v48 = vld [vmem:[%s7146_s6 + $0x140] sm:$0xf] }
  0xcf   : > { %v1921_v31 = vpop.f32.mrf.mxu1 }
  0xd0   : > { %v2258_v32 = vadd.f32 %v2257_v29, %v2089_v28  ;;  %v1922_v33 = vadd.f32 %v1921_v31, %v1752_v30  ;;  %8428 = vst [vmem:[#allocation18_spill] sm:$0xff] %v7346_v26  ;;  %v209_v31 = vld [vmem:[#allocation2 + $0x20] sm:$0xff] }
  0xd2   : > { %v4701_v29 = vmul.f32 %v4445_v60, %v2258_v32  ;;  %v4453_v32 = vunpack.c.l.bf16 %v209_v31  ;;  %v6579_v60 = vld [vmem:[%s7146_s6 + $0x14c] sm:$0xf0] }
  0xd5   : > { %v2090_v61 = vpop.f32.mrf.mxu2 }
  0xd6   : > { %v2091_v63 = vadd.f32 %v2090_v61, %v1922_v33  ;;  %v2259_v8 = vpop.f32.mrf.mxu3  ;;  %v1755_v10 = vpop.f32.mrf.mxu0  ;;  %v6577_v61 = vld [vmem:[%s7146_s6 + $0x144] sm:$0xf] }
  0xd7   : > { %v1924_v24 = vpop.f32.mrf.mxu1 }
  0xd8   : > { %v2260_v27 = vadd.f32 %v2259_v8, %v2091_v63  ;;  %v1925_v28 = vadd.f32 %v1924_v24, %v1755_v10  ;;  %v5544_v63 = vld [vmem:[%s7146_s6 + $0x150] sm:$0xf0]  ;;  %v5550_v8 = vld [vmem:[%s7146_s6 + $0x148] sm:$0xf]  ;;  %v6578_v24 = vld [vmem:[%s7146_s6 + $0x14c] sm:$0xf] }
  0xd9   : > { %1794 = vmatmul.bf16.gmra.mxu0 %v7340_v62  ;;  %1963 = vmatmul.bf16.gmra.mxu1 %v7342_v11 }
  0xda   : > { %v4705_v30 = vmul.f32 %v4449_v9, %v2260_v27  ;;  %2132 = vmatmul.bf16.gmra.mxu2 %v7344_v17  ;;  %v6580_v9 = vld [vmem:[%s7146_s6 + $0x154] sm:$0xf0]  ;;  %v5552_v27 = vld [vmem:[%s7146_s6 + $0x158] sm:$0xf0]  ;;  %v6457_v17 = vld [vmem:[#allocation2 + $0x184] sm:$0xf] }
  0xdb   : > { %2301 = vmatmul.bf16.gmra.mxu3 %v7346_v26 }
  0xdc   : > { %v4957_v33 = vadd.f32 %v4705_v30, %v4701_v29  ;;  %v7360_v29 = vor.u32 %v6579_v60, %v5542_v48  ;;  %v6216_v48 = vld [vmem:[#allocation2 + $0x290] sm:$0xf0]  ;;  %v6521_v60 = vld [vmem:[#allocation2 + $0x384] sm:$0xf] }
  0xdd   : > { %v2093_v34 = vpop.f32.mrf.mxu2 }
  0xde   : > { %v2094_v35 = vadd.f32 %v2093_v34, %v1925_v28  ;;  %v2262_v40 = vpop.f32.mrf.mxu3  ;;  %v1757_v41 = vpop.f32.mrf.mxu0  ;;  %8429 = vst [vmem:[#allocation19_spill] sm:$0xff] %v7360_v29  ;;  %v4457_v34 = vunpack.c.l.bf16 %v211_v45 }
  0xdf   : > { %v1926_v42 = vpop.f32.mrf.mxu1 }
  0xe0   : > { %v2263_v43 = vadd.f32 %v2262_v40, %v2094_v35  ;;  %v1927_v44 = vadd.f32 %v1926_v42, %v1757_v41  ;;  %v7362_v35 = vor.u32 %v6577_v61, %v5544_v63  ;;  %v7364_v40 = vor.u32 %v6580_v9, %v5550_v8 }
  0xe1   : > { %v7366_v41 = vor.u32 %v6578_v24, %v5552_v27 }
  0xe2   : > { %v4709_v46 = vmul.f32 %v4453_v32, %v2263_v43  ;;  %8430 = vst [vmem:[#allocation20_spill] sm:$0xff] %v7362_v35 }
  0xe3   : > { %8431 = vst [vmem:[#allocation21_spill] sm:$0xff] %v7364_v40 }
  0xe4   : > { %v4958_v10 = vadd.f32 %v4957_v33, %v4709_v46  ;;  %8432 = vst [vmem:[#allocation22_spill] sm:$0xff] %v7366_v41  ;;  %v6489_v46 = vld [vmem:[#allocation2 + $0x284] sm:$0xf] }
  0xe5   : > { %v2095_v28 = vpop.f32.mrf.mxu2  ;;  %v6219_v63 = vor.u32 %v6489_v46, %v6216_v48  ;;  %v6581_v46 = vld [vmem:[%s7146_s6 + $0x164] sm:$0xf]  ;;  %v5560_v48 = vld [vmem:[%s7146_s6 + $0x170] sm:$0xf0] }
  0xe6   : > { %v2096_v30 = vadd.f32 %v2095_v28, %v1927_v44  ;;  %v2264_v31 = vpop.f32.mrf.mxu3  ;;  %v1760_v26 = vpop.f32.mrf.mxu0  ;;  %v213_v44 = vld [vmem:[#allocation2 + $0x40] sm:$0xff] }
  0xe7   : > { %v1929_v32 = vpop.f32.mrf.mxu1  ;;  %v4461_v24 = vunpack.c.l.bf16 %v213_v44  ;;  %2758 = vmatpush.bf16.msrb.mxu2 %v6219_v63 }
  0xe8   : > { %v2265_v42 = vadd.f32 %v2264_v31, %v2096_v30  ;;  %v1930_v43 = vadd.f32 %v1929_v32, %v1760_v26  ;;  %v6344_v26 = vld [vmem:[#allocation2 + $0x390] sm:$0xf0]  ;;  %v5558_v32 = vld [vmem:[%s7146_s6 + $0x160] sm:$0xf] }
  0xe9   : > { %1799 = vmatmul.bf16.gmra.mxu0 %v7360_v29  ;;  %1968 = vmatmul.bf16.gmra.mxu1 %v7362_v35  ;;  %v6347_v28 = vor.u32 %v6521_v60, %v6344_v26  ;;  %v6425_v35 = vld [vmem:[#allocation2 + $0x84] sm:$0xf]  ;;  %v5960_v29 = vld [vmem:[#allocation2 + $0x90] sm:$0xf0] }
  0xea   : > { %v4713_v33 = vmul.f32 %v4457_v34, %v2265_v42  ;;  %2137 = vmatmul.bf16.gmra.mxu2 %v7364_v40  ;;  %v215_v34 = vld [vmem:[#allocation2 + $0x50] sm:$0xff]  ;;  %v5568_v40 = vld [vmem:[%s7146_s6 + $0x178] sm:$0xf0] }
  0xeb   : > { %2306 = vmatmul.bf16.gmra.mxu3 %v7366_v41  ;;  %v6583_v42 = vld [vmem:[%s7146_s6 + $0x16c] sm:$0xf0]  ;;  %v6582_v41 = vld [vmem:[%s7146_s6 + $0x16c] sm:$0xf]  ;;  %v4465_v26 = vunpack.c.l.bf16 %v215_v34 }
  0xec   : > { %v4959_v45 = vadd.f32 %v4958_v10, %v4713_v33  ;;  %2927 = vmatpush.bf16.msrb.mxu3 %v6347_v28  ;;  %v7380_v63 = vor.u32 %v6583_v42, %v5558_v32  ;;  %v7386_v25 = vor.u32 %v6582_v41, %v5568_v40 }
  0xed   : > { %v2098_v61 = vpop.f32.mrf.mxu2 }
  0xee   : > { %v2099_v8 = vadd.f32 %v2098_v61, %v1930_v43  ;;  %v2267_v9 = vpop.f32.mrf.mxu3  ;;  %v1762_v27 = vpop.f32.mrf.mxu0  ;;  %v5566_v43 = vld [vmem:[%s7146_s6 + $0x168] sm:$0xf]  ;;  %v6584_v61 = vld [vmem:[%s7146_s6 + $0x174] sm:$0xf0]  ;;  %8433 = vst [vmem:[#allocation23_spill] sm:$0xff] %v7380_v63 }
  0xef   : > { %v1931_v10 = vpop.f32.mrf.mxu1  ;;  %8436 = vst [vmem:[#allocation26_spill] sm:$0xff] %v7386_v25 }
  0xf0   : > { %v2268_v30 = vadd.f32 %v2267_v9, %v2099_v8  ;;  %v1932_v31 = vadd.f32 %v1931_v10, %v1762_v27  ;;  %v5963_v8 = vor.u32 %v6425_v35, %v5960_v29  ;;  %v6088_v9 = vld [vmem:[#allocation2 + $0x190] sm:$0xf0] }
  0xf1   : > { %v6091_v11 = vor.u32 %v6457_v17, %v6088_v9  ;;  %v217_v17 = vld [vmem:[#allocation2 + $0x60] sm:$0xff]  ;;  %v6588_v9 = vld [vmem:[%s7146_s6 + $0x194] sm:$0xf0] }
  0xf2   : > { %v4717_v33 = vmul.f32 %v4461_v24, %v2268_v30  ;;  %v7382_v24 = vor.u32 %v6581_v46, %v5560_v48  ;;  %v7384_v30 = vor.u32 %v6584_v61, %v5566_v43  ;;  %2420 = vmatpush.bf16.msrb.mxu0 %v5963_v8  ;;  %v4469_v40 = vunpack.c.l.bf16 %v217_v17  ;;  %v219_v46 = vld [vmem:[#allocation2 + $0x70] sm:$0xff]  ;;  %v5574_v43 = vld [vmem:[%s7146_s6 + $0x180] sm:$0xf]  ;;  %v5582_v8 = vld [vmem:[%s7146_s6 + $0x188] sm:$0xf] }
  0xf3   : > { %2589 = vmatpush.bf16.msrb.mxu1 %v6091_v11  ;;  %v6587_v61 = vld [vmem:[%s7146_s6 + $0x18c] sm:$0xf0]  ;;  %v4473_v17 = vunpack.c.l.bf16 %v219_v46 }
  0xf4   : > { %v4960_v44 = vadd.f32 %v4959_v45, %v4717_v33  ;;  %8434 = vst [vmem:[#allocation24_spill] sm:$0xff] %v7382_v24 }
  0xf5   : > { %v2100_v60 = vpop.f32.mrf.mxu2  ;;  %8435 = vst [vmem:[#allocation25_spill] sm:$0xff] %v7384_v30 }
  0xf6   : > { %v2101_v27 = vadd.f32 %v2100_v60, %v1932_v31  ;;  %v2269_v28 = vpop.f32.mrf.mxu3  ;;  %v1765_v10 = vpop.f32.mrf.mxu0  ;;  %v6585_v60 = vld [vmem:[%s7146_s6 + $0x184] sm:$0xf] }
  0xf7   : > { %v1934_v62 = vpop.f32.mrf.mxu1 }
  0xf8   : > { %v2270_v45 = vadd.f32 %v2269_v28, %v2101_v27  ;;  %v1935_v33 = vadd.f32 %v1934_v62, %v1765_v10  ;;  %v6586_v27 = vld [vmem:[%s7146_s6 + $0x18c] sm:$0xf]  ;;  %v5584_v28 = vld [vmem:[%s7146_s6 + $0x198] sm:$0xf0] }
  0xf9   : > { %1804 = vmatmul.bf16.gmra.mxu0 %v7380_v63  ;;  %1973 = vmatmul.bf16.gmra.mxu1 %v7382_v24 }
  0xfa   : > { %v4721_v34 = vmul.f32 %v4465_v26, %v2270_v45  ;;  %2142 = vmatmul.bf16.gmra.mxu2 %v7384_v30  ;;  %v5576_v26 = vld [vmem:[%s7146_s6 + $0x190] sm:$0xf0]  ;;  %v7400_v45 = vor.u32 %v6587_v61, %v5574_v43 }
  0xfb   : > { %2311 = vmatmul.bf16.gmra.mxu3 %v7386_v25  ;;  %v6453_v25 = vld [vmem:[#allocation2 + $0x164] sm:$0xf] }
  0xfc   : > { %v4961_v29 = vadd.f32 %v4960_v44, %v4721_v34  ;;  %8437 = vst [vmem:[#allocation27_spill] sm:$0xff] %v7400_v45 }
  0xfd   : > { %v2103_v35 = vpop.f32.mrf.mxu2 }
  0xfe   : > { %v2104_v62 = vadd.f32 %v2103_v35, %v1935_v33  ;;  %v2272_v11 = vpop.f32.mrf.mxu3  ;;  %v1767_v41 = vpop.f32.mrf.mxu0 }
  0xff   : > { %v1936_v31 = vpop.f32.mrf.mxu1 }
 0x100   : > { %v2273_v32 = vadd.f32 %v2272_v11, %v2104_v62  ;;  %v1937_v42 = vadd.f32 %v1936_v31, %v1767_v41  ;;  %v7402_v62 = vor.u32 %v6585_v60, %v5576_v26  ;;  %v7404_v11 = vor.u32 %v6588_v9, %v5582_v8 }
 0x101   : > { %v7406_v41 = vor.u32 %v6586_v27, %v5584_v28  ;;  %v223_v28 = vld [vmem:[#allocation2 + $0x90] sm:$0xff] }
 0x102   : > { %v4725_v48 = vmul.f32 %v4469_v40, %v2273_v32  ;;  %8438 = vst [vmem:[#allocation28_spill] sm:$0xff] %v7402_v62 }
 0x103   : > { %8439 = vst [vmem:[#allocation29_spill] sm:$0xff] %v7404_v11 }
 0x104   : > { %v4962_v44 = vadd.f32 %v4961_v29, %v4725_v48  ;;  %8440 = vst [vmem:[#allocation30_spill] sm:$0xff] %v7406_v41 }
 0x105   : > { %v2105_v10 = vpop.f32.mrf.mxu2 }
 0x106   : > { %v2106_v33 = vadd.f32 %v2105_v10, %v1937_v42  ;;  %v2274_v34 = vpop.f32.mrf.mxu3  ;;  %v1770_v35 = vpop.f32.mrf.mxu0  ;;  %v221_v42 = vld [vmem:[#allocation2 + $0x80] sm:$0xff] }
 0x107   : > { %v1939_v40 = vpop.f32.mrf.mxu1  ;;  %v4477_v60 = vunpack.c.l.bf16 %v221_v42 }
 0x108   : > { %v2275_v31 = vadd.f32 %v2274_v34, %v2106_v33  ;;  %v1940_v32 = vadd.f32 %v1939_v40, %v1770_v35  ;;  %v5590_v33 = vld [vmem:[%s7146_s6 + $0x1a0] sm:$0xf]  ;;  %v6591_v34 = vld [vmem:[%s7146_s6 + $0x1ac] sm:$0xf0]  ;;  %v5592_v35 = vld [vmem:[%s7146_s6 + $0x1b0] sm:$0xf0] }
 0x109   : > { %1809 = vmatmul.bf16.gmra.mxu0 %v7400_v45  ;;  %1978 = vmatmul.bf16.gmra.mxu1 %v7402_v62  ;;  %v5598_v40 = vld [vmem:[%s7146_s6 + $0x1a8] sm:$0xf]  ;;  %v4481_v62 = vunpack.c.l.bf16 %v223_v28 }
 0x10a   : > { %v4729_v29 = vmul.f32 %v4473_v17, %v2275_v31  ;;  %2147 = vmatmul.bf16.gmra.mxu2 %v7404_v11  ;;  %v6589_v17 = vld [vmem:[%s7146_s6 + $0x1a4] sm:$0xf]  ;;  %v6592_v31 = vld [vmem:[%s7146_s6 + $0x1b4] sm:$0xf0] }
 0x10b   : > { %2316 = vmatmul.bf16.gmra.mxu3 %v7406_v41  ;;  %v5600_v41 = vld [vmem:[%s7146_s6 + $0x1b8] sm:$0xf0] }
 0x10c   : > { %v4963_v46 = vadd.f32 %v4962_v44, %v4729_v29  ;;  %v6590_v29 = vld [vmem:[%s7146_s6 + $0x1ac] sm:$0xf] }
 0x10d   : > { %v2108_v48 = vpop.f32.mrf.mxu2 }
 0x10e   : > { %v2109_v43 = vadd.f32 %v2108_v48, %v1940_v32  ;;  %v2277_v61 = vpop.f32.mrf.mxu3  ;;  %v1772_v26 = vpop.f32.mrf.mxu0  ;;  %v7420_v48 = vor.u32 %v6591_v34, %v5590_v33 }
 0x10f   : > { %v1941_v8 = vpop.f32.mrf.mxu1 }
 0x110   : > { %v2278_v9 = vadd.f32 %v2277_v61, %v2109_v43  ;;  %v1942_v27 = vadd.f32 %v1941_v8, %v1772_v26  ;;  %8441 = vst [vmem:[#allocation31_spill] sm:$0xff] %v7420_v48  ;;  %v7422_v43 = vor.u32 %v6589_v17, %v5592_v35  ;;  %v7424_v61 = vor.u32 %v6592_v31, %v5598_v40  ;;  %v227_v35 = vld [vmem:[#allocation2 + $0xb0] sm:$0xff]  ;;  %v5606_v31 = vld [vmem:[%s7146_s6 + $0x1c0] sm:$0xf] }
 0x111   : > { %v7426_v26 = vor.u32 %v6590_v29, %v5600_v41  ;;  %v6595_v29 = vld [vmem:[%s7146_s6 + $0x1cc] sm:$0xf0] }
 0x112   : > { %v4733_v10 = vmul.f32 %v4477_v60, %v2278_v9  ;;  %8442 = vst [vmem:[#allocation32_spill] sm:$0xff] %v7422_v43 }
 0x113   : > { %8443 = vst [vmem:[#allocation33_spill] sm:$0xff] %v7424_v61 }
 0x114   : > { %v4964_v44 = vadd.f32 %v4963_v46, %v4733_v10  ;;  %8444 = vst [vmem:[#allocation34_spill] sm:$0xff] %v7426_v26 }
 0x115   : > { %v2110_v32 = vpop.f32.mrf.mxu2 }
 0x116   : > { %v2111_v11 = vadd.f32 %v2110_v32, %v1942_v27  ;;  %v2279_v42 = vpop.f32.mrf.mxu3  ;;  %v1775_v45 = vpop.f32.mrf.mxu0  ;;  %v225_v27 = vld [vmem:[#allocation2 + $0xa0] sm:$0xff] }
 0x117   : > { %v1944_v60 = vpop.f32.mrf.mxu1  ;;  %v6593_v32 = vld [vmem:[%s7146_s6 + $0x1c4] sm:$0xf] }
 0x118   : > { %v2280_v8 = vadd.f32 %v2279_v42, %v2111_v11  ;;  %v1945_v9 = vadd.f32 %v1944_v60, %v1775_v45  ;;  %v5608_v42 = vld [vmem:[%s7146_s6 + $0x1d0] sm:$0xf0]  ;;  %v5614_v60 = vld [vmem:[%s7146_s6 + $0x1c8] sm:$0xf] }
 0x119   : > { %1814 = vmatmul.bf16.gmra.mxu0 %v7420_v48  ;;  %1983 = vmatmul.bf16.gmra.mxu1 %v7422_v43  ;;  %v4489_v43 = vunpack.c.l.bf16 %v227_v35 }
 0x11a   : > { %v4737_v46 = vmul.f32 %v4481_v62, %v2280_v8  ;;  %2152 = vmatmul.bf16.gmra.mxu2 %v7424_v61  ;;  %v4485_v62 = vunpack.c.l.bf16 %v225_v27  ;;  %v6596_v8 = vld [vmem:[%s7146_s6 + $0x1d4] sm:$0xf0] }
 0x11b   : > { %2321 = vmatmul.bf16.gmra.mxu3 %v7426_v26  ;;  %v5616_v26 = vld [vmem:[%s7146_s6 + $0x1d8] sm:$0xf0] }
 0x11c   : > { %v4965_v28 = vadd.f32 %v4964_v44, %v4737_v46  ;;  %v6594_v46 = vld [vmem:[%s7146_s6 + $0x1cc] sm:$0xf] }
 0x11d   : > { %v2113_v41 = vpop.f32.mrf.mxu2 }
 0x11e   : > { %v2114_v11 = vadd.f32 %v2113_v41, %v1945_v9  ;;  %v2282_v45 = vpop.f32.mrf.mxu3  ;;  %v1777_v10 = vpop.f32.mrf.mxu0  ;;  %v7440_v41 = vor.u32 %v6595_v29, %v5606_v31  ;;  %v6200_v31 = vld [vmem:[#allocation2 + $0x270] sm:$0xf0]  ;;  %v6517_v29 = vld [vmem:[#allocation2 + $0x364] sm:$0xf] }
 0x11f   : > { %v1946_v33 = vpop.f32.mrf.mxu1 }
 0x120   : > { %v2283_v34 = vadd.f32 %v2282_v45, %v2114_v11  ;;  %v1947_v17 = vadd.f32 %v1946_v33, %v1777_v10  ;;  %8445 = vst [vmem:[#allocation35_spill] sm:$0xff] %v7440_v41  ;;  %v7442_v11 = vor.u32 %v6593_v32, %v5608_v42  ;;  %v7444_v45 = vor.u32 %v6596_v8, %v5614_v60 }
 0x121   : > { %v7446_v10 = vor.u32 %v6594_v46, %v5616_v26 }
 0x122   : > { %v4741_v40 = vmul.f32 %v4485_v62, %v2283_v34  ;;  %8446 = vst [vmem:[#allocation36_spill] sm:$0xff] %v7442_v11 }
 0x123   : > { %8447 = vst [vmem:[#allocation37_spill] sm:$0xff] %v7444_v45 }
 0x124   : > { %v4966_v44 = vadd.f32 %v4965_v28, %v4741_v40  ;;  %8448 = vst [vmem:[#allocation38_spill] sm:$0xff] %v7446_v10  ;;  %v6485_v40 = vld [vmem:[#allocation2 + $0x264] sm:$0xf] }
 0x125   : > { %v2115_v9 = vpop.f32.mrf.mxu2  ;;  %v6203_v32 = vor.u32 %v6485_v40, %v6200_v31  ;;  %v6597_v40 = vld [vmem:[%s7146_s6 + $0x1e4] sm:$0xf]  ;;  %v5624_v31 = vld [vmem:[%s7146_s6 + $0x1f0] sm:$0xf0] }
 0x126   : > { %v2116_v61 = vadd.f32 %v2115_v9, %v1947_v17  ;;  %v2284_v27 = vpop.f32.mrf.mxu3  ;;  %v1780_v48 = vpop.f32.mrf.mxu0  ;;  %v229_v17 = vld [vmem:[#allocation2 + $0xc0] sm:$0xff] }
 0x127   : > { %v1949_v62 = vpop.f32.mrf.mxu1  ;;  %v4493_v42 = vunpack.c.l.bf16 %v229_v17  ;;  %2759 = vmatpush.bf16.msrb.mxu2 %v6203_v32 }
 0x128   : > { %v2285_v33 = vadd.f32 %v2284_v27, %v2116_v61  ;;  %v1950_v34 = vadd.f32 %v1949_v62, %v1780_v48  ;;  %v6328_v48 = vld [vmem:[#allocation2 + $0x370] sm:$0xf0]  ;;  %v5622_v62 = vld [vmem:[%s7146_s6 + $0x1e0] sm:$0xf] }
 0x129   : > { %1819 = vmatmul.bf16.gmra.mxu0 %v7440_v41  ;;  %1988 = vmatmul.bf16.gmra.mxu1 %v7442_v11  ;;  %v6331_v8 = vor.u32 %v6517_v29, %v6328_v48  ;;  %v231_v27 = vld [vmem:[#allocation2 + $0xd0] sm:$0xff]  ;;  %v6421_v11 = vld [vmem:[#allocation2 + $0x64] sm:$0xf] }
 0x12a   : > { %v4745_v28 = vmul.f32 %v4489_v43, %v2285_v33  ;;  %2157 = vmatmul.bf16.gmra.mxu2 %v7444_v45  ;;  %v6599_v33 = vld [vmem:[%s7146_s6 + $0x1ec] sm:$0xf0]  ;;  %v5632_v45 = vld [vmem:[%s7146_s6 + $0x1f8] sm:$0xf0]  ;;  %v5944_v41 = vld [vmem:[#allocation2 + $0x70] sm:$0xf0]  ;;  %v4497_v48 = vunpack.c.l.bf16 %v231_v27 }
 0x12b   : > { %2326 = vmatmul.bf16.gmra.mxu3 %v7446_v10  ;;  %v6598_v10 = vld [vmem:[%s7146_s6 + $0x1ec] sm:$0xf]  ;;  %v7460_v32 = vor.u32 %v6599_v33, %v5622_v62 }
 0x12c   : > { %v4967_v35 = vadd.f32 %v4966_v44, %v4745_v28  ;;  %2928 = vmatpush.bf16.msrb.mxu3 %v6331_v8  ;;  %v7466_v63 = vor.u32 %v6598_v10, %v5632_v45 }
 0x12d   : > { %v2118_v26 = vpop.f32.mrf.mxu2  ;;  %8449 = vst [vmem:[#allocation39_spill] sm:$0xff] %v7460_v32 }
 0x12e   : > { %v2119_v61 = vadd.f32 %v2118_v26, %v1950_v34  ;;  %v2287_v43 = vpop.f32.mrf.mxu3  ;;  %v1782_v60 = vpop.f32.mrf.mxu0  ;;  %v5630_v34 = vld [vmem:[%s7146_s6 + $0x1e8] sm:$0xf]  ;;  %v6600_v26 = vld [vmem:[%s7146_s6 + $0x1f4] sm:$0xf0]  ;;  %8452 = vst [vmem:[#allocation42_spill] sm:$0xff] %v7466_v63 }
 0x12f   : > { %v1951_v44 = vpop.f32.mrf.mxu1 }
 0x130   : > { %v2288_v46 = vadd.f32 %v2287_v43, %v2119_v61  ;;  %v1952_v9 = vadd.f32 %v1951_v44, %v1782_v60  ;;  %v5947_v61 = vor.u32 %v6421_v11, %v5944_v41  ;;  %v6072_v43 = vld [vmem:[#allocation2 + $0x170] sm:$0xf0] }
 0x131   : > { %v6075_v30 = vor.u32 %v6453_v25, %v6072_v43  ;;  %v233_v25 = vld [vmem:[#allocation2 + $0xe0] sm:$0xff]  ;;  %v6604_v43 = vld [vmem:[%s7146_s6 + $0x214] sm:$0xf0] }
 0x132   : > { %v4749_v28 = vmul.f32 %v4493_v42, %v2288_v46  ;;  %v7462_v42 = vor.u32 %v6597_v40, %v5624_v31  ;;  %v7464_v46 = vor.u32 %v6600_v26, %v5630_v34  ;;  %2421 = vmatpush.bf16.msrb.mxu0 %v5947_v61  ;;  %v4501_v45 = vunpack.c.l.bf16 %v233_v25  ;;  %v235_v40 = vld [vmem:[#allocation2 + $0xf0] sm:$0xff]  ;;  %v5638_v34 = vld [vmem:[%s7146_s6 + $0x200] sm:$0xf]  ;;  %v5646_v61 = vld [vmem:[%s7146_s6 + $0x208] sm:$0xf] }
 0x133   : > { %2590 = vmatpush.bf16.msrb.mxu1 %v6075_v30  ;;  %v6603_v26 = vld [vmem:[%s7146_s6 + $0x20c] sm:$0xf0]  ;;  %v4505_v25 = vunpack.c.l.bf16 %v235_v40 }
 0x134   : > { %v4968_v17 = vadd.f32 %v4967_v35, %v4749_v28  ;;  %8450 = vst [vmem:[#allocation40_spill] sm:$0xff] %v7462_v42 }
 0x135   : > { %v2120_v29 = vpop.f32.mrf.mxu2  ;;  %8451 = vst [vmem:[#allocation41_spill] sm:$0xff] %v7464_v46 }
 0x136   : > { %v2121_v60 = vadd.f32 %v2120_v29, %v1952_v9  ;;  %v2289_v8 = vpop.f32.mrf.mxu3  ;;  %v1785_v44 = vpop.f32.mrf.mxu0  ;;  %v6601_v29 = vld [vmem:[%s7146_s6 + $0x204] sm:$0xf] }
 0x137   : > { %v1954_v24 = vpop.f32.mrf.mxu1 }
 0x138   : > { %v2290_v35 = vadd.f32 %v2289_v8, %v2121_v60  ;;  %v1955_v28 = vadd.f32 %v1954_v24, %v1785_v44  ;;  %v6602_v60 = vld [vmem:[%s7146_s6 + $0x20c] sm:$0xf]  ;;  %v5648_v8 = vld [vmem:[%s7146_s6 + $0x218] sm:$0xf0] }
 0x139   : > { %1824 = vmatmul.bf16.gmra.mxu0 %v7460_v32  ;;  %1993 = vmatmul.bf16.gmra.mxu1 %v7462_v42 }
 0x13a   : > { %v4753_v27 = vmul.f32 %v4497_v48, %v2290_v35  ;;  %2162 = vmatmul.bf16.gmra.mxu2 %v7464_v46  ;;  %v5640_v48 = vld [vmem:[%s7146_s6 + $0x210] sm:$0xf0]  ;;  %v7480_v35 = vor.u32 %v6603_v26, %v5638_v34 }
 0x13b   : > { %2331 = vmatmul.bf16.gmra.mxu3 %v7466_v63  ;;  %v6449_v63 = vld [vmem:[#allocation2 + $0x144] sm:$0xf] }
 0x13c   : > { %v4969_v41 = vadd.f32 %v4968_v17, %v4753_v27  ;;  %8453 = vst [vmem:[#allocation43_spill] sm:$0xff] %v7480_v35 }
 0x13d   : > { %v2123_v11 = vpop.f32.mrf.mxu2 }
 0x13e   : > { %v2124_v24 = vadd.f32 %v2123_v11, %v1955_v28  ;;  %v2292_v30 = vpop.f32.mrf.mxu3  ;;  %v1787_v10 = vpop.f32.mrf.mxu0 }
 0x13f   : > { %v1956_v9 = vpop.f32.mrf.mxu1 }
 0x140   : > { %v2293_v62 = vadd.f32 %v2292_v30, %v2124_v24  ;;  %v1957_v33 = vadd.f32 %v1956_v9, %v1787_v10  ;;  %v7482_v24 = vor.u32 %v6601_v29, %v5640_v48  ;;  %v7484_v30 = vor.u32 %v6604_v43, %v5646_v61 }
 0x141   : > { %v7486_v10 = vor.u32 %v6602_v60, %v5648_v8  ;;  %v239_v8 = vld [vmem:[#allocation2 + $0x110] sm:$0xff] }
 0x142   : > { %v4757_v31 = vmul.f32 %v4501_v45, %v2293_v62  ;;  %8454 = vst [vmem:[#allocation44_spill] sm:$0xff] %v7482_v24 }
 0x143   : > { %8455 = vst [vmem:[#allocation45_spill] sm:$0xff] %v7484_v30 }
 0x144   : > { %v4970_v17 = vadd.f32 %v4969_v41, %v4757_v31  ;;  %8456 = vst [vmem:[#allocation46_spill] sm:$0xff] %v7486_v10 }
 0x145   : > { %v2125_v44 = vpop.f32.mrf.mxu2 }
 0x146   : > { %v2126_v28 = vadd.f32 %v2125_v44, %v1957_v33  ;;  %v2294_v27 = vpop.f32.mrf.mxu3  ;;  %v1790_v11 = vpop.f32.mrf.mxu0  ;;  %v237_v33 = vld [vmem:[#allocation2 + $0x100] sm:$0xff] }
 0x147   : > { %v1959_v45 = vpop.f32.mrf.mxu1  ;;  %v4509_v29 = vunpack.c.l.bf16 %v237_v33 }
 0x148   : > { %v2295_v9 = vadd.f32 %v2294_v27, %v2126_v28  ;;  %v1960_v62 = vadd.f32 %v1959_v45, %v1790_v11  ;;  %v5654_v28 = vld [vmem:[%s7146_s6 + $0x220] sm:$0xf]  ;;  %v6607_v27 = vld [vmem:[%s7146_s6 + $0x22c] sm:$0xf0]  ;;  %v5656_v11 = vld [vmem:[%s7146_s6 + $0x230] sm:$0xf0] }
 0x149   : > { %1829 = vmatmul.bf16.gmra.mxu0 %v7480_v35  ;;  %1998 = vmatmul.bf16.gmra.mxu1 %v7482_v24  ;;  %v5662_v45 = vld [vmem:[%s7146_s6 + $0x228] sm:$0xf]  ;;  %v4513_v24 = vunpack.c.l.bf16 %v239_v8 }
 0x14a   : > { %v4761_v41 = vmul.f32 %v4505_v25, %v2295_v9  ;;  %2167 = vmatmul.bf16.gmra.mxu2 %v7484_v30  ;;  %v6605_v25 = vld [vmem:[%s7146_s6 + $0x224] sm:$0xf]  ;;  %v6608_v9 = vld [vmem:[%s7146_s6 + $0x234] sm:$0xf0] }
 0x14b   : > { %2336 = vmatmul.bf16.gmra.mxu3 %v7486_v10  ;;  %v5664_v10 = vld [vmem:[%s7146_s6 + $0x238] sm:$0xf0] }
 0x14c   : > { %v4971_v40 = vadd.f32 %v4970_v17, %v4761_v41  ;;  %v6606_v41 = vld [vmem:[%s7146_s6 + $0x22c] sm:$0xf] }
 0x14d   : > { %v2128_v31 = vpop.f32.mrf.mxu2 }
 0x14e   : > { %v2129_v34 = vadd.f32 %v2128_v31, %v1960_v62  ;;  %v2297_v26 = vpop.f32.mrf.mxu3  ;;  %v1792_v48 = vpop.f32.mrf.mxu0  ;;  %v7500_v31 = vor.u32 %v6607_v27, %v5654_v28 }
 0x14f   : > { %v1961_v61 = vpop.f32.mrf.mxu1 }
 0x150   : > { %v2298_v43 = vadd.f32 %v2297_v26, %v2129_v34  ;;  %v1962_v60 = vadd.f32 %v1961_v61, %v1792_v48  ;;  %8457 = vst [vmem:[#allocation47_spill] sm:$0xff] %v7500_v31  ;;  %v7502_v34 = vor.u32 %v6605_v25, %v5656_v11  ;;  %v7504_v26 = vor.u32 %v6608_v9, %v5662_v45  ;;  %v243_v11 = vld [vmem:[#allocation2 + $0x130] sm:$0xff]  ;;  %v5670_v9 = vld [vmem:[%s7146_s6 + $0x240] sm:$0xf] }
 0x151   : > { %v7506_v48 = vor.u32 %v6606_v41, %v5664_v10  ;;  %v6611_v41 = vld [vmem:[%s7146_s6 + $0x24c] sm:$0xf0] }
 0x152   : > { %v4765_v44 = vmul.f32 %v4509_v29, %v2298_v43  ;;  %8458 = vst [vmem:[#allocation48_spill] sm:$0xff] %v7502_v34 }
 0x153   : > { %8459 = vst [vmem:[#allocation49_spill] sm:$0xff] %v7504_v26 }
 0x154   : > { %v4972_v17 = vadd.f32 %v4971_v40, %v4765_v44  ;;  %8460 = vst [vmem:[#allocation50_spill] sm:$0xff] %v7506_v48 }
 0x155   : > { %v2130_v62 = vpop.f32.mrf.mxu2 }
 0x156   : > { %v2131_v30 = vadd.f32 %v2130_v62, %v1962_v60  ;;  %v2299_v33 = vpop.f32.mrf.mxu3  ;;  %v1795_v35 = vpop.f32.mrf.mxu0  ;;  %v241_v60 = vld [vmem:[#allocation2 + $0x120] sm:$0xff] }
 0x157   : > { %v1964_v29 = vpop.f32.mrf.mxu1  ;;  %v6609_v62 = vld [vmem:[%s7146_s6 + $0x244] sm:$0xf] }
 0x158   : > { %v2300_v61 = vadd.f32 %v2299_v33, %v2131_v30  ;;  %v1965_v43 = vadd.f32 %v1964_v29, %v1795_v35  ;;  %v5672_v33 = vld [vmem:[%s7146_s6 + $0x250] sm:$0xf0]  ;;  %v5678_v29 = vld [vmem:[%s7146_s6 + $0x248] sm:$0xf] }
 0x159   : > { %1834 = vmatmul.bf16.gmra.mxu0 %v7500_v31  ;;  %2003 = vmatmul.bf16.gmra.mxu1 %v7502_v34  ;;  %v4521_v34 = vunpack.c.l.bf16 %v243_v11 }
 0x15a   : > { %v4769_v40 = vmul.f32 %v4513_v24, %v2300_v61  ;;  %2172 = vmatmul.bf16.gmra.mxu2 %v7504_v26  ;;  %v4517_v24 = vunpack.c.l.bf16 %v241_v60  ;;  %v6612_v61 = vld [vmem:[%s7146_s6 + $0x254] sm:$0xf0] }
 0x15b   : > { %2341 = vmatmul.bf16.gmra.mxu3 %v7506_v48  ;;  %v5680_v48 = vld [vmem:[%s7146_s6 + $0x258] sm:$0xf0] }
 0x15c   : > { %v4973_v8 = vadd.f32 %v4972_v17, %v4769_v40  ;;  %v6610_v40 = vld [vmem:[%s7146_s6 + $0x24c] sm:$0xf] }
 0x15d   : > { %v2133_v10 = vpop.f32.mrf.mxu2 }
 0x15e   : > { %v2134_v30 = vadd.f32 %v2133_v10, %v1965_v43  ;;  %v2302_v35 = vpop.f32.mrf.mxu3  ;;  %v1797_v44 = vpop.f32.mrf.mxu0  ;;  %v7520_v10 = vor.u32 %v6611_v41, %v5670_v9  ;;  %v6184_v9 = vld [vmem:[#allocation2 + $0x250] sm:$0xf0]  ;;  %v6513_v41 = vld [vmem:[#allocation2 + $0x344] sm:$0xf] }
 0x15f   : > { %v1966_v28 = vpop.f32.mrf.mxu1 }
 0x160   : > { %v2303_v27 = vadd.f32 %v2302_v35, %v2134_v30  ;;  %v1967_v25 = vadd.f32 %v1966_v28, %v1797_v44  ;;  %8461 = vst [vmem:[#allocation51_spill] sm:$0xff] %v7520_v10  ;;  %v7522_v30 = vor.u32 %v6609_v62, %v5672_v33  ;;  %v7524_v35 = vor.u32 %v6612_v61, %v5678_v29 }
 0x161   : > { %v7526_v44 = vor.u32 %v6610_v40, %v5680_v48 }
 0x162   : > { %v4773_v45 = vmul.f32 %v4517_v24, %v2303_v27  ;;  %8462 = vst [vmem:[#allocation52_spill] sm:$0xff] %v7522_v30 }
 0x163   : > { %8463 = vst [vmem:[#allocation53_spill] sm:$0xff] %v7524_v35 }
 0x164   : > { %v4974_v17 = vadd.f32 %v4973_v8, %v4773_v45  ;;  %8464 = vst [vmem:[#allocation54_spill] sm:$0xff] %v7526_v44  ;;  %v6481_v45 = vld [vmem:[#allocation2 + $0x244] sm:$0xf] }
 0x165   : > { %v2135_v43 = vpop.f32.mrf.mxu2  ;;  %v6187_v62 = vor.u32 %v6481_v45, %v6184_v9  ;;  %v6613_v45 = vld [vmem:[%s7146_s6 + $0x264] sm:$0xf]  ;;  %v5688_v9 = vld [vmem:[%s7146_s6 + $0x270] sm:$0xf0] }
 0x166   : > { %v2136_v26 = vadd.f32 %v2135_v43, %v1967_v25  ;;  %v2304_v60 = vpop.f32.mrf.mxu3  ;;  %v1800_v31 = vpop.f32.mrf.mxu0  ;;  %v245_v25 = vld [vmem:[#allocation2 + $0x140] sm:$0xff] }
 0x167   : > { %v1969_v24 = vpop.f32.mrf.mxu1  ;;  %v4525_v33 = vunpack.c.l.bf16 %v245_v25  ;;  %2760 = vmatpush.bf16.msrb.mxu2 %v6187_v62 }
 0x168   : > { %v2305_v28 = vadd.f32 %v2304_v60, %v2136_v26  ;;  %v1970_v27 = vadd.f32 %v1969_v24, %v1800_v31  ;;  %v6312_v31 = vld [vmem:[#allocation2 + $0x350] sm:$0xf0]  ;;  %v5686_v24 = vld [vmem:[%s7146_s6 + $0x260] sm:$0xf] }
 0x169   : > { %1839 = vmatmul.bf16.gmra.mxu0 %v7520_v10  ;;  %2008 = vmatmul.bf16.gmra.mxu1 %v7522_v30  ;;  %v6315_v61 = vor.u32 %v6513_v41, %v6312_v31  ;;  %v247_v60 = vld [vmem:[#allocation2 + $0x150] sm:$0xff]  ;;  %v6417_v30 = vld [vmem:[#allocation2 + $0x44] sm:$0xf] }
 0x16a   : > { %v4777_v8 = vmul.f32 %v4521_v34, %v2305_v28  ;;  %2177 = vmatmul.bf16.gmra.mxu2 %v7524_v35  ;;  %v6615_v28 = vld [vmem:[%s7146_s6 + $0x26c] sm:$0xf0]  ;;  %v5696_v35 = vld [vmem:[%s7146_s6 + $0x278] sm:$0xf0]  ;;  %v5928_v10 = vld [vmem:[#allocation2 + $0x50] sm:$0xf0]  ;;  %v4529_v31 = vunpack.c.l.bf16 %v247_v60 }
 0x16b   : > { %2346 = vmatmul.bf16.gmra.mxu3 %v7526_v44  ;;  %v6614_v44 = vld [vmem:[%s7146_s6 + $0x26c] sm:$0xf]  ;;  %v7540_v62 = vor.u32 %v6615_v28, %v5686_v24 }
 0x16c   : > { %v4975_v11 = vadd.f32 %v4974_v17, %v4777_v8  ;;  %2929 = vmatpush.bf16.msrb.mxu3 %v6315_v61  ;;  %v7546_v32 = vor.u32 %v6614_v44, %v5696_v35 }
 0x16d   : > { %v2138_v48 = vpop.f32.mrf.mxu2  ;;  %8465 = vst [vmem:[#allocation55_spill] sm:$0xff] %v7540_v62 }
 0x16e   : > { %v2139_v26 = vadd.f32 %v2138_v48, %v1970_v27  ;;  %v2307_v34 = vpop.f32.mrf.mxu3  ;;  %v1802_v29 = vpop.f32.mrf.mxu0  ;;  %v5694_v27 = vld [vmem:[%s7146_s6 + $0x268] sm:$0xf]  ;;  %v6616_v48 = vld [vmem:[%s7146_s6 + $0x274] sm:$0xf0]  ;;  %8468 = vst [vmem:[#allocation58_spill] sm:$0xff] %v7546_v32 }
 0x16f   : > { %v1971_v17 = vpop.f32.mrf.mxu1 }
 0x170   : > { %v2308_v40 = vadd.f32 %v2307_v34, %v2139_v26  ;;  %v1972_v43 = vadd.f32 %v1971_v17, %v1802_v29  ;;  %v5931_v26 = vor.u32 %v6417_v30, %v5928_v10  ;;  %v6056_v34 = vld [vmem:[#allocation2 + $0x150] sm:$0xf0] }
 0x171   : > { %v6059_v46 = vor.u32 %v6449_v63, %v6056_v34  ;;  %v249_v63 = vld [vmem:[#allocation2 + $0x160] sm:$0xff]  ;;  %v6620_v34 = vld [vmem:[%s7146_s6 + $0x294] sm:$0xf0] }
 0x172   : > { %v4781_v8 = vmul.f32 %v4525_v33, %v2308_v40  ;;  %v7542_v33 = vor.u32 %v6613_v45, %v5688_v9  ;;  %v7544_v40 = vor.u32 %v6616_v48, %v5694_v27  ;;  %2422 = vmatpush.bf16.msrb.mxu0 %v5931_v26  ;;  %v4533_v35 = vunpack.c.l.bf16 %v249_v63  ;;  %v251_v45 = vld [vmem:[#allocation2 + $0x170] sm:$0xff]  ;;  %v5702_v27 = vld [vmem:[%s7146_s6 + $0x280] sm:$0xf]  ;;  %v5710_v26 = vld [vmem:[%s7146_s6 + $0x288] sm:$0xf] }
 0x173   : > { %2591 = vmatpush.bf16.msrb.mxu1 %v6059_v46  ;;  %v6619_v48 = vld [vmem:[%s7146_s6 + $0x28c] sm:$0xf0]  ;;  %v4537_v63 = vunpack.c.l.bf16 %v251_v45 }
 0x174   : > { %v4976_v25 = vadd.f32 %v4975_v11, %v4781_v8  ;;  %8466 = vst [vmem:[#allocation56_spill] sm:$0xff] %v7542_v33 }
 0x175   : > { %v2140_v41 = vpop.f32.mrf.mxu2  ;;  %8467 = vst [vmem:[#allocation57_spill] sm:$0xff] %v7544_v40 }
 0x176   : > { %v2141_v29 = vadd.f32 %v2140_v41, %v1972_v43  ;;  %v2309_v61 = vpop.f32.mrf.mxu3  ;;  %v1805_v17 = vpop.f32.mrf.mxu0  ;;  %v6617_v41 = vld [vmem:[%s7146_s6 + $0x284] sm:$0xf] }
 0x177   : > { %v1974_v42 = vpop.f32.mrf.mxu1 }
 0x178   : > { %v2310_v11 = vadd.f32 %v2309_v61, %v2141_v29  ;;  %v1975_v8 = vadd.f32 %v1974_v42, %v1805_v17  ;;  %v6618_v29 = vld [vmem:[%s7146_s6 + $0x28c] sm:$0xf]  ;;  %v5712_v61 = vld [vmem:[%s7146_s6 + $0x298] sm:$0xf0] }
 0x179   : > { %1844 = vmatmul.bf16.gmra.mxu0 %v7540_v62  ;;  %2013 = vmatmul.bf16.gmra.mxu1 %v7542_v33 }
 0x17a   : > { %v4785_v60 = vmul.f32 %v4529_v31, %v2310_v11  ;;  %2182 = vmatmul.bf16.gmra.mxu2 %v7544_v40  ;;  %v5704_v31 = vld [vmem:[%s7146_s6 + $0x290] sm:$0xf0]  ;;  %v7560_v11 = vor.u32 %v6619_v48, %v5702_v27 }
 0x17b   : > { %2351 = vmatmul.bf16.gmra.mxu3 %v7546_v32  ;;  %v6445_v32 = vld [vmem:[#allocation2 + $0x124] sm:$0xf] }
 0x17c   : > { %v4977_v10 = vadd.f32 %v4976_v25, %v4785_v60  ;;  %8469 = vst [vmem:[#allocation59_spill] sm:$0xff] %v7560_v11 }
 0x17d   : > { %v2143_v30 = vpop.f32.mrf.mxu2 }
 0x17e   : > { %v2144_v42 = vadd.f32 %v2143_v30, %v1975_v8  ;;  %v2312_v46 = vpop.f32.mrf.mxu3  ;;  %v1807_v44 = vpop.f32.mrf.mxu0 }
 0x17f   : > { %v1976_v43 = vpop.f32.mrf.mxu1 }
 0x180   : > { %v2313_v24 = vadd.f32 %v2312_v46, %v2144_v42  ;;  %v1977_v28 = vadd.f32 %v1976_v43, %v1807_v44  ;;  %v7562_v42 = vor.u32 %v6617_v41, %v5704_v31  ;;  %v7564_v46 = vor.u32 %v6620_v34, %v5710_v26 }
 0x181   : > { %v7566_v44 = vor.u32 %v6618_v29, %v5712_v61  ;;  %v255_v61 = vld [vmem:[#allocation2 + $0x190] sm:$0xff] }
 0x182   : > { %v4789_v9 = vmul.f32 %v4533_v35, %v2313_v24  ;;  %8470 = vst [vmem:[#allocation60_spill] sm:$0xff] %v7562_v42 }
 0x183   : > { %8471 = vst [vmem:[#allocation61_spill] sm:$0xff] %v7564_v46 }
 0x184   : > { %v4978_v25 = vadd.f32 %v4977_v10, %v4789_v9  ;;  %8472 = vst [vmem:[#allocation62_spill] sm:$0xff] %v7566_v44 }
 0x185   : > { %v2145_v17 = vpop.f32.mrf.mxu2 }
 0x186   : > { %v2146_v8 = vadd.f32 %v2145_v17, %v1977_v28  ;;  %v2314_v60 = vpop.f32.mrf.mxu3  ;;  %v1810_v30 = vpop.f32.mrf.mxu0  ;;  %v253_v28 = vld [vmem:[#allocation2 + $0x180] sm:$0xff] }
 0x187   : > { %v1979_v35 = vpop.f32.mrf.mxu1  ;;  %v4541_v41 = vunpack.c.l.bf16 %v253_v28 }
 0x188   : > { %v2315_v43 = vadd.f32 %v2314_v60, %v2146_v8  ;;  %v1980_v24 = vadd.f32 %v1979_v35, %v1810_v30  ;;  %v5718_v8 = vld [vmem:[%s7146_s6 + $0x2a0] sm:$0xf]  ;;  %v6623_v60 = vld [vmem:[%s7146_s6 + $0x2ac] sm:$0xf0]  ;;  %v5720_v30 = vld [vmem:[%s7146_s6 + $0x2b0] sm:$0xf0] }
 0x189   : > { %1849 = vmatmul.bf16.gmra.mxu0 %v7560_v11  ;;  %2018 = vmatmul.bf16.gmra.mxu1 %v7562_v42  ;;  %v5726_v35 = vld [vmem:[%s7146_s6 + $0x2a8] sm:$0xf]  ;;  %v4545_v42 = vunpack.c.l.bf16 %v255_v61 }
 0x18a   : > { %v4793_v10 = vmul.f32 %v4537_v63, %v2315_v43  ;;  %2187 = vmatmul.bf16.gmra.mxu2 %v7564_v46  ;;  %v6621_v63 = vld [vmem:[%s7146_s6 + $0x2a4] sm:$0xf]  ;;  %v6624_v43 = vld [vmem:[%s7146_s6 + $0x2b4] sm:$0xf0] }
 0x18b   : > { %2356 = vmatmul.bf16.gmra.mxu3 %v7566_v44  ;;  %v5728_v44 = vld [vmem:[%s7146_s6 + $0x2b8] sm:$0xf0] }
 0x18c   : > { %v4979_v45 = vadd.f32 %v4978_v25, %v4793_v10  ;;  %v6622_v10 = vld [vmem:[%s7146_s6 + $0x2ac] sm:$0xf] }
 0x18d   : > { %v2148_v9 = vpop.f32.mrf.mxu2 }
 0x18e   : > { %v2149_v27 = vadd.f32 %v2148_v9, %v1980_v24  ;;  %v2317_v48 = vpop.f32.mrf.mxu3  ;;  %v1812_v31 = vpop.f32.mrf.mxu0  ;;  %v7580_v9 = vor.u32 %v6623_v60, %v5718_v8 }
 0x18f   : > { %v1981_v26 = vpop.f32.mrf.mxu1 }
 0x190   : > { %v2318_v34 = vadd.f32 %v2317_v48, %v2149_v27  ;;  %v1982_v29 = vadd.f32 %v1981_v26, %v1812_v31  ;;  %8473 = vst [vmem:[#allocation63_spill] sm:$0xff] %v7580_v9  ;;  %v7582_v27 = vor.u32 %v6621_v63, %v5720_v30  ;;  %v7584_v48 = vor.u32 %v6624_v43, %v5726_v35  ;;  %v259_v30 = vld [vmem:[#allocation2 + $0x1b0] sm:$0xff]  ;;  %v5734_v43 = vld [vmem:[%s7146_s6 + $0x2c0] sm:$0xf] }
 0x191   : > { %v7586_v31 = vor.u32 %v6622_v10, %v5728_v44  ;;  %v6627_v10 = vld [vmem:[%s7146_s6 + $0x2cc] sm:$0xf0] }
 0x192   : > { %v4797_v17 = vmul.f32 %v4541_v41, %v2318_v34  ;;  %8474 = vst [vmem:[#allocation64_spill] sm:$0xff] %v7582_v27 }
 0x193   : > { %8475 = vst [vmem:[#allocation65_spill] sm:$0xff] %v7584_v48 }
 0x194   : > { %v4980_v25 = vadd.f32 %v4979_v45, %v4797_v17  ;;  %8476 = vst [vmem:[#allocation66_spill] sm:$0xff] %v7586_v31 }
 0x195   : > { %v2150_v24 = vpop.f32.mrf.mxu2 }
 0x196   : > { %v2151_v46 = vadd.f32 %v2150_v24, %v1982_v29  ;;  %v2319_v28 = vpop.f32.mrf.mxu3  ;;  %v1815_v11 = vpop.f32.mrf.mxu0  ;;  %v257_v29 = vld [vmem:[#allocation2 + $0x1a0] sm:$0xff] }
 0x197   : > { %v1984_v41 = vpop.f32.mrf.mxu1  ;;  %v6625_v24 = vld [vmem:[%s7146_s6 + $0x2c4] sm:$0xf] }
 0x198   : > { %v2320_v26 = vadd.f32 %v2319_v28, %v2151_v46  ;;  %v1985_v34 = vadd.f32 %v1984_v41, %v1815_v11  ;;  %v5736_v28 = vld [vmem:[%s7146_s6 + $0x2d0] sm:$0xf0]  ;;  %v5742_v41 = vld [vmem:[%s7146_s6 + $0x2c8] sm:$0xf] }
 0x199   : > { %1854 = vmatmul.bf16.gmra.mxu0 %v7580_v9  ;;  %2023 = vmatmul.bf16.gmra.mxu1 %v7582_v27  ;;  %v4553_v27 = vunpack.c.l.bf16 %v259_v30 }
 0x19a   : > { %v4801_v45 = vmul.f32 %v4545_v42, %v2320_v26  ;;  %2192 = vmatmul.bf16.gmra.mxu2 %v7584_v48  ;;  %v4549_v42 = vunpack.c.l.bf16 %v257_v29  ;;  %v6628_v26 = vld [vmem:[%s7146_s6 + $0x2d4] sm:$0xf0] }
 0x19b   : > { %2361 = vmatmul.bf16.gmra.mxu3 %v7586_v31  ;;  %v5744_v31 = vld [vmem:[%s7146_s6 + $0x2d8] sm:$0xf0] }
 0x19c   : > { %v4981_v61 = vadd.f32 %v4980_v25, %v4801_v45  ;;  %v6626_v45 = vld [vmem:[%s7146_s6 + $0x2cc] sm:$0xf] }
 0x19d   : > { %v2153_v44 = vpop.f32.mrf.mxu2 }
 0x19e   : > { %v2154_v46 = vadd.f32 %v2153_v44, %v1985_v34  ;;  %v2322_v11 = vpop.f32.mrf.mxu3  ;;  %v1817_v17 = vpop.f32.mrf.mxu0  ;;  %v7600_v44 = vor.u32 %v6627_v10, %v5734_v43  ;;  %v6168_v43 = vld [vmem:[#allocation2 + $0x230] sm:$0xf0]  ;;  %v6509_v10 = vld [vmem:[#allocation2 + $0x324] sm:$0xf] }
 0x19f   : > { %v1986_v8 = vpop.f32.mrf.mxu1 }
 0x1a0   : > { %v2323_v60 = vadd.f32 %v2322_v11, %v2154_v46  ;;  %v1987_v63 = vadd.f32 %v1986_v8, %v1817_v17  ;;  %8477 = vst [vmem:[#allocation67_spill] sm:$0xff] %v7600_v44  ;;  %v7602_v46 = vor.u32 %v6625_v24, %v5736_v28  ;;  %v7604_v11 = vor.u32 %v6628_v26, %v5742_v41 }
 0x1a1   : > { %v7606_v17 = vor.u32 %v6626_v45, %v5744_v31 }
 0x1a2   : > { %v4805_v35 = vmul.f32 %v4549_v42, %v2323_v60  ;;  %8478 = vst [vmem:[#allocation68_spill] sm:$0xff] %v7602_v46 }
 0x1a3   : > { %8479 = vst [vmem:[#allocation69_spill] sm:$0xff] %v7604_v11 }
 0x1a4   : > { %v4982_v25 = vadd.f32 %v4981_v61, %v4805_v35  ;;  %8480 = vst [vmem:[#allocation70_spill] sm:$0xff] %v7606_v17  ;;  %v6477_v35 = vld [vmem:[#allocation2 + $0x224] sm:$0xf] }
 0x1a5   : > { %v2155_v34 = vpop.f32.mrf.mxu2  ;;  %v6171_v24 = vor.u32 %v6477_v35, %v6168_v43  ;;  %v6629_v35 = vld [vmem:[%s7146_s6 + $0x2e4] sm:$0xf]  ;;  %v5752_v43 = vld [vmem:[%s7146_s6 + $0x2f0] sm:$0xf0] }
 0x1a6   : > { %v2156_v48 = vadd.f32 %v2155_v34, %v1987_v63  ;;  %v2324_v29 = vpop.f32.mrf.mxu3  ;;  %v1820_v9 = vpop.f32.mrf.mxu0  ;;  %v261_v63 = vld [vmem:[#allocation2 + $0x1c0] sm:$0xff] }
 0x1a7   : > { %v1989_v42 = vpop.f32.mrf.mxu1  ;;  %v4557_v28 = vunpack.c.l.bf16 %v261_v63  ;;  %2761 = vmatpush.bf16.msrb.mxu2 %v6171_v24 }
 0x1a8   : > { %v2325_v8 = vadd.f32 %v2324_v29, %v2156_v48  ;;  %v1990_v60 = vadd.f32 %v1989_v42, %v1820_v9  ;;  %v6296_v9 = vld [vmem:[#allocation2 + $0x330] sm:$0xf0]  ;;  %v5750_v42 = vld [vmem:[%s7146_s6 + $0x2e0] sm:$0xf] }
 0x1a9   : > { %1859 = vmatmul.bf16.gmra.mxu0 %v7600_v44  ;;  %2028 = vmatmul.bf16.gmra.mxu1 %v7602_v46  ;;  %v6299_v26 = vor.u32 %v6509_v10, %v6296_v9  ;;  %v263_v29 = vld [vmem:[#allocation2 + $0x1d0] sm:$0xff]  ;;  %v6413_v46 = vld [vmem:[#allocation2 + $0x24] sm:$0xf] }
 0x1aa   : > { %v4809_v61 = vmul.f32 %v4553_v27, %v2325_v8  ;;  %2197 = vmatmul.bf16.gmra.mxu2 %v7604_v11  ;;  %v6631_v8 = vld [vmem:[%s7146_s6 + $0x2ec] sm:$0xf0]  ;;  %v5760_v11 = vld [vmem:[%s7146_s6 + $0x2f8] sm:$0xf0]  ;;  %v5912_v44 = vld [vmem:[#allocation2 + $0x30] sm:$0xf0]  ;;  %v4561_v9 = vunpack.c.l.bf16 %v263_v29 }
 0x1ab   : > { %2366 = vmatmul.bf16.gmra.mxu3 %v7606_v17  ;;  %v6630_v17 = vld [vmem:[%s7146_s6 + $0x2ec] sm:$0xf]  ;;  %v7620_v24 = vor.u32 %v6631_v8, %v5750_v42 }
 0x1ac   : > { %v4983_v30 = vadd.f32 %v4982_v25, %v4809_v61  ;;  %2930 = vmatpush.bf16.msrb.mxu3 %v6299_v26  ;;  %v7626_v62 = vor.u32 %v6630_v17, %v5760_v11 }
 0x1ad   : > { %v2158_v31 = vpop.f32.mrf.mxu2  ;;  %8481 = vst [vmem:[#allocation71_spill] sm:$0xff] %v7620_v24 }
 0x1ae   : > { %v2159_v48 = vadd.f32 %v2158_v31, %v1990_v60  ;;  %v2327_v27 = vpop.f32.mrf.mxu3  ;;  %v1822_v41 = vpop.f32.mrf.mxu0  ;;  %v5758_v60 = vld [vmem:[%s7146_s6 + $0x2e8] sm:$0xf]  ;;  %v6632_v31 = vld [vmem:[%s7146_s6 + $0x2f4] sm:$0xf0]  ;;  %8484 = vst [vmem:[#allocation74_spill] sm:$0xff] %v7626_v62 }
 0x1af   : > { %v1991_v25 = vpop.f32.mrf.mxu1 }
 0x1b0   : > { %v2328_v45 = vadd.f32 %v2327_v27, %v2159_v48  ;;  %v1992_v34 = vadd.f32 %v1991_v25, %v1822_v41  ;;  %v5915_v48 = vor.u32 %v6413_v46, %v5912_v44  ;;  %v6040_v27 = vld [vmem:[#allocation2 + $0x130] sm:$0xf0] }
 0x1b1   : > { %v6043_v40 = vor.u32 %v6445_v32, %v6040_v27  ;;  %v265_v32 = vld [vmem:[#allocation2 + $0x1e0] sm:$0xff]  ;;  %v6636_v27 = vld [vmem:[%s7146_s6 + $0x314] sm:$0xf0] }
 0x1b2   : > { %v4813_v61 = vmul.f32 %v4557_v28, %v2328_v45  ;;  %v7622_v28 = vor.u32 %v6629_v35, %v5752_v43  ;;  %v7624_v45 = vor.u32 %v6632_v31, %v5758_v60  ;;  %2423 = vmatpush.bf16.msrb.mxu0 %v5915_v48  ;;  %v4565_v11 = vunpack.c.l.bf16 %v265_v32  ;;  %v267_v35 = vld [vmem:[#allocation2 + $0x1f0] sm:$0xff]  ;;  %v5766_v60 = vld [vmem:[%s7146_s6 + $0x300] sm:$0xf]  ;;  %v5774_v48 = vld [vmem:[%s7146_s6 + $0x308] sm:$0xf] }
 0x1b3   : > { %2592 = vmatpush.bf16.msrb.mxu1 %v6043_v40  ;;  %v6635_v31 = vld [vmem:[%s7146_s6 + $0x30c] sm:$0xf0]  ;;  %v4569_v32 = vunpack.c.l.bf16 %v267_v35 }
 0x1b4   : > { %v4984_v63 = vadd.f32 %v4983_v30, %v4813_v61  ;;  %8482 = vst [vmem:[#allocation72_spill] sm:$0xff] %v7622_v28 }
 0x1b5   : > { %v2160_v10 = vpop.f32.mrf.mxu2  ;;  %8483 = vst [vmem:[#allocation73_spill] sm:$0xff] %v7624_v45 }
 0x1b6   : > { %v2161_v41 = vadd.f32 %v2160_v10, %v1992_v34  ;;  %v2329_v26 = vpop.f32.mrf.mxu3  ;;  %v1825_v25 = vpop.f32.mrf.mxu0  ;;  %v6633_v10 = vld [vmem:[%s7146_s6 + $0x304] sm:$0xf] }
 0x1b7   : > { %v1994_v33 = vpop.f32.mrf.mxu1 }
 0x1b8   : > { %v2330_v30 = vadd.f32 %v2329_v26, %v2161_v41  ;;  %v1995_v61 = vadd.f32 %v1994_v33, %v1825_v25  ;;  %v6634_v41 = vld [vmem:[%s7146_s6 + $0x30c] sm:$0xf]  ;;  %v5776_v26 = vld [vmem:[%s7146_s6 + $0x318] sm:$0xf0] }
 0x1b9   : > { %1864 = vmatmul.bf16.gmra.mxu0 %v7620_v24  ;;  %2033 = vmatmul.bf16.gmra.mxu1 %v7622_v28 }
 0x1ba   : > { %v4817_v29 = vmul.f32 %v4561_v9, %v2330_v30  ;;  %2202 = vmatmul.bf16.gmra.mxu2 %v7624_v45  ;;  %v5768_v9 = vld [vmem:[%s7146_s6 + $0x310] sm:$0xf0]  ;;  %v7640_v30 = vor.u32 %v6635_v31, %v5766_v60 }
 0x1bb   : > { %2371 = vmatmul.bf16.gmra.mxu3 %v7626_v62  ;;  %v6441_v62 = vld [vmem:[#allocation2 + $0x104] sm:$0xf] }
 0x1bc   : > { %v4985_v44 = vadd.f32 %v4984_v63, %v4817_v29  ;;  %8485 = vst [vmem:[#allocation75_spill] sm:$0xff] %v7640_v30 }
 0x1bd   : > { %v2163_v46 = vpop.f32.mrf.mxu2 }
 0x1be   : > { %v2164_v33 = vadd.f32 %v2163_v46, %v1995_v61  ;;  %v2332_v40 = vpop.f32.mrf.mxu3  ;;  %v1827_v17 = vpop.f32.mrf.mxu0 }
 0x1bf   : > { %v1996_v34 = vpop.f32.mrf.mxu1 }
 0x1c0   : > { %v2333_v42 = vadd.f32 %v2332_v40, %v2164_v33  ;;  %v1997_v8 = vadd.f32 %v1996_v34, %v1827_v17  ;;  %v7642_v33 = vor.u32 %v6633_v10, %v5768_v9  ;;  %v7644_v40 = vor.u32 %v6636_v27, %v5774_v48 }
 0x1c1   : > { %v7646_v17 = vor.u32 %v6634_v41, %v5776_v26  ;;  %v271_v26 = vld [vmem:[#allocation2 + $0x210] sm:$0xff] }
 0x1c2   : > { %v4821_v43 = vmul.f32 %v4565_v11, %v2333_v42  ;;  %8486 = vst [vmem:[#allocation76_spill] sm:$0xff] %v7642_v33 }
 0x1c3   : > { %8487 = vst [vmem:[#allocation77_spill] sm:$0xff] %v7644_v40 }
 0x1c4   : > { %v4986_v63 = vadd.f32 %v4985_v44, %v4821_v43  ;;  %8488 = vst [vmem:[#allocation78_spill] sm:$0xff] %v7646_v17 }
 0x1c5   : > { %v2165_v25 = vpop.f32.mrf.mxu2 }
 0x1c6   : > { %v2166_v61 = vadd.f32 %v2165_v25, %v1997_v8  ;;  %v2334_v29 = vpop.f32.mrf.mxu3  ;;  %v1830_v46 = vpop.f32.mrf.mxu0  ;;  %v269_v8 = vld [vmem:[#allocation2 + $0x200] sm:$0xff] }
 0x1c7   : > { %v1999_v11 = vpop.f32.mrf.mxu1  ;;  %v4573_v10 = vunpack.c.l.bf16 %v269_v8 }
 0x1c8   : > { %v2335_v34 = vadd.f32 %v2334_v29, %v2166_v61  ;;  %v2000_v42 = vadd.f32 %v1999_v11, %v1830_v46  ;;  %v5782_v61 = vld [vmem:[%s7146_s6 + $0x320] sm:$0xf]  ;;  %v6639_v29 = vld [vmem:[%s7146_s6 + $0x32c] sm:$0xf0]  ;;  %v5784_v46 = vld [vmem:[%s7146_s6 + $0x330] sm:$0xf0] }
 0x1c9   : > { %1869 = vmatmul.bf16.gmra.mxu0 %v7640_v30  ;;  %2038 = vmatmul.bf16.gmra.mxu1 %v7642_v33  ;;  %v5790_v11 = vld [vmem:[%s7146_s6 + $0x328] sm:$0xf]  ;;  %v4577_v33 = vunpack.c.l.bf16 %v271_v26 }
 0x1ca   : > { %v4825_v44 = vmul.f32 %v4569_v32, %v2335_v34  ;;  %2207 = vmatmul.bf16.gmra.mxu2 %v7644_v40  ;;  %v6637_v32 = vld [vmem:[%s7146_s6 + $0x324] sm:$0xf]  ;;  %v6640_v34 = vld [vmem:[%s7146_s6 + $0x334] sm:$0xf0] }
 0x1cb   : > { %2376 = vmatmul.bf16.gmra.mxu3 %v7646_v17  ;;  %v5792_v17 = vld [vmem:[%s7146_s6 + $0x338] sm:$0xf0] }
 0x1cc   : > { %v4987_v35 = vadd.f32 %v4986_v63, %v4825_v44  ;;  %v6638_v44 = vld [vmem:[%s7146_s6 + $0x32c] sm:$0xf] }
 0x1cd   : > { %v2168_v43 = vpop.f32.mrf.mxu2 }
 0x1ce   : > { %v2169_v60 = vadd.f32 %v2168_v43, %v2000_v42  ;;  %v2337_v31 = vpop.f32.mrf.mxu3  ;;  %v1832_v9 = vpop.f32.mrf.mxu0  ;;  %v7660_v43 = vor.u32 %v6639_v29, %v5782_v61 }
 0x1cf   : > { %v2001_v48 = vpop.f32.mrf.mxu1 }
 0x1d0   : > { %v2338_v27 = vadd.f32 %v2337_v31, %v2169_v60  ;;  %v2002_v41 = vadd.f32 %v2001_v48, %v1832_v9  ;;  %8489 = vst [vmem:[#allocation79_spill] sm:$0xff] %v7660_v43  ;;  %v7662_v60 = vor.u32 %v6637_v32, %v5784_v46  ;;  %v7664_v31 = vor.u32 %v6640_v34, %v5790_v11  ;;  %v275_v46 = vld [vmem:[#allocation2 + $0x230] sm:$0xff]  ;;  %v5798_v34 = vld [vmem:[%s7146_s6 + $0x340] sm:$0xf] }
 0x1d1   : > { %v7666_v9 = vor.u32 %v6638_v44, %v5792_v17  ;;  %v6643_v44 = vld [vmem:[%s7146_s6 + $0x34c] sm:$0xf0] }
 0x1d2   : > { %v4829_v25 = vmul.f32 %v4573_v10, %v2338_v27  ;;  %8490 = vst [vmem:[#allocation80_spill] sm:$0xff] %v7662_v60 }
 0x1d3   : > { %8491 = vst [vmem:[#allocation81_spill] sm:$0xff] %v7664_v31 }
 0x1d4   : > { %v4988_v63 = vadd.f32 %v4987_v35, %v4829_v25  ;;  %8492 = vst [vmem:[#allocation82_spill] sm:$0xff] %v7666_v9 }
 0x1d5   : > { %v2170_v42 = vpop.f32.mrf.mxu2 }
 0x1d6   : > { %v2171_v40 = vadd.f32 %v2170_v42, %v2002_v41  ;;  %v2339_v8 = vpop.f32.mrf.mxu3  ;;  %v1835_v30 = vpop.f32.mrf.mxu0  ;;  %v273_v41 = vld [vmem:[#allocation2 + $0x220] sm:$0xff] }
 0x1d7   : > { %v2004_v10 = vpop.f32.mrf.mxu1  ;;  %v6641_v42 = vld [vmem:[%s7146_s6 + $0x344] sm:$0xf] }
 0x1d8   : > { %v2340_v48 = vadd.f32 %v2339_v8, %v2171_v40  ;;  %v2005_v27 = vadd.f32 %v2004_v10, %v1835_v30  ;;  %v5800_v8 = vld [vmem:[%s7146_s6 + $0x350] sm:$0xf0]  ;;  %v5806_v10 = vld [vmem:[%s7146_s6 + $0x348] sm:$0xf] }
 0x1d9   : > { %1874 = vmatmul.bf16.gmra.mxu0 %v7660_v43  ;;  %2043 = vmatmul.bf16.gmra.mxu1 %v7662_v60  ;;  %v4585_v60 = vunpack.c.l.bf16 %v275_v46 }
 0x1da   : > { %v4833_v35 = vmul.f32 %v4577_v33, %v2340_v48  ;;  %2212 = vmatmul.bf16.gmra.mxu2 %v7664_v31  ;;  %v4581_v33 = vunpack.c.l.bf16 %v273_v41  ;;  %v6644_v48 = vld [vmem:[%s7146_s6 + $0x354] sm:$0xf0] }
 0x1db   : > { %2381 = vmatmul.bf16.gmra.mxu3 %v7666_v9  ;;  %v5808_v9 = vld [vmem:[%s7146_s6 + $0x358] sm:$0xf0] }
 0x1dc   : > { %v4989_v26 = vadd.f32 %v4988_v63, %v4833_v35  ;;  %v6642_v35 = vld [vmem:[%s7146_s6 + $0x34c] sm:$0xf] }
 0x1dd   : > { %v2173_v17 = vpop.f32.mrf.mxu2 }
 0x1de   : > { %v2174_v40 = vadd.f32 %v2173_v17, %v2005_v27  ;;  %v2342_v30 = vpop.f32.mrf.mxu3  ;;  %v1837_v25 = vpop.f32.mrf.mxu0  ;;  %v7680_v17 = vor.u32 %v6643_v44, %v5798_v34  ;;  %v6152_v34 = vld [vmem:[#allocation2 + $0x210] sm:$0xf0]  ;;  %v6505_v44 = vld [vmem:[#allocation2 + $0x304] sm:$0xf] }
 0x1df   : > { %v2006_v61 = vpop.f32.mrf.mxu1 }
 0x1e0   : > { %v2343_v29 = vadd.f32 %v2342_v30, %v2174_v40  ;;  %v2007_v32 = vadd.f32 %v2006_v61, %v1837_v25  ;;  %8493 = vst [vmem:[#allocation83_spill] sm:$0xff] %v7680_v17  ;;  %v7682_v40 = vor.u32 %v6641_v42, %v5800_v8  ;;  %v7684_v30 = vor.u32 %v6644_v48, %v5806_v10 }
 0x1e1   : > { %v7686_v25 = vor.u32 %v6642_v35, %v5808_v9 }
 0x1e2   : > { %v4837_v11 = vmul.f32 %v4581_v33, %v2343_v29  ;;  %8494 = vst [vmem:[#allocation84_spill] sm:$0xff] %v7682_v40 }
 0x1e3   : > { %8495 = vst [vmem:[#allocation85_spill] sm:$0xff] %v7684_v30 }
 0x1e4   : > { %v4990_v63 = vadd.f32 %v4989_v26, %v4837_v11  ;;  %8496 = vst [vmem:[#allocation86_spill] sm:$0xff] %v7686_v25  ;;  %v6473_v11 = vld [vmem:[#allocation2 + $0x204] sm:$0xf] }
 0x1e5   : > { %v2175_v27 = vpop.f32.mrf.mxu2  ;;  %v6155_v42 = vor.u32 %v6473_v11, %v6152_v34  ;;  %v6645_v11 = vld [vmem:[%s7146_s6 + $0x364] sm:$0xf]  ;;  %v5816_v34 = vld [vmem:[%s7146_s6 + $0x370] sm:$0xf0] }
 0x1e6   : > { %v2176_v31 = vadd.f32 %v2175_v27, %v2007_v32  ;;  %v2344_v41 = vpop.f32.mrf.mxu3  ;;  %v1840_v43 = vpop.f32.mrf.mxu0  ;;  %v277_v32 = vld [vmem:[#allocation2 + $0x240] sm:$0xff] }
 0x1e7   : > { %v2009_v33 = vpop.f32.mrf.mxu1  ;;  %v4589_v8 = vunpack.c.l.bf16 %v277_v32  ;;  %2762 = vmatpush.bf16.msrb.mxu2 %v6155_v42 }
 0x1e8   : > { %v2345_v61 = vadd.f32 %v2344_v41, %v2176_v31  ;;  %v2010_v29 = vadd.f32 %v2009_v33, %v1840_v43  ;;  %v6280_v43 = vld [vmem:[#allocation2 + $0x310] sm:$0xf0]  ;;  %v5814_v33 = vld [vmem:[%s7146_s6 + $0x360] sm:$0xf] }
 0x1e9   : > { %1879 = vmatmul.bf16.gmra.mxu0 %v7680_v17  ;;  %2048 = vmatmul.bf16.gmra.mxu1 %v7682_v40  ;;  %v6283_v48 = vor.u32 %v6505_v44, %v6280_v43  ;;  %v279_v41 = vld [vmem:[#allocation2 + $0x250] sm:$0xff]  ;;  %v6409_v40 = vld [vmem:[#allocation2 + $0x4] sm:$0xf] }
 0x1ea   : > { %v4841_v26 = vmul.f32 %v4585_v60, %v2345_v61  ;;  %2217 = vmatmul.bf16.gmra.mxu2 %v7684_v30  ;;  %v6647_v61 = vld [vmem:[%s7146_s6 + $0x36c] sm:$0xf0]  ;;  %v5824_v30 = vld [vmem:[%s7146_s6 + $0x378] sm:$0xf0]  ;;  %v5896_v17 = vld [vmem:[#allocation2 + $0x10] sm:$0xf0]  ;;  %v4593_v43 = vunpack.c.l.bf16 %v279_v41 }
 0x1eb   : > { %2386 = vmatmul.bf16.gmra.mxu3 %v7686_v25  ;;  %v6646_v25 = vld [vmem:[%s7146_s6 + $0x36c] sm:$0xf]  ;;  %v7700_v42 = vor.u32 %v6647_v61, %v5814_v33 }
 0x1ec   : > { %v4991_v46 = vadd.f32 %v4990_v63, %v4841_v26  ;;  %2931 = vmatpush.bf16.msrb.mxu3 %v6283_v48  ;;  %v7706_v24 = vor.u32 %v6646_v25, %v5824_v30 }
 0x1ed   : > { %v2178_v9 = vpop.f32.mrf.mxu2  ;;  %8497 = vst [vmem:[#allocation87_spill] sm:$0xff] %v7700_v42 }
 0x1ee   : > { %v2179_v31 = vadd.f32 %v2178_v9, %v2010_v29  ;;  %v2347_v60 = vpop.f32.mrf.mxu3  ;;  %v1842_v10 = vpop.f32.mrf.mxu0  ;;  %v5822_v29 = vld [vmem:[%s7146_s6 + $0x368] sm:$0xf]  ;;  %v6648_v9 = vld [vmem:[%s7146_s6 + $0x374] sm:$0xf0]  ;;  %8500 = vst [vmem:[#allocation90_spill] sm:$0xff] %v7706_v24 }
 0x1ef   : > { %v2011_v63 = vpop.f32.mrf.mxu1 }
 0x1f0   : > { %v2348_v35 = vadd.f32 %v2347_v60, %v2179_v31  ;;  %v2012_v27 = vadd.f32 %v2011_v63, %v1842_v10  ;;  %v5899_v31 = vor.u32 %v6409_v40, %v5896_v17  ;;  %v6024_v60 = vld [vmem:[#allocation2 + $0x110] sm:$0xf0] }
 0x1f1   : > { %v6027_v45 = vor.u32 %v6441_v62, %v6024_v60  ;;  %v281_v62 = vld [vmem:[#allocation2 + $0x260] sm:$0xff]  ;;  %v6652_v60 = vld [vmem:[%s7146_s6 + $0x394] sm:$0xf0] }
 0x1f2   : > { %v4845_v26 = vmul.f32 %v4589_v8, %v2348_v35  ;;  %v7702_v8 = vor.u32 %v6645_v11, %v5816_v34  ;;  %v7704_v35 = vor.u32 %v6648_v9, %v5822_v29  ;;  %2424 = vmatpush.bf16.msrb.mxu0 %v5899_v31  ;;  %v4597_v30 = vunpack.c.l.bf16 %v281_v62  ;;  %v283_v11 = vld [vmem:[#allocation2 + $0x270] sm:$0xff]  ;;  %v5830_v29 = vld [vmem:[%s7146_s6 + $0x380] sm:$0xf]  ;;  %v5838_v31 = vld [vmem:[%s7146_s6 + $0x388] sm:$0xf] }
 0x1f3   : > { %2593 = vmatpush.bf16.msrb.mxu1 %v6027_v45  ;;  %v6651_v9 = vld [vmem:[%s7146_s6 + $0x38c] sm:$0xf0]  ;;  %v4601_v62 = vunpack.c.l.bf16 %v283_v11 }
 0x1f4   : > { %v4992_v32 = vadd.f32 %v4991_v46, %v4845_v26  ;;  %8498 = vst [vmem:[#allocation88_spill] sm:$0xff] %v7702_v8 }
 0x1f5   : > { %v2180_v44 = vpop.f32.mrf.mxu2  ;;  %8499 = vst [vmem:[#allocation89_spill] sm:$0xff] %v7704_v35 }
 0x1f6   : > { %v2181_v10 = vadd.f32 %v2180_v44, %v2012_v27  ;;  %v2349_v48 = vpop.f32.mrf.mxu3  ;;  %v1845_v63 = vpop.f32.mrf.mxu0  ;;  %v6649_v44 = vld [vmem:[%s7146_s6 + $0x384] sm:$0xf] }
 0x1f7   : > { %v2014_v28 = vpop.f32.mrf.mxu1 }
 0x1f8   : > { %v2350_v46 = vadd.f32 %v2349_v48, %v2181_v10  ;;  %v2015_v26 = vadd.f32 %v2014_v28, %v1845_v63  ;;  %v6650_v10 = vld [vmem:[%s7146_s6 + $0x38c] sm:$0xf]  ;;  %v5840_v48 = vld [vmem:[%s7146_s6 + $0x398] sm:$0xf0] }
 0x1f9   : > { %1884 = vmatmul.bf16.gmra.mxu0 %v7700_v42  ;;  %2053 = vmatmul.bf16.gmra.mxu1 %v7702_v8 }
 0x1fa   : > { %v4849_v41 = vmul.f32 %v4593_v43, %v2350_v46  ;;  %2222 = vmatmul.bf16.gmra.mxu2 %v7704_v35  ;;  %v5832_v43 = vld [vmem:[%s7146_s6 + $0x390] sm:$0xf0]  ;;  %v7720_v46 = vor.u32 %v6651_v9, %v5830_v29 }
 0x1fb   : > { %2391 = vmatmul.bf16.gmra.mxu3 %v7706_v24  ;;  %v6142_v24 = vld [vmem:[#allocation2 + $0x1e8] sm:$0xf] }
 0x1fc   : > { %v4993_v17 = vadd.f32 %v4992_v32, %v4849_v41  ;;  %8501 = vst [vmem:[#allocation91_spill] sm:$0xff] %v7720_v46 }
 0x1fd   : > { %v2183_v40 = vpop.f32.mrf.mxu2 }
 0x1fe   : > { %v2184_v28 = vadd.f32 %v2183_v40, %v2015_v26  ;;  %v2352_v45 = vpop.f32.mrf.mxu3  ;;  %v1847_v25 = vpop.f32.mrf.mxu0 }
 0x1ff   : > { %v2016_v27 = vpop.f32.mrf.mxu1 }
 0x200   : > { %v2353_v33 = vadd.f32 %v2352_v45, %v2184_v28  ;;  %v2017_v61 = vadd.f32 %v2016_v27, %v1847_v25  ;;  %v7722_v28 = vor.u32 %v6649_v44, %v5832_v43  ;;  %v7724_v45 = vor.u32 %v6652_v60, %v5838_v31 }
 0x201   : > { %v7726_v25 = vor.u32 %v6650_v10, %v5840_v48  ;;  %v287_v48 = vld [vmem:[#allocation2 + $0x290] sm:$0xff] }
 0x202   : > { %v4853_v34 = vmul.f32 %v4597_v30, %v2353_v33  ;;  %8502 = vst [vmem:[#allocation92_spill] sm:$0xff] %v7722_v28 }
 0x203   : > { %8503 = vst [vmem:[#allocation93_spill] sm:$0xff] %v7724_v45 }
 0x204   : > { %v4994_v32 = vadd.f32 %v4993_v17, %v4853_v34  ;;  %8504 = vst [vmem:[#allocation94_spill] sm:$0xff] %v7726_v25 }
 0x205   : > { %v2185_v63 = vpop.f32.mrf.mxu2 }
 0x206   : > { %v2186_v26 = vadd.f32 %v2185_v63, %v2017_v61  ;;  %v2354_v41 = vpop.f32.mrf.mxu3  ;;  %v1850_v40 = vpop.f32.mrf.mxu0  ;;  %v285_v61 = vld [vmem:[#allocation2 + $0x280] sm:$0xff] }
 0x207   : > { %v2019_v30 = vpop.f32.mrf.mxu1  ;;  %v4605_v44 = vunpack.c.l.bf16 %v285_v61 }
 0x208   : > { %v2355_v27 = vadd.f32 %v2354_v41, %v2186_v26  ;;  %v2020_v33 = vadd.f32 %v2019_v30, %v1850_v40  ;;  %v5846_v26 = vld [vmem:[%s7146_s6 + $0x3a0] sm:$0xf]  ;;  %v6655_v41 = vld [vmem:[%s7146_s6 + $0x3ac] sm:$0xf0]  ;;  %v5848_v40 = vld [vmem:[%s7146_s6 + $0x3b0] sm:$0xf0] }
 0x209   : > { %1889 = vmatmul.bf16.gmra.mxu0 %v7720_v46  ;;  %2058 = vmatmul.bf16.gmra.mxu1 %v7722_v28  ;;  %v5854_v30 = vld [vmem:[%s7146_s6 + $0x3a8] sm:$0xf]  ;;  %v4609_v28 = vunpack.c.l.bf16 %v287_v48 }
 0x20a   : > { %v4857_v17 = vmul.f32 %v4601_v62, %v2355_v27  ;;  %2227 = vmatmul.bf16.gmra.mxu2 %v7724_v45  ;;  %v6653_v62 = vld [vmem:[%s7146_s6 + $0x3a4] sm:$0xf]  ;;  %v6656_v27 = vld [vmem:[%s7146_s6 + $0x3b4] sm:$0xf0] }
 0x20b   : > { %2396 = vmatmul.bf16.gmra.mxu3 %v7726_v25  ;;  %v5856_v25 = vld [vmem:[%s7146_s6 + $0x3b8] sm:$0xf0] }
 0x20c   : > { %v4995_v11 = vadd.f32 %v4994_v32, %v4857_v17  ;;  %v6654_v17 = vld [vmem:[%s7146_s6 + $0x3ac] sm:$0xf] }
 0x20d   : > { %v2188_v34 = vpop.f32.mrf.mxu2 }
 0x20e   : > { %v2189_v29 = vadd.f32 %v2188_v34, %v2020_v33  ;;  %v2357_v9 = vpop.f32.mrf.mxu3  ;;  %v1852_v43 = vpop.f32.mrf.mxu0  ;;  %v7740_v34 = vor.u32 %v6655_v41, %v5846_v26 }
 0x20f   : > { %v2021_v31 = vpop.f32.mrf.mxu1 }
 0x210   : > { %v2358_v60 = vadd.f32 %v2357_v9, %v2189_v29  ;;  %v2022_v10 = vadd.f32 %v2021_v31, %v1852_v43  ;;  %8505 = vst [vmem:[#allocation95_spill] sm:$0xff] %v7740_v34  ;;  %v7742_v29 = vor.u32 %v6653_v62, %v5848_v40  ;;  %v7744_v9 = vor.u32 %v6656_v27, %v5854_v30  ;;  %v291_v40 = vld [vmem:[#allocation2 + $0x2b0] sm:$0xff]  ;;  %v5862_v27 = vld [vmem:[%s7146_s6 + $0x3c0] sm:$0xf] }
 0x211   : > { %v7746_v43 = vor.u32 %v6654_v17, %v5856_v25  ;;  %v6659_v17 = vld [vmem:[%s7146_s6 + $0x3cc] sm:$0xf0] }
 0x212   : > { %v4861_v63 = vmul.f32 %v4605_v44, %v2358_v60  ;;  %8506 = vst [vmem:[#allocation96_spill] sm:$0xff] %v7742_v29 }
 0x213   : > { %8507 = vst [vmem:[#allocation97_spill] sm:$0xff] %v7744_v9 }
 0x214   : > { %v4996_v32 = vadd.f32 %v4995_v11, %v4861_v63  ;;  %8508 = vst [vmem:[#allocation98_spill] sm:$0xff] %v7746_v43 }
 0x215   : > { %v2190_v33 = vpop.f32.mrf.mxu2 }
 0x216   : > { %v2191_v45 = vadd.f32 %v2190_v33, %v2022_v10  ;;  %v2359_v61 = vpop.f32.mrf.mxu3  ;;  %v1855_v46 = vpop.f32.mrf.mxu0  ;;  %v289_v10 = vld [vmem:[#allocation2 + $0x2a0] sm:$0xff] }
 0x217   : > { %v2024_v44 = vpop.f32.mrf.mxu1  ;;  %v6657_v33 = vld [vmem:[%s7146_s6 + $0x3c4] sm:$0xf] }
 0x218   : > { %v2360_v31 = vadd.f32 %v2359_v61, %v2191_v45  ;;  %v2025_v60 = vadd.f32 %v2024_v44, %v1855_v46  ;;  %v5864_v61 = vld [vmem:[%s7146_s6 + $0x3d0] sm:$0xf0]  ;;  %v5870_v44 = vld [vmem:[%s7146_s6 + $0x3c8] sm:$0xf] }
 0x219   : > { %1894 = vmatmul.bf16.gmra.mxu0 %v7740_v34  ;;  %2063 = vmatmul.bf16.gmra.mxu1 %v7742_v29  ;;  %v4617_v29 = vunpack.c.l.bf16 %v291_v40 }
 0x21a   : > { %v4865_v11 = vmul.f32 %v4609_v28, %v2360_v31  ;;  %2232 = vmatmul.bf16.gmra.mxu2 %v7744_v9  ;;  %v4613_v28 = vunpack.c.l.bf16 %v289_v10  ;;  %v6660_v31 = vld [vmem:[%s7146_s6 + $0x3d4] sm:$0xf0] }
 0x21b   : > { %2401 = vmatmul.bf16.gmra.mxu3 %v7746_v43  ;;  %v5872_v43 = vld [vmem:[%s7146_s6 + $0x3d8] sm:$0xf0] }
 0x21c   : > { %v4997_v48 = vadd.f32 %v4996_v32, %v4865_v11  ;;  %v6658_v11 = vld [vmem:[%s7146_s6 + $0x3cc] sm:$0xf] }
 0x21d   : > { %v2193_v25 = vpop.f32.mrf.mxu2 }
 0x21e   : > { %v2194_v45 = vadd.f32 %v2193_v25, %v2025_v60  ;;  %v2362_v46 = vpop.f32.mrf.mxu3  ;;  %v1857_v63 = vpop.f32.mrf.mxu0  ;;  %v7760_v25 = vor.u32 %v6659_v17, %v5862_v27  ;;  %v6504_v27 = vld [vmem:[#allocation2 + $0x2f4] sm:$0xf0]  ;;  %v6398_v17 = vld [vmem:[#allocation2 + $0x3e8] sm:$0xf] }
 0x21f   : > { %v2026_v26 = vpop.f32.mrf.mxu1 }
 0x220   : > { %v2363_v41 = vadd.f32 %v2362_v46, %v2194_v45  ;;  %v2027_v62 = vadd.f32 %v2026_v26, %v1857_v63  ;;  %8509 = vst [vmem:[#allocation99_spill] sm:$0xff] %v7760_v25  ;;  %v7762_v45 = vor.u32 %v6657_v33, %v5864_v61  ;;  %v7764_v46 = vor.u32 %v6660_v31, %v5870_v44 }
 0x221   : > { %v7766_v63 = vor.u32 %v6658_v11, %v5872_v43 }
 0x222   : > { %v4869_v30 = vmul.f32 %v4613_v28, %v2363_v41  ;;  %8510 = vst [vmem:[#allocation100_spill] sm:$0xff] %v7762_v45 }
 0x223   : > { %8511 = vst [vmem:[#allocation101_spill] sm:$0xff] %v7764_v46 }
 0x224   : > { %v4998_v32 = vadd.f32 %v4997_v48, %v4869_v30  ;;  %8512 = vst [vmem:[#allocation102_spill] sm:$0xff] %v7766_v63  ;;  %v6270_v30 = vld [vmem:[#allocation2 + $0x2e8] sm:$0xf] }
 0x225   : > { %v2195_v60 = vpop.f32.mrf.mxu2  ;;  %v6271_v33 = vor.u32 %v6504_v27, %v6270_v30  ;;  %v6661_v30 = vld [vmem:[%s7146_s6 + $0x3e4] sm:$0xf]  ;;  %v5880_v27 = vld [vmem:[%s7146_s6 + $0x3f0] sm:$0xf0] }
 0x226   : > { %v2196_v9 = vadd.f32 %v2195_v60, %v2027_v62  ;;  %v2364_v10 = vpop.f32.mrf.mxu3  ;;  %v1860_v34 = vpop.f32.mrf.mxu0  ;;  %v293_v62 = vld [vmem:[#allocation2 + $0x2c0] sm:$0xff] }
 0x227   : > { %v2029_v28 = vpop.f32.mrf.mxu1  ;;  %v4621_v61 = vunpack.c.l.bf16 %v293_v62  ;;  %3431 = vmatpush.bf16.msra.mxu2 %v6271_v33 }
 0x228   : > { %v2365_v26 = vadd.f32 %v2364_v10, %v2196_v9  ;;  %v2030_v41 = vadd.f32 %v2029_v28, %v1860_v34  ;;  %v6536_v34 = vld [vmem:[#allocation2 + $0x3f4] sm:$0xf0]  ;;  %v295_v10 = vld [vmem:[#allocation2 + $0x2d0] sm:$0xff]  ;;  %v5878_v28 = vld [vmem:[%s7146_s6 + $0x3e0] sm:$0xf] }
 0x229   : > { %1899 = vmatmul.bf16.gmra.mxu0 %v7760_v25  ;;  %2068 = vmatmul.bf16.gmra.mxu1 %v7762_v45  ;;  %v6399_v31 = vor.u32 %v6536_v34, %v6398_v17  ;;  %v6014_v45 = vld [vmem:[#allocation2 + $0xe8] sm:$0xf]  ;;  %v6440_v25 = vld [vmem:[#allocation2 + $0xf4] sm:$0xf0]  ;;  %v4625_v34 = vunpack.c.l.bf16 %v295_v10 }
 0x22a   : > { %v4873_v48 = vmul.f32 %v4617_v29, %v2365_v26  ;;  %2237 = vmatmul.bf16.gmra.mxu2 %v7764_v46  ;;  %v6663_v26 = vld [vmem:[%s7146_s6 + $0x3ec] sm:$0xf0]  ;;  %v5888_v46 = vld [vmem:[%s7146_s6 + $0x3f8] sm:$0xf0] }
 0x22b   : > { %2406 = vmatmul.bf16.gmra.mxu3 %v7766_v63  ;;  %v6662_v63 = vld [vmem:[%s7146_s6 + $0x3ec] sm:$0xf]  ;;  %v7780_v33 = vor.u32 %v6663_v26, %v5878_v28 }
 0x22c   : > { %v4999_v40 = vadd.f32 %v4998_v32, %v4873_v48  ;;  %3600 = vmatpush.bf16.msra.mxu3 %v6399_v31  ;;  %v7786_v42 = vor.u32 %v6662_v63, %v5888_v46 }
 0x22d   : > { %v2198_v43 = vpop.f32.mrf.mxu2 }
 0x22e   : > { %v2199_v9 = vadd.f32 %v2198_v43, %v2030_v41  ;;  %v2367_v29 = vpop.f32.mrf.mxu3  ;;  %v1862_v44 = vpop.f32.mrf.mxu0  ;;  %v5886_v41 = vld [vmem:[%s7146_s6 + $0x3e8] sm:$0xf]  ;;  %v6664_v43 = vld [vmem:[%s7146_s6 + $0x3f4] sm:$0xf0] }
 0x22f   : > { %v2031_v32 = vpop.f32.mrf.mxu1 }
 0x230   : > { %v2368_v11 = vadd.f32 %v2367_v29, %v2199_v9  ;;  %v2032_v60 = vadd.f32 %v2031_v32, %v1862_v44  ;;  %v6015_v9 = vor.u32 %v6440_v25, %v6014_v45  ;;  %v6472_v29 = vld [vmem:[#allocation2 + $0x1f4] sm:$0xf0]  ;;  %v297_v25 = vld [vmem:[#allocation2 + $0x2e0] sm:$0xff] }
 0x231   : > { %v6143_v35 = vor.u32 %v6472_v29, %v6142_v24  ;;  %v4629_v46 = vunpack.c.l.bf16 %v297_v25 }
 0x232   : > { %v4877_v48 = vmul.f32 %v4621_v61, %v2368_v11  ;;  %v7782_v61 = vor.u32 %v6661_v30, %v5880_v27  ;;  %v7784_v11 = vor.u32 %v6664_v43, %v5886_v41  ;;  %3093 = vmatpush.bf16.msra.mxu0 %v6015_v9  ;;  %v299_v27 = vld [vmem:[#allocation2 + $0x2f0] sm:$0xff] }
 0x233   : > { %3262 = vmatpush.bf16.msra.mxu1 %v6143_v35  ;;  %v4633_v9 = vunpack.c.l.bf16 %v299_v27 }
 0x234   : > { %v5000_v62 = vadd.f32 %v4999_v40, %v4877_v48 }
 0x235   : > { %v2200_v17 = vpop.f32.mrf.mxu2 }
 0x236   : > { %v2201_v44 = vadd.f32 %v2200_v17, %v2032_v60  ;;  %v2369_v31 = vpop.f32.mrf.mxu3  ;;  %v1865_v32 = vpop.f32.mrf.mxu0 }
 0x237   : > { %v2034_v8 = vpop.f32.mrf.mxu1 }
 0x238   : > { %v2370_v40 = vadd.f32 %v2369_v31, %v2201_v44  ;;  %v2035_v48 = vadd.f32 %v2034_v8, %v1865_v32 }
 0x239   : > { %1904 = vmatmul.bf16.gmra.mxu0 %v7780_v33  ;;  %2073 = vmatmul.bf16.gmra.mxu1 %v7782_v61 }
 0x23a   : > { %v4881_v10 = vmul.f32 %v4625_v34, %v2370_v40  ;;  %2242 = vmatmul.bf16.gmra.mxu2 %v7784_v11  ;;  %v301_v40 = vld [vmem:[#allocation2 + $0x300] sm:$0xff] }
 0x23b   : > { %2411 = vmatmul.bf16.gmra.mxu3 %v7786_v42 }
 0x23c   : > { %v5001_v45 = vadd.f32 %v5000_v62, %v4881_v10 }
 0x23d   : > { %v2203_v60 = vpop.f32.mrf.mxu2 }
 0x23e   : > { %v2204_v24 = vadd.f32 %v2203_v60, %v2035_v48  ;;  %v2372_v28 = vpop.f32.mrf.mxu3  ;;  %v1867_v63 = vpop.f32.mrf.mxu0  ;;  %v4637_v60 = vunpack.c.l.bf16 %v301_v40 }
 0x23f   : > { %v2036_v26 = vpop.f32.mrf.mxu1 }
 0x240   : > { %v2373_v30 = vadd.f32 %v2372_v28, %v2204_v24  ;;  %v2037_v8 = vadd.f32 %v2036_v26, %v1867_v63 }
 0x242   : > { %v4885_v35 = vmul.f32 %v4629_v46, %v2373_v30  ;;  %v303_v30 = vld [vmem:[#allocation2 + $0x310] sm:$0xff] }
 0x244   : > { %v5002_v41 = vadd.f32 %v5001_v45, %v4885_v35 }
 0x245   : > { %v2205_v43 = vpop.f32.mrf.mxu2 }
 0x246   : > { %v2206_v17 = vadd.f32 %v2205_v43, %v2037_v8  ;;  %v2374_v34 = vpop.f32.mrf.mxu3  ;;  %v1870_v29 = vpop.f32.mrf.mxu0 }
 0x247   : > { %v2039_v44 = vpop.f32.mrf.mxu1 }
 0x248   : > { %v2375_v31 = vadd.f32 %v2374_v34, %v2206_v17  ;;  %v2040_v32 = vadd.f32 %v2039_v44, %v1870_v29  ;;  %v4641_v17 = vunpack.c.l.bf16 %v303_v30 }
 0x249   : > { %2425 = vmatmul.bf16.vlgmr.msrb.gmra.mxu0 %v7160_v47  ;;  %2594 = vmatmul.bf16.vlgmr.msrb.gmra.mxu1 %v7162_v51 }
 0x24a   : > { %v4889_v62 = vmul.f32 %v4633_v9, %v2375_v31  ;;  %2763 = vmatmul.bf16.vlgmr.msrb.gmra.mxu2 %v7164_v52  ;;  %v305_v31 = vld [vmem:[#allocation2 + $0x320] sm:$0xff] }
 0x24b   : > { %2932 = vmatmul.bf16.vlgmr.msrb.gmra.mxu3 %v7166_v53 }
 0x24c   : > { %v5003_v48 = vadd.f32 %v5002_v41, %v4889_v62 }
 0x24d   : > { %v2208_v10 = vpop.f32.mrf.mxu2 }
 0x24e   : > { %v2209_v25 = vadd.f32 %v2208_v10, %v2040_v32  ;;  %v2377_v45 = vpop.f32.mrf.mxu3  ;;  %v1872_v24 = vpop.f32.mrf.mxu0  ;;  %v4645_v10 = vunpack.c.l.bf16 %v305_v31  ;;  %v6500_v31 = vld [vmem:[#allocation2 + $0x2d4] sm:$0xf0] }
 0x24f   : > { %v2041_v28 = vpop.f32.mrf.mxu1 }
 0x250   : > { %v2378_v46 = vadd.f32 %v2377_v45, %v2209_v25  ;;  %v2042_v63 = vadd.f32 %v2041_v28, %v1872_v24 }
 0x252   : > { %v4893_v26 = vmul.f32 %v4637_v60, %v2378_v46  ;;  %v307_v46 = vld [vmem:[#allocation2 + $0x330] sm:$0xff] }
 0x254   : > { %v5004_v8 = vadd.f32 %v5003_v48, %v4893_v26 }
 0x255   : > { %v2210_v35 = vpop.f32.mrf.mxu2 }
 0x256   : > { %v2211_v27 = vadd.f32 %v2210_v35, %v2042_v63  ;;  %v2379_v43 = vpop.f32.mrf.mxu3  ;;  %v1875_v34 = vpop.f32.mrf.mxu0 }
 0x257   : > { %v2044_v9 = vpop.f32.mrf.mxu1 }
 0x258   : > { %v2380_v29 = vadd.f32 %v2379_v43, %v2211_v27  ;;  %v2045_v44 = vadd.f32 %v2044_v9, %v1875_v34  ;;  %v4649_v27 = vunpack.c.l.bf16 %v307_v46 }
 0x259   : > { %2430 = vmatmul.bf16.gmra.mxu0 %v7180_v0  ;;  %2599 = vmatmul.bf16.gmra.mxu1 %v7182_v1 }
 0x25a   : > { %v4897_v41 = vmul.f32 %v4641_v17, %v2380_v29  ;;  %2768 = vmatmul.bf16.gmra.mxu2 %v7184_v2  ;;  %v309_v29 = vld [vmem:[#allocation2 + $0x340] sm:$0xff] }
 0x25b   : > { %2937 = vmatmul.bf16.gmra.mxu3 %v7186_v3 }
 0x25c   : > { %v5005_v32 = vadd.f32 %v5004_v8, %v4897_v41  ;;  %v6254_v41 = vld [vmem:[#allocation2 + $0x2c8] sm:$0xf] }
 0x25d   : > { %v2213_v62 = vpop.f32.mrf.mxu2 }
 0x25e   : > { %v2214_v40 = vadd.f32 %v2213_v62, %v2045_v44  ;;  %v2382_v48 = vpop.f32.mrf.mxu3  ;;  %v1877_v25 = vpop.f32.mrf.mxu0 }
 0x25f   : > { %v2046_v45 = vpop.f32.mrf.mxu1 }
 0x260   : > { %v2383_v60 = vadd.f32 %v2382_v48, %v2214_v40  ;;  %v2047_v24 = vadd.f32 %v2046_v45, %v1877_v25  ;;  %v6255_v40 = vor.u32 %v6500_v31, %v6254_v41  ;;  %v6532_v48 = vld [vmem:[#allocation2 + $0x3d4] sm:$0xf0]  ;;  %v4653_v45 = vunpack.c.l.bf16 %v309_v29 }
 0x261   : > { %v6468_v41 = vld [vmem:[#allocation2 + $0x1d4] sm:$0xf0] }
 0x262   : > { %v4901_v28 = vmul.f32 %v4645_v10, %v2383_v60  ;;  %3432 = vmatpush.bf16.msra.mxu2 %v6255_v40 }
 0x264   : > { %v5006_v63 = vadd.f32 %v5005_v32, %v4901_v28  ;;  %v6382_v32 = vld [vmem:[#allocation2 + $0x3c8] sm:$0xf] }
 0x265   : > { %v2215_v26 = vpop.f32.mrf.mxu2 }
 0x266   : > { %v2216_v30 = vadd.f32 %v2215_v26, %v2047_v24  ;;  %v2384_v35 = vpop.f32.mrf.mxu3  ;;  %v1880_v43 = vpop.f32.mrf.mxu0  ;;  %v6383_v24 = vor.u32 %v6532_v48, %v6382_v32 }
 0x267   : > { %v2049_v17 = vpop.f32.mrf.mxu1 }
 0x268   : > { %v2385_v34 = vadd.f32 %v2384_v35, %v2216_v30  ;;  %v2050_v9 = vadd.f32 %v2049_v17, %v1880_v43  ;;  %3601 = vmatpush.bf16.msra.mxu3 %v6383_v24  ;;  %v311_v35 = vld [vmem:[#allocation2 + $0x350] sm:$0xff]  ;;  %v6436_v43 = vld [vmem:[#allocation2 + $0xd4] sm:$0xf0]  ;;  %v6126_v17 = vld [vmem:[#allocation2 + $0x1c8] sm:$0xf] }
 0x269   : > { %2435 = vmatmul.bf16.gmra.mxu0 %v7200_v12  ;;  %2604 = vmatmul.bf16.gmra.mxu1 %v7202_v13 }
 0x26a   : > { %v4905_v8 = vmul.f32 %v4649_v27, %v2385_v34  ;;  %2773 = vmatmul.bf16.gmra.mxu2 %v7204_v14 }
 0x26b   : > { %2942 = vmatmul.bf16.gmra.mxu3 %v7206_v15  ;;  %v6127_v15 = vor.u32 %v6468_v41, %v6126_v17 }
 0x26c   : > { %v5007_v44 = vadd.f32 %v5006_v63, %v4905_v8  ;;  %v5998_v63 = vld [vmem:[#allocation2 + $0xc8] sm:$0xf] }
 0x26d   : > { %v2218_v62 = vpop.f32.mrf.mxu2  ;;  %v5999_v8 = vor.u32 %v6436_v43, %v5998_v63  ;;  %3263 = vmatpush.bf16.msra.mxu1 %v6127_v15  ;;  %v315_v63 = vld [vmem:[#allocation2 + $0x370] sm:$0xff] }
 0x26e   : > { %v2219_v10 = vadd.f32 %v2218_v62, %v2050_v9  ;;  %v2387_v25 = vpop.f32.mrf.mxu3  ;;  %v1882_v60 = vpop.f32.mrf.mxu0  ;;  %v4657_v62 = vunpack.c.l.bf16 %v311_v35  ;;  %v4665_v41 = vunpack.c.l.bf16 %v315_v63 }
 0x26f   : > { %v2051_v28 = vpop.f32.mrf.mxu1  ;;  %3094 = vmatpush.bf16.msra.mxu0 %v5999_v8 }
 0x270   : > { %v2388_v46 = vadd.f32 %v2387_v25, %v2219_v10  ;;  %v2052_v26 = vadd.f32 %v2051_v28, %v1882_v60 }
 0x272   : > { %v4909_v30 = vmul.f32 %v4653_v45, %v2388_v46 }
 0x274   : > { %v5008_v27 = vadd.f32 %v5007_v44, %v4909_v30  ;;  %v313_v44 = vld [vmem:[#allocation2 + $0x360] sm:$0xff] }
 0x275   : > { %v2220_v34 = vpop.f32.mrf.mxu2  ;;  %v4661_v28 = vunpack.c.l.bf16 %v313_v44 }
 0x276   : > { %v2221_v31 = vadd.f32 %v2220_v34, %v2052_v26  ;;  %v2389_v9 = vpop.f32.mrf.mxu3  ;;  %v1885_v29 = vpop.f32.mrf.mxu0 }
 0x277   : > { %v2054_v32 = vpop.f32.mrf.mxu1 }
 0x278   : > { %v2390_v40 = vadd.f32 %v2389_v9, %v2221_v31  ;;  %v2055_v48 = vadd.f32 %v2054_v32, %v1885_v29  ;;  %v317_v32 = vld [vmem:[#allocation2 + $0x380] sm:$0xff] }
 0x279   : > { %2440 = vmatmul.bf16.gmra.mxu0 %v7220_v36  ;;  %2609 = vmatmul.bf16.gmra.mxu1 %v7222_v37 }
 0x27a   : > { %v4913_v10 = vmul.f32 %v4657_v62, %v2390_v40  ;;  %2778 = vmatmul.bf16.gmra.mxu2 %v7224_v38 }
 0x27b   : > { %2947 = vmatmul.bf16.gmra.mxu3 %v7226_v39 }
 0x27c   : > { %v5009_v25 = vadd.f32 %v5008_v27, %v4913_v10 }
 0x27d   : > { %v2223_v45 = vpop.f32.mrf.mxu2 }
 0x27e   : > { %v2224_v60 = vadd.f32 %v2223_v45, %v2055_v48  ;;  %v2392_v24 = vpop.f32.mrf.mxu3  ;;  %v1887_v46 = vpop.f32.mrf.mxu0 }
 0x27f   : > { %v2056_v26 = vpop.f32.mrf.mxu1 }
 0x280   : > { %v2393_v30 = vadd.f32 %v2392_v24, %v2224_v60  ;;  %v2057_v35 = vadd.f32 %v2056_v26, %v1887_v46  ;;  %v319_v26 = vld [vmem:[#allocation2 + $0x390] sm:$0xff] }
 0x282   : > { %v4917_v15 = vmul.f32 %v4661_v28, %v2393_v30 }
 0x284   : > { %v5010_v43 = vadd.f32 %v5009_v25, %v4917_v15  ;;  %v4669_v25 = vunpack.c.l.bf16 %v317_v32 }
 0x285   : > { %v2225_v17 = vpop.f32.mrf.mxu2 }
 0x286   : > { %v2226_v34 = vadd.f32 %v2225_v17, %v2057_v35  ;;  %v2394_v8 = vpop.f32.mrf.mxu3  ;;  %v1890_v31 = vpop.f32.mrf.mxu0  ;;  %v4673_v17 = vunpack.c.l.bf16 %v319_v26 }
 0x287   : > { %v2059_v9 = vpop.f32.mrf.mxu1 }
 0x288   : > { %v2395_v62 = vadd.f32 %v2394_v8, %v2226_v34  ;;  %v2060_v29 = vadd.f32 %v2059_v9, %v1890_v31  ;;  %v321_v9 = vld [vmem:[#allocation2 + $0x3a0] sm:$0xff] }
 0x289   : > { %2445 = vmatmul.bf16.gmra.mxu0 %v7240_v49  ;;  %2614 = vmatmul.bf16.gmra.mxu1 %v7242_v50 }
 0x28a   : > { %v4921_v27 = vmul.f32 %v4665_v41, %v2395_v62  ;;  %2783 = vmatmul.bf16.gmra.mxu2 %v7244_v54 }
 0x28b   : > { %2952 = vmatmul.bf16.gmra.mxu3 %v7246_v55 }
 0x28c   : > { %v5011_v40 = vadd.f32 %v5010_v43, %v4921_v27 }
 0x28d   : > { %v2228_v48 = vpop.f32.mrf.mxu2 }
 0x28e   : > { %v2229_v10 = vadd.f32 %v2228_v48, %v2060_v29  ;;  %v2397_v44 = vpop.f32.mrf.mxu3  ;;  %v1892_v45 = vpop.f32.mrf.mxu0 }
 0x28f   : > { %v2061_v60 = vpop.f32.mrf.mxu1 }
 0x290   : > { %v2398_v24 = vadd.f32 %v2397_v44, %v2229_v10  ;;  %v2062_v28 = vadd.f32 %v2061_v60, %v1892_v45  ;;  %v323_v60 = vld [vmem:[#allocation2 + $0x3b0] sm:$0xff] }
 0x292   : > { %v4925_v46 = vmul.f32 %v4669_v25, %v2398_v24 }
 0x294   : > { %v5012_v30 = vadd.f32 %v5011_v40, %v4925_v46  ;;  %v4677_v40 = vunpack.c.l.bf16 %v321_v9 }
 0x295   : > { %v2230_v35 = vpop.f32.mrf.mxu2 }
 0x296   : > { %v2231_v15 = vadd.f32 %v2230_v35, %v2062_v28  ;;  %v2399_v63 = vpop.f32.mrf.mxu3  ;;  %v1895_v34 = vpop.f32.mrf.mxu0  ;;  %v4681_v35 = vunpack.c.l.bf16 %v323_v60 }
 0x297   : > { %v2064_v8 = vpop.f32.mrf.mxu1 }
 0x298   : > { %v2400_v41 = vadd.f32 %v2399_v63, %v2231_v15  ;;  %v2065_v31 = vadd.f32 %v2064_v8, %v1895_v34  ;;  %v325_v8 = vld [vmem:[#allocation2 + $0x3c0] sm:$0xff] }
 0x299   : > { %2450 = vmatmul.bf16.gmra.mxu0 %v7260_v4  ;;  %2619 = vmatmul.bf16.gmra.mxu1 %v7262_v5 }
 0x29a   : > { %v4929_v43 = vmul.f32 %v4673_v17, %v2400_v41  ;;  %2788 = vmatmul.bf16.gmra.mxu2 %v7264_v6 }
 0x29b   : > { %2957 = vmatmul.bf16.gmra.mxu3 %v7266_v7 }
 0x29c   : > { %v5013_v62 = vadd.f32 %v5012_v30, %v4929_v43 }
 0x29d   : > { %v2233_v29 = vpop.f32.mrf.mxu2 }
 0x29e   : > { %v2234_v27 = vadd.f32 %v2233_v29, %v2065_v31  ;;  %v2402_v32 = vpop.f32.mrf.mxu3  ;;  %v1897_v48 = vpop.f32.mrf.mxu0 }
 0x29f   : > { %v2066_v10 = vpop.f32.mrf.mxu1 }
 0x2a0   : > { %v2403_v44 = vadd.f32 %v2402_v32, %v2234_v27  ;;  %v2067_v25 = vadd.f32 %v2066_v10, %v1897_v48  ;;  %v327_v10 = vld [vmem:[#allocation2 + $0x3d0] sm:$0xff] }
 0x2a2   : > { %v4933_v45 = vmul.f32 %v4677_v40, %v2403_v44 }
 0x2a4   : > { %v5014_v24 = vadd.f32 %v5013_v62, %v4933_v45  ;;  %v4685_v62 = vunpack.c.l.bf16 %v325_v8 }
 0x2a5   : > { %v2235_v28 = vpop.f32.mrf.mxu2 }
 0x2a6   : > { %v2236_v46 = vadd.f32 %v2235_v28, %v2067_v25  ;;  %v2404_v26 = vpop.f32.mrf.mxu3  ;;  %v1900_v15 = vpop.f32.mrf.mxu0  ;;  %v4689_v28 = vunpack.c.l.bf16 %v327_v10 }
 0x2a7   : > { %v2069_v63 = vpop.f32.mrf.mxu1 }
 0x2a8   : > { %v2405_v17 = vadd.f32 %v2404_v26, %v2236_v46  ;;  %v2070_v34 = vadd.f32 %v2069_v63, %v1900_v15 }
 0x2a9   : > { %2455 = vmatmul.bf16.gmra.mxu0 %v7280_v20  ;;  %2624 = vmatmul.bf16.gmra.mxu1 %v7282_v21 }
 0x2aa   : > { %v4937_v30 = vmul.f32 %v4681_v35, %v2405_v17  ;;  %2793 = vmatmul.bf16.gmra.mxu2 %v7284_v22  ;;  %v6238_v17 = vld [vmem:[#allocation2 + $0x2a8] sm:$0xf] }
 0x2ab   : > { %2962 = vmatmul.bf16.gmra.mxu3 %v7286_v23 }
 0x2ac   : > { %v5015_v41 = vadd.f32 %v5014_v24, %v4937_v30  ;;  %v329_v24 = vld [vmem:[#allocation2 + $0x3e0] sm:$0xff]  ;;  %v6366_v30 = vld [vmem:[#allocation2 + $0x3a8] sm:$0xf] }
 0x2ad   : > { %v2238_v31 = vpop.f32.mrf.mxu2 }
 0x2ae   : > { %v2239_v43 = vadd.f32 %v2238_v31, %v2070_v34  ;;  %v2407_v9 = vpop.f32.mrf.mxu3  ;;  %v1902_v29 = vpop.f32.mrf.mxu0  ;;  %v6496_v34 = vld [vmem:[#allocation2 + $0x2b4] sm:$0xf0]  ;;  %v5982_v31 = vld [vmem:[#allocation2 + $0xa8] sm:$0xf] }
 0x2af   : > { %v2071_v27 = vpop.f32.mrf.mxu1  ;;  %v6239_v8 = vor.u32 %v6496_v34, %v6238_v17  ;;  %v331_v17 = vld [vmem:[#allocation2 + $0x3f0] sm:$0xff] }
 0x2b0   : > { %v2408_v32 = vadd.f32 %v2407_v9, %v2239_v43  ;;  %v2072_v40 = vadd.f32 %v2071_v27, %v1902_v29  ;;  %v6432_v43 = vld [vmem:[#allocation2 + $0xb4] sm:$0xf0]  ;;  %v6110_v27 = vld [vmem:[#allocation2 + $0x1a8] sm:$0xf] }
 0x2b1   : > { %v5983_v29 = vor.u32 %v6432_v43, %v5982_v31  ;;  %3433 = vmatpush.bf16.msra.mxu2 %v6239_v8 }
 0x2b2   : > { %v4941_v48 = vmul.f32 %v4685_v62, %v2408_v32  ;;  %v6464_v32 = vld [vmem:[#allocation2 + $0x1b4] sm:$0xf0] }
 0x2b3   : > { %3095 = vmatpush.bf16.msra.mxu0 %v5983_v29 }
 0x2b4   : > { %v5016_v44 = vadd.f32 %v5015_v41, %v4941_v48  ;;  %v6528_v41 = vld [vmem:[#allocation2 + $0x3b4] sm:$0xf0]  ;;  %v6111_v48 = vor.u32 %v6464_v32, %v6110_v27 }
 0x2b5   : > { %v2240_v25 = vpop.f32.mrf.mxu2  ;;  %v6367_v62 = vor.u32 %v6528_v41, %v6366_v30  ;;  %v4697_v41 = vunpack.c.l.bf16 %v331_v17 }
 0x2b6   : > { %v2241_v45 = vadd.f32 %v2240_v25, %v2072_v40  ;;  %v2409_v60 = vpop.f32.mrf.mxu3  ;;  %v1905_v46 = vpop.f32.mrf.mxu0  ;;  %3264 = vmatpush.bf16.msra.mxu1 %v6111_v48 }
 0x2b7   : > { %v2074_v26 = vpop.f32.mrf.mxu1  ;;  %3602 = vmatpush.bf16.msra.mxu3 %v6367_v62  ;;  %v8513_v62 = vld [vmem:[#allocation14_spill] sm:$0xff] }
 0x2b8   : > { %v2410_v35 = vadd.f32 %v2409_v60, %v2241_v45  ;;  %v2075_v15 = vadd.f32 %v2074_v26, %v1905_v46  ;;  %v4693_v45 = vunpack.c.l.bf16 %v329_v24 }
 0x2b9   : > { %2460 = vmatmul.bf16.gmra.mxu0 %v7300_v56  ;;  %2629 = vmatmul.bf16.gmra.mxu1 %v7302_v57 }
 0x2ba   : > { %v4945_v63 = vmul.f32 %v4689_v28, %v2410_v35  ;;  %2798 = vmatmul.bf16.gmra.mxu2 %v7304_v58 }
 0x2bb   : > { %2967 = vmatmul.bf16.gmra.mxu3 %v7306_v59 }
 0x2bc   : > { %v5017_v9 = vadd.f32 %v5016_v44, %v4945_v63 }
 0x2bd   : > { %v2243_v40 = vpop.f32.mrf.mxu2 }
 0x2be   : > { %v2244_v10 = vadd.f32 %v2243_v40, %v2075_v15  ;;  %v2412_v25 = vpop.f32.mrf.mxu3  ;;  %v1907_v60 = vpop.f32.mrf.mxu0 }
 0x2bf   : > { %v2076_v28 = vpop.f32.mrf.mxu1 }
 0x2c0   : > { %v2413_v46 = vadd.f32 %v2412_v25, %v2244_v10  ;;  %v2077_v26 = vadd.f32 %v2076_v28, %v1907_v60  ;;  %v6740_v60 = vld [vmem:[#allocation2] sm:$0xff] }
 0x2c1   : > { %v4446_v28 = vunpack.c.h.bf16 %v6740_v60 }
 0x2c2   : > { %v4949_v35 = vmul.f32 %v4693_v45, %v2413_v46 }
 0x2c4   : > { %v5018_v44 = vadd.f32 %v5017_v9, %v4949_v35  ;;  %v6741_v35 = vld [vmem:[#allocation2 + $0x10] sm:$0xff] }
 0x2c5   : > { %v2245_v63 = vpop.f32.mrf.mxu2  ;;  %v4450_v17 = vunpack.c.h.bf16 %v6741_v35 }
 0x2c6   : > { %v2246_v34 = vadd.f32 %v2245_v63, %v2077_v26  ;;  %v2414_v30 = vpop.f32.mrf.mxu3  ;;  %v2426_v31 = vpop.f32.mrf.mxu0 }
 0x2c7   : > { %v2595_v8 = vpop.f32.mrf.mxu1 }
 0x2c8   : > { %v2415_v43 = vadd.f32 %v2414_v30, %v2246_v34  ;;  %v2596_v15 = vadd.f32 %v2595_v8, %v2426_v31 }
 0x2c9   : > { %2465 = vmatmul.bf16.gmra.mxu0 %v7320_v16  ;;  %2634 = vmatmul.bf16.gmra.mxu1 %v7322_v18 }
 0x2ca   : > { %v4953_v24 = vmul.f32 %v4697_v41, %v2415_v43  ;;  %2803 = vmatmul.bf16.gmra.mxu2 %v7324_v19  ;;  %v8515_v43 = vld [vmem:[#allocation16_spill] sm:$0xff] }
 0x2cb   : > { %2972 = vmatmul.bf16.gmra.mxu3 %v8513_v62 }
 0x2cc   : > { %v7828_v29 = vadd.f32 %v5018_v44, %v4953_v24  ;;  %v8514_v44 = vld [vmem:[#allocation15_spill] sm:$0xff]  ;;  %v8517_v24 = vld [vmem:[#allocation18_spill] sm:$0xff] }
 0x2cd   : > { %v2764_v9 = vpop.f32.mrf.mxu2 }
 0x2ce   : > { %v2765_v27 = vadd.f32 %v2764_v9, %v2596_v15  ;;  %v2933_v32 = vpop.f32.mrf.mxu3  ;;  %v2428_v40 = vpop.f32.mrf.mxu0  ;;  %v8516_v15 = vld [vmem:[#allocation17_spill] sm:$0xff] }
 0x2cf   : > { %v2597_v48 = vpop.f32.mrf.mxu1 }
 0x2d0   : > { %v2934_v10 = vadd.f32 %v2933_v32, %v2765_v27  ;;  %v2598_v25 = vadd.f32 %v2597_v48, %v2428_v40  ;;  %v6742_v48 = vld [vmem:[#allocation2 + $0x20] sm:$0xff] }
 0x2d2   : > { %v4702_v31 = vmul.f32 %v4446_v28, %v2934_v10 }
 0x2d5   : > { %v2766_v45 = vpop.f32.mrf.mxu2 }
 0x2d6   : > { %v2767_v46 = vadd.f32 %v2766_v45, %v2598_v25  ;;  %v2935_v26 = vpop.f32.mrf.mxu3  ;;  %v2431_v63 = vpop.f32.mrf.mxu0  ;;  %v4454_v25 = vunpack.c.h.bf16 %v6742_v48  ;;  %v8520_v48 = vld [vmem:[#allocation21_spill] sm:$0xff] }
 0x2d7   : > { %v2600_v34 = vpop.f32.mrf.mxu1 }
 0x2d8   : > { %v2936_v30 = vadd.f32 %v2935_v26, %v2767_v46  ;;  %v2601_v41 = vadd.f32 %v2600_v34, %v2431_v63  ;;  %v6743_v34 = vld [vmem:[#allocation2 + $0x30] sm:$0xff] }
 0x2d9   : > { %2470 = vmatmul.bf16.gmra.mxu0 %v8514_v44  ;;  %2639 = vmatmul.bf16.gmra.mxu1 %v8515_v43 }
 0x2da   : > { %v4706_v8 = vmul.f32 %v4450_v17, %v2936_v30  ;;  %2808 = vmatmul.bf16.gmra.mxu2 %v8516_v15  ;;  %v4458_v30 = vunpack.c.h.bf16 %v6743_v34 }
 0x2db   : > { %2977 = vmatmul.bf16.gmra.mxu3 %v8517_v24 }
 0x2dc   : > { %v5026_v9 = vadd.f32 %v4706_v8, %v4702_v31  ;;  %v8518_v8 = vld [vmem:[#allocation19_spill] sm:$0xff] }
 0x2dd   : > { %v2769_v27 = vpop.f32.mrf.mxu2 }
 0x2de   : > { %v2770_v32 = vadd.f32 %v2769_v27, %v2601_v41  ;;  %v2938_v40 = vpop.f32.mrf.mxu3  ;;  %v2433_v45 = vpop.f32.mrf.mxu0  ;;  %v8519_v27 = vld [vmem:[#allocation20_spill] sm:$0xff] }
 0x2df   : > { %v2602_v60 = vpop.f32.mrf.mxu1 }
 0x2e0   : > { %v2939_v46 = vadd.f32 %v2938_v40, %v2770_v32  ;;  %v2603_v26 = vadd.f32 %v2602_v60, %v2433_v45  ;;  %v8521_v32 = vld [vmem:[#allocation22_spill] sm:$0xff]  ;;  %v6350_v45 = vld [vmem:[#allocation2 + $0x388] sm:$0xf] }
 0x2e2   : > { %v4710_v35 = vmul.f32 %v4454_v25, %v2939_v46  ;;  %v6492_v25 = vld [vmem:[#allocation2 + $0x294] sm:$0xf0] }
 0x2e4   : > { %v5027_v63 = vadd.f32 %v5026_v9, %v4710_v35  ;;  %v6222_v9 = vld [vmem:[#allocation2 + $0x288] sm:$0xf] }
 0x2e5   : > { %v2771_v10 = vpop.f32.mrf.mxu2  ;;  %v6223_v46 = vor.u32 %v6492_v25, %v6222_v9  ;;  %v6460_v9 = vld [vmem:[#allocation2 + $0x194] sm:$0xf0] }
 0x2e6   : > { %v2772_v28 = vadd.f32 %v2771_v10, %v2603_v26  ;;  %v2940_v17 = vpop.f32.mrf.mxu3  ;;  %v2436_v15 = vpop.f32.mrf.mxu0  ;;  %v6524_v26 = vld [vmem:[#allocation2 + $0x394] sm:$0xf0] }
 0x2e7   : > { %v2605_v43 = vpop.f32.mrf.mxu1  ;;  %3434 = vmatpush.bf16.msra.mxu2 %v6223_v46 }
 0x2e8   : > { %v2941_v24 = vadd.f32 %v2940_v17, %v2772_v28  ;;  %v2606_v31 = vadd.f32 %v2605_v43, %v2436_v15  ;;  %v6744_v28 = vld [vmem:[#allocation2 + $0x40] sm:$0xff]  ;;  %v6351_v17 = vor.u32 %v6524_v26, %v6350_v45 }
 0x2e9   : > { %2475 = vmatmul.bf16.gmra.mxu0 %v8518_v8  ;;  %2644 = vmatmul.bf16.gmra.mxu1 %v8519_v27  ;;  %v4462_v43 = vunpack.c.h.bf16 %v6744_v28  ;;  %v6094_v27 = vld [vmem:[#allocation2 + $0x188] sm:$0xf] }
 0x2ea   : > { %v4714_v41 = vmul.f32 %v4458_v30, %v2941_v24  ;;  %2813 = vmatmul.bf16.gmra.mxu2 %v8520_v48  ;;  %3603 = vmatpush.bf16.msra.mxu3 %v6351_v17  ;;  %v6095_v19 = vor.u32 %v6460_v9, %v6094_v27 }
 0x2eb   : > { %2982 = vmatmul.bf16.gmra.mxu3 %v8521_v32 }
 0x2ec   : > { %v5028_v40 = vadd.f32 %v5027_v63, %v4714_v41  ;;  %v5966_v63 = vld [vmem:[#allocation2 + $0x88] sm:$0xf]  ;;  %v6428_v41 = vld [vmem:[#allocation2 + $0x94] sm:$0xf0]  ;;  %3265 = vmatpush.bf16.msra.mxu1 %v6095_v19 }
 0x2ed   : > { %v2774_v60 = vpop.f32.mrf.mxu2  ;;  %v5967_v44 = vor.u32 %v6428_v41, %v5966_v63 }
 0x2ee   : > { %v2775_v35 = vadd.f32 %v2774_v60, %v2606_v31  ;;  %v2943_v10 = vpop.f32.mrf.mxu3  ;;  %v2438_v15 = vpop.f32.mrf.mxu0  ;;  %v6745_v60 = vld [vmem:[#allocation2 + $0x50] sm:$0xff] }
 0x2ef   : > { %v2607_v24 = vpop.f32.mrf.mxu1  ;;  %v4466_v62 = vunpack.c.h.bf16 %v6745_v60  ;;  %3096 = vmatpush.bf16.msra.mxu0 %v5967_v44  ;;  %v6747_v60 = vld [vmem:[#allocation2 + $0x70] sm:$0xff] }
 0x2f0   : > { %v2944_v34 = vadd.f32 %v2943_v10, %v2775_v35  ;;  %v2608_v30 = vadd.f32 %v2607_v24, %v2438_v15  ;;  %v8522_v35 = vld [vmem:[#allocation23_spill] sm:$0xff]  ;;  %v8524_v10 = vld [vmem:[#allocation25_spill] sm:$0xff] }
 0x2f2   : > { %v4718_v48 = vmul.f32 %v4462_v43, %v2944_v34  ;;  %v8525_v43 = vld [vmem:[#allocation26_spill] sm:$0xff] }
 0x2f3   : > { %v6746_v34 = vld [vmem:[#allocation2 + $0x60] sm:$0xff] }
 0x2f4   : > { %v5029_v32 = vadd.f32 %v5028_v40, %v4718_v48  ;;  %v8523_v40 = vld [vmem:[#allocation24_spill] sm:$0xff]  ;;  %v4470_v27 = vunpack.c.h.bf16 %v6746_v34  ;;  %v8528_v34 = vld [vmem:[#allocation29_spill] sm:$0xff] }
 0x2f5   : > { %v2776_v8 = vpop.f32.mrf.mxu2 }
 0x2f6   : > { %v2777_v25 = vadd.f32 %v2776_v8, %v2608_v30  ;;  %v2945_v31 = vpop.f32.mrf.mxu3  ;;  %v2441_v28 = vpop.f32.mrf.mxu0 }
 0x2f7   : > { %v2610_v45 = vpop.f32.mrf.mxu1 }
 0x2f8   : > { %v2946_v46 = vadd.f32 %v2945_v31, %v2777_v25  ;;  %v2611_v26 = vadd.f32 %v2610_v45, %v2441_v28  ;;  %v4474_v28 = vunpack.c.h.bf16 %v6747_v60 }
 0x2f9   : > { %2480 = vmatmul.bf16.gmra.mxu0 %v8522_v35  ;;  %2649 = vmatmul.bf16.gmra.mxu1 %v8523_v40 }
 0x2fa   : > { %v4722_v48 = vmul.f32 %v4466_v62, %v2946_v46  ;;  %2818 = vmatmul.bf16.gmra.mxu2 %v8524_v10 }
 0x2fb   : > { %2987 = vmatmul.bf16.gmra.mxu3 %v8525_v43 }
 0x2fc   : > { %v5030_v8 = vadd.f32 %v5029_v32, %v4722_v48  ;;  %v8526_v48 = vld [vmem:[#allocation27_spill] sm:$0xff] }
 0x2fd   : > { %v2779_v15 = vpop.f32.mrf.mxu2 }
 0x2fe   : > { %v2780_v17 = vadd.f32 %v2779_v15, %v2611_v26  ;;  %v2948_v24 = vpop.f32.mrf.mxu3  ;;  %v2443_v30 = vpop.f32.mrf.mxu0  ;;  %v8527_v15 = vld [vmem:[#allocation28_spill] sm:$0xff] }
 0x2ff   : > { %v2612_v44 = vpop.f32.mrf.mxu1 }
 0x300   : > { %v2949_v63 = vadd.f32 %v2948_v24, %v2780_v17  ;;  %v2613_v41 = vadd.f32 %v2612_v44, %v2443_v30  ;;  %v8529_v17 = vld [vmem:[#allocation30_spill] sm:$0xff] }
 0x301   : > { %v6748_v44 = vld [vmem:[#allocation2 + $0x80] sm:$0xff] }
 0x302   : > { %v4726_v19 = vmul.f32 %v4470_v27, %v2949_v63  ;;  %v4478_v63 = vunpack.c.h.bf16 %v6748_v44  ;;  %v8532_v44 = vld [vmem:[#allocation33_spill] sm:$0xff] }
 0x304   : > { %v5031_v9 = vadd.f32 %v5030_v8, %v4726_v19 }
 0x305   : > { %v2781_v25 = vpop.f32.mrf.mxu2 }
 0x306   : > { %v2782_v62 = vadd.f32 %v2781_v25, %v2613_v41  ;;  %v2950_v31 = vpop.f32.mrf.mxu3  ;;  %v2446_v45 = vpop.f32.mrf.mxu0 }
 0x307   : > { %v2615_v46 = vpop.f32.mrf.mxu1 }
 0x308   : > { %v2951_v43 = vadd.f32 %v2950_v31, %v2782_v62  ;;  %v2616_v32 = vadd.f32 %v2615_v46, %v2446_v45  ;;  %v6749_v46 = vld [vmem:[#allocation2 + $0x90] sm:$0xff] }
 0x309   : > { %2485 = vmatmul.bf16.gmra.mxu0 %v8526_v48  ;;  %2654 = vmatmul.bf16.gmra.mxu1 %v8527_v15  ;;  %v4482_v15 = vunpack.c.h.bf16 %v6749_v46  ;;  %v6751_v46 = vld [vmem:[#allocation2 + $0xb0] sm:$0xff] }
 0x30a   : > { %v4730_v26 = vmul.f32 %v4474_v28, %v2951_v43  ;;  %2823 = vmatmul.bf16.gmra.mxu2 %v8528_v34 }
 0x30b   : > { %2992 = vmatmul.bf16.gmra.mxu3 %v8529_v17 }
 0x30c   : > { %v5032_v24 = vadd.f32 %v5031_v9, %v4730_v26  ;;  %v8530_v26 = vld [vmem:[#allocation31_spill] sm:$0xff] }
 0x30d   : > { %v2784_v8 = vpop.f32.mrf.mxu2 }
 0x30e   : > { %v2785_v27 = vadd.f32 %v2784_v8, %v2616_v32  ;;  %v2953_v30 = vpop.f32.mrf.mxu3  ;;  %v2448_v41 = vpop.f32.mrf.mxu0  ;;  %v8531_v8 = vld [vmem:[#allocation32_spill] sm:$0xff] }
 0x30f   : > { %v2617_v19 = vpop.f32.mrf.mxu1 }
 0x310   : > { %v2954_v25 = vadd.f32 %v2953_v30, %v2785_v27  ;;  %v2618_v62 = vadd.f32 %v2617_v19, %v2448_v41  ;;  %v8533_v27 = vld [vmem:[#allocation34_spill] sm:$0xff] }
 0x311   : > { %v6750_v19 = vld [vmem:[#allocation2 + $0xa0] sm:$0xff] }
 0x312   : > { %v4734_v31 = vmul.f32 %v4478_v63, %v2954_v25  ;;  %v4486_v25 = vunpack.c.h.bf16 %v6750_v19  ;;  %v8536_v19 = vld [vmem:[#allocation37_spill] sm:$0xff] }
 0x314   : > { %v5033_v60 = vadd.f32 %v5032_v24, %v4734_v31 }
 0x315   : > { %v2786_v45 = vpop.f32.mrf.mxu2 }
 0x316   : > { %v2787_v43 = vadd.f32 %v2786_v45, %v2618_v62  ;;  %v2955_v28 = vpop.f32.mrf.mxu3  ;;  %v2451_v34 = vpop.f32.mrf.mxu0 }
 0x317   : > { %v2620_v48 = vpop.f32.mrf.mxu1 }
 0x318   : > { %v2956_v17 = vadd.f32 %v2955_v28, %v2787_v43  ;;  %v2621_v9 = vadd.f32 %v2620_v48, %v2451_v34 }
 0x319   : > { %2490 = vmatmul.bf16.gmra.mxu0 %v8530_v26  ;;  %2659 = vmatmul.bf16.gmra.mxu1 %v8531_v8  ;;  %v4490_v8 = vunpack.c.h.bf16 %v6751_v46 }
 0x31a   : > { %v4738_v32 = vmul.f32 %v4482_v15, %v2956_v17  ;;  %2828 = vmatmul.bf16.gmra.mxu2 %v8532_v44 }
 0x31b   : > { %2997 = vmatmul.bf16.gmra.mxu3 %v8533_v27 }
 0x31c   : > { %v5034_v30 = vadd.f32 %v5033_v60, %v4738_v32  ;;  %v8534_v32 = vld [vmem:[#allocation35_spill] sm:$0xff] }
 0x31d   : > { %v2789_v24 = vpop.f32.mrf.mxu2 }
 0x31e   : > { %v2790_v63 = vadd.f32 %v2789_v24, %v2621_v9  ;;  %v2958_v41 = vpop.f32.mrf.mxu3  ;;  %v2453_v62 = vpop.f32.mrf.mxu0  ;;  %v8535_v24 = vld [vmem:[#allocation36_spill] sm:$0xff] }
 0x31f   : > { %v2622_v31 = vpop.f32.mrf.mxu1 }
 0x320   : > { %v2959_v45 = vadd.f32 %v2958_v41, %v2790_v63  ;;  %v2623_v43 = vadd.f32 %v2622_v31, %v2453_v62  ;;  %v8537_v63 = vld [vmem:[#allocation38_spill] sm:$0xff]  ;;  %v6334_v62 = vld [vmem:[#allocation2 + $0x368] sm:$0xf] }
 0x322   : > { %v4742_v48 = vmul.f32 %v4486_v25, %v2959_v45  ;;  %v6488_v25 = vld [vmem:[#allocation2 + $0x274] sm:$0xf0] }
 0x324   : > { %v5035_v34 = vadd.f32 %v5034_v30, %v4742_v48  ;;  %v6206_v30 = vld [vmem:[#allocation2 + $0x268] sm:$0xf] }
 0x325   : > { %v2791_v28 = vpop.f32.mrf.mxu2  ;;  %v6207_v45 = vor.u32 %v6488_v25, %v6206_v30  ;;  %v6456_v30 = vld [vmem:[#allocation2 + $0x174] sm:$0xf0] }
 0x326   : > { %v2792_v15 = vadd.f32 %v2791_v28, %v2623_v43  ;;  %v2960_v17 = vpop.f32.mrf.mxu3  ;;  %v2456_v44 = vpop.f32.mrf.mxu0  ;;  %v6520_v43 = vld [vmem:[#allocation2 + $0x374] sm:$0xf0] }
 0x327   : > { %v2625_v26 = vpop.f32.mrf.mxu1  ;;  %3435 = vmatpush.bf16.msra.mxu2 %v6207_v45 }
 0x328   : > { %v2961_v27 = vadd.f32 %v2960_v17, %v2792_v15  ;;  %v2626_v60 = vadd.f32 %v2625_v26, %v2456_v44  ;;  %v6752_v15 = vld [vmem:[#allocation2 + $0xc0] sm:$0xff]  ;;  %v6335_v17 = vor.u32 %v6520_v43, %v6334_v62 }
 0x329   : > { %2495 = vmatmul.bf16.gmra.mxu0 %v8534_v32  ;;  %2664 = vmatmul.bf16.gmra.mxu1 %v8535_v24  ;;  %v4494_v26 = vunpack.c.h.bf16 %v6752_v15  ;;  %v6078_v24 = vld [vmem:[#allocation2 + $0x168] sm:$0xf] }
 0x32a   : > { %v4746_v9 = vmul.f32 %v4490_v8, %v2961_v27  ;;  %2833 = vmatmul.bf16.gmra.mxu2 %v8536_v19  ;;  %3604 = vmatpush.bf16.msra.mxu3 %v6335_v17  ;;  %v6079_v35 = vor.u32 %v6456_v30, %v6078_v24 }
 0x32b   : > { %3002 = vmatmul.bf16.gmra.mxu3 %v8537_v63 }
 0x32c   : > { %v5036_v41 = vadd.f32 %v5035_v34, %v4746_v9  ;;  %v5950_v34 = vld [vmem:[#allocation2 + $0x68] sm:$0xf]  ;;  %v6424_v9 = vld [vmem:[#allocation2 + $0x74] sm:$0xf0]  ;;  %3266 = vmatpush.bf16.msra.mxu1 %v6079_v35 }
 0x32d   : > { %v2794_v31 = vpop.f32.mrf.mxu2  ;;  %v5951_v10 = vor.u32 %v6424_v9, %v5950_v34 }
 0x32e   : > { %v2795_v48 = vadd.f32 %v2794_v31, %v2626_v60  ;;  %v2963_v28 = vpop.f32.mrf.mxu3  ;;  %v2458_v44 = vpop.f32.mrf.mxu0  ;;  %v6753_v31 = vld [vmem:[#allocation2 + $0xd0] sm:$0xff] }
 0x32f   : > { %v2627_v8 = vpop.f32.mrf.mxu1  ;;  %v4498_v40 = vunpack.c.h.bf16 %v6753_v31  ;;  %3097 = vmatpush.bf16.msra.mxu0 %v5951_v10  ;;  %v6755_v31 = vld [vmem:[#allocation2 + $0xf0] sm:$0xff] }
 0x330   : > { %v2964_v27 = vadd.f32 %v2963_v28, %v2795_v48  ;;  %v2628_v46 = vadd.f32 %v2627_v8, %v2458_v44  ;;  %v8538_v48 = vld [vmem:[#allocation39_spill] sm:$0xff]  ;;  %v8540_v28 = vld [vmem:[#allocation41_spill] sm:$0xff] }
 0x332   : > { %v4750_v19 = vmul.f32 %v4494_v26, %v2964_v27  ;;  %v8541_v26 = vld [vmem:[#allocation42_spill] sm:$0xff] }
 0x333   : > { %v6754_v27 = vld [vmem:[#allocation2 + $0xe0] sm:$0xff] }
 0x334   : > { %v5037_v63 = vadd.f32 %v5036_v41, %v4750_v19  ;;  %v8539_v41 = vld [vmem:[#allocation40_spill] sm:$0xff]  ;;  %v4502_v24 = vunpack.c.h.bf16 %v6754_v27  ;;  %v8544_v27 = vld [vmem:[#allocation45_spill] sm:$0xff] }
 0x335   : > { %v2796_v32 = vpop.f32.mrf.mxu2 }
 0x336   : > { %v2797_v25 = vadd.f32 %v2796_v32, %v2628_v46  ;;  %v2965_v60 = vpop.f32.mrf.mxu3  ;;  %v2461_v15 = vpop.f32.mrf.mxu0 }
 0x337   : > { %v2630_v62 = vpop.f32.mrf.mxu1 }
 0x338   : > { %v2966_v45 = vadd.f32 %v2965_v60, %v2797_v25  ;;  %v2631_v43 = vadd.f32 %v2630_v62, %v2461_v15  ;;  %v4506_v15 = vunpack.c.h.bf16 %v6755_v31 }
 0x339   : > { %2500 = vmatmul.bf16.gmra.mxu0 %v8538_v48  ;;  %2669 = vmatmul.bf16.gmra.mxu1 %v8539_v41 }
 0x33a   : > { %v4754_v19 = vmul.f32 %v4498_v40, %v2966_v45  ;;  %2838 = vmatmul.bf16.gmra.mxu2 %v8540_v28 }
 0x33b   : > { %3007 = vmatmul.bf16.gmra.mxu3 %v8541_v26 }
 0x33c   : > { %v5038_v32 = vadd.f32 %v5037_v63, %v4754_v19  ;;  %v8542_v19 = vld [vmem:[#allocation43_spill] sm:$0xff] }
 0x33d   : > { %v2799_v44 = vpop.f32.mrf.mxu2 }
 0x33e   : > { %v2800_v17 = vadd.f32 %v2799_v44, %v2631_v43  ;;  %v2968_v8 = vpop.f32.mrf.mxu3  ;;  %v2463_v46 = vpop.f32.mrf.mxu0  ;;  %v8543_v44 = vld [vmem:[#allocation44_spill] sm:$0xff] }
 0x33f   : > { %v2632_v10 = vpop.f32.mrf.mxu1 }
 0x340   : > { %v2969_v34 = vadd.f32 %v2968_v8, %v2800_v17  ;;  %v2633_v9 = vadd.f32 %v2632_v10, %v2463_v46  ;;  %v8545_v17 = vld [vmem:[#allocation46_spill] sm:$0xff] }
 0x341   : > { %v6756_v10 = vld [vmem:[#allocation2 + $0x100] sm:$0xff] }
 0x342   : > { %v4758_v35 = vmul.f32 %v4502_v24, %v2969_v34  ;;  %v4510_v34 = vunpack.c.h.bf16 %v6756_v10  ;;  %v8548_v10 = vld [vmem:[#allocation49_spill] sm:$0xff] }
 0x344   : > { %v5039_v30 = vadd.f32 %v5038_v32, %v4758_v35 }
 0x345   : > { %v2801_v25 = vpop.f32.mrf.mxu2 }
 0x346   : > { %v2802_v40 = vadd.f32 %v2801_v25, %v2633_v9  ;;  %v2970_v60 = vpop.f32.mrf.mxu3  ;;  %v2466_v62 = vpop.f32.mrf.mxu0 }
 0x347   : > { %v2635_v45 = vpop.f32.mrf.mxu1 }
 0x348   : > { %v2971_v26 = vadd.f32 %v2970_v60, %v2802_v40  ;;  %v2636_v63 = vadd.f32 %v2635_v45, %v2466_v62  ;;  %v6757_v45 = vld [vmem:[#allocation2 + $0x110] sm:$0xff] }
 0x349   : > { %2505 = vmatmul.bf16.gmra.mxu0 %v8542_v19  ;;  %2674 = vmatmul.bf16.gmra.mxu1 %v8543_v44  ;;  %v4514_v44 = vunpack.c.h.bf16 %v6757_v45  ;;  %v6759_v45 = vld [vmem:[#allocation2 + $0x130] sm:$0xff] }
 0x34a   : > { %v4762_v43 = vmul.f32 %v4506_v15, %v2971_v26  ;;  %2843 = vmatmul.bf16.gmra.mxu2 %v8544_v27 }
 0x34b   : > { %3012 = vmatmul.bf16.gmra.mxu3 %v8545_v17 }
 0x34c   : > { %v5040_v8 = vadd.f32 %v5039_v30, %v4762_v43  ;;  %v8546_v43 = vld [vmem:[#allocation47_spill] sm:$0xff] }
 0x34d   : > { %v2804_v32 = vpop.f32.mrf.mxu2 }
 0x34e   : > { %v2805_v24 = vadd.f32 %v2804_v32, %v2636_v63  ;;  %v2973_v46 = vpop.f32.mrf.mxu3  ;;  %v2468_v9 = vpop.f32.mrf.mxu0  ;;  %v8547_v32 = vld [vmem:[#allocation48_spill] sm:$0xff] }
 0x34f   : > { %v2637_v35 = vpop.f32.mrf.mxu1 }
 0x350   : > { %v2974_v25 = vadd.f32 %v2973_v46, %v2805_v24  ;;  %v2638_v40 = vadd.f32 %v2637_v35, %v2468_v9  ;;  %v8549_v24 = vld [vmem:[#allocation50_spill] sm:$0xff] }
 0x351   : > { %v6758_v35 = vld [vmem:[#allocation2 + $0x120] sm:$0xff] }
 0x352   : > { %v4766_v60 = vmul.f32 %v4510_v34, %v2974_v25  ;;  %v4518_v25 = vunpack.c.h.bf16 %v6758_v35  ;;  %v8552_v35 = vld [vmem:[#allocation53_spill] sm:$0xff] }
 0x354   : > { %v5041_v31 = vadd.f32 %v5040_v8, %v4766_v60 }
 0x355   : > { %v2806_v62 = vpop.f32.mrf.mxu2 }
 0x356   : > { %v2807_v26 = vadd.f32 %v2806_v62, %v2638_v40  ;;  %v2975_v15 = vpop.f32.mrf.mxu3  ;;  %v2471_v27 = vpop.f32.mrf.mxu0 }
 0x357   : > { %v2640_v19 = vpop.f32.mrf.mxu1 }
 0x358   : > { %v2976_v17 = vadd.f32 %v2975_v15, %v2807_v26  ;;  %v2641_v30 = vadd.f32 %v2640_v19, %v2471_v27 }
 0x359   : > { %2510 = vmatmul.bf16.gmra.mxu0 %v8546_v43  ;;  %2679 = vmatmul.bf16.gmra.mxu1 %v8547_v32  ;;  %v4522_v32 = vunpack.c.h.bf16 %v6759_v45 }
 0x35a   : > { %v4770_v63 = vmul.f32 %v4514_v44, %v2976_v17  ;;  %2848 = vmatmul.bf16.gmra.mxu2 %v8548_v10 }
 0x35b   : > { %3017 = vmatmul.bf16.gmra.mxu3 %v8549_v24 }
 0x35c   : > { %v5042_v46 = vadd.f32 %v5041_v31, %v4770_v63  ;;  %v8550_v63 = vld [vmem:[#allocation51_spill] sm:$0xff] }
 0x35d   : > { %v2809_v8 = vpop.f32.mrf.mxu2 }
 0x35e   : > { %v2810_v34 = vadd.f32 %v2809_v8, %v2641_v30  ;;  %v2978_v9 = vpop.f32.mrf.mxu3  ;;  %v2473_v40 = vpop.f32.mrf.mxu0  ;;  %v8551_v8 = vld [vmem:[#allocation52_spill] sm:$0xff] }
 0x35f   : > { %v2642_v60 = vpop.f32.mrf.mxu1 }
 0x360   : > { %v2979_v62 = vadd.f32 %v2978_v9, %v2810_v34  ;;  %v2643_v26 = vadd.f32 %v2642_v60, %v2473_v40  ;;  %v8553_v34 = vld [vmem:[#allocation54_spill] sm:$0xff]  ;;  %v6318_v40 = vld [vmem:[#allocation2 + $0x348] sm:$0xf] }
 0x362   : > { %v4774_v19 = vmul.f32 %v4518_v25, %v2979_v62  ;;  %v6484_v25 = vld [vmem:[#allocation2 + $0x254] sm:$0xf0] }
 0x364   : > { %v5043_v27 = vadd.f32 %v5042_v46, %v4774_v19  ;;  %v6190_v46 = vld [vmem:[#allocation2 + $0x248] sm:$0xf] }
 0x365   : > { %v2811_v15 = vpop.f32.mrf.mxu2  ;;  %v6191_v62 = vor.u32 %v6484_v25, %v6190_v46  ;;  %v6452_v46 = vld [vmem:[#allocation2 + $0x154] sm:$0xf0] }
 0x366   : > { %v2812_v44 = vadd.f32 %v2811_v15, %v2643_v26  ;;  %v2980_v17 = vpop.f32.mrf.mxu3  ;;  %v2476_v10 = vpop.f32.mrf.mxu0  ;;  %v6516_v26 = vld [vmem:[#allocation2 + $0x354] sm:$0xf0] }
 0x367   : > { %v2645_v43 = vpop.f32.mrf.mxu1  ;;  %3436 = vmatpush.bf16.msra.mxu2 %v6191_v62 }
 0x368   : > { %v2981_v24 = vadd.f32 %v2980_v17, %v2812_v44  ;;  %v2646_v31 = vadd.f32 %v2645_v43, %v2476_v10  ;;  %v6760_v44 = vld [vmem:[#allocation2 + $0x140] sm:$0xff]  ;;  %v6319_v17 = vor.u32 %v6516_v26, %v6318_v40 }
 0x369   : > { %2515 = vmatmul.bf16.gmra.mxu0 %v8550_v63  ;;  %2684 = vmatmul.bf16.gmra.mxu1 %v8551_v8  ;;  %v4526_v43 = vunpack.c.h.bf16 %v6760_v44  ;;  %v6062_v8 = vld [vmem:[#allocation2 + $0x148] sm:$0xf] }
 0x36a   : > { %v4778_v30 = vmul.f32 %v4522_v32, %v2981_v24  ;;  %2853 = vmatmul.bf16.gmra.mxu2 %v8552_v35  ;;  %3605 = vmatpush.bf16.msra.mxu3 %v6319_v17  ;;  %v6063_v48 = vor.u32 %v6452_v46, %v6062_v8 }
 0x36b   : > { %3022 = vmatmul.bf16.gmra.mxu3 %v8553_v34 }
 0x36c   : > { %v5044_v9 = vadd.f32 %v5043_v27, %v4778_v30  ;;  %v5934_v27 = vld [vmem:[#allocation2 + $0x48] sm:$0xf]  ;;  %v6420_v30 = vld [vmem:[#allocation2 + $0x54] sm:$0xf0]  ;;  %3267 = vmatpush.bf16.msra.mxu1 %v6063_v48 }
 0x36d   : > { %v2814_v60 = vpop.f32.mrf.mxu2  ;;  %v5935_v28 = vor.u32 %v6420_v30, %v5934_v27 }
 0x36e   : > { %v2815_v19 = vadd.f32 %v2814_v60, %v2646_v31  ;;  %v2983_v15 = vpop.f32.mrf.mxu3  ;;  %v2478_v10 = vpop.f32.mrf.mxu0  ;;  %v6761_v60 = vld [vmem:[#allocation2 + $0x150] sm:$0xff] }
 0x36f   : > { %v2647_v32 = vpop.f32.mrf.mxu1  ;;  %v4530_v41 = vunpack.c.h.bf16 %v6761_v60  ;;  %3098 = vmatpush.bf16.msra.mxu0 %v5935_v28  ;;  %v6763_v60 = vld [vmem:[#allocation2 + $0x170] sm:$0xff] }
 0x370   : > { %v2984_v24 = vadd.f32 %v2983_v15, %v2815_v19  ;;  %v2648_v45 = vadd.f32 %v2647_v32, %v2478_v10  ;;  %v8554_v19 = vld [vmem:[#allocation55_spill] sm:$0xff]  ;;  %v8556_v15 = vld [vmem:[#allocation57_spill] sm:$0xff] }
 0x372   : > { %v4782_v35 = vmul.f32 %v4526_v43, %v2984_v24  ;;  %v8557_v43 = vld [vmem:[#allocation58_spill] sm:$0xff] }
 0x373   : > { %v6762_v24 = vld [vmem:[#allocation2 + $0x160] sm:$0xff] }
 0x374   : > { %v5045_v34 = vadd.f32 %v5044_v9, %v4782_v35  ;;  %v8555_v9 = vld [vmem:[#allocation56_spill] sm:$0xff]  ;;  %v4534_v8 = vunpack.c.h.bf16 %v6762_v24  ;;  %v8560_v24 = vld [vmem:[#allocation61_spill] sm:$0xff] }
 0x375   : > { %v2816_v63 = vpop.f32.mrf.mxu2 }
 0x376   : > { %v2817_v25 = vadd.f32 %v2816_v63, %v2648_v45  ;;  %v2985_v31 = vpop.f32.mrf.mxu3  ;;  %v2481_v44 = vpop.f32.mrf.mxu0 }
 0x377   : > { %v2650_v40 = vpop.f32.mrf.mxu1 }
 0x378   : > { %v2986_v62 = vadd.f32 %v2985_v31, %v2817_v25  ;;  %v2651_v26 = vadd.f32 %v2650_v40, %v2481_v44  ;;  %v4538_v44 = vunpack.c.h.bf16 %v6763_v60 }
 0x379   : > { %2520 = vmatmul.bf16.gmra.mxu0 %v8554_v19  ;;  %2689 = vmatmul.bf16.gmra.mxu1 %v8555_v9 }
 0x37a   : > { %v4786_v35 = vmul.f32 %v4530_v41, %v2986_v62  ;;  %2858 = vmatmul.bf16.gmra.mxu2 %v8556_v15 }
 0x37b   : > { %3027 = vmatmul.bf16.gmra.mxu3 %v8557_v43 }
 0x37c   : > { %v5046_v63 = vadd.f32 %v5045_v34, %v4786_v35  ;;  %v8558_v35 = vld [vmem:[#allocation59_spill] sm:$0xff] }
 0x37d   : > { %v2819_v10 = vpop.f32.mrf.mxu2 }
 0x37e   : > { %v2820_v17 = vadd.f32 %v2819_v10, %v2651_v26  ;;  %v2988_v32 = vpop.f32.mrf.mxu3  ;;  %v2483_v45 = vpop.f32.mrf.mxu0  ;;  %v8559_v10 = vld [vmem:[#allocation60_spill] sm:$0xff] }
 0x37f   : > { %v2652_v28 = vpop.f32.mrf.mxu1 }
 0x380   : > { %v2989_v27 = vadd.f32 %v2988_v32, %v2820_v17  ;;  %v2653_v30 = vadd.f32 %v2652_v28, %v2483_v45  ;;  %v8561_v17 = vld [vmem:[#allocation62_spill] sm:$0xff] }
 0x381   : > { %v6764_v28 = vld [vmem:[#allocation2 + $0x180] sm:$0xff] }
 0x382   : > { %v4790_v48 = vmul.f32 %v4534_v8, %v2989_v27  ;;  %v4542_v27 = vunpack.c.h.bf16 %v6764_v28  ;;  %v8564_v28 = vld [vmem:[#allocation65_spill] sm:$0xff] }
 0x384   : > { %v5047_v46 = vadd.f32 %v5046_v63, %v4790_v48 }
 0x385   : > { %v2821_v25 = vpop.f32.mrf.mxu2 }
 0x386   : > { %v2822_v41 = vadd.f32 %v2821_v25, %v2653_v30  ;;  %v2990_v31 = vpop.f32.mrf.mxu3  ;;  %v2486_v40 = vpop.f32.mrf.mxu0 }
 0x387   : > { %v2655_v62 = vpop.f32.mrf.mxu1 }
 0x388   : > { %v2991_v43 = vadd.f32 %v2990_v31, %v2822_v41  ;;  %v2656_v34 = vadd.f32 %v2655_v62, %v2486_v40  ;;  %v6765_v62 = vld [vmem:[#allocation2 + $0x190] sm:$0xff] }
 0x389   : > { %2525 = vmatmul.bf16.gmra.mxu0 %v8558_v35  ;;  %2694 = vmatmul.bf16.gmra.mxu1 %v8559_v10  ;;  %v4546_v10 = vunpack.c.h.bf16 %v6765_v62  ;;  %v6767_v62 = vld [vmem:[#allocation2 + $0x1b0] sm:$0xff] }
 0x38a   : > { %v4794_v26 = vmul.f32 %v4538_v44, %v2991_v43  ;;  %2863 = vmatmul.bf16.gmra.mxu2 %v8560_v24 }
 0x38b   : > { %3032 = vmatmul.bf16.gmra.mxu3 %v8561_v17 }
 0x38c   : > { %v5048_v32 = vadd.f32 %v5047_v46, %v4794_v26  ;;  %v8562_v26 = vld [vmem:[#allocation63_spill] sm:$0xff] }
 0x38d   : > { %v2824_v63 = vpop.f32.mrf.mxu2 }
 0x38e   : > { %v2825_v8 = vadd.f32 %v2824_v63, %v2656_v34  ;;  %v2993_v45 = vpop.f32.mrf.mxu3  ;;  %v2488_v30 = vpop.f32.mrf.mxu0  ;;  %v8563_v63 = vld [vmem:[#allocation64_spill] sm:$0xff] }
 0x38f   : > { %v2657_v48 = vpop.f32.mrf.mxu1 }
 0x390   : > { %v2994_v25 = vadd.f32 %v2993_v45, %v2825_v8  ;;  %v2658_v41 = vadd.f32 %v2657_v48, %v2488_v30  ;;  %v8565_v8 = vld [vmem:[#allocation66_spill] sm:$0xff] }
 0x391   : > { %v6766_v48 = vld [vmem:[#allocation2 + $0x1a0] sm:$0xff] }
 0x392   : > { %v4798_v31 = vmul.f32 %v4542_v27, %v2994_v25  ;;  %v4550_v25 = vunpack.c.h.bf16 %v6766_v48  ;;  %v8568_v48 = vld [vmem:[#allocation69_spill] sm:$0xff] }
 0x394   : > { %v5049_v60 = vadd.f32 %v5048_v32, %v4798_v31 }
 0x395   : > { %v2826_v40 = vpop.f32.mrf.mxu2 }
 0x396   : > { %v2827_v43 = vadd.f32 %v2826_v40, %v2658_v41  ;;  %v2995_v44 = vpop.f32.mrf.mxu3  ;;  %v2491_v24 = vpop.f32.mrf.mxu0 }
 0x397   : > { %v2660_v35 = vpop.f32.mrf.mxu1 }
 0x398   : > { %v2996_v17 = vadd.f32 %v2995_v44, %v2827_v43  ;;  %v2661_v46 = vadd.f32 %v2660_v35, %v2491_v24 }
 0x399   : > { %2530 = vmatmul.bf16.gmra.mxu0 %v8562_v26  ;;  %2699 = vmatmul.bf16.gmra.mxu1 %v8563_v63  ;;  %v4554_v63 = vunpack.c.h.bf16 %v6767_v62 }
 0x39a   : > { %v4802_v34 = vmul.f32 %v4546_v10, %v2996_v17  ;;  %2868 = vmatmul.bf16.gmra.mxu2 %v8564_v28 }
 0x39b   : > { %3037 = vmatmul.bf16.gmra.mxu3 %v8565_v8 }
 0x39c   : > { %v5050_v45 = vadd.f32 %v5049_v60, %v4802_v34  ;;  %v8566_v34 = vld [vmem:[#allocation67_spill] sm:$0xff] }
 0x39d   : > { %v2829_v32 = vpop.f32.mrf.mxu2 }
 0x39e   : > { %v2830_v27 = vadd.f32 %v2829_v32, %v2661_v46  ;;  %v2998_v30 = vpop.f32.mrf.mxu3  ;;  %v2493_v41 = vpop.f32.mrf.mxu0  ;;  %v8567_v32 = vld [vmem:[#allocation68_spill] sm:$0xff] }
 0x39f   : > { %v2662_v31 = vpop.f32.mrf.mxu1 }
 0x3a0   : > { %v2999_v40 = vadd.f32 %v2998_v30, %v2830_v27  ;;  %v2663_v43 = vadd.f32 %v2662_v31, %v2493_v41  ;;  %v8569_v27 = vld [vmem:[#allocation70_spill] sm:$0xff]  ;;  %v6302_v41 = vld [vmem:[#allocation2 + $0x328] sm:$0xf] }
 0x3a2   : > { %v4806_v35 = vmul.f32 %v4550_v25, %v2999_v40  ;;  %v6480_v25 = vld [vmem:[#allocation2 + $0x234] sm:$0xf0] }
 0x3a4   : > { %v5051_v24 = vadd.f32 %v5050_v45, %v4806_v35  ;;  %v6174_v45 = vld [vmem:[#allocation2 + $0x228] sm:$0xf] }
 0x3a5   : > { %v2831_v44 = vpop.f32.mrf.mxu2  ;;  %v6175_v40 = vor.u32 %v6480_v25, %v6174_v45  ;;  %v6448_v45 = vld [vmem:[#allocation2 + $0x134] sm:$0xf0] }
 0x3a6   : > { %v2832_v10 = vadd.f32 %v2831_v44, %v2663_v43  ;;  %v3000_v17 = vpop.f32.mrf.mxu3  ;;  %v2496_v28 = vpop.f32.mrf.mxu0  ;;  %v6512_v43 = vld [vmem:[#allocation2 + $0x334] sm:$0xf0] }
 0x3a7   : > { %v2665_v26 = vpop.f32.mrf.mxu1  ;;  %3437 = vmatpush.bf16.msra.mxu2 %v6175_v40 }
 0x3a8   : > { %v3001_v8 = vadd.f32 %v3000_v17, %v2832_v10  ;;  %v2666_v60 = vadd.f32 %v2665_v26, %v2496_v28  ;;  %v6768_v10 = vld [vmem:[#allocation2 + $0x1c0] sm:$0xff]  ;;  %v6303_v17 = vor.u32 %v6512_v43, %v6302_v41 }
 0x3a9   : > { %2535 = vmatmul.bf16.gmra.mxu0 %v8566_v34  ;;  %2704 = vmatmul.bf16.gmra.mxu1 %v8567_v32  ;;  %v4558_v26 = vunpack.c.h.bf16 %v6768_v10  ;;  %v6046_v32 = vld [vmem:[#allocation2 + $0x128] sm:$0xf] }
 0x3aa   : > { %v4810_v46 = vmul.f32 %v4554_v63, %v3001_v8  ;;  %2873 = vmatmul.bf16.gmra.mxu2 %v8568_v48  ;;  %3606 = vmatpush.bf16.msra.mxu3 %v6303_v17  ;;  %v6047_v19 = vor.u32 %v6448_v45, %v6046_v32 }
 0x3ab   : > { %3042 = vmatmul.bf16.gmra.mxu3 %v8569_v27 }
 0x3ac   : > { %v5052_v30 = vadd.f32 %v5051_v24, %v4810_v46  ;;  %v5918_v24 = vld [vmem:[#allocation2 + $0x28] sm:$0xf]  ;;  %v6416_v46 = vld [vmem:[#allocation2 + $0x34] sm:$0xf0]  ;;  %3268 = vmatpush.bf16.msra.mxu1 %v6047_v19 }
 0x3ad   : > { %v2834_v31 = vpop.f32.mrf.mxu2  ;;  %v5919_v15 = vor.u32 %v6416_v46, %v5918_v24 }
 0x3ae   : > { %v2835_v35 = vadd.f32 %v2834_v31, %v2666_v60  ;;  %v3003_v44 = vpop.f32.mrf.mxu3  ;;  %v2498_v28 = vpop.f32.mrf.mxu0  ;;  %v6769_v31 = vld [vmem:[#allocation2 + $0x1d0] sm:$0xff] }
 0x3af   : > { %v2667_v63 = vpop.f32.mrf.mxu1  ;;  %v4562_v9 = vunpack.c.h.bf16 %v6769_v31  ;;  %3099 = vmatpush.bf16.msra.mxu0 %v5919_v15  ;;  %v6771_v31 = vld [vmem:[#allocation2 + $0x1f0] sm:$0xff] }
 0x3b0   : > { %v3004_v8 = vadd.f32 %v3003_v44, %v2835_v35  ;;  %v2668_v62 = vadd.f32 %v2667_v63, %v2498_v28  ;;  %v8570_v35 = vld [vmem:[#allocation71_spill] sm:$0xff]  ;;  %v8572_v44 = vld [vmem:[#allocation73_spill] sm:$0xff] }
 0x3b2   : > { %v4814_v48 = vmul.f32 %v4558_v26, %v3004_v8  ;;  %v8573_v26 = vld [vmem:[#allocation74_spill] sm:$0xff] }
 0x3b3   : > { %v6770_v8 = vld [vmem:[#allocation2 + $0x1e0] sm:$0xff] }
 0x3b4   : > { %v5053_v27 = vadd.f32 %v5052_v30, %v4814_v48  ;;  %v8571_v30 = vld [vmem:[#allocation72_spill] sm:$0xff]  ;;  %v4566_v32 = vunpack.c.h.bf16 %v6770_v8  ;;  %v8576_v8 = vld [vmem:[#allocation77_spill] sm:$0xff] }
 0x3b5   : > { %v2836_v34 = vpop.f32.mrf.mxu2 }
 0x3b6   : > { %v2837_v25 = vadd.f32 %v2836_v34, %v2668_v62  ;;  %v3005_v60 = vpop.f32.mrf.mxu3  ;;  %v2501_v10 = vpop.f32.mrf.mxu0 }
 0x3b7   : > { %v2670_v41 = vpop.f32.mrf.mxu1 }
 0x3b8   : > { %v3006_v40 = vadd.f32 %v3005_v60, %v2837_v25  ;;  %v2671_v43 = vadd.f32 %v2670_v41, %v2501_v10  ;;  %v4570_v10 = vunpack.c.h.bf16 %v6771_v31 }
 0x3b9   : > { %2540 = vmatmul.bf16.gmra.mxu0 %v8570_v35  ;;  %2709 = vmatmul.bf16.gmra.mxu1 %v8571_v30 }
 0x3ba   : > { %v4818_v48 = vmul.f32 %v4562_v9, %v3006_v40  ;;  %2878 = vmatmul.bf16.gmra.mxu2 %v8572_v44 }
 0x3bb   : > { %3047 = vmatmul.bf16.gmra.mxu3 %v8573_v26 }
 0x3bc   : > { %v5054_v34 = vadd.f32 %v5053_v27, %v4818_v48  ;;  %v8574_v48 = vld [vmem:[#allocation75_spill] sm:$0xff] }
 0x3bd   : > { %v2839_v28 = vpop.f32.mrf.mxu2 }
 0x3be   : > { %v2840_v17 = vadd.f32 %v2839_v28, %v2671_v43  ;;  %v3008_v63 = vpop.f32.mrf.mxu3  ;;  %v2503_v62 = vpop.f32.mrf.mxu0  ;;  %v8575_v28 = vld [vmem:[#allocation76_spill] sm:$0xff] }
 0x3bf   : > { %v2672_v15 = vpop.f32.mrf.mxu1 }
 0x3c0   : > { %v3009_v24 = vadd.f32 %v3008_v63, %v2840_v17  ;;  %v2673_v46 = vadd.f32 %v2672_v15, %v2503_v62  ;;  %v8577_v17 = vld [vmem:[#allocation78_spill] sm:$0xff] }
 0x3c1   : > { %v6772_v15 = vld [vmem:[#allocation2 + $0x200] sm:$0xff] }
 0x3c2   : > { %v4822_v19 = vmul.f32 %v4566_v32, %v3009_v24  ;;  %v4574_v24 = vunpack.c.h.bf16 %v6772_v15  ;;  %v8580_v15 = vld [vmem:[#allocation81_spill] sm:$0xff] }
 0x3c4   : > { %v5055_v45 = vadd.f32 %v5054_v34, %v4822_v19 }
 0x3c5   : > { %v2841_v25 = vpop.f32.mrf.mxu2 }
 0x3c6   : > { %v2842_v9 = vadd.f32 %v2841_v25, %v2673_v46  ;;  %v3010_v60 = vpop.f32.mrf.mxu3  ;;  %v2506_v41 = vpop.f32.mrf.mxu0 }
 0x3c7   : > { %v2675_v40 = vpop.f32.mrf.mxu1 }
 0x3c8   : > { %v3011_v26 = vadd.f32 %v3010_v60, %v2842_v9  ;;  %v2676_v27 = vadd.f32 %v2675_v40, %v2506_v41  ;;  %v6773_v40 = vld [vmem:[#allocation2 + $0x210] sm:$0xff] }
 0x3c9   : > { %2545 = vmatmul.bf16.gmra.mxu0 %v8574_v48  ;;  %2714 = vmatmul.bf16.gmra.mxu1 %v8575_v28  ;;  %v4578_v28 = vunpack.c.h.bf16 %v6773_v40  ;;  %v6775_v40 = vld [vmem:[#allocation2 + $0x230] sm:$0xff] }
 0x3ca   : > { %v4826_v43 = vmul.f32 %v4570_v10, %v3011_v26  ;;  %2883 = vmatmul.bf16.gmra.mxu2 %v8576_v8 }
 0x3cb   : > { %3052 = vmatmul.bf16.gmra.mxu3 %v8577_v17 }
 0x3cc   : > { %v5056_v63 = vadd.f32 %v5055_v45, %v4826_v43  ;;  %v8578_v43 = vld [vmem:[#allocation79_spill] sm:$0xff] }
 0x3cd   : > { %v2844_v34 = vpop.f32.mrf.mxu2 }
 0x3ce   : > { %v2845_v32 = vadd.f32 %v2844_v34, %v2676_v27  ;;  %v3013_v62 = vpop.f32.mrf.mxu3  ;;  %v2508_v46 = vpop.f32.mrf.mxu0  ;;  %v8579_v34 = vld [vmem:[#allocation80_spill] sm:$0xff] }
 0x3cf   : > { %v2677_v19 = vpop.f32.mrf.mxu1 }
 0x3d0   : > { %v3014_v25 = vadd.f32 %v3013_v62, %v2845_v32  ;;  %v2678_v9 = vadd.f32 %v2677_v19, %v2508_v46  ;;  %v8581_v32 = vld [vmem:[#allocation82_spill] sm:$0xff] }
 0x3d1   : > { %v6774_v19 = vld [vmem:[#allocation2 + $0x220] sm:$0xff] }
 0x3d2   : > { %v4830_v60 = vmul.f32 %v4574_v24, %v3014_v25  ;;  %v4582_v25 = vunpack.c.h.bf16 %v6774_v19  ;;  %v8584_v19 = vld [vmem:[#allocation85_spill] sm:$0xff] }
 0x3d4   : > { %v5057_v31 = vadd.f32 %v5056_v63, %v4830_v60 }
 0x3d5   : > { %v2846_v41 = vpop.f32.mrf.mxu2 }
 0x3d6   : > { %v2847_v26 = vadd.f32 %v2846_v41, %v2678_v9  ;;  %v3015_v10 = vpop.f32.mrf.mxu3  ;;  %v2511_v8 = vpop.f32.mrf.mxu0 }
 0x3d7   : > { %v2680_v48 = vpop.f32.mrf.mxu1 }
 0x3d8   : > { %v3016_v17 = vadd.f32 %v3015_v10, %v2847_v26  ;;  %v2681_v45 = vadd.f32 %v2680_v48, %v2511_v8 }
 0x3d9   : > { %2550 = vmatmul.bf16.gmra.mxu0 %v8578_v43  ;;  %2719 = vmatmul.bf16.gmra.mxu1 %v8579_v34  ;;  %v4586_v34 = vunpack.c.h.bf16 %v6775_v40 }
 0x3da   : > { %v4834_v27 = vmul.f32 %v4578_v28, %v3016_v17  ;;  %2888 = vmatmul.bf16.gmra.mxu2 %v8580_v15 }
 0x3db   : > { %3057 = vmatmul.bf16.gmra.mxu3 %v8581_v32 }
 0x3dc   : > { %v5058_v62 = vadd.f32 %v5057_v31, %v4834_v27  ;;  %v8582_v27 = vld [vmem:[#allocation83_spill] sm:$0xff] }
 0x3dd   : > { %v2849_v63 = vpop.f32.mrf.mxu2 }
 0x3de   : > { %v2850_v24 = vadd.f32 %v2849_v63, %v2681_v45  ;;  %v3018_v46 = vpop.f32.mrf.mxu3  ;;  %v2513_v9 = vpop.f32.mrf.mxu0  ;;  %v8583_v63 = vld [vmem:[#allocation84_spill] sm:$0xff] }
 0x3df   : > { %v2682_v60 = vpop.f32.mrf.mxu1 }
 0x3e0   : > { %v3019_v41 = vadd.f32 %v3018_v46, %v2850_v24  ;;  %v2683_v26 = vadd.f32 %v2682_v60, %v2513_v9  ;;  %v8585_v24 = vld [vmem:[#allocation86_spill] sm:$0xff]  ;;  %v6286_v9 = vld [vmem:[#allocation2 + $0x308] sm:$0xf] }
 0x3e2   : > { %v4838_v48 = vmul.f32 %v4582_v25, %v3019_v41  ;;  %v6476_v25 = vld [vmem:[#allocation2 + $0x214] sm:$0xf0] }
 0x3e4   : > { %v5059_v8 = vadd.f32 %v5058_v62, %v4838_v48  ;;  %v6158_v62 = vld [vmem:[#allocation2 + $0x208] sm:$0xf] }
 0x3e5   : > { %v2851_v10 = vpop.f32.mrf.mxu2  ;;  %v6159_v41 = vor.u32 %v6476_v25, %v6158_v62  ;;  %v6444_v62 = vld [vmem:[#allocation2 + $0x114] sm:$0xf0] }
 0x3e6   : > { %v2852_v28 = vadd.f32 %v2851_v10, %v2683_v26  ;;  %v3020_v17 = vpop.f32.mrf.mxu3  ;;  %v2516_v15 = vpop.f32.mrf.mxu0  ;;  %v6508_v26 = vld [vmem:[#allocation2 + $0x314] sm:$0xf0] }
 0x3e7   : > { %v2685_v43 = vpop.f32.mrf.mxu1  ;;  %3438 = vmatpush.bf16.msra.mxu2 %v6159_v41 }
 0x3e8   : > { %v3021_v32 = vadd.f32 %v3020_v17, %v2852_v28  ;;  %v2686_v31 = vadd.f32 %v2685_v43, %v2516_v15  ;;  %v6776_v28 = vld [vmem:[#allocation2 + $0x240] sm:$0xff]  ;;  %v6287_v17 = vor.u32 %v6508_v26, %v6286_v9 }
 0x3e9   : > { %2555 = vmatmul.bf16.gmra.mxu0 %v8582_v27  ;;  %2724 = vmatmul.bf16.gmra.mxu1 %v8583_v63  ;;  %v4590_v43 = vunpack.c.h.bf16 %v6776_v28  ;;  %v6030_v63 = vld [vmem:[#allocation2 + $0x108] sm:$0xf] }
 0x3ea   : > { %v4842_v45 = vmul.f32 %v4586_v34, %v3021_v32  ;;  %2893 = vmatmul.bf16.gmra.mxu2 %v8584_v19  ;;  %3607 = vmatpush.bf16.msra.mxu3 %v6287_v17  ;;  %v6031_v35 = vor.u32 %v6444_v62, %v6030_v63 }
 0x3eb   : > { %3062 = vmatmul.bf16.gmra.mxu3 %v8585_v24 }
 0x3ec   : > { %v5060_v46 = vadd.f32 %v5059_v8, %v4842_v45  ;;  %v5902_v8 = vld [vmem:[#allocation2 + $0x8] sm:$0xf]  ;;  %v6412_v45 = vld [vmem:[#allocation2 + $0x14] sm:$0xf0]  ;;  %3269 = vmatpush.bf16.msra.mxu1 %v6031_v35 }
 0x3ed   : > { %v2854_v60 = vpop.f32.mrf.mxu2  ;;  %v5903_v44 = vor.u32 %v6412_v45, %v5902_v8 }
 0x3ee   : > { %v2855_v48 = vadd.f32 %v2854_v60, %v2686_v31  ;;  %v3023_v10 = vpop.f32.mrf.mxu3  ;;  %v2518_v15 = vpop.f32.mrf.mxu0  ;;  %v6777_v60 = vld [vmem:[#allocation2 + $0x250] sm:$0xff] }
 0x3ef   : > { %v2687_v34 = vpop.f32.mrf.mxu1  ;;  %v4594_v30 = vunpack.c.h.bf16 %v6777_v60  ;;  %3100 = vmatpush.bf16.msra.mxu0 %v5903_v44  ;;  %v6779_v60 = vld [vmem:[#allocation2 + $0x270] sm:$0xff] }
 0x3f0   : > { %v3024_v32 = vadd.f32 %v3023_v10, %v2855_v48  ;;  %v2688_v40 = vadd.f32 %v2687_v34, %v2518_v15  ;;  %v8586_v48 = vld [vmem:[#allocation87_spill] sm:$0xff]  ;;  %v8588_v10 = vld [vmem:[#allocation89_spill] sm:$0xff] }
 0x3f2   : > { %v4846_v19 = vmul.f32 %v4590_v43, %v3024_v32  ;;  %v8589_v43 = vld [vmem:[#allocation90_spill] sm:$0xff] }
 0x3f3   : > { %v6778_v32 = vld [vmem:[#allocation2 + $0x260] sm:$0xff] }
 0x3f4   : > { %v5061_v24 = vadd.f32 %v5060_v46, %v4846_v19  ;;  %v8587_v46 = vld [vmem:[#allocation88_spill] sm:$0xff]  ;;  %v4598_v63 = vunpack.c.h.bf16 %v6778_v32  ;;  %v8592_v32 = vld [vmem:[#allocation93_spill] sm:$0xff] }
 0x3f5   : > { %v2856_v27 = vpop.f32.mrf.mxu2 }
 0x3f6   : > { %v2857_v25 = vadd.f32 %v2856_v27, %v2688_v40  ;;  %v3025_v31 = vpop.f32.mrf.mxu3  ;;  %v2521_v28 = vpop.f32.mrf.mxu0 }
 0x3f7   : > { %v2690_v9 = vpop.f32.mrf.mxu1 }
 0x3f8   : > { %v3026_v41 = vadd.f32 %v3025_v31, %v2857_v25  ;;  %v2691_v26 = vadd.f32 %v2690_v9, %v2521_v28  ;;  %v4602_v28 = vunpack.c.h.bf16 %v6779_v60 }
 0x3f9   : > { %2560 = vmatmul.bf16.gmra.mxu0 %v8586_v48  ;;  %2729 = vmatmul.bf16.gmra.mxu1 %v8587_v46 }
 0x3fa   : > { %v4850_v19 = vmul.f32 %v4594_v30, %v3026_v41  ;;  %2898 = vmatmul.bf16.gmra.mxu2 %v8588_v10 }
 0x3fb   : > { %3067 = vmatmul.bf16.gmra.mxu3 %v8589_v43 }
 0x3fc   : > { %v5062_v27 = vadd.f32 %v5061_v24, %v4850_v19  ;;  %v8590_v19 = vld [vmem:[#allocation91_spill] sm:$0xff] }
 0x3fd   : > { %v2859_v15 = vpop.f32.mrf.mxu2 }
 0x3fe   : > { %v2860_v17 = vadd.f32 %v2859_v15, %v2691_v26  ;;  %v3028_v34 = vpop.f32.mrf.mxu3  ;;  %v2523_v40 = vpop.f32.mrf.mxu0  ;;  %v8591_v15 = vld [vmem:[#allocation92_spill] sm:$0xff] }
 0x3ff   : > { %v2692_v44 = vpop.f32.mrf.mxu1 }
 0x400   : > { %v3029_v8 = vadd.f32 %v3028_v34, %v2860_v17  ;;  %v2693_v45 = vadd.f32 %v2692_v44, %v2523_v40  ;;  %v8593_v17 = vld [vmem:[#allocation94_spill] sm:$0xff] }
 0x401   : > { %v6780_v44 = vld [vmem:[#allocation2 + $0x280] sm:$0xff] }
 0x402   : > { %v4854_v35 = vmul.f32 %v4598_v63, %v3029_v8  ;;  %v4606_v8 = vunpack.c.h.bf16 %v6780_v44  ;;  %v8596_v44 = vld [vmem:[#allocation97_spill] sm:$0xff] }
 0x404   : > { %v5063_v62 = vadd.f32 %v5062_v27, %v4854_v35 }
 0x405   : > { %v2861_v25 = vpop.f32.mrf.mxu2 }
 0x406   : > { %v2862_v30 = vadd.f32 %v2861_v25, %v2693_v45  ;;  %v3030_v31 = vpop.f32.mrf.mxu3  ;;  %v2526_v9 = vpop.f32.mrf.mxu0 }
 0x407   : > { %v2695_v41 = vpop.f32.mrf.mxu1 }
 0x408   : > { %v3031_v43 = vadd.f32 %v3030_v31, %v2862_v30  ;;  %v2696_v24 = vadd.f32 %v2695_v41, %v2526_v9  ;;  %v6781_v41 = vld [vmem:[#allocation2 + $0x290] sm:$0xff] }
 0x409   : > { %2565 = vmatmul.bf16.gmra.mxu0 %v8590_v19  ;;  %2734 = vmatmul.bf16.gmra.mxu1 %v8591_v15  ;;  %v4610_v15 = vunpack.c.h.bf16 %v6781_v41  ;;  %v6783_v41 = vld [vmem:[#allocation2 + $0x2b0] sm:$0xff] }
 0x40a   : > { %v4858_v26 = vmul.f32 %v4602_v28, %v3031_v43  ;;  %2903 = vmatmul.bf16.gmra.mxu2 %v8592_v32 }
 0x40b   : > { %3072 = vmatmul.bf16.gmra.mxu3 %v8593_v17 }
 0x40c   : > { %v5064_v34 = vadd.f32 %v5063_v62, %v4858_v26  ;;  %v8594_v26 = vld [vmem:[#allocation95_spill] sm:$0xff] }
 0x40d   : > { %v2864_v27 = vpop.f32.mrf.mxu2 }
 0x40e   : > { %v2865_v63 = vadd.f32 %v2864_v27, %v2696_v24  ;;  %v3033_v40 = vpop.f32.mrf.mxu3  ;;  %v2528_v45 = vpop.f32.mrf.mxu0  ;;  %v8595_v27 = vld [vmem:[#allocation96_spill] sm:$0xff] }
 0x40f   : > { %v2697_v35 = vpop.f32.mrf.mxu1 }
 0x410   : > { %v3034_v25 = vadd.f32 %v3033_v40, %v2865_v63  ;;  %v2698_v30 = vadd.f32 %v2697_v35, %v2528_v45  ;;  %v8597_v63 = vld [vmem:[#allocation98_spill] sm:$0xff] }
 0x411   : > { %v6782_v35 = vld [vmem:[#allocation2 + $0x2a0] sm:$0xff] }
 0x412   : > { %v4862_v31 = vmul.f32 %v4606_v8, %v3034_v25  ;;  %v4614_v25 = vunpack.c.h.bf16 %v6782_v35  ;;  %v8600_v35 = vld [vmem:[#allocation101_spill] sm:$0xff] }
 0x414   : > { %v5065_v60 = vadd.f32 %v5064_v34, %v4862_v31 }
 0x415   : > { %v2866_v9 = vpop.f32.mrf.mxu2 }
 0x416   : > { %v2867_v43 = vadd.f32 %v2866_v9, %v2698_v30  ;;  %v3035_v28 = vpop.f32.mrf.mxu3  ;;  %v2531_v32 = vpop.f32.mrf.mxu0 }
 0x417   : > { %v2700_v19 = vpop.f32.mrf.mxu1 }
 0x418   : > { %v3036_v17 = vadd.f32 %v3035_v28, %v2867_v43  ;;  %v2701_v62 = vadd.f32 %v2700_v19, %v2531_v32 }
 0x419   : > { %2570 = vmatmul.bf16.gmra.mxu0 %v8594_v26  ;;  %2739 = vmatmul.bf16.gmra.mxu1 %v8595_v27  ;;  %v4618_v27 = vunpack.c.h.bf16 %v6783_v41 }
 0x41a   : > { %v4866_v24 = vmul.f32 %v4610_v15, %v3036_v17  ;;  %2908 = vmatmul.bf16.gmra.mxu2 %v8596_v44 }
 0x41b   : > { %3077 = vmatmul.bf16.gmra.mxu3 %v8597_v63 }
 0x41c   : > { %v5066_v40 = vadd.f32 %v5065_v60, %v4866_v24  ;;  %v8598_v24 = vld [vmem:[#allocation99_spill] sm:$0xff] }
 0x41d   : > { %v2869_v34 = vpop.f32.mrf.mxu2 }
 0x41e   : > { %v2870_v8 = vadd.f32 %v2869_v34, %v2701_v62  ;;  %v3038_v45 = vpop.f32.mrf.mxu3  ;;  %v2533_v30 = vpop.f32.mrf.mxu0  ;;  %v8599_v34 = vld [vmem:[#allocation100_spill] sm:$0xff] }
 0x41f   : > { %v2702_v31 = vpop.f32.mrf.mxu1 }
 0x420   : > { %v3039_v9 = vadd.f32 %v3038_v45, %v2870_v8  ;;  %v2703_v43 = vadd.f32 %v2702_v31, %v2533_v30  ;;  %v8601_v8 = vld [vmem:[#allocation102_spill] sm:$0xff]  ;;  %v6534_v30 = vld [vmem:[#allocation2 + $0x3ec] sm:$0xf] }
 0x422   : > { %v4870_v19 = vmul.f32 %v4614_v25, %v3039_v9  ;;  %v6272_v25 = vld [vmem:[#allocation2 + $0x2f8] sm:$0xf0] }
 0x424   : > { %v5067_v32 = vadd.f32 %v5066_v40, %v4870_v19  ;;  %v6502_v40 = vld [vmem:[#allocation2 + $0x2ec] sm:$0xf] }
 0x425   : > { %v2871_v28 = vpop.f32.mrf.mxu2  ;;  %v6275_v9 = vor.u32 %v6502_v40, %v6272_v25  ;;  %v6144_v40 = vld [vmem:[#allocation2 + $0x1f8] sm:$0xf0] }
 0x426   : > { %v2872_v15 = vadd.f32 %v2871_v28, %v2703_v43  ;;  %v3040_v17 = vpop.f32.mrf.mxu3  ;;  %v2536_v44 = vpop.f32.mrf.mxu0  ;;  %v6400_v43 = vld [vmem:[#allocation2 + $0x3f8] sm:$0xf0] }
 0x427   : > { %v2705_v26 = vpop.f32.mrf.mxu1  ;;  %4107 = vmatpush.bf16.msrb.mxu2 %v6275_v9 }
 0x428   : > { %v3041_v63 = vadd.f32 %v3040_v17, %v2872_v15  ;;  %v2706_v60 = vadd.f32 %v2705_v26, %v2536_v44  ;;  %v6784_v15 = vld [vmem:[#allocation2 + $0x2c0] sm:$0xff]  ;;  %v6403_v17 = vor.u32 %v6534_v30, %v6400_v43 }
 0x429   : > { %2575 = vmatmul.bf16.gmra.mxu0 %v8598_v24  ;;  %2744 = vmatmul.bf16.gmra.mxu1 %v8599_v34  ;;  %v4622_v26 = vunpack.c.h.bf16 %v6784_v15  ;;  %v6470_v34 = vld [vmem:[#allocation2 + $0x1ec] sm:$0xf] }
 0x42a   : > { %v4874_v62 = vmul.f32 %v4618_v27, %v3041_v63  ;;  %2913 = vmatmul.bf16.gmra.mxu2 %v8600_v35  ;;  %4276 = vmatpush.bf16.msrb.mxu3 %v6403_v17  ;;  %v6147_v48 = vor.u32 %v6470_v34, %v6144_v40 }
 0x42b   : > { %3082 = vmatmul.bf16.gmra.mxu3 %v8601_v8 }
 0x42c   : > { %v5068_v45 = vadd.f32 %v5067_v32, %v4874_v62  ;;  %v6438_v32 = vld [vmem:[#allocation2 + $0xec] sm:$0xf]  ;;  %v6016_v62 = vld [vmem:[#allocation2 + $0xf8] sm:$0xf0]  ;;  %3938 = vmatpush.bf16.msrb.mxu1 %v6147_v48 }
 0x42d   : > { %v2874_v31 = vpop.f32.mrf.mxu2  ;;  %v6019_v10 = vor.u32 %v6438_v32, %v6016_v62  ;;  %v6787_v62 = vld [vmem:[#allocation2 + $0x2f0] sm:$0xff] }
 0x42e   : > { %v2875_v19 = vadd.f32 %v2874_v31, %v2706_v60  ;;  %v3043_v28 = vpop.f32.mrf.mxu3  ;;  %v2538_v44 = vpop.f32.mrf.mxu0  ;;  %v6785_v31 = vld [vmem:[#allocation2 + $0x2d0] sm:$0xff]  ;;  %v4634_v40 = vunpack.c.h.bf16 %v6787_v62 }
 0x42f   : > { %v2707_v27 = vpop.f32.mrf.mxu1  ;;  %v4626_v46 = vunpack.c.h.bf16 %v6785_v31  ;;  %3769 = vmatpush.bf16.msrb.mxu0 %v6019_v10 }
 0x430   : > { %v3044_v63 = vadd.f32 %v3043_v28, %v2875_v19  ;;  %v2708_v41 = vadd.f32 %v2707_v27, %v2538_v44 }
 0x432   : > { %v4878_v35 = vmul.f32 %v4622_v26, %v3044_v63  ;;  %v6786_v26 = vld [vmem:[#allocation2 + $0x2e0] sm:$0xff] }
 0x433   : > { %v4630_v34 = vunpack.c.h.bf16 %v6786_v26 }
 0x434   : > { %v5069_v8 = vadd.f32 %v5068_v45, %v4878_v35 }
 0x435   : > { %v2876_v24 = vpop.f32.mrf.mxu2 }
 0x436   : > { %v2877_v25 = vadd.f32 %v2876_v24, %v2708_v41  ;;  %v3045_v60 = vpop.f32.mrf.mxu3  ;;  %v2541_v15 = vpop.f32.mrf.mxu0 }
 0x437   : > { %v2710_v30 = vpop.f32.mrf.mxu1 }
 0x438   : > { %v3046_v9 = vadd.f32 %v3045_v60, %v2877_v25  ;;  %v2711_v43 = vadd.f32 %v2710_v30, %v2541_v15 }
 0x439   : > { %2580 = vmatmul.bf16.gmra.mxu0 %v7780_v33  ;;  %2749 = vmatmul.bf16.gmra.mxu1 %v7782_v61 }
 0x43a   : > { %v4882_v35 = vmul.f32 %v4626_v46, %v3046_v9  ;;  %2918 = vmatmul.bf16.gmra.mxu2 %v7784_v11 }
 0x43b   : > { %3087 = vmatmul.bf16.gmra.mxu3 %v7786_v42 }
 0x43c   : > { %v5070_v24 = vadd.f32 %v5069_v8, %v4882_v35 }
 0x43d   : > { %v2879_v45 = vpop.f32.mrf.mxu2 }
 0x43e   : > { %v2880_v19 = vadd.f32 %v2879_v45, %v2711_v43  ;;  %v3048_v28 = vpop.f32.mrf.mxu3  ;;  %v2543_v44 = vpop.f32.mrf.mxu0 }
 0x43f   : > { %v2712_v10 = vpop.f32.mrf.mxu1 }
 0x440   : > { %v3049_v17 = vadd.f32 %v3048_v28, %v2880_v19  ;;  %v2713_v27 = vadd.f32 %v2712_v10, %v2543_v44 }
 0x442   : > { %v4886_v48 = vmul.f32 %v4630_v34, %v3049_v17 }
 0x444   : > { %v5071_v63 = vadd.f32 %v5070_v24, %v4886_v48  ;;  %v6788_v24 = vld [vmem:[#allocation2 + $0x300] sm:$0xff] }
 0x445   : > { %v2881_v41 = vpop.f32.mrf.mxu2  ;;  %v4638_v45 = vunpack.c.h.bf16 %v6788_v24 }
 0x446   : > { %v2882_v46 = vadd.f32 %v2881_v41, %v2713_v27  ;;  %v3050_v32 = vpop.f32.mrf.mxu3  ;;  %v2546_v25 = vpop.f32.mrf.mxu0  ;;  %v6789_v41 = vld [vmem:[#allocation2 + $0x310] sm:$0xff] }
 0x447   : > { %v2715_v60 = vpop.f32.mrf.mxu1 }
 0x448   : > { %v3051_v31 = vadd.f32 %v3050_v32, %v2882_v46  ;;  %v2716_v8 = vadd.f32 %v2715_v60, %v2546_v25  ;;  %v4642_v46 = vunpack.c.h.bf16 %v6789_v41 }
 0x449   : > { %3101 = vmatmul.bf16.vlgmr.msra.gmra.mxu0 %v7160_v47  ;;  %3270 = vmatmul.bf16.vlgmr.msra.gmra.mxu1 %v7162_v51 }
 0x44a   : > { %v4890_v15 = vmul.f32 %v4634_v40, %v3051_v31  ;;  %3439 = vmatmul.bf16.vlgmr.msra.gmra.mxu2 %v7164_v52 }
 0x44b   : > { %3608 = vmatmul.bf16.vlgmr.msra.gmra.mxu3 %v7166_v53 }
 0x44c   : > { %v5072_v30 = vadd.f32 %v5071_v63, %v4890_v15 }
 0x44d   : > { %v2884_v9 = vpop.f32.mrf.mxu2 }
 0x44e   : > { %v2885_v43 = vadd.f32 %v2884_v9, %v2716_v8  ;;  %v3053_v35 = vpop.f32.mrf.mxu3  ;;  %v2548_v19 = vpop.f32.mrf.mxu0 }
 0x44f   : > { %v2717_v28 = vpop.f32.mrf.mxu1 }
 0x450   : > { %v3054_v26 = vadd.f32 %v3053_v35, %v2885_v43  ;;  %v2718_v34 = vadd.f32 %v2717_v28, %v2548_v19 }
 0x452   : > { %v4894_v44 = vmul.f32 %v4638_v45, %v3054_v26 }
 0x454   : > { %v5073_v10 = vadd.f32 %v5072_v30, %v4894_v44  ;;  %v6790_v30 = vld [vmem:[#allocation2 + $0x320] sm:$0xff] }
 0x455   : > { %v2886_v17 = vpop.f32.mrf.mxu2  ;;  %v4646_v9 = vunpack.c.h.bf16 %v6790_v30 }
 0x456   : > { %v2887_v27 = vadd.f32 %v2886_v17, %v2718_v34  ;;  %v3055_v48 = vpop.f32.mrf.mxu3  ;;  %v2551_v32 = vpop.f32.mrf.mxu0  ;;  %v6791_v17 = vld [vmem:[#allocation2 + $0x330] sm:$0xff] }
 0x457   : > { %v2720_v62 = vpop.f32.mrf.mxu1 }
 0x458   : > { %v3056_v40 = vadd.f32 %v3055_v48, %v2887_v27  ;;  %v2721_v63 = vadd.f32 %v2720_v62, %v2551_v32  ;;  %v4650_v27 = vunpack.c.h.bf16 %v6791_v17  ;;  %v8602_v62 = vld [vmem:[#allocation11_spill] sm:$0xff] }
 0x459   : > { %3106 = vmatmul.bf16.gmra.mxu0 %v7180_v0  ;;  %3275 = vmatmul.bf16.gmra.mxu1 %v7182_v1 }
 0x45a   : > { %v4898_v25 = vmul.f32 %v4642_v46, %v3056_v40  ;;  %3444 = vmatmul.bf16.gmra.mxu2 %v7184_v2 }
 0x45b   : > { %3613 = vmatmul.bf16.gmra.mxu3 %v7186_v3 }
 0x45c   : > { %v5074_v60 = vadd.f32 %v5073_v10, %v4898_v25  ;;  %v6256_v25 = vld [vmem:[#allocation2 + $0x2d8] sm:$0xf0] }
 0x45d   : > { %v2889_v31 = vpop.f32.mrf.mxu2 }
 0x45e   : > { %v2890_v8 = vadd.f32 %v2889_v31, %v2721_v63  ;;  %v3058_v15 = vpop.f32.mrf.mxu3  ;;  %v2553_v43 = vpop.f32.mrf.mxu0  ;;  %v6498_v63 = vld [vmem:[#allocation2 + $0x2cc] sm:$0xf] }
 0x45f   : > { %v2722_v35 = vpop.f32.mrf.mxu1 }
 0x460   : > { %v3059_v24 = vadd.f32 %v3058_v15, %v2890_v8  ;;  %v2723_v45 = vadd.f32 %v2722_v35, %v2553_v43  ;;  %v6259_v8 = vor.u32 %v6498_v63, %v6256_v25  ;;  %v6384_v15 = vld [vmem:[#allocation2 + $0x3d8] sm:$0xf0]  ;;  %v6792_v43 = vld [vmem:[#allocation2 + $0x340] sm:$0xff]  ;;  %v6793_v25 = vld [vmem:[#allocation2 + $0x350] sm:$0xff] }
 0x461   : > { %v4654_v35 = vunpack.c.h.bf16 %v6792_v43 }
 0x462   : > { %v4902_v19 = vmul.f32 %v4646_v9, %v3059_v24  ;;  %4108 = vmatpush.bf16.msrb.mxu2 %v6259_v8 }
 0x464   : > { %v5075_v28 = vadd.f32 %v5074_v60, %v4902_v19  ;;  %v6530_v60 = vld [vmem:[#allocation2 + $0x3cc] sm:$0xf] }
 0x465   : > { %v2891_v26 = vpop.f32.mrf.mxu2 }
 0x466   : > { %v2892_v34 = vadd.f32 %v2891_v26, %v2723_v45  ;;  %v3060_v44 = vpop.f32.mrf.mxu3  ;;  %v2556_v48 = vpop.f32.mrf.mxu0  ;;  %v6387_v45 = vor.u32 %v6530_v60, %v6384_v15 }
 0x467   : > { %v2725_v41 = vpop.f32.mrf.mxu1 }
 0x468   : > { %v3061_v46 = vadd.f32 %v3060_v44, %v2892_v34  ;;  %v2726_v10 = vadd.f32 %v2725_v41, %v2556_v48  ;;  %4277 = vmatpush.bf16.msrb.mxu3 %v6387_v45  ;;  %v6466_v48 = vld [vmem:[#allocation2 + $0x1cc] sm:$0xf]  ;;  %v6794_v45 = vld [vmem:[#allocation2 + $0x360] sm:$0xff] }
 0x469   : > { %3111 = vmatmul.bf16.gmra.mxu0 %v7200_v12  ;;  %3280 = vmatmul.bf16.gmra.mxu1 %v7202_v13 }
 0x46a   : > { %v4906_v32 = vmul.f32 %v4650_v27, %v3061_v46  ;;  %3449 = vmatmul.bf16.gmra.mxu2 %v7204_v14  ;;  %v6000_v27 = vld [vmem:[#allocation2 + $0xd8] sm:$0xf0] }
 0x46b   : > { %3618 = vmatmul.bf16.gmra.mxu3 %v8602_v62 }
 0x46c   : > { %v5076_v40 = vadd.f32 %v5075_v28, %v4906_v32  ;;  %v6434_v28 = vld [vmem:[#allocation2 + $0xcc] sm:$0xf]  ;;  %v6128_v32 = vld [vmem:[#allocation2 + $0x1d8] sm:$0xf0] }
 0x46d   : > { %v2894_v31 = vpop.f32.mrf.mxu2  ;;  %v6003_v46 = vor.u32 %v6434_v28, %v6000_v27  ;;  %v6131_v62 = vor.u32 %v6466_v48, %v6128_v32  ;;  %v6795_v32 = vld [vmem:[#allocation2 + $0x370] sm:$0xff] }
 0x46e   : > { %v2895_v30 = vadd.f32 %v2894_v31, %v2726_v10  ;;  %v3063_v9 = vpop.f32.mrf.mxu3  ;;  %v2558_v24 = vpop.f32.mrf.mxu0  ;;  %v4658_v31 = vunpack.c.h.bf16 %v6793_v25 }
 0x46f   : > { %v2727_v19 = vpop.f32.mrf.mxu1  ;;  %3770 = vmatpush.bf16.msrb.mxu0 %v6003_v46  ;;  %3939 = vmatpush.bf16.msrb.mxu1 %v6131_v62 }
 0x470   : > { %v3064_v26 = vadd.f32 %v3063_v9, %v2895_v30  ;;  %v2728_v34 = vadd.f32 %v2727_v19, %v2558_v24  ;;  %v4662_v19 = vunpack.c.h.bf16 %v6794_v45 }
 0x472   : > { %v4910_v44 = vmul.f32 %v4654_v35, %v3064_v26 }
 0x474   : > { %v5077_v17 = vadd.f32 %v5076_v40, %v4910_v44 }
 0x475   : > { %v2896_v41 = vpop.f32.mrf.mxu2 }
 0x476   : > { %v2897_v63 = vadd.f32 %v2896_v41, %v2728_v34  ;;  %v3065_v10 = vpop.f32.mrf.mxu3  ;;  %v2561_v43 = vpop.f32.mrf.mxu0 }
 0x477   : > { %v2730_v60 = vpop.f32.mrf.mxu1 }
 0x478   : > { %v3066_v8 = vadd.f32 %v3065_v10, %v2897_v63  ;;  %v2731_v15 = vadd.f32 %v2730_v60, %v2561_v43  ;;  %v4666_v63 = vunpack.c.h.bf16 %v6795_v32 }
 0x479   : > { %3116 = vmatmul.bf16.gmra.mxu0 %v7220_v36  ;;  %3285 = vmatmul.bf16.gmra.mxu1 %v7222_v37 }
 0x47a   : > { %v4914_v40 = vmul.f32 %v4658_v31, %v3066_v8  ;;  %3454 = vmatmul.bf16.gmra.mxu2 %v7224_v38 }
 0x47b   : > { %3623 = vmatmul.bf16.gmra.mxu3 %v7226_v39 }
 0x47c   : > { %v5078_v30 = vadd.f32 %v5077_v17, %v4914_v40 }
 0x47d   : > { %v2899_v9 = vpop.f32.mrf.mxu2 }
 0x47e   : > { %v2900_v35 = vadd.f32 %v2899_v9, %v2731_v15  ;;  %v3068_v24 = vpop.f32.mrf.mxu3  ;;  %v2563_v26 = vpop.f32.mrf.mxu0 }
 0x47f   : > { %v2732_v34 = vpop.f32.mrf.mxu1 }
 0x480   : > { %v3069_v44 = vadd.f32 %v3068_v24, %v2900_v35  ;;  %v2733_v28 = vadd.f32 %v2732_v34, %v2563_v26 }
 0x482   : > { %v4918_v62 = vmul.f32 %v4662_v19, %v3069_v44 }
 0x484   : > { %v5079_v27 = vadd.f32 %v5078_v30, %v4918_v62  ;;  %v6796_v30 = vld [vmem:[#allocation2 + $0x380] sm:$0xff] }
 0x485   : > { %v2901_v48 = vpop.f32.mrf.mxu2  ;;  %v4670_v9 = vunpack.c.h.bf16 %v6796_v30 }
 0x486   : > { %v2902_v41 = vadd.f32 %v2901_v48, %v2733_v28  ;;  %v3070_v46 = vpop.f32.mrf.mxu3  ;;  %v2566_v10 = vpop.f32.mrf.mxu0  ;;  %v6797_v48 = vld [vmem:[#allocation2 + $0x390] sm:$0xff] }
 0x487   : > { %v2735_v25 = vpop.f32.mrf.mxu1 }
 0x488   : > { %v3071_v31 = vadd.f32 %v3070_v46, %v2902_v41  ;;  %v2736_v17 = vadd.f32 %v2735_v25, %v2566_v10  ;;  %v4674_v41 = vunpack.c.h.bf16 %v6797_v48 }
 0x489   : > { %3121 = vmatmul.bf16.gmra.mxu0 %v7240_v49  ;;  %3290 = vmatmul.bf16.gmra.mxu1 %v7242_v50 }
 0x48a   : > { %v4922_v43 = vmul.f32 %v4666_v63, %v3071_v31  ;;  %3459 = vmatmul.bf16.gmra.mxu2 %v7244_v54 }
 0x48b   : > { %3628 = vmatmul.bf16.gmra.mxu3 %v7246_v55 }
 0x48c   : > { %v5080_v60 = vadd.f32 %v5079_v27, %v4922_v43 }
 0x48d   : > { %v2904_v8 = vpop.f32.mrf.mxu2 }
 0x48e   : > { %v2905_v15 = vadd.f32 %v2904_v8, %v2736_v17  ;;  %v3073_v40 = vpop.f32.mrf.mxu3  ;;  %v2568_v35 = vpop.f32.mrf.mxu0 }
 0x48f   : > { %v2737_v24 = vpop.f32.mrf.mxu1 }
 0x490   : > { %v3074_v45 = vadd.f32 %v3073_v40, %v2905_v15  ;;  %v2738_v19 = vadd.f32 %v2737_v24, %v2568_v35 }
 0x492   : > { %v4926_v26 = vmul.f32 %v4670_v9, %v3074_v45 }
 0x494   : > { %v5081_v34 = vadd.f32 %v5080_v60, %v4926_v26  ;;  %v6798_v60 = vld [vmem:[#allocation2 + $0x3a0] sm:$0xff] }
 0x495   : > { %v2906_v44 = vpop.f32.mrf.mxu2  ;;  %v4678_v8 = vunpack.c.h.bf16 %v6798_v60 }
 0x496   : > { %v2907_v28 = vadd.f32 %v2906_v44, %v2738_v19  ;;  %v3075_v62 = vpop.f32.mrf.mxu3  ;;  %v2571_v46 = vpop.f32.mrf.mxu0  ;;  %v6799_v44 = vld [vmem:[#allocation2 + $0x3b0] sm:$0xff] }
 0x497   : > { %v2740_v32 = vpop.f32.mrf.mxu1 }
 0x498   : > { %v3076_v63 = vadd.f32 %v3075_v62, %v2907_v28  ;;  %v2741_v27 = vadd.f32 %v2740_v32, %v2571_v46  ;;  %v4682_v28 = vunpack.c.h.bf16 %v6799_v44 }
 0x499   : > { %3126 = vmatmul.bf16.gmra.mxu0 %v7260_v4  ;;  %3295 = vmatmul.bf16.gmra.mxu1 %v7262_v5 }
 0x49a   : > { %v4930_v10 = vmul.f32 %v4674_v41, %v3076_v63  ;;  %3464 = vmatmul.bf16.gmra.mxu2 %v7264_v6 }
 0x49b   : > { %3633 = vmatmul.bf16.gmra.mxu3 %v7266_v7 }
 0x49c   : > { %v5082_v25 = vadd.f32 %v5081_v34, %v4930_v10 }
 0x49d   : > { %v2909_v31 = vpop.f32.mrf.mxu2 }
 0x49e   : > { %v2910_v17 = vadd.f32 %v2909_v31, %v2741_v27  ;;  %v3078_v43 = vpop.f32.mrf.mxu3  ;;  %v2573_v15 = vpop.f32.mrf.mxu0 }
 0x49f   : > { %v2742_v40 = vpop.f32.mrf.mxu1 }
 0x4a0   : > { %v3079_v30 = vadd.f32 %v3078_v43, %v2910_v17  ;;  %v2743_v9 = vadd.f32 %v2742_v40, %v2573_v15 }
 0x4a2   : > { %v4934_v35 = vmul.f32 %v4678_v8, %v3079_v30 }
 0x4a4   : > { %v5083_v24 = vadd.f32 %v5082_v25, %v4934_v35  ;;  %v6800_v25 = vld [vmem:[#allocation2 + $0x3c0] sm:$0xff] }
 0x4a5   : > { %v2911_v45 = vpop.f32.mrf.mxu2  ;;  %v4686_v31 = vunpack.c.h.bf16 %v6800_v25  ;;  %v5984_v25 = vld [vmem:[#allocation2 + $0xb8] sm:$0xf0] }
 0x4a6   : > { %v2912_v19 = vadd.f32 %v2911_v45, %v2743_v9  ;;  %v3080_v26 = vpop.f32.mrf.mxu3  ;;  %v2576_v62 = vpop.f32.mrf.mxu0  ;;  %v6801_v45 = vld [vmem:[#allocation2 + $0x3d0] sm:$0xff] }
 0x4a7   : > { %v2745_v48 = vpop.f32.mrf.mxu1 }
 0x4a8   : > { %v3081_v41 = vadd.f32 %v3080_v26, %v2912_v19  ;;  %v2746_v34 = vadd.f32 %v2745_v48, %v2576_v62  ;;  %v4690_v19 = vunpack.c.h.bf16 %v6801_v45 }
 0x4a9   : > { %3131 = vmatmul.bf16.gmra.mxu0 %v7280_v20  ;;  %3300 = vmatmul.bf16.gmra.mxu1 %v7282_v21 }
 0x4aa   : > { %v4938_v46 = vmul.f32 %v4682_v28, %v3081_v41  ;;  %3469 = vmatmul.bf16.gmra.mxu2 %v7284_v22  ;;  %v6494_v41 = vld [vmem:[#allocation2 + $0x2ac] sm:$0xf] }
 0x4ab   : > { %3638 = vmatmul.bf16.gmra.mxu3 %v7286_v23 }
 0x4ac   : > { %v5084_v32 = vadd.f32 %v5083_v24, %v4938_v46  ;;  %v6526_v46 = vld [vmem:[#allocation2 + $0x3ac] sm:$0xf] }
 0x4ad   : > { %v2914_v63 = vpop.f32.mrf.mxu2 }
 0x4ae   : > { %v2915_v27 = vadd.f32 %v2914_v63, %v2746_v34  ;;  %v3083_v10 = vpop.f32.mrf.mxu3  ;;  %v2578_v17 = vpop.f32.mrf.mxu0  ;;  %v6240_v34 = vld [vmem:[#allocation2 + $0x2b8] sm:$0xf0] }
 0x4af   : > { %v2747_v43 = vpop.f32.mrf.mxu1  ;;  %v6243_v63 = vor.u32 %v6494_v41, %v6240_v34 }
 0x4b0   : > { %v3084_v60 = vadd.f32 %v3083_v10, %v2915_v27  ;;  %v2748_v8 = vadd.f32 %v2747_v43, %v2578_v17  ;;  %v6368_v27 = vld [vmem:[#allocation2 + $0x3b8] sm:$0xf0]  ;;  %v6430_v10 = vld [vmem:[#allocation2 + $0xac] sm:$0xf]  ;;  %v6802_v43 = vld [vmem:[#allocation2 + $0x3e0] sm:$0xff] }
 0x4b1   : > { %4109 = vmatpush.bf16.msrb.mxu2 %v6243_v63 }
 0x4b2   : > { %v4942_v15 = vmul.f32 %v4686_v31, %v3084_v60  ;;  %v4694_v60 = vunpack.c.h.bf16 %v6802_v43 }
 0x4b4   : > { %v5085_v40 = vadd.f32 %v5084_v32, %v4942_v15  ;;  %v6371_v15 = vor.u32 %v6526_v46, %v6368_v27 }
 0x4b5   : > { %v2916_v30 = vpop.f32.mrf.mxu2 }
 0x4b6   : > { %v2917_v9 = vadd.f32 %v2916_v30, %v2748_v8  ;;  %v3085_v35 = vpop.f32.mrf.mxu3  ;;  %v2581_v26 = vpop.f32.mrf.mxu0  ;;  %v5987_v30 = vor.u32 %v6430_v10, %v5984_v25  ;;  %4278 = vmatpush.bf16.msrb.mxu3 %v6371_v15 }
 0x4b7   : > { %v2750_v44 = vpop.f32.mrf.mxu1 }
 0x4b8   : > { %v3086_v28 = vadd.f32 %v3085_v35, %v2917_v9  ;;  %v2751_v24 = vadd.f32 %v2750_v44, %v2581_v26  ;;  %v6462_v9 = vld [vmem:[#allocation2 + $0x1ac] sm:$0xf]  ;;  %v6112_v35 = vld [vmem:[#allocation2 + $0x1b8] sm:$0xf0]  ;;  %3771 = vmatpush.bf16.msrb.mxu0 %v5987_v30 }
 0x4b9   : > { %3136 = vmatmul.bf16.gmra.mxu0 %v7300_v56  ;;  %3305 = vmatmul.bf16.gmra.mxu1 %v7302_v57 }
 0x4ba   : > { %v4946_v62 = vmul.f32 %v4690_v19, %v3086_v28  ;;  %3474 = vmatmul.bf16.gmra.mxu2 %v7304_v58  ;;  %v5020_v28 = vrot.slane %v7828_v29, 4 }
 0x4bb   : > { %3643 = vmatmul.bf16.gmra.mxu3 %v7306_v59 }
 0x4bc   : > { %v5086_v48 = vadd.f32 %v5085_v40, %v4946_v62  ;;  %v6115_v40 = vor.u32 %v6462_v9, %v6112_v35  ;;  %v5021_v25 = vadd.f32 %v5020_v28, %v7828_v29 }
 0x4bd   : > { %v2919_v32 = vpop.f32.mrf.mxu2 }
 0x4be   : > { %v2920_v31 = vadd.f32 %v2919_v32, %v2751_v24  ;;  %v3088_v17 = vpop.f32.mrf.mxu3  ;;  %v2583_v8 = vpop.f32.mrf.mxu0  ;;  %3940 = vmatpush.bf16.msrb.mxu1 %v6115_v40  ;;  %v6803_v32 = vld [vmem:[#allocation2 + $0x3f0] sm:$0xff] }
 0x4bf   : > { %v2752_v45 = vpop.f32.mrf.mxu1  ;;  %v4698_v46 = vunpack.c.h.bf16 %v6803_v32 }
 0x4c0   : > { %v3089_v19 = vadd.f32 %v3088_v17, %v2920_v31  ;;  %v2753_v26 = vadd.f32 %v2752_v45, %v2583_v8  ;;  %v8603_v17 = vld [vmem:[#allocation13_spill] sm:$0xff] }
 0x4c2   : > { %v4950_v44 = vmul.f32 %v4694_v60, %v3089_v19  ;;  %v8604_v60 = vld [vmem:[#allocation14_spill] sm:$0xff] }
 0x4c4   : > { %v5087_v24 = vadd.f32 %v5086_v48, %v4950_v44  ;;  %v5022_v48 = vrot.slane %v5021_v25, 2 }
 0x4c5   : > { %v2921_v62 = vpop.f32.mrf.mxu2 }
 0x4c6   : > { %v2922_v41 = vadd.f32 %v2921_v62, %v2753_v26  ;;  %v3090_v34 = vpop.f32.mrf.mxu3  ;;  %v3102_v27 = vpop.f32.mrf.mxu0  ;;  %v5023_v29 = vadd.f32 %v5022_v48, %v5021_v25  ;;  %v206_v62 = vld [vmem:[#allocation2 + $0x8] sm:$0xff] }
 0x4c7   : > { %v3271_v10 = vpop.f32.mrf.mxu1  ;;  %v8605_v48 = vld [vmem:[#allocation15_spill] sm:$0xff] }
 0x4c8   : > { %v3091_v63 = vadd.f32 %v3090_v34, %v2922_v41  ;;  %v3272_v43 = vadd.f32 %v3271_v10, %v3102_v27  ;;  %v208_v41 = vld [vmem:[#allocation2 + $0x18] sm:$0xff]  ;;  %v5024_v34 = vrot.slane %v5023_v29, 1  ;;  %v4447_v10 = vunpack.c.l.bf16 %v206_v62 }
 0x4c9   : > { %3141 = vmatmul.bf16.gmra.mxu0 %v7320_v16  ;;  %3310 = vmatmul.bf16.gmra.mxu1 %v7322_v18 }
 0x4ca   : > { %v4954_v31 = vmul.f32 %v4698_v46, %v3091_v63  ;;  %3479 = vmatmul.bf16.gmra.mxu2 %v8603_v17 }
 0x4cb   : > { %3648 = vmatmul.bf16.gmra.mxu3 %v8604_v60 }
 0x4cc   : > { %v5088_v8 = vadd.f32 %v5087_v24, %v4954_v31  ;;  %v4451_v31 = vunpack.c.l.bf16 %v208_v41 }
 0x4cd   : > { %v3440_v15 = vpop.f32.mrf.mxu2 }
 0x4ce   : > { %v5089_v30 = vrot.slane %v5088_v8, 4  ;;  %v3441_v9 = vadd.f32 %v3440_v15, %v3272_v43  ;;  %v3609_v35 = vpop.f32.mrf.mxu3  ;;  %v3104_v45 = vpop.f32.mrf.mxu0  ;;  %v5025_v15 = vadd.f32 %v5024_v34, %v5023_v29 }
 0x4cf   : > { %v3273_v40 = vpop.f32.mrf.mxu1 }
 0x4d0   : > { %v5090_v19 = vadd.f32 %v5089_v30, %v5088_v8  ;;  %v3610_v26 = vadd.f32 %v3609_v35, %v3441_v9  ;;  %v3274_v44 = vadd.f32 %v3273_v40, %v3104_v45  ;;  %v8606_v35 = vld [vmem:[#allocation16_spill] sm:$0xff]  ;;  %v8607_v45 = vld [vmem:[#allocation17_spill] sm:$0xff]  ;;  %v8608_v40 = vld [vmem:[#allocation18_spill] sm:$0xff] }
 0x4d2   : > { %v5091_v28 = vrot.slane %v5090_v19, 2  ;;  %v4703_v30 = vmul.f32 %v4447_v10, %v3610_v26  ;;  %v212_v10 = vld [vmem:[#allocation2 + $0x38] sm:$0xff] }
 0x4d4   : > { %v5092_v32 = vadd.f32 %v5091_v28, %v5090_v19  ;;  %v210_v19 = vld [vmem:[#allocation2 + $0x28] sm:$0xff] }
 0x4d5   : > { %v3442_v46 = vpop.f32.mrf.mxu2 }
 0x4d6   : > { %v5093_v27 = vrot.slane %v5092_v32, 1  ;;  %v3443_v63 = vadd.f32 %v3442_v46, %v3274_v44  ;;  %v3611_v24 = vpop.f32.mrf.mxu3  ;;  %v3107_v60 = vpop.f32.mrf.mxu0  ;;  %v5233_v44 = vmax.f32 %v5025_v15, 0.0 }
 0x4d7   : > { %v3276_v43 = vpop.f32.mrf.mxu1 }
 0x4d8   : > { %v5094_v17 = vadd.f32 %v5093_v27, %v5092_v32  ;;  %v3612_v18 = vadd.f32 %v3611_v24, %v3443_v63  ;;  %v3277_v25 = vadd.f32 %v3276_v43, %v3107_v60  ;;  %v4455_v60 = vunpack.c.l.bf16 %v210_v19 }
 0x4d9   : > { %3146 = vmatmul.bf16.gmra.mxu0 %v8605_v48  ;;  %3315 = vmatmul.bf16.gmra.mxu1 %v8606_v35 }
 0x4da   : > { %v5234_v8 = vmax.f32 %v5094_v17, 0.0  ;;  %v4707_v9 = vmul.f32 %v4451_v31, %v3612_v18  ;;  %3484 = vmatmul.bf16.gmra.mxu2 %v8607_v45 }
 0x4db   : > { %3653 = vmatmul.bf16.gmra.mxu3 %v8608_v40  ;;  %v4459_v40 = vunpack.c.l.bf16 %v212_v10 }
 0x4dc   : > { %v5241_v28 = vrot.slane %v5234_v8, 7  ;;  %v5095_v62 = vadd.f32 %v4707_v9, %v4703_v30 }
 0x4dd   : > { %v3445_v29 = vpop.f32.mrf.mxu2 }
 0x4de   : > { %v3446_v41 = vadd.f32 %v3445_v29, %v3277_v25  ;;  %v3614_v34 = vpop.f32.mrf.mxu3  ;;  %v3109_v32 = vpop.f32.mrf.mxu0  ;;  %v7964_v46 = vsel %vm5244_vm0, %v5233_v44, %v5241_v28  ;;  %v8610_v25 = vld [vmem:[#allocation19_spill] sm:$0xff]  ;;  %v8611_v29 = vld [vmem:[#allocation20_spill] sm:$0xff]  ;;  %v8612_v44 = vld [vmem:[#allocation21_spill] sm:$0xff] }
 0x4df   : > { %8609 = vst [vmem:[#allocation15_spill] sm:$0xff] %v7964_v46  ;;  %v3278_v17 = vpop.f32.mrf.mxu1  ;;  %v8613_v28 = vld [vmem:[#allocation22_spill] sm:$0xff]  ;;  %v216_v46 = vld [vmem:[#allocation2 + $0x58] sm:$0xff] }
 0x4e0   : > { %v3615_v18 = vadd.f32 %v3614_v34, %v3446_v41  ;;  %v3279_v26 = vadd.f32 %v3278_v17, %v3109_v32  ;;  %v214_v41 = vld [vmem:[#allocation2 + $0x48] sm:$0xff] }
 0x4e1   : > { %v6522_v32 = vld [vmem:[#allocation2 + $0x38c] sm:$0xf] }
 0x4e2   : > { %v4711_v27 = vmul.f32 %v4455_v60, %v3615_v18  ;;  %v6224_v60 = vld [vmem:[#allocation2 + $0x298] sm:$0xf0] }
 0x4e4   : > { %v5096_v63 = vadd.f32 %v5095_v62, %v4711_v27  ;;  %v6490_v62 = vld [vmem:[#allocation2 + $0x28c] sm:$0xf] }
 0x4e5   : > { %v3447_v24 = vpop.f32.mrf.mxu2  ;;  %v6227_v18 = vor.u32 %v6490_v62, %v6224_v60  ;;  %v6096_v62 = vld [vmem:[#allocation2 + $0x198] sm:$0xf0] }
 0x4e6   : > { %v3448_v31 = vadd.f32 %v3447_v24, %v3279_v26  ;;  %v3616_v43 = vpop.f32.mrf.mxu3  ;;  %v3112_v15 = vpop.f32.mrf.mxu0  ;;  %v6352_v26 = vld [vmem:[#allocation2 + $0x398] sm:$0xf0]  ;;  %v4463_v24 = vunpack.c.l.bf16 %v214_v41 }
 0x4e7   : > { %v3281_v8 = vpop.f32.mrf.mxu1  ;;  %4110 = vmatpush.bf16.msrb.mxu2 %v6227_v18 }
 0x4e8   : > { %v3617_v30 = vadd.f32 %v3616_v43, %v3448_v31  ;;  %v3282_v9 = vadd.f32 %v3281_v8, %v3112_v15  ;;  %v6355_v43 = vor.u32 %v6522_v32, %v6352_v26 }
 0x4e9   : > { %3151 = vmatmul.bf16.gmra.mxu0 %v8610_v25  ;;  %3320 = vmatmul.bf16.gmra.mxu1 %v8611_v29 }
 0x4ea   : > { %v4715_v19 = vmul.f32 %v4459_v40, %v3617_v30  ;;  %3489 = vmatmul.bf16.gmra.mxu2 %v8612_v44  ;;  %4279 = vmatpush.bf16.msrb.mxu3 %v6355_v43  ;;  %v6458_v44 = vld [vmem:[#allocation2 + $0x18c] sm:$0xf] }
 0x4eb   : > { %3658 = vmatmul.bf16.gmra.mxu3 %v8613_v28  ;;  %v6099_v45 = vor.u32 %v6458_v44, %v6096_v62  ;;  %v218_v43 = vld [vmem:[#allocation2 + $0x68] sm:$0xff] }
 0x4ec   : > { %v5097_v34 = vadd.f32 %v5096_v63, %v4715_v19  ;;  %v6426_v63 = vld [vmem:[#allocation2 + $0x8c] sm:$0xf]  ;;  %v5968_v19 = vld [vmem:[#allocation2 + $0x98] sm:$0xf0]  ;;  %v4471_v44 = vunpack.c.l.bf16 %v218_v43 }
 0x4ed   : > { %v3450_v17 = vpop.f32.mrf.mxu2  ;;  %v5971_v25 = vor.u32 %v6426_v63, %v5968_v19  ;;  %3941 = vmatpush.bf16.msrb.mxu1 %v6099_v45  ;;  %v220_v19 = vld [vmem:[#allocation2 + $0x78] sm:$0xff] }
 0x4ee   : > { %v3451_v27 = vadd.f32 %v3450_v17, %v3282_v9  ;;  %v3619_v10 = vpop.f32.mrf.mxu3  ;;  %v3114_v31 = vpop.f32.mrf.mxu0  ;;  %v4467_v17 = vunpack.c.l.bf16 %v216_v46  ;;  %v8620_v43 = vld [vmem:[#allocation29_spill] sm:$0xff] }
 0x4ef   : > { %v3283_v40 = vpop.f32.mrf.mxu1  ;;  %3772 = vmatpush.bf16.msrb.mxu0 %v5971_v25 }
 0x4f0   : > { %v3620_v15 = vadd.f32 %v3619_v10, %v3451_v27  ;;  %v3284_v8 = vadd.f32 %v3283_v40, %v3114_v31  ;;  %v8614_v27 = vld [vmem:[#allocation23_spill] sm:$0xff]  ;;  %v8617_v31 = vld [vmem:[#allocation26_spill] sm:$0xff] }
 0x4f2   : > { %v4719_v30 = vmul.f32 %v4463_v24, %v3620_v15  ;;  %v8616_v24 = vld [vmem:[#allocation25_spill] sm:$0xff] }
 0x4f4   : > { %v5098_v28 = vadd.f32 %v5097_v34, %v4719_v30  ;;  %v8615_v34 = vld [vmem:[#allocation24_spill] sm:$0xff] }
 0x4f5   : > { %v3452_v29 = vpop.f32.mrf.mxu2 }
 0x4f6   : > { %v3453_v60 = vadd.f32 %v3452_v29, %v3284_v8  ;;  %v3621_v9 = vpop.f32.mrf.mxu3  ;;  %v3117_v41 = vpop.f32.mrf.mxu0 }
 0x4f7   : > { %v3286_v32 = vpop.f32.mrf.mxu1 }
 0x4f8   : > { %v3622_v18 = vadd.f32 %v3621_v9, %v3453_v60  ;;  %v3287_v26 = vadd.f32 %v3286_v32, %v3117_v41  ;;  %v4475_v41 = vunpack.c.l.bf16 %v220_v19 }
 0x4f9   : > { %3156 = vmatmul.bf16.gmra.mxu0 %v8614_v27  ;;  %3325 = vmatmul.bf16.gmra.mxu1 %v8615_v34 }
 0x4fa   : > { %v4723_v10 = vmul.f32 %v4467_v17, %v3622_v18  ;;  %3494 = vmatmul.bf16.gmra.mxu2 %v8616_v24 }
 0x4fb   : > { %3663 = vmatmul.bf16.gmra.mxu3 %v8617_v31 }
 0x4fc   : > { %v5099_v29 = vadd.f32 %v5098_v28, %v4723_v10  ;;  %v8618_v28 = vld [vmem:[#allocation27_spill] sm:$0xff]  ;;  %v8619_v10 = vld [vmem:[#allocation28_spill] sm:$0xff] }
 0x4fd   : > { %v3455_v40 = vpop.f32.mrf.mxu2 }
 0x4fe   : > { %v3456_v46 = vadd.f32 %v3455_v40, %v3287_v26  ;;  %v3624_v15 = vpop.f32.mrf.mxu3  ;;  %v3119_v8 = vpop.f32.mrf.mxu0  ;;  %v8621_v40 = vld [vmem:[#allocation30_spill] sm:$0xff] }
 0x4ff   : > { %v3288_v25 = vpop.f32.mrf.mxu1 }
 0x500   : > { %v3625_v30 = vadd.f32 %v3624_v15, %v3456_v46  ;;  %v3289_v63 = vadd.f32 %v3288_v25, %v3119_v8  ;;  %v222_v46 = vld [vmem:[#allocation2 + $0x88] sm:$0xff] }
 0x501   : > { %v4479_v25 = vunpack.c.l.bf16 %v222_v46  ;;  %v8624_v46 = vld [vmem:[#allocation33_spill] sm:$0xff] }
 0x502   : > { %v4727_v45 = vmul.f32 %v4471_v44, %v3625_v30 }
 0x504   : > { %v5100_v62 = vadd.f32 %v5099_v29, %v4727_v45 }
 0x505   : > { %v3457_v60 = vpop.f32.mrf.mxu2 }
 0x506   : > { %v3458_v9 = vadd.f32 %v3457_v60, %v3289_v63  ;;  %v3626_v17 = vpop.f32.mrf.mxu3  ;;  %v3122_v32 = vpop.f32.mrf.mxu0 }
 0x507   : > { %v3291_v18 = vpop.f32.mrf.mxu1 }
 0x508   : > { %v3627_v31 = vadd.f32 %v3626_v17, %v3458_v9  ;;  %v3292_v24 = vadd.f32 %v3291_v18, %v3122_v32  ;;  %v224_v9 = vld [vmem:[#allocation2 + $0x98] sm:$0xff] }
 0x509   : > { %3161 = vmatmul.bf16.gmra.mxu0 %v8618_v28  ;;  %3330 = vmatmul.bf16.gmra.mxu1 %v8619_v10  ;;  %v4483_v18 = vunpack.c.l.bf16 %v224_v9 }
 0x50a   : > { %v4731_v26 = vmul.f32 %v4475_v41, %v3627_v31  ;;  %3499 = vmatmul.bf16.gmra.mxu2 %v8620_v43 }
 0x50b   : > { %3668 = vmatmul.bf16.gmra.mxu3 %v8621_v40 }
 0x50c   : > { %v5101_v15 = vadd.f32 %v5100_v62, %v4731_v26  ;;  %v8622_v62 = vld [vmem:[#allocation31_spill] sm:$0xff]  ;;  %v8623_v26 = vld [vmem:[#allocation32_spill] sm:$0xff] }
 0x50d   : > { %v3460_v29 = vpop.f32.mrf.mxu2 }
 0x50e   : > { %v3461_v44 = vadd.f32 %v3460_v29, %v3292_v24  ;;  %v3629_v8 = vpop.f32.mrf.mxu3  ;;  %v3124_v30 = vpop.f32.mrf.mxu0  ;;  %v8625_v29 = vld [vmem:[#allocation34_spill] sm:$0xff] }
 0x50f   : > { %v3293_v63 = vpop.f32.mrf.mxu1 }
 0x510   : > { %v3630_v45 = vadd.f32 %v3629_v8, %v3461_v44  ;;  %v3294_v19 = vadd.f32 %v3293_v63, %v3124_v30  ;;  %v226_v44 = vld [vmem:[#allocation2 + $0xa8] sm:$0xff] }
 0x511   : > { %v4487_v63 = vunpack.c.l.bf16 %v226_v44  ;;  %v8628_v44 = vld [vmem:[#allocation37_spill] sm:$0xff] }
 0x512   : > { %v4735_v60 = vmul.f32 %v4479_v25, %v3630_v45 }
 0x514   : > { %v5102_v17 = vadd.f32 %v5101_v15, %v4735_v60 }
 0x515   : > { %v3462_v31 = vpop.f32.mrf.mxu2 }
 0x516   : > { %v3463_v41 = vadd.f32 %v3462_v31, %v3294_v19  ;;  %v3631_v32 = vpop.f32.mrf.mxu3  ;;  %v3127_v43 = vpop.f32.mrf.mxu0 }
 0x517   : > { %v3296_v10 = vpop.f32.mrf.mxu1 }
 0x518   : > { %v3632_v40 = vadd.f32 %v3631_v32, %v3463_v41  ;;  %v3297_v28 = vadd.f32 %v3296_v10, %v3127_v43  ;;  %v228_v43 = vld [vmem:[#allocation2 + $0xb8] sm:$0xff] }
 0x519   : > { %3166 = vmatmul.bf16.gmra.mxu0 %v8622_v62  ;;  %3335 = vmatmul.bf16.gmra.mxu1 %v8623_v26 }
 0x51a   : > { %v4739_v24 = vmul.f32 %v4483_v18, %v3632_v40  ;;  %3504 = vmatmul.bf16.gmra.mxu2 %v8624_v46  ;;  %v4491_v18 = vunpack.c.l.bf16 %v228_v43 }
 0x51b   : > { %3673 = vmatmul.bf16.gmra.mxu3 %v8625_v29 }
 0x51c   : > { %v5103_v8 = vadd.f32 %v5102_v17, %v4739_v24  ;;  %v8626_v17 = vld [vmem:[#allocation35_spill] sm:$0xff]  ;;  %v8627_v24 = vld [vmem:[#allocation36_spill] sm:$0xff] }
 0x51d   : > { %v3465_v15 = vpop.f32.mrf.mxu2 }
 0x51e   : > { %v3466_v25 = vadd.f32 %v3465_v15, %v3297_v28  ;;  %v3634_v30 = vpop.f32.mrf.mxu3  ;;  %v3129_v45 = vpop.f32.mrf.mxu0  ;;  %v8629_v15 = vld [vmem:[#allocation38_spill] sm:$0xff] }
 0x51f   : > { %v3298_v19 = vpop.f32.mrf.mxu1 }
 0x520   : > { %v3635_v60 = vadd.f32 %v3634_v30, %v3466_v25  ;;  %v3299_v9 = vadd.f32 %v3298_v19, %v3129_v45  ;;  %v230_v25 = vld [vmem:[#allocation2 + $0xc8] sm:$0xff] }
 0x521   : > { %v6518_v45 = vld [vmem:[#allocation2 + $0x36c] sm:$0xf] }
 0x522   : > { %v4743_v10 = vmul.f32 %v4487_v63, %v3635_v60  ;;  %v6208_v63 = vld [vmem:[#allocation2 + $0x278] sm:$0xf0] }
 0x524   : > { %v5104_v31 = vadd.f32 %v5103_v8, %v4743_v10  ;;  %v6486_v8 = vld [vmem:[#allocation2 + $0x26c] sm:$0xf] }
 0x525   : > { %v3467_v40 = vpop.f32.mrf.mxu2  ;;  %v6211_v60 = vor.u32 %v6486_v8, %v6208_v63  ;;  %v6080_v8 = vld [vmem:[#allocation2 + $0x178] sm:$0xf0] }
 0x526   : > { %v3468_v41 = vadd.f32 %v3467_v40, %v3299_v9  ;;  %v3636_v32 = vpop.f32.mrf.mxu3  ;;  %v3132_v46 = vpop.f32.mrf.mxu0  ;;  %v6336_v9 = vld [vmem:[#allocation2 + $0x378] sm:$0xf0] }
 0x527   : > { %v3301_v26 = vpop.f32.mrf.mxu1  ;;  %v6339_v40 = vor.u32 %v6518_v45, %v6336_v9  ;;  %4111 = vmatpush.bf16.msrb.mxu2 %v6211_v60 }
 0x528   : > { %v3637_v29 = vadd.f32 %v3636_v32, %v3468_v41  ;;  %v3302_v62 = vadd.f32 %v3301_v26, %v3132_v46  ;;  %v4495_v26 = vunpack.c.l.bf16 %v230_v25 }
 0x529   : > { %3171 = vmatmul.bf16.gmra.mxu0 %v8626_v17  ;;  %3340 = vmatmul.bf16.gmra.mxu1 %v8627_v24  ;;  %v6454_v24 = vld [vmem:[#allocation2 + $0x16c] sm:$0xf] }
 0x52a   : > { %v4747_v28 = vmul.f32 %v4491_v18, %v3637_v29  ;;  %3509 = vmatmul.bf16.gmra.mxu2 %v8628_v44  ;;  %4280 = vmatpush.bf16.msrb.mxu3 %v6339_v40  ;;  %v6083_v27 = vor.u32 %v6454_v24, %v6080_v8  ;;  %v234_v40 = vld [vmem:[#allocation2 + $0xe8] sm:$0xff] }
 0x52b   : > { %3678 = vmatmul.bf16.gmra.mxu3 %v8629_v15  ;;  %v232_v15 = vld [vmem:[#allocation2 + $0xd8] sm:$0xff]  ;;  %v4503_v24 = vunpack.c.l.bf16 %v234_v40 }
 0x52c   : > { %v5105_v30 = vadd.f32 %v5104_v31, %v4747_v28  ;;  %v6422_v31 = vld [vmem:[#allocation2 + $0x6c] sm:$0xf]  ;;  %v5952_v28 = vld [vmem:[#allocation2 + $0x78] sm:$0xf0]  ;;  %3942 = vmatpush.bf16.msrb.mxu1 %v6083_v27 }
 0x52d   : > { %v3470_v19 = vpop.f32.mrf.mxu2  ;;  %v5955_v34 = vor.u32 %v6422_v31, %v5952_v28  ;;  %v236_v28 = vld [vmem:[#allocation2 + $0xf8] sm:$0xff] }
 0x52e   : > { %v3471_v10 = vadd.f32 %v3470_v19, %v3302_v62  ;;  %v3639_v43 = vpop.f32.mrf.mxu3  ;;  %v3134_v46 = vpop.f32.mrf.mxu0  ;;  %v4499_v19 = vunpack.c.l.bf16 %v232_v15  ;;  %v8636_v40 = vld [vmem:[#allocation45_spill] sm:$0xff] }
 0x52f   : > { %v3303_v29 = vpop.f32.mrf.mxu1  ;;  %3773 = vmatpush.bf16.msrb.mxu0 %v5955_v34 }
 0x530   : > { %v3640_v41 = vadd.f32 %v3639_v43, %v3471_v10  ;;  %v3304_v32 = vadd.f32 %v3303_v29, %v3134_v46  ;;  %v8630_v10 = vld [vmem:[#allocation39_spill] sm:$0xff]  ;;  %v8633_v46 = vld [vmem:[#allocation42_spill] sm:$0xff] }
 0x532   : > { %v4751_v18 = vmul.f32 %v4495_v26, %v3640_v41  ;;  %v8632_v26 = vld [vmem:[#allocation41_spill] sm:$0xff] }
 0x534   : > { %v5106_v44 = vadd.f32 %v5105_v30, %v4751_v18  ;;  %v8631_v30 = vld [vmem:[#allocation40_spill] sm:$0xff] }
 0x535   : > { %v3472_v17 = vpop.f32.mrf.mxu2 }
 0x536   : > { %v3473_v63 = vadd.f32 %v3472_v17, %v3304_v32  ;;  %v3641_v62 = vpop.f32.mrf.mxu3  ;;  %v3137_v25 = vpop.f32.mrf.mxu0 }
 0x537   : > { %v3306_v45 = vpop.f32.mrf.mxu1 }
 0x538   : > { %v3642_v60 = vadd.f32 %v3641_v62, %v3473_v63  ;;  %v3307_v9 = vadd.f32 %v3306_v45, %v3137_v25  ;;  %v4507_v25 = vunpack.c.l.bf16 %v236_v28 }
 0x539   : > { %3176 = vmatmul.bf16.gmra.mxu0 %v8630_v10  ;;  %3345 = vmatmul.bf16.gmra.mxu1 %v8631_v30 }
 0x53a   : > { %v4755_v43 = vmul.f32 %v4499_v19, %v3642_v60  ;;  %3514 = vmatmul.bf16.gmra.mxu2 %v8632_v26 }
 0x53b   : > { %3683 = vmatmul.bf16.gmra.mxu3 %v8633_v46 }
 0x53c   : > { %v5107_v17 = vadd.f32 %v5106_v44, %v4755_v43  ;;  %v8634_v44 = vld [vmem:[#allocation43_spill] sm:$0xff]  ;;  %v8635_v43 = vld [vmem:[#allocation44_spill] sm:$0xff] }
 0x53d   : > { %v3475_v29 = vpop.f32.mrf.mxu2 }
 0x53e   : > { %v3476_v15 = vadd.f32 %v3475_v29, %v3307_v9  ;;  %v3644_v41 = vpop.f32.mrf.mxu3  ;;  %v3139_v32 = vpop.f32.mrf.mxu0  ;;  %v8637_v29 = vld [vmem:[#allocation46_spill] sm:$0xff] }
 0x53f   : > { %v3308_v34 = vpop.f32.mrf.mxu1 }
 0x540   : > { %v3645_v18 = vadd.f32 %v3644_v41, %v3476_v15  ;;  %v3309_v31 = vadd.f32 %v3308_v34, %v3139_v32  ;;  %v238_v15 = vld [vmem:[#allocation2 + $0x108] sm:$0xff] }
 0x541   : > { %v4511_v34 = vunpack.c.l.bf16 %v238_v15  ;;  %v8640_v15 = vld [vmem:[#allocation49_spill] sm:$0xff] }
 0x542   : > { %v4759_v27 = vmul.f32 %v4503_v24, %v3645_v18 }
 0x544   : > { %v5108_v8 = vadd.f32 %v5107_v17, %v4759_v27 }
 0x545   : > { %v3477_v63 = vpop.f32.mrf.mxu2 }
 0x546   : > { %v3478_v62 = vadd.f32 %v3477_v63, %v3309_v31  ;;  %v3646_v19 = vpop.f32.mrf.mxu3  ;;  %v3142_v45 = vpop.f32.mrf.mxu0 }
 0x547   : > { %v3311_v60 = vpop.f32.mrf.mxu1 }
 0x548   : > { %v3647_v46 = vadd.f32 %v3646_v19, %v3478_v62  ;;  %v3312_v26 = vadd.f32 %v3311_v60, %v3142_v45  ;;  %v240_v62 = vld [vmem:[#allocation2 + $0x118] sm:$0xff] }
 0x549   : > { %3181 = vmatmul.bf16.gmra.mxu0 %v8634_v44  ;;  %3350 = vmatmul.bf16.gmra.mxu1 %v8635_v43  ;;  %v4515_v60 = vunpack.c.l.bf16 %v240_v62 }
 0x54a   : > { %v4763_v9 = vmul.f32 %v4507_v25, %v3647_v46  ;;  %3519 = vmatmul.bf16.gmra.mxu2 %v8636_v40 }
 0x54b   : > { %3688 = vmatmul.bf16.gmra.mxu3 %v8637_v29 }
 0x54c   : > { %v5109_v41 = vadd.f32 %v5108_v8, %v4763_v9  ;;  %v8638_v8 = vld [vmem:[#allocation47_spill] sm:$0xff]  ;;  %v8639_v9 = vld [vmem:[#allocation48_spill] sm:$0xff] }
 0x54d   : > { %v3480_v17 = vpop.f32.mrf.mxu2 }
 0x54e   : > { %v3481_v24 = vadd.f32 %v3480_v17, %v3312_v26  ;;  %v3649_v32 = vpop.f32.mrf.mxu3  ;;  %v3144_v18 = vpop.f32.mrf.mxu0  ;;  %v8641_v17 = vld [vmem:[#allocation50_spill] sm:$0xff] }
 0x54f   : > { %v3313_v31 = vpop.f32.mrf.mxu1 }
 0x550   : > { %v3650_v27 = vadd.f32 %v3649_v32, %v3481_v24  ;;  %v3314_v28 = vadd.f32 %v3313_v31, %v3144_v18  ;;  %v242_v24 = vld [vmem:[#allocation2 + $0x128] sm:$0xff] }
 0x551   : > { %v4519_v31 = vunpack.c.l.bf16 %v242_v24  ;;  %v8644_v24 = vld [vmem:[#allocation53_spill] sm:$0xff] }
 0x552   : > { %v4767_v63 = vmul.f32 %v4511_v34, %v3650_v27 }
 0x554   : > { %v5110_v19 = vadd.f32 %v5109_v41, %v4767_v63 }
 0x555   : > { %v3482_v46 = vpop.f32.mrf.mxu2 }
 0x556   : > { %v3483_v25 = vadd.f32 %v3482_v46, %v3314_v28  ;;  %v3651_v45 = vpop.f32.mrf.mxu3  ;;  %v3147_v40 = vpop.f32.mrf.mxu0 }
 0x557   : > { %v3316_v43 = vpop.f32.mrf.mxu1 }
 0x558   : > { %v3652_v29 = vadd.f32 %v3651_v45, %v3483_v25  ;;  %v3317_v44 = vadd.f32 %v3316_v43, %v3147_v40  ;;  %v244_v40 = vld [vmem:[#allocation2 + $0x138] sm:$0xff] }
 0x559   : > { %3186 = vmatmul.bf16.gmra.mxu0 %v8638_v8  ;;  %3355 = vmatmul.bf16.gmra.mxu1 %v8639_v9 }
 0x55a   : > { %v4771_v26 = vmul.f32 %v4515_v60, %v3652_v29  ;;  %3524 = vmatmul.bf16.gmra.mxu2 %v8640_v15  ;;  %v4523_v60 = vunpack.c.l.bf16 %v244_v40 }
 0x55b   : > { %3693 = vmatmul.bf16.gmra.mxu3 %v8641_v17 }
 0x55c   : > { %v5111_v32 = vadd.f32 %v5110_v19, %v4771_v26  ;;  %v8642_v19 = vld [vmem:[#allocation51_spill] sm:$0xff]  ;;  %v8643_v26 = vld [vmem:[#allocation52_spill] sm:$0xff] }
 0x55d   : > { %v3485_v41 = vpop.f32.mrf.mxu2 }
 0x55e   : > { %v3486_v34 = vadd.f32 %v3485_v41, %v3317_v44  ;;  %v3654_v18 = vpop.f32.mrf.mxu3  ;;  %v3149_v27 = vpop.f32.mrf.mxu0  ;;  %v8645_v41 = vld [vmem:[#allocation54_spill] sm:$0xff] }
 0x55f   : > { %v3318_v28 = vpop.f32.mrf.mxu1 }
 0x560   : > { %v3655_v63 = vadd.f32 %v3654_v18, %v3486_v34  ;;  %v3319_v62 = vadd.f32 %v3318_v28, %v3149_v27  ;;  %v246_v34 = vld [vmem:[#allocation2 + $0x148] sm:$0xff] }
 0x561   : > { %v6514_v27 = vld [vmem:[#allocation2 + $0x34c] sm:$0xf] }
 0x562   : > { %v4775_v43 = vmul.f32 %v4519_v31, %v3655_v63  ;;  %v6192_v31 = vld [vmem:[#allocation2 + $0x258] sm:$0xf0] }
 0x564   : > { %v5112_v46 = vadd.f32 %v5111_v32, %v4775_v43  ;;  %v6482_v32 = vld [vmem:[#allocation2 + $0x24c] sm:$0xf] }
 0x565   : > { %v3487_v29 = vpop.f32.mrf.mxu2  ;;  %v6195_v63 = vor.u32 %v6482_v32, %v6192_v31  ;;  %v6064_v32 = vld [vmem:[#allocation2 + $0x158] sm:$0xf0] }
 0x566   : > { %v3488_v25 = vadd.f32 %v3487_v29, %v3319_v62  ;;  %v3656_v45 = vpop.f32.mrf.mxu3  ;;  %v3152_v15 = vpop.f32.mrf.mxu0  ;;  %v6320_v62 = vld [vmem:[#allocation2 + $0x358] sm:$0xf0] }
 0x567   : > { %v3321_v9 = vpop.f32.mrf.mxu1  ;;  %v6323_v29 = vor.u32 %v6514_v27, %v6320_v62  ;;  %4112 = vmatpush.bf16.msrb.mxu2 %v6195_v63 }
 0x568   : > { %v3657_v17 = vadd.f32 %v3656_v45, %v3488_v25  ;;  %v3322_v8 = vadd.f32 %v3321_v9, %v3152_v15  ;;  %v4527_v9 = vunpack.c.l.bf16 %v246_v34 }
 0x569   : > { %3191 = vmatmul.bf16.gmra.mxu0 %v8642_v19  ;;  %3360 = vmatmul.bf16.gmra.mxu1 %v8643_v26  ;;  %v6450_v26 = vld [vmem:[#allocation2 + $0x14c] sm:$0xf] }
 0x56a   : > { %v4779_v44 = vmul.f32 %v4523_v60, %v3657_v17  ;;  %3529 = vmatmul.bf16.gmra.mxu2 %v8644_v24  ;;  %4281 = vmatpush.bf16.msrb.mxu3 %v6323_v29  ;;  %v6067_v10 = vor.u32 %v6450_v26, %v6064_v32  ;;  %v250_v29 = vld [vmem:[#allocation2 + $0x168] sm:$0xff] }
 0x56b   : > { %3698 = vmatmul.bf16.gmra.mxu3 %v8645_v41  ;;  %v248_v41 = vld [vmem:[#allocation2 + $0x158] sm:$0xff]  ;;  %v4535_v26 = vunpack.c.l.bf16 %v250_v29 }
 0x56c   : > { %v5113_v18 = vadd.f32 %v5112_v46, %v4779_v44  ;;  %v6418_v46 = vld [vmem:[#allocation2 + $0x4c] sm:$0xf]  ;;  %v5936_v44 = vld [vmem:[#allocation2 + $0x58] sm:$0xf0]  ;;  %3943 = vmatpush.bf16.msrb.mxu1 %v6067_v10 }
 0x56d   : > { %v3490_v28 = vpop.f32.mrf.mxu2  ;;  %v5939_v30 = vor.u32 %v6418_v46, %v5936_v44  ;;  %v252_v44 = vld [vmem:[#allocation2 + $0x178] sm:$0xff] }
 0x56e   : > { %v3491_v43 = vadd.f32 %v3490_v28, %v3322_v8  ;;  %v3659_v40 = vpop.f32.mrf.mxu3  ;;  %v3154_v15 = vpop.f32.mrf.mxu0  ;;  %v4531_v28 = vunpack.c.l.bf16 %v248_v41  ;;  %v8652_v29 = vld [vmem:[#allocation61_spill] sm:$0xff] }
 0x56f   : > { %v3323_v17 = vpop.f32.mrf.mxu1  ;;  %3774 = vmatpush.bf16.msrb.mxu0 %v5939_v30 }
 0x570   : > { %v3660_v25 = vadd.f32 %v3659_v40, %v3491_v43  ;;  %v3324_v45 = vadd.f32 %v3323_v17, %v3154_v15  ;;  %v8646_v43 = vld [vmem:[#allocation55_spill] sm:$0xff]  ;;  %v8649_v15 = vld [vmem:[#allocation58_spill] sm:$0xff] }
 0x572   : > { %v4783_v60 = vmul.f32 %v4527_v9, %v3660_v25  ;;  %v8648_v9 = vld [vmem:[#allocation57_spill] sm:$0xff] }
 0x574   : > { %v5114_v24 = vadd.f32 %v5113_v18, %v4783_v60  ;;  %v8647_v18 = vld [vmem:[#allocation56_spill] sm:$0xff] }
 0x575   : > { %v3492_v19 = vpop.f32.mrf.mxu2 }
 0x576   : > { %v3493_v31 = vadd.f32 %v3492_v19, %v3324_v45  ;;  %v3661_v8 = vpop.f32.mrf.mxu3  ;;  %v3157_v34 = vpop.f32.mrf.mxu0 }
 0x577   : > { %v3326_v27 = vpop.f32.mrf.mxu1 }
 0x578   : > { %v3662_v63 = vadd.f32 %v3661_v8, %v3493_v31  ;;  %v3327_v62 = vadd.f32 %v3326_v27, %v3157_v34  ;;  %v4539_v34 = vunpack.c.l.bf16 %v252_v44 }
 0x579   : > { %3196 = vmatmul.bf16.gmra.mxu0 %v8646_v43  ;;  %3365 = vmatmul.bf16.gmra.mxu1 %v8647_v18 }
 0x57a   : > { %v4787_v40 = vmul.f32 %v4531_v28, %v3662_v63  ;;  %3534 = vmatmul.bf16.gmra.mxu2 %v8648_v9 }
 0x57b   : > { %3703 = vmatmul.bf16.gmra.mxu3 %v8649_v15 }
 0x57c   : > { %v5115_v19 = vadd.f32 %v5114_v24, %v4787_v40  ;;  %v8650_v24 = vld [vmem:[#allocation59_spill] sm:$0xff]  ;;  %v8651_v40 = vld [vmem:[#allocation60_spill] sm:$0xff] }
 0x57d   : > { %v3495_v17 = vpop.f32.mrf.mxu2 }
 0x57e   : > { %v3496_v41 = vadd.f32 %v3495_v17, %v3327_v62  ;;  %v3664_v25 = vpop.f32.mrf.mxu3  ;;  %v3159_v45 = vpop.f32.mrf.mxu0  ;;  %v8653_v17 = vld [vmem:[#allocation62_spill] sm:$0xff] }
 0x57f   : > { %v3328_v30 = vpop.f32.mrf.mxu1 }
 0x580   : > { %v3665_v60 = vadd.f32 %v3664_v25, %v3496_v41  ;;  %v3329_v46 = vadd.f32 %v3328_v30, %v3159_v45  ;;  %v254_v41 = vld [vmem:[#allocation2 + $0x188] sm:$0xff] }
 0x581   : > { %v4543_v30 = vunpack.c.l.bf16 %v254_v41  ;;  %v8656_v41 = vld [vmem:[#allocation65_spill] sm:$0xff] }
 0x582   : > { %v4791_v10 = vmul.f32 %v4535_v26, %v3665_v60 }
 0x584   : > { %v5116_v32 = vadd.f32 %v5115_v19, %v4791_v10 }
 0x585   : > { %v3497_v31 = vpop.f32.mrf.mxu2 }
 0x586   : > { %v3498_v8 = vadd.f32 %v3497_v31, %v3329_v46  ;;  %v3666_v28 = vpop.f32.mrf.mxu3  ;;  %v3162_v27 = vpop.f32.mrf.mxu0 }
 0x587   : > { %v3331_v63 = vpop.f32.mrf.mxu1 }
 0x588   : > { %v3667_v15 = vadd.f32 %v3666_v28, %v3498_v8  ;;  %v3332_v9 = vadd.f32 %v3331_v63, %v3162_v27  ;;  %v256_v8 = vld [vmem:[#allocation2 + $0x198] sm:$0xff] }
 0x589   : > { %3201 = vmatmul.bf16.gmra.mxu0 %v8650_v24  ;;  %3370 = vmatmul.bf16.gmra.mxu1 %v8651_v40  ;;  %v4547_v63 = vunpack.c.l.bf16 %v256_v8 }
 0x58a   : > { %v4795_v62 = vmul.f32 %v4539_v34, %v3667_v15  ;;  %3539 = vmatmul.bf16.gmra.mxu2 %v8652_v29 }
 0x58b   : > { %3708 = vmatmul.bf16.gmra.mxu3 %v8653_v17 }
 0x58c   : > { %v5117_v25 = vadd.f32 %v5116_v32, %v4795_v62  ;;  %v8654_v32 = vld [vmem:[#allocation63_spill] sm:$0xff]  ;;  %v8655_v62 = vld [vmem:[#allocation64_spill] sm:$0xff] }
 0x58d   : > { %v3500_v19 = vpop.f32.mrf.mxu2 }
 0x58e   : > { %v3501_v26 = vadd.f32 %v3500_v19, %v3332_v9  ;;  %v3669_v45 = vpop.f32.mrf.mxu3  ;;  %v3164_v60 = vpop.f32.mrf.mxu0  ;;  %v8657_v19 = vld [vmem:[#allocation66_spill] sm:$0xff] }
 0x58f   : > { %v3333_v46 = vpop.f32.mrf.mxu1 }
 0x590   : > { %v3670_v10 = vadd.f32 %v3669_v45, %v3501_v26  ;;  %v3334_v44 = vadd.f32 %v3333_v46, %v3164_v60  ;;  %v258_v26 = vld [vmem:[#allocation2 + $0x1a8] sm:$0xff] }
 0x591   : > { %v4551_v46 = vunpack.c.l.bf16 %v258_v26  ;;  %v8660_v26 = vld [vmem:[#allocation69_spill] sm:$0xff] }
 0x592   : > { %v4799_v31 = vmul.f32 %v4543_v30, %v3670_v10 }
 0x594   : > { %v5118_v28 = vadd.f32 %v5117_v25, %v4799_v31 }
 0x595   : > { %v3502_v15 = vpop.f32.mrf.mxu2 }
 0x596   : > { %v3503_v34 = vadd.f32 %v3502_v15, %v3334_v44  ;;  %v3671_v27 = vpop.f32.mrf.mxu3  ;;  %v3167_v29 = vpop.f32.mrf.mxu0 }
 0x597   : > { %v3336_v40 = vpop.f32.mrf.mxu1 }
 0x598   : > { %v3672_v17 = vadd.f32 %v3671_v27, %v3503_v34  ;;  %v3337_v24 = vadd.f32 %v3336_v40, %v3167_v29  ;;  %v260_v29 = vld [vmem:[#allocation2 + $0x1b8] sm:$0xff] }
 0x599   : > { %3206 = vmatmul.bf16.gmra.mxu0 %v8654_v32  ;;  %3375 = vmatmul.bf16.gmra.mxu1 %v8655_v62 }
 0x59a   : > { %v4803_v9 = vmul.f32 %v4547_v63, %v3672_v17  ;;  %3544 = vmatmul.bf16.gmra.mxu2 %v8656_v41  ;;  %v4555_v63 = vunpack.c.l.bf16 %v260_v29 }
 0x59b   : > { %3713 = vmatmul.bf16.gmra.mxu3 %v8657_v19 }
 0x59c   : > { %v5119_v45 = vadd.f32 %v5118_v28, %v4803_v9  ;;  %v8658_v28 = vld [vmem:[#allocation67_spill] sm:$0xff]  ;;  %v8659_v9 = vld [vmem:[#allocation68_spill] sm:$0xff] }
 0x59d   : > { %v3505_v25 = vpop.f32.mrf.mxu2 }
 0x59e   : > { %v3506_v30 = vadd.f32 %v3505_v25, %v3337_v24  ;;  %v3674_v60 = vpop.f32.mrf.mxu3  ;;  %v3169_v10 = vpop.f32.mrf.mxu0  ;;  %v8661_v25 = vld [vmem:[#allocation70_spill] sm:$0xff] }
 0x59f   : > { %v3338_v44 = vpop.f32.mrf.mxu1 }
 0x5a0   : > { %v3675_v31 = vadd.f32 %v3674_v60, %v3506_v30  ;;  %v3339_v8 = vadd.f32 %v3338_v44, %v3169_v10  ;;  %v262_v30 = vld [vmem:[#allocation2 + $0x1c8] sm:$0xff] }
 0x5a1   : > { %v6510_v10 = vld [vmem:[#allocation2 + $0x32c] sm:$0xf] }
 0x5a2   : > { %v4807_v40 = vmul.f32 %v4551_v46, %v3675_v31  ;;  %v6176_v46 = vld [vmem:[#allocation2 + $0x238] sm:$0xf0] }
 0x5a4   : > { %v5120_v15 = vadd.f32 %v5119_v45, %v4807_v40  ;;  %v6478_v45 = vld [vmem:[#allocation2 + $0x22c] sm:$0xf] }
 0x5a5   : > { %v3507_v17 = vpop.f32.mrf.mxu2  ;;  %v6179_v31 = vor.u32 %v6478_v45, %v6176_v46  ;;  %v6048_v45 = vld [vmem:[#allocation2 + $0x138] sm:$0xf0] }
 0x5a6   : > { %v3508_v34 = vadd.f32 %v3507_v17, %v3339_v8  ;;  %v3676_v27 = vpop.f32.mrf.mxu3  ;;  %v3172_v41 = vpop.f32.mrf.mxu0  ;;  %v6304_v8 = vld [vmem:[#allocation2 + $0x338] sm:$0xf0] }
 0x5a7   : > { %v3341_v62 = vpop.f32.mrf.mxu1  ;;  %v6307_v17 = vor.u32 %v6510_v10, %v6304_v8  ;;  %4113 = vmatpush.bf16.msrb.mxu2 %v6179_v31 }
 0x5a8   : > { %v3677_v19 = vadd.f32 %v3676_v27, %v3508_v34  ;;  %v3342_v32 = vadd.f32 %v3341_v62, %v3172_v41  ;;  %v4559_v62 = vunpack.c.l.bf16 %v262_v30 }
 0x5a9   : > { %3211 = vmatmul.bf16.gmra.mxu0 %v8658_v28  ;;  %3380 = vmatmul.bf16.gmra.mxu1 %v8659_v9  ;;  %v6446_v9 = vld [vmem:[#allocation2 + $0x12c] sm:$0xf] }
 0x5aa   : > { %v4811_v24 = vmul.f32 %v4555_v63, %v3677_v19  ;;  %3549 = vmatmul.bf16.gmra.mxu2 %v8660_v26  ;;  %4282 = vmatpush.bf16.msrb.mxu3 %v6307_v17  ;;  %v6051_v43 = vor.u32 %v6446_v9, %v6048_v45  ;;  %v266_v17 = vld [vmem:[#allocation2 + $0x1e8] sm:$0xff] }
 0x5ab   : > { %3718 = vmatmul.bf16.gmra.mxu3 %v8661_v25  ;;  %v264_v25 = vld [vmem:[#allocation2 + $0x1d8] sm:$0xff]  ;;  %v4567_v9 = vunpack.c.l.bf16 %v266_v17 }
 0x5ac   : > { %v5121_v60 = vadd.f32 %v5120_v15, %v4811_v24  ;;  %v6414_v15 = vld [vmem:[#allocation2 + $0x2c] sm:$0xf]  ;;  %v5920_v24 = vld [vmem:[#allocation2 + $0x38] sm:$0xf0]  ;;  %3944 = vmatpush.bf16.msrb.mxu1 %v6051_v43 }
 0x5ad   : > { %v3510_v44 = vpop.f32.mrf.mxu2  ;;  %v5923_v18 = vor.u32 %v6414_v15, %v5920_v24  ;;  %v268_v24 = vld [vmem:[#allocation2 + $0x1f8] sm:$0xff] }
 0x5ae   : > { %v3511_v40 = vadd.f32 %v3510_v44, %v3342_v32  ;;  %v3679_v29 = vpop.f32.mrf.mxu3  ;;  %v3174_v41 = vpop.f32.mrf.mxu0  ;;  %v4563_v44 = vunpack.c.l.bf16 %v264_v25  ;;  %v8668_v17 = vld [vmem:[#allocation77_spill] sm:$0xff] }
 0x5af   : > { %v3343_v19 = vpop.f32.mrf.mxu1  ;;  %3775 = vmatpush.bf16.msrb.mxu0 %v5923_v18 }
 0x5b0   : > { %v3680_v34 = vadd.f32 %v3679_v29, %v3511_v40  ;;  %v3344_v27 = vadd.f32 %v3343_v19, %v3174_v41  ;;  %v8662_v40 = vld [vmem:[#allocation71_spill] sm:$0xff]  ;;  %v8665_v41 = vld [vmem:[#allocation74_spill] sm:$0xff] }
 0x5b2   : > { %v4815_v63 = vmul.f32 %v4559_v62, %v3680_v34  ;;  %v8664_v62 = vld [vmem:[#allocation73_spill] sm:$0xff] }
 0x5b4   : > { %v5122_v26 = vadd.f32 %v5121_v60, %v4815_v63  ;;  %v8663_v60 = vld [vmem:[#allocation72_spill] sm:$0xff] }
 0x5b5   : > { %v3512_v28 = vpop.f32.mrf.mxu2 }
 0x5b6   : > { %v3513_v46 = vadd.f32 %v3512_v28, %v3344_v27  ;;  %v3681_v32 = vpop.f32.mrf.mxu3  ;;  %v3177_v30 = vpop.f32.mrf.mxu0 }
 0x5b7   : > { %v3346_v10 = vpop.f32.mrf.mxu1 }
 0x5b8   : > { %v3682_v31 = vadd.f32 %v3681_v32, %v3513_v46  ;;  %v3347_v8 = vadd.f32 %v3346_v10, %v3177_v30  ;;  %v4571_v30 = vunpack.c.l.bf16 %v268_v24 }
 0x5b9   : > { %3216 = vmatmul.bf16.gmra.mxu0 %v8662_v40  ;;  %3385 = vmatmul.bf16.gmra.mxu1 %v8663_v60 }
 0x5ba   : > { %v4819_v29 = vmul.f32 %v4563_v44, %v3682_v31  ;;  %3554 = vmatmul.bf16.gmra.mxu2 %v8664_v62 }
 0x5bb   : > { %3723 = vmatmul.bf16.gmra.mxu3 %v8665_v41 }
 0x5bc   : > { %v5123_v28 = vadd.f32 %v5122_v26, %v4819_v29  ;;  %v8666_v26 = vld [vmem:[#allocation75_spill] sm:$0xff]  ;;  %v8667_v29 = vld [vmem:[#allocation76_spill] sm:$0xff] }
 0x5bd   : > { %v3515_v19 = vpop.f32.mrf.mxu2 }
 0x5be   : > { %v3516_v25 = vadd.f32 %v3515_v19, %v3347_v8  ;;  %v3684_v34 = vpop.f32.mrf.mxu3  ;;  %v3179_v27 = vpop.f32.mrf.mxu0  ;;  %v8669_v19 = vld [vmem:[#allocation78_spill] sm:$0xff] }
 0x5bf   : > { %v3348_v18 = vpop.f32.mrf.mxu1 }
 0x5c0   : > { %v3685_v63 = vadd.f32 %v3684_v34, %v3516_v25  ;;  %v3349_v15 = vadd.f32 %v3348_v18, %v3179_v27  ;;  %v270_v25 = vld [vmem:[#allocation2 + $0x208] sm:$0xff] }
 0x5c1   : > { %v4575_v18 = vunpack.c.l.bf16 %v270_v25  ;;  %v8672_v25 = vld [vmem:[#allocation81_spill] sm:$0xff] }
 0x5c2   : > { %v4823_v43 = vmul.f32 %v4567_v9, %v3685_v63 }
 0x5c4   : > { %v5124_v45 = vadd.f32 %v5123_v28, %v4823_v43 }
 0x5c5   : > { %v3517_v46 = vpop.f32.mrf.mxu2 }
 0x5c6   : > { %v3518_v32 = vadd.f32 %v3517_v46, %v3349_v15  ;;  %v3686_v44 = vpop.f32.mrf.mxu3  ;;  %v3182_v10 = vpop.f32.mrf.mxu0 }
 0x5c7   : > { %v3351_v31 = vpop.f32.mrf.mxu1 }
 0x5c8   : > { %v3687_v41 = vadd.f32 %v3686_v44, %v3518_v32  ;;  %v3352_v62 = vadd.f32 %v3351_v31, %v3182_v10  ;;  %v272_v32 = vld [vmem:[#allocation2 + $0x218] sm:$0xff] }
 0x5c9   : > { %3221 = vmatmul.bf16.gmra.mxu0 %v8666_v26  ;;  %3390 = vmatmul.bf16.gmra.mxu1 %v8667_v29  ;;  %v4579_v31 = vunpack.c.l.bf16 %v272_v32 }
 0x5ca   : > { %v4827_v8 = vmul.f32 %v4571_v30, %v3687_v41  ;;  %3559 = vmatmul.bf16.gmra.mxu2 %v8668_v17 }
 0x5cb   : > { %3728 = vmatmul.bf16.gmra.mxu3 %v8669_v19 }
 0x5cc   : > { %v5125_v34 = vadd.f32 %v5124_v45, %v4827_v8  ;;  %v8670_v45 = vld [vmem:[#allocation79_spill] sm:$0xff]  ;;  %v8671_v8 = vld [vmem:[#allocation80_spill] sm:$0xff] }
 0x5cd   : > { %v3520_v28 = vpop.f32.mrf.mxu2 }
 0x5ce   : > { %v3521_v9 = vadd.f32 %v3520_v28, %v3352_v62  ;;  %v3689_v27 = vpop.f32.mrf.mxu3  ;;  %v3184_v63 = vpop.f32.mrf.mxu0  ;;  %v8673_v28 = vld [vmem:[#allocation82_spill] sm:$0xff] }
 0x5cf   : > { %v3353_v15 = vpop.f32.mrf.mxu1 }
 0x5d0   : > { %v3690_v43 = vadd.f32 %v3689_v27, %v3521_v9  ;;  %v3354_v24 = vadd.f32 %v3353_v15, %v3184_v63  ;;  %v274_v9 = vld [vmem:[#allocation2 + $0x228] sm:$0xff] }
 0x5d1   : > { %v4583_v15 = vunpack.c.l.bf16 %v274_v9  ;;  %v8676_v9 = vld [vmem:[#allocation85_spill] sm:$0xff] }
 0x5d2   : > { %v4831_v46 = vmul.f32 %v4575_v18, %v3690_v43 }
 0x5d4   : > { %v5126_v44 = vadd.f32 %v5125_v34, %v4831_v46 }
 0x5d5   : > { %v3522_v41 = vpop.f32.mrf.mxu2 }
 0x5d6   : > { %v3523_v30 = vadd.f32 %v3522_v41, %v3354_v24  ;;  %v3691_v10 = vpop.f32.mrf.mxu3  ;;  %v3187_v17 = vpop.f32.mrf.mxu0 }
 0x5d7   : > { %v3356_v29 = vpop.f32.mrf.mxu1 }
 0x5d8   : > { %v3692_v19 = vadd.f32 %v3691_v10, %v3523_v30  ;;  %v3357_v26 = vadd.f32 %v3356_v29, %v3187_v17  ;;  %v276_v17 = vld [vmem:[#allocation2 + $0x238] sm:$0xff] }
 0x5d9   : > { %3226 = vmatmul.bf16.gmra.mxu0 %v8670_v45  ;;  %3395 = vmatmul.bf16.gmra.mxu1 %v8671_v8 }
 0x5da   : > { %v4835_v62 = vmul.f32 %v4579_v31, %v3692_v19  ;;  %3564 = vmatmul.bf16.gmra.mxu2 %v8672_v25  ;;  %v4587_v31 = vunpack.c.l.bf16 %v276_v17 }
 0x5db   : > { %3733 = vmatmul.bf16.gmra.mxu3 %v8673_v28 }
 0x5dc   : > { %v5127_v27 = vadd.f32 %v5126_v44, %v4835_v62  ;;  %v8674_v44 = vld [vmem:[#allocation83_spill] sm:$0xff]  ;;  %v8675_v62 = vld [vmem:[#allocation84_spill] sm:$0xff] }
 0x5dd   : > { %v3525_v34 = vpop.f32.mrf.mxu2 }
 0x5de   : > { %v3526_v18 = vadd.f32 %v3525_v34, %v3357_v26  ;;  %v3694_v63 = vpop.f32.mrf.mxu3  ;;  %v3189_v43 = vpop.f32.mrf.mxu0  ;;  %v8677_v34 = vld [vmem:[#allocation86_spill] sm:$0xff] }
 0x5df   : > { %v3358_v24 = vpop.f32.mrf.mxu1 }
 0x5e0   : > { %v3695_v46 = vadd.f32 %v3694_v63, %v3526_v18  ;;  %v3359_v32 = vadd.f32 %v3358_v24, %v3189_v43  ;;  %v278_v18 = vld [vmem:[#allocation2 + $0x248] sm:$0xff] }
 0x5e1   : > { %v6506_v43 = vld [vmem:[#allocation2 + $0x30c] sm:$0xf] }
 0x5e2   : > { %v4839_v29 = vmul.f32 %v4583_v15, %v3695_v46  ;;  %v6160_v15 = vld [vmem:[#allocation2 + $0x218] sm:$0xf0] }
 0x5e4   : > { %v5128_v41 = vadd.f32 %v5127_v27, %v4839_v29  ;;  %v6474_v27 = vld [vmem:[#allocation2 + $0x20c] sm:$0xf] }
 0x5e5   : > { %v3527_v19 = vpop.f32.mrf.mxu2  ;;  %v6163_v46 = vor.u32 %v6474_v27, %v6160_v15  ;;  %v6032_v27 = vld [vmem:[#allocation2 + $0x118] sm:$0xf0] }
 0x5e6   : > { %v3528_v30 = vadd.f32 %v3527_v19, %v3359_v32  ;;  %v3696_v10 = vpop.f32.mrf.mxu3  ;;  %v3192_v25 = vpop.f32.mrf.mxu0  ;;  %v6288_v32 = vld [vmem:[#allocation2 + $0x318] sm:$0xf0] }
 0x5e7   : > { %v3361_v8 = vpop.f32.mrf.mxu1  ;;  %v6291_v19 = vor.u32 %v6506_v43, %v6288_v32  ;;  %4114 = vmatpush.bf16.msrb.mxu2 %v6163_v46 }
 0x5e8   : > { %v3697_v28 = vadd.f32 %v3696_v10, %v3528_v30  ;;  %v3362_v45 = vadd.f32 %v3361_v8, %v3192_v25  ;;  %v4591_v8 = vunpack.c.l.bf16 %v278_v18 }
 0x5e9   : > { %3231 = vmatmul.bf16.gmra.mxu0 %v8674_v44  ;;  %3400 = vmatmul.bf16.gmra.mxu1 %v8675_v62  ;;  %v6442_v62 = vld [vmem:[#allocation2 + $0x10c] sm:$0xf] }
 0x5ea   : > { %v4843_v26 = vmul.f32 %v4587_v31, %v3697_v28  ;;  %3569 = vmatmul.bf16.gmra.mxu2 %v8676_v9  ;;  %4283 = vmatpush.bf16.msrb.mxu3 %v6291_v19  ;;  %v6035_v40 = vor.u32 %v6442_v62, %v6032_v27  ;;  %v282_v19 = vld [vmem:[#allocation2 + $0x268] sm:$0xff] }
 0x5eb   : > { %3738 = vmatmul.bf16.gmra.mxu3 %v8677_v34  ;;  %v280_v34 = vld [vmem:[#allocation2 + $0x258] sm:$0xff]  ;;  %v4599_v62 = vunpack.c.l.bf16 %v282_v19 }
 0x5ec   : > { %v5129_v63 = vadd.f32 %v5128_v41, %v4843_v26  ;;  %v6410_v41 = vld [vmem:[#allocation2 + $0xc] sm:$0xf]  ;;  %v5904_v26 = vld [vmem:[#allocation2 + $0x18] sm:$0xf0]  ;;  %3945 = vmatpush.bf16.msrb.mxu1 %v6035_v40 }
 0x5ed   : > { %v3530_v24 = vpop.f32.mrf.mxu2  ;;  %v5907_v60 = vor.u32 %v6410_v41, %v5904_v26  ;;  %v284_v26 = vld [vmem:[#allocation2 + $0x278] sm:$0xff] }
 0x5ee   : > { %v3531_v29 = vadd.f32 %v3530_v24, %v3362_v45  ;;  %v3699_v17 = vpop.f32.mrf.mxu3  ;;  %v3194_v25 = vpop.f32.mrf.mxu0  ;;  %v4595_v24 = vunpack.c.l.bf16 %v280_v34  ;;  %v8684_v19 = vld [vmem:[#allocation93_spill] sm:$0xff] }
 0x5ef   : > { %v3363_v28 = vpop.f32.mrf.mxu1  ;;  %3776 = vmatpush.bf16.msrb.mxu0 %v5907_v60 }
 0x5f0   : > { %v3700_v30 = vadd.f32 %v3699_v17, %v3531_v29  ;;  %v3364_v10 = vadd.f32 %v3363_v28, %v3194_v25  ;;  %v8678_v29 = vld [vmem:[#allocation87_spill] sm:$0xff]  ;;  %v8681_v25 = vld [vmem:[#allocation90_spill] sm:$0xff] }
 0x5f2   : > { %v4847_v31 = vmul.f32 %v4591_v8, %v3700_v30  ;;  %v8680_v8 = vld [vmem:[#allocation89_spill] sm:$0xff] }
 0x5f4   : > { %v5130_v9 = vadd.f32 %v5129_v63, %v4847_v31  ;;  %v8679_v63 = vld [vmem:[#allocation88_spill] sm:$0xff] }
 0x5f5   : > { %v3532_v44 = vpop.f32.mrf.mxu2 }
 0x5f6   : > { %v3533_v15 = vadd.f32 %v3532_v44, %v3364_v10  ;;  %v3701_v45 = vpop.f32.mrf.mxu3  ;;  %v3197_v18 = vpop.f32.mrf.mxu0 }
 0x5f7   : > { %v3366_v43 = vpop.f32.mrf.mxu1 }
 0x5f8   : > { %v3702_v46 = vadd.f32 %v3701_v45, %v3533_v15  ;;  %v3367_v32 = vadd.f32 %v3366_v43, %v3197_v18  ;;  %v4603_v18 = vunpack.c.l.bf16 %v284_v26 }
 0x5f9   : > { %3236 = vmatmul.bf16.gmra.mxu0 %v8678_v29  ;;  %3405 = vmatmul.bf16.gmra.mxu1 %v8679_v63 }
 0x5fa   : > { %v4851_v17 = vmul.f32 %v4595_v24, %v3702_v46  ;;  %3574 = vmatmul.bf16.gmra.mxu2 %v8680_v8 }
 0x5fb   : > { %3743 = vmatmul.bf16.gmra.mxu3 %v8681_v25 }
 0x5fc   : > { %v5131_v44 = vadd.f32 %v5130_v9, %v4851_v17  ;;  %v8682_v9 = vld [vmem:[#allocation91_spill] sm:$0xff]  ;;  %v8683_v17 = vld [vmem:[#allocation92_spill] sm:$0xff] }
 0x5fd   : > { %v3535_v28 = vpop.f32.mrf.mxu2 }
 0x5fe   : > { %v3536_v34 = vadd.f32 %v3535_v28, %v3367_v32  ;;  %v3704_v30 = vpop.f32.mrf.mxu3  ;;  %v3199_v10 = vpop.f32.mrf.mxu0  ;;  %v8685_v28 = vld [vmem:[#allocation94_spill] sm:$0xff] }
 0x5ff   : > { %v3368_v60 = vpop.f32.mrf.mxu1 }
 0x600   : > { %v3705_v31 = vadd.f32 %v3704_v30, %v3536_v34  ;;  %v3369_v41 = vadd.f32 %v3368_v60, %v3199_v10  ;;  %v286_v34 = vld [vmem:[#allocation2 + $0x288] sm:$0xff] }
 0x601   : > { %v4607_v60 = vunpack.c.l.bf16 %v286_v34  ;;  %v8688_v34 = vld [vmem:[#allocation97_spill] sm:$0xff] }
 0x602   : > { %v4855_v40 = vmul.f32 %v4599_v62, %v3705_v31 }
 0x604   : > { %v5132_v27 = vadd.f32 %v5131_v44, %v4855_v40 }
 0x605   : > { %v3537_v15 = vpop.f32.mrf.mxu2 }
 0x606   : > { %v3538_v45 = vadd.f32 %v3537_v15, %v3369_v41  ;;  %v3706_v24 = vpop.f32.mrf.mxu3  ;;  %v3202_v43 = vpop.f32.mrf.mxu0 }
 0x607   : > { %v3371_v46 = vpop.f32.mrf.mxu1 }
 0x608   : > { %v3707_v25 = vadd.f32 %v3706_v24, %v3538_v45  ;;  %v3372_v8 = vadd.f32 %v3371_v46, %v3202_v43  ;;  %v288_v45 = vld [vmem:[#allocation2 + $0x298] sm:$0xff] }
 0x609   : > { %3241 = vmatmul.bf16.gmra.mxu0 %v8682_v9  ;;  %3410 = vmatmul.bf16.gmra.mxu1 %v8683_v17  ;;  %v4611_v46 = vunpack.c.l.bf16 %v288_v45 }
 0x60a   : > { %v4859_v32 = vmul.f32 %v4603_v18, %v3707_v25  ;;  %3579 = vmatmul.bf16.gmra.mxu2 %v8684_v19 }
 0x60b   : > { %3748 = vmatmul.bf16.gmra.mxu3 %v8685_v28 }
 0x60c   : > { %v5133_v30 = vadd.f32 %v5132_v27, %v4859_v32  ;;  %v8686_v27 = vld [vmem:[#allocation95_spill] sm:$0xff]  ;;  %v8687_v32 = vld [vmem:[#allocation96_spill] sm:$0xff] }
 0x60d   : > { %v3540_v44 = vpop.f32.mrf.mxu2 }
 0x60e   : > { %v3541_v62 = vadd.f32 %v3540_v44, %v3372_v8  ;;  %v3709_v10 = vpop.f32.mrf.mxu3  ;;  %v3204_v31 = vpop.f32.mrf.mxu0  ;;  %v8689_v44 = vld [vmem:[#allocation98_spill] sm:$0xff] }
 0x60f   : > { %v3373_v41 = vpop.f32.mrf.mxu1 }
 0x610   : > { %v3710_v40 = vadd.f32 %v3709_v10, %v3541_v62  ;;  %v3374_v26 = vadd.f32 %v3373_v41, %v3204_v31  ;;  %v290_v62 = vld [vmem:[#allocation2 + $0x2a8] sm:$0xff] }
 0x611   : > { %v4615_v41 = vunpack.c.l.bf16 %v290_v62  ;;  %v8692_v62 = vld [vmem:[#allocation101_spill] sm:$0xff] }
 0x612   : > { %v4863_v15 = vmul.f32 %v4607_v60, %v3710_v40 }
 0x614   : > { %v5134_v24 = vadd.f32 %v5133_v30, %v4863_v15 }
 0x615   : > { %v3542_v25 = vpop.f32.mrf.mxu2 }
 0x616   : > { %v3543_v18 = vadd.f32 %v3542_v25, %v3374_v26  ;;  %v3711_v43 = vpop.f32.mrf.mxu3  ;;  %v3207_v19 = vpop.f32.mrf.mxu0 }
 0x617   : > { %v3376_v17 = vpop.f32.mrf.mxu1 }
 0x618   : > { %v3712_v28 = vadd.f32 %v3711_v43, %v3543_v18  ;;  %v3377_v9 = vadd.f32 %v3376_v17, %v3207_v19  ;;  %v292_v19 = vld [vmem:[#allocation2 + $0x2b8] sm:$0xff] }
 0x619   : > { %3246 = vmatmul.bf16.gmra.mxu0 %v8686_v27  ;;  %3415 = vmatmul.bf16.gmra.mxu1 %v8687_v32 }
 0x61a   : > { %v4867_v8 = vmul.f32 %v4611_v46, %v3712_v28  ;;  %3584 = vmatmul.bf16.gmra.mxu2 %v8688_v34  ;;  %v4619_v46 = vunpack.c.l.bf16 %v292_v19 }
 0x61b   : > { %3753 = vmatmul.bf16.gmra.mxu3 %v8689_v44 }
 0x61c   : > { %v5135_v10 = vadd.f32 %v5134_v24, %v4867_v8  ;;  %v8690_v24 = vld [vmem:[#allocation99_spill] sm:$0xff]  ;;  %v8691_v8 = vld [vmem:[#allocation100_spill] sm:$0xff] }
 0x61d   : > { %v3545_v30 = vpop.f32.mrf.mxu2 }
 0x61e   : > { %v3546_v60 = vadd.f32 %v3545_v30, %v3377_v9  ;;  %v3714_v31 = vpop.f32.mrf.mxu3  ;;  %v3209_v40 = vpop.f32.mrf.mxu0  ;;  %v8693_v30 = vld [vmem:[#allocation102_spill] sm:$0xff] }
 0x61f   : > { %v3378_v26 = vpop.f32.mrf.mxu1 }
 0x620   : > { %v3715_v15 = vadd.f32 %v3714_v31, %v3546_v60  ;;  %v3379_v45 = vadd.f32 %v3378_v26, %v3209_v40  ;;  %v294_v60 = vld [vmem:[#allocation2 + $0x2c8] sm:$0xff] }
 0x621   : > { %v4623_v26 = vunpack.c.l.bf16 %v294_v60 }
 0x622   : > { %v4871_v17 = vmul.f32 %v4615_v41, %v3715_v15 }
 0x624   : > { %v5136_v25 = vadd.f32 %v5135_v10, %v4871_v17 }
 0x625   : > { %v3547_v28 = vpop.f32.mrf.mxu2 }
 0x626   : > { %v3548_v18 = vadd.f32 %v3547_v28, %v3379_v45  ;;  %v3716_v43 = vpop.f32.mrf.mxu3  ;;  %v3212_v34 = vpop.f32.mrf.mxu0 }
 0x627   : > { %v3381_v32 = vpop.f32.mrf.mxu1 }
 0x628   : > { %v3717_v44 = vadd.f32 %v3716_v43, %v3548_v18  ;;  %v3382_v27 = vadd.f32 %v3381_v32, %v3212_v34  ;;  %v296_v34 = vld [vmem:[#allocation2 + $0x2d8] sm:$0xff] }
 0x629   : > { %3251 = vmatmul.bf16.gmra.mxu0 %v8690_v24  ;;  %3420 = vmatmul.bf16.gmra.mxu1 %v8691_v8 }
 0x62a   : > { %v4875_v9 = vmul.f32 %v4619_v46, %v3717_v44  ;;  %3589 = vmatmul.bf16.gmra.mxu2 %v8692_v62  ;;  %v4627_v46 = vunpack.c.l.bf16 %v296_v34 }
 0x62b   : > { %3758 = vmatmul.bf16.gmra.mxu3 %v8693_v30 }
 0x62c   : > { %v5137_v31 = vadd.f32 %v5136_v25, %v4875_v9  ;;  %v298_v25 = vld [vmem:[#allocation2 + $0x2e8] sm:$0xff] }
 0x62d   : > { %v3550_v10 = vpop.f32.mrf.mxu2 }
 0x62e   : > { %v3551_v41 = vadd.f32 %v3550_v10, %v3382_v27  ;;  %v3719_v40 = vpop.f32.mrf.mxu3  ;;  %v3214_v15 = vpop.f32.mrf.mxu0 }
 0x62f   : > { %v3383_v45 = vpop.f32.mrf.mxu1 }
 0x630   : > { %v3720_v17 = vadd.f32 %v3719_v40, %v3551_v41  ;;  %v3384_v19 = vadd.f32 %v3383_v45, %v3214_v15  ;;  %v4631_v41 = vunpack.c.l.bf16 %v298_v25 }
 0x632   : > { %v4879_v32 = vmul.f32 %v4623_v26, %v3720_v17 }
 0x634   : > { %v5138_v28 = vadd.f32 %v5137_v31, %v4879_v32 }
 0x635   : > { %v3552_v44 = vpop.f32.mrf.mxu2 }
 0x636   : > { %v3553_v18 = vadd.f32 %v3552_v44, %v3384_v19  ;;  %v3721_v43 = vpop.f32.mrf.mxu3  ;;  %v3217_v62 = vpop.f32.mrf.mxu0 }
 0x637   : > { %v3386_v8 = vpop.f32.mrf.mxu1 }
 0x638   : > { %v3722_v30 = vadd.f32 %v3721_v43, %v3553_v18  ;;  %v3387_v24 = vadd.f32 %v3386_v8, %v3217_v62  ;;  %v300_v62 = vld [vmem:[#allocation2 + $0x2f8] sm:$0xff] }
 0x639   : > { %3256 = vmatmul.bf16.gmra.mxu0 %v7780_v33  ;;  %3425 = vmatmul.bf16.gmra.mxu1 %v7782_v61  ;;  %v4635_v34 = vunpack.c.l.bf16 %v300_v62 }
 0x63a   : > { %v4883_v27 = vmul.f32 %v4627_v46, %v3722_v30  ;;  %3594 = vmatmul.bf16.gmra.mxu2 %v7784_v11 }
 0x63b   : > { %3763 = vmatmul.bf16.gmra.mxu3 %v7786_v42 }
 0x63c   : > { %v5139_v9 = vadd.f32 %v5138_v28, %v4883_v27  ;;  %v302_v28 = vld [vmem:[#allocation2 + $0x308] sm:$0xff] }
 0x63d   : > { %v3555_v60 = vpop.f32.mrf.mxu2 }
 0x63e   : > { %v3556_v31 = vadd.f32 %v3555_v60, %v3387_v24  ;;  %v3724_v10 = vpop.f32.mrf.mxu3  ;;  %v3219_v40 = vpop.f32.mrf.mxu0 }
 0x63f   : > { %v3388_v26 = vpop.f32.mrf.mxu1 }
 0x640   : > { %v3725_v15 = vadd.f32 %v3724_v10, %v3556_v31  ;;  %v3389_v45 = vadd.f32 %v3388_v26, %v3219_v40  ;;  %v4639_v31 = vunpack.c.l.bf16 %v302_v28 }
 0x642   : > { %v4887_v8 = vmul.f32 %v4631_v41, %v3725_v15 }
 0x644   : > { %v5140_v17 = vadd.f32 %v5139_v9, %v4887_v8 }
 0x645   : > { %v3557_v30 = vpop.f32.mrf.mxu2 }
 0x646   : > { %v3558_v19 = vadd.f32 %v3557_v30, %v3389_v45  ;;  %v3726_v32 = vpop.f32.mrf.mxu3  ;;  %v3222_v44 = vpop.f32.mrf.mxu0  ;;  %v304_v45 = vld [vmem:[#allocation2 + $0x318] sm:$0xff] }
 0x647   : > { %v3391_v18 = vpop.f32.mrf.mxu1  ;;  %v4643_v30 = vunpack.c.l.bf16 %v304_v45 }
 0x648   : > { %v3727_v43 = vadd.f32 %v3726_v32, %v3558_v19  ;;  %v3392_v46 = vadd.f32 %v3391_v18, %v3222_v44 }
 0x649   : > { %3777 = vmatmul.bf16.vlgmr.msrb.gmra.mxu0 %v7160_v47  ;;  %3946 = vmatmul.bf16.vlgmr.msrb.gmra.mxu1 %v7162_v51 }
 0x64a   : > { %v4891_v24 = vmul.f32 %v4635_v34, %v3727_v43  ;;  %4115 = vmatmul.bf16.vlgmr.msrb.gmra.mxu2 %v7164_v52  ;;  %v306_v34 = vld [vmem:[#allocation2 + $0x328] sm:$0xff] }
 0x64b   : > { %4284 = vmatmul.bf16.vlgmr.msrb.gmra.mxu3 %v7166_v53 }
 0x64c   : > { %v5141_v27 = vadd.f32 %v5140_v17, %v4891_v24  ;;  %v4647_v24 = vunpack.c.l.bf16 %v306_v34 }
 0x64d   : > { %v3560_v25 = vpop.f32.mrf.mxu2 }
 0x64e   : > { %v3561_v9 = vadd.f32 %v3560_v25, %v3392_v46  ;;  %v3729_v60 = vpop.f32.mrf.mxu3  ;;  %v3224_v10 = vpop.f32.mrf.mxu0 }
 0x64f   : > { %v3393_v41 = vpop.f32.mrf.mxu1 }
 0x650   : > { %v3730_v40 = vadd.f32 %v3729_v60, %v3561_v9  ;;  %v3394_v26 = vadd.f32 %v3393_v41, %v3224_v10 }
 0x652   : > { %v4895_v15 = vmul.f32 %v4639_v31, %v3730_v40  ;;  %v308_v31 = vld [vmem:[#allocation2 + $0x338] sm:$0xff] }
 0x653   : > { %v4651_v40 = vunpack.c.l.bf16 %v308_v31 }
 0x654   : > { %v5142_v47 = vadd.f32 %v5141_v27, %v4895_v15 }
 0x655   : > { %v3562_v8 = vpop.f32.mrf.mxu2 }
 0x656   : > { %v3563_v62 = vadd.f32 %v3562_v8, %v3394_v26  ;;  %v3731_v51 = vpop.f32.mrf.mxu3  ;;  %v3227_v52 = vpop.f32.mrf.mxu0  ;;  %v310_v8 = vld [vmem:[#allocation2 + $0x348] sm:$0xff] }
 0x657   : > { %v3396_v19 = vpop.f32.mrf.mxu1 }
 0x658   : > { %v3732_v53 = vadd.f32 %v3731_v51, %v3563_v62  ;;  %v3397_v32 = vadd.f32 %v3396_v19, %v3227_v52  ;;  %v4655_v19 = vunpack.c.l.bf16 %v310_v8 }
 0x659   : > { %3782 = vmatmul.bf16.gmra.mxu0 %v7180_v0  ;;  %3951 = vmatmul.bf16.gmra.mxu1 %v7182_v1 }
 0x65a   : > { %v4899_v17 = vmul.f32 %v4643_v30, %v3732_v53  ;;  %4120 = vmatmul.bf16.gmra.mxu2 %v7184_v2 }
 0x65b   : > { %4289 = vmatmul.bf16.gmra.mxu3 %v7186_v3 }
 0x65c   : > { %v5143_v44 = vadd.f32 %v5142_v47, %v4899_v17  ;;  %v8694_v47 = vld [vmem:[#allocation11_spill] sm:$0xff] }
 0x65d   : > { %v3565_v18 = vpop.f32.mrf.mxu2 }
 0x65e   : > { %v3566_v43 = vadd.f32 %v3565_v18, %v3397_v32  ;;  %v3734_v46 = vpop.f32.mrf.mxu3  ;;  %v3229_v28 = vpop.f32.mrf.mxu0  ;;  %v312_v18 = vld [vmem:[#allocation2 + $0x358] sm:$0xff] }
 0x65f   : > { %v3398_v27 = vpop.f32.mrf.mxu1 }
 0x660   : > { %v3735_v25 = vadd.f32 %v3734_v46, %v3566_v43  ;;  %v3399_v9 = vadd.f32 %v3398_v27, %v3229_v28 }
 0x662   : > { %v4903_v60 = vmul.f32 %v4647_v24, %v3735_v25  ;;  %v4659_v24 = vunpack.c.l.bf16 %v312_v18 }
 0x664   : > { %v5144_v0 = vadd.f32 %v5143_v44, %v4903_v60  ;;  %v314_v60 = vld [vmem:[#allocation2 + $0x368] sm:$0xff] }
 0x665   : > { %v3567_v10 = vpop.f32.mrf.mxu2 }
 0x666   : > { %v3568_v41 = vadd.f32 %v3567_v10, %v3399_v9  ;;  %v3736_v1 = vpop.f32.mrf.mxu3  ;;  %v3232_v2 = vpop.f32.mrf.mxu0 }
 0x667   : > { %v3401_v26 = vpop.f32.mrf.mxu1 }
 0x668   : > { %v3737_v3 = vadd.f32 %v3736_v1, %v3568_v41  ;;  %v3402_v15 = vadd.f32 %v3401_v26, %v3232_v2  ;;  %v4663_v1 = vunpack.c.l.bf16 %v314_v60 }
 0x669   : > { %3787 = vmatmul.bf16.gmra.mxu0 %v7200_v12  ;;  %3956 = vmatmul.bf16.gmra.mxu1 %v7202_v13 }
 0x66a   : > { %v4907_v45 = vmul.f32 %v4651_v40, %v3737_v3  ;;  %4125 = vmatmul.bf16.gmra.mxu2 %v7204_v14 }
 0x66b   : > { %4294 = vmatmul.bf16.gmra.mxu3 %v8694_v47 }
 0x66c   : > { %v5145_v62 = vadd.f32 %v5144_v0, %v4907_v45  ;;  %v316_v45 = vld [vmem:[#allocation2 + $0x378] sm:$0xff] }
 0x66d   : > { %v3570_v51 = vpop.f32.mrf.mxu2 }
 0x66e   : > { %v3571_v30 = vadd.f32 %v3570_v51, %v3402_v15  ;;  %v3739_v52 = vpop.f32.mrf.mxu3  ;;  %v3234_v53 = vpop.f32.mrf.mxu0 }
 0x66f   : > { %v3403_v32 = vpop.f32.mrf.mxu1 }
 0x670   : > { %v3740_v17 = vadd.f32 %v3739_v52, %v3571_v30  ;;  %v3404_v34 = vadd.f32 %v3403_v32, %v3234_v53 }
 0x672   : > { %v4911_v44 = vmul.f32 %v4655_v19, %v3740_v17  ;;  %v318_v19 = vld [vmem:[#allocation2 + $0x388] sm:$0xff] }
 0x674   : > { %v5146_v12 = vadd.f32 %v5145_v62, %v4911_v44  ;;  %v4667_v62 = vunpack.c.l.bf16 %v316_v45  ;;  %v4671_v44 = vunpack.c.l.bf16 %v318_v19 }
 0x675   : > { %v3572_v43 = vpop.f32.mrf.mxu2 }
 0x676   : > { %v3573_v46 = vadd.f32 %v3572_v43, %v3404_v34  ;;  %v3741_v13 = vpop.f32.mrf.mxu3  ;;  %v3237_v14 = vpop.f32.mrf.mxu0 }
 0x677   : > { %v3406_v28 = vpop.f32.mrf.mxu1 }
 0x678   : > { %v3742_v27 = vadd.f32 %v3741_v13, %v3573_v46  ;;  %v3407_v25 = vadd.f32 %v3406_v28, %v3237_v14 }
 0x679   : > { %3792 = vmatmul.bf16.gmra.mxu0 %v7220_v36  ;;  %3961 = vmatmul.bf16.gmra.mxu1 %v7222_v37 }
 0x67a   : > { %v4915_v9 = vmul.f32 %v4659_v24, %v3742_v27  ;;  %4130 = vmatmul.bf16.gmra.mxu2 %v7224_v38  ;;  %v320_v24 = vld [vmem:[#allocation2 + $0x398] sm:$0xff] }
 0x67b   : > { %4299 = vmatmul.bf16.gmra.mxu3 %v7226_v39  ;;  %v4675_v27 = vunpack.c.l.bf16 %v320_v24 }
 0x67c   : > { %v5147_v31 = vadd.f32 %v5146_v12, %v4915_v9 }
 0x67d   : > { %v3575_v0 = vpop.f32.mrf.mxu2 }
 0x67e   : > { %v3576_v10 = vadd.f32 %v3575_v0, %v3407_v25  ;;  %v3744_v41 = vpop.f32.mrf.mxu3  ;;  %v3239_v40 = vpop.f32.mrf.mxu0 }
 0x67f   : > { %v3408_v2 = vpop.f32.mrf.mxu1 }
 0x680   : > { %v3745_v26 = vadd.f32 %v3744_v41, %v3576_v10  ;;  %v3409_v3 = vadd.f32 %v3408_v2, %v3239_v40 }
 0x682   : > { %v4919_v15 = vmul.f32 %v4663_v1, %v3745_v26 }
 0x684   : > { %v5148_v36 = vadd.f32 %v5147_v31, %v4919_v15  ;;  %v322_v31 = vld [vmem:[#allocation2 + $0x3a8] sm:$0xff] }
 0x685   : > { %v3577_v47 = vpop.f32.mrf.mxu2  ;;  %v4679_v40 = vunpack.c.l.bf16 %v322_v31 }
 0x686   : > { %v3578_v8 = vadd.f32 %v3577_v47, %v3409_v3  ;;  %v3746_v37 = vpop.f32.mrf.mxu3  ;;  %v3242_v38 = vpop.f32.mrf.mxu0 }
 0x687   : > { %v3411_v51 = vpop.f32.mrf.mxu1 }
 0x688   : > { %v3747_v39 = vadd.f32 %v3746_v37, %v3578_v8  ;;  %v3412_v30 = vadd.f32 %v3411_v51, %v3242_v38 }
 0x689   : > { %3797 = vmatmul.bf16.gmra.mxu0 %v7240_v49  ;;  %3966 = vmatmul.bf16.gmra.mxu1 %v7242_v50 }
 0x68a   : > { %v4923_v52 = vmul.f32 %v4667_v62, %v3747_v39  ;;  %4135 = vmatmul.bf16.gmra.mxu2 %v7244_v54  ;;  %v326_v39 = vld [vmem:[#allocation2 + $0x3c8] sm:$0xff] }
 0x68b   : > { %4304 = vmatmul.bf16.gmra.mxu3 %v7246_v55 }
 0x68c   : > { %v5149_v53 = vadd.f32 %v5148_v36, %v4923_v52  ;;  %v324_v36 = vld [vmem:[#allocation2 + $0x3b8] sm:$0xff] }
 0x68d   : > { %v3580_v32 = vpop.f32.mrf.mxu2  ;;  %v4683_v37 = vunpack.c.l.bf16 %v324_v36  ;;  %v8695_v36 = vld [vmem:[#allocation12_spill] sm:$0xff] }
 0x68e   : > { %v3581_v17 = vadd.f32 %v3580_v32, %v3412_v30  ;;  %v3749_v34 = vpop.f32.mrf.mxu3  ;;  %v3244_v18 = vpop.f32.mrf.mxu0  ;;  %v4687_v32 = vunpack.c.l.bf16 %v326_v39 }
 0x68f   : > { %v3413_v12 = vpop.f32.mrf.mxu1 }
 0x690   : > { %v3750_v43 = vadd.f32 %v3749_v34, %v3581_v17  ;;  %v3414_v46 = vadd.f32 %v3413_v12, %v3244_v18 }
 0x692   : > { %v4927_v13 = vmul.f32 %v4671_v44, %v3750_v43  ;;  %v328_v43 = vld [vmem:[#allocation2 + $0x3d8] sm:$0xff] }
 0x693   : > { %v4691_v24 = vunpack.c.l.bf16 %v328_v43 }
 0x694   : > { %v5150_v49 = vadd.f32 %v5149_v53, %v4927_v13 }
 0x695   : > { %v3582_v14 = vpop.f32.mrf.mxu2 }
 0x696   : > { %v3583_v28 = vadd.f32 %v3582_v14, %v3414_v46  ;;  %v3751_v50 = vpop.f32.mrf.mxu3  ;;  %v3247_v54 = vpop.f32.mrf.mxu0 }
 0x697   : > { %v3416_v25 = vpop.f32.mrf.mxu1 }
 0x698   : > { %v3752_v55 = vadd.f32 %v3751_v50, %v3583_v28  ;;  %v3417_v9 = vadd.f32 %v3416_v25, %v3247_v54  ;;  %v330_v50 = vld [vmem:[#allocation2 + $0x3e8] sm:$0xff] }
 0x699   : > { %3802 = vmatmul.bf16.gmra.mxu0 %v7260_v4  ;;  %3971 = vmatmul.bf16.gmra.mxu1 %v7262_v5 }
 0x69a   : > { %v4931_v60 = vmul.f32 %v4675_v27, %v3752_v55  ;;  %4140 = vmatmul.bf16.gmra.mxu2 %v7264_v6 }
 0x69b   : > { %4309 = vmatmul.bf16.gmra.mxu3 %v7266_v7 }
 0x69c   : > { %v5151_v0 = vadd.f32 %v5150_v49, %v4931_v60 }
 0x69d   : > { %v3585_v10 = vpop.f32.mrf.mxu2 }
 0x69e   : > { %v3586_v41 = vadd.f32 %v3585_v10, %v3417_v9  ;;  %v3754_v1 = vpop.f32.mrf.mxu3  ;;  %v3249_v2 = vpop.f32.mrf.mxu0  ;;  %v4695_v9 = vunpack.c.l.bf16 %v330_v50 }
 0x69f   : > { %v3418_v26 = vpop.f32.mrf.mxu1 }
 0x6a0   : > { %v3755_v3 = vadd.f32 %v3754_v1, %v3586_v41  ;;  %v3419_v15 = vadd.f32 %v3418_v26, %v3249_v2  ;;  %v332_v1 = vld [vmem:[#allocation2 + $0x3f8] sm:$0xff] }
 0x6a1   : > { %v4699_v26 = vunpack.c.l.bf16 %v332_v1  ;;  %v8700_v1 = vld [vmem:[#allocation19_spill] sm:$0xff] }
 0x6a2   : > { %v4935_v45 = vmul.f32 %v4679_v40, %v3755_v3 }
 0x6a4   : > { %v5152_v4 = vadd.f32 %v5151_v0, %v4935_v45 }
 0x6a5   : > { %v3587_v47 = vpop.f32.mrf.mxu2 }
 0x6a6   : > { %v3588_v8 = vadd.f32 %v3587_v47, %v3419_v15  ;;  %v3756_v5 = vpop.f32.mrf.mxu3  ;;  %v3252_v6 = vpop.f32.mrf.mxu0  ;;  %v8697_v47 = vld [vmem:[#allocation14_spill] sm:$0xff] }
 0x6a7   : > { %v3421_v62 = vpop.f32.mrf.mxu1 }
 0x6a8   : > { %v3757_v7 = vadd.f32 %v3756_v5, %v3588_v8  ;;  %v3422_v38 = vadd.f32 %v3421_v62, %v3252_v6 }
 0x6a9   : > { %3807 = vmatmul.bf16.gmra.mxu0 %v7280_v20  ;;  %3976 = vmatmul.bf16.gmra.mxu1 %v7282_v21 }
 0x6aa   : > { %v4939_v51 = vmul.f32 %v4683_v37, %v3757_v7  ;;  %4145 = vmatmul.bf16.gmra.mxu2 %v7284_v22 }
 0x6ab   : > { %4314 = vmatmul.bf16.gmra.mxu3 %v7286_v23 }
 0x6ac   : > { %v5153_v30 = vadd.f32 %v5152_v4, %v4939_v51  ;;  %v8696_v4 = vld [vmem:[#allocation13_spill] sm:$0xff] }
 0x6ad   : > { %v3590_v52 = vpop.f32.mrf.mxu2 }
 0x6ae   : > { %v3591_v19 = vadd.f32 %v3590_v52, %v3422_v38  ;;  %v3759_v53 = vpop.f32.mrf.mxu3  ;;  %v3254_v17 = vpop.f32.mrf.mxu0 }
 0x6af   : > { %v3423_v34 = vpop.f32.mrf.mxu1 }
 0x6b0   : > { %v3760_v44 = vadd.f32 %v3759_v53, %v3591_v19  ;;  %v3424_v18 = vadd.f32 %v3423_v34, %v3254_v17  ;;  %v6805_v53 = vld [vmem:[#allocation2 + $0x18] sm:$0xff] }
 0x6b2   : > { %v4943_v12 = vmul.f32 %v4687_v32, %v3760_v44  ;;  %v4452_v32 = vunpack.c.h.bf16 %v6805_v53  ;;  %v8704_v53 = vld [vmem:[#allocation23_spill] sm:$0xff] }
 0x6b4   : > { %v5154_v20 = vadd.f32 %v5153_v30, %v4943_v12  ;;  %v6804_v30 = vld [vmem:[#allocation2 + $0x8] sm:$0xff] }
 0x6b5   : > { %v3592_v46 = vpop.f32.mrf.mxu2  ;;  %v4448_v52 = vunpack.c.h.bf16 %v6804_v30 }
 0x6b6   : > { %v3593_v13 = vadd.f32 %v3592_v46, %v3424_v18  ;;  %v3761_v21 = vpop.f32.mrf.mxu3  ;;  %v3257_v22 = vpop.f32.mrf.mxu0  ;;  %v8699_v46 = vld [vmem:[#allocation18_spill] sm:$0xff] }
 0x6b7   : > { %v3426_v49 = vpop.f32.mrf.mxu1 }
 0x6b8   : > { %v3762_v23 = vadd.f32 %v3761_v21, %v3593_v13  ;;  %v3427_v14 = vadd.f32 %v3426_v49, %v3257_v22  ;;  %v6806_v49 = vld [vmem:[#allocation2 + $0x28] sm:$0xff] }
 0x6b9   : > { %3812 = vmatmul.bf16.gmra.mxu0 %v7300_v56  ;;  %3981 = vmatmul.bf16.gmra.mxu1 %v7302_v57 }
 0x6ba   : > { %v4947_v28 = vmul.f32 %v4691_v24, %v3762_v23  ;;  %4150 = vmatmul.bf16.gmra.mxu2 %v7304_v58  ;;  %v4456_v23 = vunpack.c.h.bf16 %v6806_v49 }
 0x6bb   : > { %4319 = vmatmul.bf16.gmra.mxu3 %v7306_v59 }
 0x6bc   : > { %v5155_v27 = vadd.f32 %v5154_v20, %v4947_v28  ;;  %v8698_v20 = vld [vmem:[#allocation17_spill] sm:$0xff] }
 0x6bd   : > { %v3595_v54 = vpop.f32.mrf.mxu2 }
 0x6be   : > { %v3596_v25 = vadd.f32 %v3595_v54, %v3427_v14  ;;  %v3764_v55 = vpop.f32.mrf.mxu3  ;;  %v3259_v60 = vpop.f32.mrf.mxu0 }
 0x6bf   : > { %v3428_v31 = vpop.f32.mrf.mxu1 }
 0x6c0   : > { %v3765_v0 = vadd.f32 %v3764_v55, %v3596_v25  ;;  %v3429_v10 = vadd.f32 %v3428_v31, %v3259_v60 }
 0x6c2   : > { %v4951_v41 = vmul.f32 %v4695_v9, %v3765_v0 }
 0x6c4   : > { %v5156_v56 = vadd.f32 %v5155_v27, %v4951_v41 }
 0x6c5   : > { %v3597_v40 = vpop.f32.mrf.mxu2 }
 0x6c6   : > { %v3598_v2 = vadd.f32 %v3597_v40, %v3429_v10  ;;  %v3766_v57 = vpop.f32.mrf.mxu3  ;;  %v3778_v58 = vpop.f32.mrf.mxu0  ;;  %v8701_v40 = vld [vmem:[#allocation20_spill] sm:$0xff] }
 0x6c7   : > { %v3947_v3 = vpop.f32.mrf.mxu1 }
 0x6c8   : > { %v3767_v59 = vadd.f32 %v3766_v57, %v3598_v2  ;;  %v3948_v15 = vadd.f32 %v3947_v3, %v3778_v58  ;;  %v8702_v2 = vld [vmem:[#allocation21_spill] sm:$0xff]  ;;  %v8703_v57 = vld [vmem:[#allocation22_spill] sm:$0xff] }
 0x6c9   : > { %3817 = vmatmul.bf16.gmra.mxu0 %v7320_v16  ;;  %3986 = vmatmul.bf16.gmra.mxu1 %v8695_v36 }
 0x6ca   : > { %v4955_v45 = vmul.f32 %v4699_v26, %v3767_v59  ;;  %4155 = vmatmul.bf16.gmra.mxu2 %v8696_v4 }
 0x6cb   : > { %4324 = vmatmul.bf16.gmra.mxu3 %v8697_v47 }
 0x6cc   : > { %v8090_v8 = vadd.f32 %v5156_v56, %v4955_v45 }
 0x6cd   : > { %v4116_v5 = vpop.f32.mrf.mxu2 }
 0x6ce   : > { %v4117_v37 = vadd.f32 %v4116_v5, %v3948_v15  ;;  %v4285_v6 = vpop.f32.mrf.mxu3  ;;  %v3780_v62 = vpop.f32.mrf.mxu0  ;;  %v6808_v15 = vld [vmem:[#allocation2 + $0x48] sm:$0xff] }
 0x6cf   : > { %v3949_v7 = vpop.f32.mrf.mxu1  ;;  %v4464_v45 = vunpack.c.h.bf16 %v6808_v15 }
 0x6d0   : > { %v4286_v38 = vadd.f32 %v4285_v6, %v4117_v37  ;;  %v3950_v51 = vadd.f32 %v3949_v7, %v3780_v62 }
 0x6d2   : > { %v4704_v12 = vmul.f32 %v4448_v52, %v4286_v38 }
 0x6d5   : > { %v4118_v39 = vpop.f32.mrf.mxu2 }
 0x6d6   : > { %v4119_v16 = vadd.f32 %v4118_v39, %v3950_v51  ;;  %v4287_v19 = vpop.f32.mrf.mxu3  ;;  %v3783_v17 = vpop.f32.mrf.mxu0  ;;  %v6809_v51 = vld [vmem:[#allocation2 + $0x58] sm:$0xff] }
 0x6d7   : > { %v3952_v34 = vpop.f32.mrf.mxu1  ;;  %v4468_v39 = vunpack.c.h.bf16 %v6809_v51 }
 0x6d8   : > { %v4288_v44 = vadd.f32 %v4287_v19, %v4119_v16  ;;  %v3953_v18 = vadd.f32 %v3952_v34, %v3783_v17  ;;  %v8705_v17 = vld [vmem:[#allocation24_spill] sm:$0xff]  ;;  %v8706_v34 = vld [vmem:[#allocation25_spill] sm:$0xff] }
 0x6d9   : > { %3822 = vmatmul.bf16.gmra.mxu0 %v8605_v48  ;;  %3991 = vmatmul.bf16.gmra.mxu1 %v8606_v35  ;;  %v6807_v35 = vld [vmem:[#allocation2 + $0x38] sm:$0xff] }
 0x6da   : > { %v4708_v43 = vmul.f32 %v4452_v32, %v4288_v44  ;;  %4160 = vmatmul.bf16.gmra.mxu2 %v8698_v20  ;;  %v4460_v60 = vunpack.c.h.bf16 %v6807_v35  ;;  %v8707_v44 = vld [vmem:[#allocation26_spill] sm:$0xff] }
 0x6db   : > { %4329 = vmatmul.bf16.gmra.mxu3 %v8699_v46  ;;  %v6810_v46 = vld [vmem:[#allocation2 + $0x68] sm:$0xff] }
 0x6dc   : > { %v5164_v13 = vadd.f32 %v4708_v43, %v4704_v12 }
 0x6dd   : > { %v4121_v21 = vpop.f32.mrf.mxu2 }
 0x6de   : > { %v4122_v24 = vadd.f32 %v4121_v21, %v3953_v18  ;;  %v4290_v22 = vpop.f32.mrf.mxu3  ;;  %v3785_v14 = vpop.f32.mrf.mxu0 }
 0x6df   : > { %v3954_v28 = vpop.f32.mrf.mxu1 }
 0x6e0   : > { %v4291_v50 = vadd.f32 %v4290_v22, %v4122_v24  ;;  %v3955_v27 = vadd.f32 %v3954_v28, %v3785_v14 }
 0x6e2   : > { %v4712_v54 = vmul.f32 %v4456_v23, %v4291_v50 }
 0x6e4   : > { %v5165_v48 = vadd.f32 %v5164_v13, %v4712_v54  ;;  %v4472_v13 = vunpack.c.h.bf16 %v6810_v46  ;;  %v6811_v54 = vld [vmem:[#allocation2 + $0x78] sm:$0xff] }
 0x6e5   : > { %v4123_v25 = vpop.f32.mrf.mxu2 }
 0x6e6   : > { %v4124_v55 = vadd.f32 %v4123_v25, %v3955_v27  ;;  %v4292_v9 = vpop.f32.mrf.mxu3  ;;  %v3788_v31 = vpop.f32.mrf.mxu0 }
 0x6e7   : > { %v3957_v0 = vpop.f32.mrf.mxu1 }
 0x6e8   : > { %v4293_v10 = vadd.f32 %v4292_v9, %v4124_v55  ;;  %v3958_v41 = vadd.f32 %v3957_v0, %v3788_v31  ;;  %v8709_v0 = vld [vmem:[#allocation28_spill] sm:$0xff] }
 0x6e9   : > { %3827 = vmatmul.bf16.gmra.mxu0 %v8700_v1  ;;  %3996 = vmatmul.bf16.gmra.mxu1 %v8701_v40 }
 0x6ea   : > { %v4716_v56 = vmul.f32 %v4460_v60, %v4293_v10  ;;  %4165 = vmatmul.bf16.gmra.mxu2 %v8702_v2  ;;  %v8708_v60 = vld [vmem:[#allocation27_spill] sm:$0xff]  ;;  %v8710_v10 = vld [vmem:[#allocation29_spill] sm:$0xff] }
 0x6eb   : > { %4334 = vmatmul.bf16.gmra.mxu3 %v8703_v57  ;;  %v6812_v57 = vld [vmem:[#allocation2 + $0x88] sm:$0xff] }
 0x6ec   : > { %v5166_v26 = vadd.f32 %v5165_v48, %v4716_v56  ;;  %v4476_v48 = vunpack.c.h.bf16 %v6811_v54 }
 0x6ed   : > { %v4126_v58 = vpop.f32.mrf.mxu2 }
 0x6ee   : > { %v4127_v3 = vadd.f32 %v4126_v58, %v3958_v41  ;;  %v4295_v59 = vpop.f32.mrf.mxu3  ;;  %v3790_v36 = vpop.f32.mrf.mxu0  ;;  %v8711_v41 = vld [vmem:[#allocation30_spill] sm:$0xff] }
 0x6ef   : > { %v3959_v4 = vpop.f32.mrf.mxu1 }
 0x6f0   : > { %v4296_v47 = vadd.f32 %v4295_v59, %v4127_v3  ;;  %v3960_v5 = vadd.f32 %v3959_v4, %v3790_v36 }
 0x6f2   : > { %v4720_v37 = vmul.f32 %v4464_v45, %v4296_v47 }
 0x6f4   : > { %v5167_v6 = vadd.f32 %v5166_v26, %v4720_v37  ;;  %v4480_v26 = vunpack.c.h.bf16 %v6812_v57  ;;  %v6813_v37 = vld [vmem:[#allocation2 + $0x98] sm:$0xff] }
 0x6f5   : > { %v4128_v62 = vpop.f32.mrf.mxu2 }
 0x6f6   : > { %v4129_v7 = vadd.f32 %v4128_v62, %v3960_v5  ;;  %v4297_v38 = vpop.f32.mrf.mxu3  ;;  %v3793_v30 = vpop.f32.mrf.mxu0 }
 0x6f7   : > { %v3962_v52 = vpop.f32.mrf.mxu1 }
 0x6f8   : > { %v4298_v16 = vadd.f32 %v4297_v38, %v4129_v7  ;;  %v3963_v19 = vadd.f32 %v3962_v52, %v3793_v30  ;;  %v8713_v52 = vld [vmem:[#allocation32_spill] sm:$0xff] }
 0x6f9   : > { %3832 = vmatmul.bf16.gmra.mxu0 %v8704_v53  ;;  %4001 = vmatmul.bf16.gmra.mxu1 %v8705_v17 }
 0x6fa   : > { %v4724_v32 = vmul.f32 %v4468_v39, %v4298_v16  ;;  %4170 = vmatmul.bf16.gmra.mxu2 %v8706_v34  ;;  %v8712_v39 = vld [vmem:[#allocation31_spill] sm:$0xff]  ;;  %v8714_v16 = vld [vmem:[#allocation33_spill] sm:$0xff] }
 0x6fb   : > { %4339 = vmatmul.bf16.gmra.mxu3 %v8707_v44  ;;  %v6814_v44 = vld [vmem:[#allocation2 + $0xa8] sm:$0xff] }
 0x6fc   : > { %v5168_v18 = vadd.f32 %v5167_v6, %v4724_v32  ;;  %v4484_v6 = vunpack.c.h.bf16 %v6813_v37 }
 0x6fd   : > { %v4131_v12 = vpop.f32.mrf.mxu2 }
 0x6fe   : > { %v4132_v43 = vadd.f32 %v4131_v12, %v3963_v19  ;;  %v4300_v20 = vpop.f32.mrf.mxu3  ;;  %v3795_v21 = vpop.f32.mrf.mxu0  ;;  %v8715_v19 = vld [vmem:[#allocation34_spill] sm:$0xff] }
 0x6ff   : > { %v3964_v24 = vpop.f32.mrf.mxu1 }
 0x700   : > { %v4301_v22 = vadd.f32 %v4300_v20, %v4132_v43  ;;  %v3965_v49 = vadd.f32 %v3964_v24, %v3795_v21 }
 0x702   : > { %v4728_v23 = vmul.f32 %v4472_v13, %v4301_v22 }
 0x704   : > { %v5169_v14 = vadd.f32 %v5168_v18, %v4728_v23  ;;  %v4488_v18 = vunpack.c.h.bf16 %v6814_v44  ;;  %v6815_v23 = vld [vmem:[#allocation2 + $0xb8] sm:$0xff] }
 0x705   : > { %v4133_v28 = vpop.f32.mrf.mxu2 }
 0x706   : > { %v4134_v50 = vadd.f32 %v4133_v28, %v3965_v49  ;;  %v4302_v27 = vpop.f32.mrf.mxu3  ;;  %v3798_v25 = vpop.f32.mrf.mxu0 }
 0x707   : > { %v3967_v55 = vpop.f32.mrf.mxu1 }
 0x708   : > { %v4303_v9 = vadd.f32 %v4302_v27, %v4134_v50  ;;  %v3968_v35 = vadd.f32 %v3967_v55, %v3798_v25  ;;  %v8717_v55 = vld [vmem:[#allocation36_spill] sm:$0xff] }
 0x709   : > { %3837 = vmatmul.bf16.gmra.mxu0 %v8708_v60  ;;  %4006 = vmatmul.bf16.gmra.mxu1 %v8709_v0 }
 0x70a   : > { %v4732_v31 = vmul.f32 %v4476_v48, %v4303_v9  ;;  %4175 = vmatmul.bf16.gmra.mxu2 %v8710_v10  ;;  %v8716_v48 = vld [vmem:[#allocation35_spill] sm:$0xff]  ;;  %v8718_v9 = vld [vmem:[#allocation37_spill] sm:$0xff] }
 0x70b   : > { %4344 = vmatmul.bf16.gmra.mxu3 %v8711_v41  ;;  %v6816_v41 = vld [vmem:[#allocation2 + $0xc8] sm:$0xff] }
 0x70c   : > { %v5170_v1 = vadd.f32 %v5169_v14, %v4732_v31  ;;  %v4492_v14 = vunpack.c.h.bf16 %v6815_v23 }
 0x70d   : > { %v4136_v56 = vpop.f32.mrf.mxu2 }
 0x70e   : > { %v4137_v40 = vadd.f32 %v4136_v56, %v3968_v35  ;;  %v4305_v2 = vpop.f32.mrf.mxu3  ;;  %v3800_v58 = vpop.f32.mrf.mxu0  ;;  %v8719_v35 = vld [vmem:[#allocation38_spill] sm:$0xff] }
 0x70f   : > { %v3969_v3 = vpop.f32.mrf.mxu1 }
 0x710   : > { %v4306_v59 = vadd.f32 %v4305_v2, %v4137_v40  ;;  %v3970_v15 = vadd.f32 %v3969_v3, %v3800_v58 }
 0x712   : > { %v4736_v45 = vmul.f32 %v4480_v26, %v4306_v59 }
 0x714   : > { %v5171_v36 = vadd.f32 %v5170_v1, %v4736_v45  ;;  %v4496_v1 = vunpack.c.h.bf16 %v6816_v41  ;;  %v6817_v45 = vld [vmem:[#allocation2 + $0xd8] sm:$0xff] }
 0x715   : > { %v4138_v4 = vpop.f32.mrf.mxu2 }
 0x716   : > { %v4139_v47 = vadd.f32 %v4138_v4, %v3970_v15  ;;  %v4307_v5 = vpop.f32.mrf.mxu3  ;;  %v3803_v62 = vpop.f32.mrf.mxu0 }
 0x717   : > { %v3972_v7 = vpop.f32.mrf.mxu1 }
 0x718   : > { %v4308_v38 = vadd.f32 %v4307_v5, %v4139_v47  ;;  %v3973_v51 = vadd.f32 %v3972_v7, %v3803_v62  ;;  %v8721_v7 = vld [vmem:[#allocation40_spill] sm:$0xff] }
 0x719   : > { %3842 = vmatmul.bf16.gmra.mxu0 %v8712_v39  ;;  %4011 = vmatmul.bf16.gmra.mxu1 %v8713_v52 }
 0x71a   : > { %v4740_v30 = vmul.f32 %v4484_v6, %v4308_v38  ;;  %4180 = vmatmul.bf16.gmra.mxu2 %v8714_v16  ;;  %v8720_v6 = vld [vmem:[#allocation39_spill] sm:$0xff]  ;;  %v8722_v38 = vld [vmem:[#allocation41_spill] sm:$0xff] }
 0x71b   : > { %4349 = vmatmul.bf16.gmra.mxu3 %v8715_v19  ;;  %v6818_v19 = vld [vmem:[#allocation2 + $0xe8] sm:$0xff] }
 0x71c   : > { %v5172_v53 = vadd.f32 %v5171_v36, %v4740_v30  ;;  %v4500_v36 = vunpack.c.h.bf16 %v6817_v45 }
 0x71d   : > { %v4141_v32 = vpop.f32.mrf.mxu2 }
 0x71e   : > { %v4142_v17 = vadd.f32 %v4141_v32, %v3973_v51  ;;  %v4310_v34 = vpop.f32.mrf.mxu3  ;;  %v3805_v12 = vpop.f32.mrf.mxu0  ;;  %v8723_v51 = vld [vmem:[#allocation42_spill] sm:$0xff] }
 0x71f   : > { %v3974_v43 = vpop.f32.mrf.mxu1 }
 0x720   : > { %v4311_v20 = vadd.f32 %v4310_v34, %v4142_v17  ;;  %v3975_v46 = vadd.f32 %v3974_v43, %v3805_v12 }
 0x722   : > { %v4744_v13 = vmul.f32 %v4488_v18, %v4311_v20 }
 0x724   : > { %v5173_v21 = vadd.f32 %v5172_v53, %v4744_v13  ;;  %v4504_v53 = vunpack.c.h.bf16 %v6818_v19  ;;  %v6819_v13 = vld [vmem:[#allocation2 + $0xf8] sm:$0xff] }
 0x725   : > { %v4143_v24 = vpop.f32.mrf.mxu2 }
 0x726   : > { %v4144_v22 = vadd.f32 %v4143_v24, %v3975_v46  ;;  %v4312_v49 = vpop.f32.mrf.mxu3  ;;  %v3808_v28 = vpop.f32.mrf.mxu0 }
 0x727   : > { %v3977_v50 = vpop.f32.mrf.mxu1 }
 0x728   : > { %v4313_v27 = vadd.f32 %v4312_v49, %v4144_v22  ;;  %v3978_v54 = vadd.f32 %v3977_v50, %v3808_v28  ;;  %v8725_v50 = vld [vmem:[#allocation44_spill] sm:$0xff] }
 0x729   : > { %3847 = vmatmul.bf16.gmra.mxu0 %v8716_v48  ;;  %4016 = vmatmul.bf16.gmra.mxu1 %v8717_v55 }
 0x72a   : > { %v4748_v25 = vmul.f32 %v4492_v14, %v4313_v27  ;;  %4185 = vmatmul.bf16.gmra.mxu2 %v8718_v9  ;;  %v8724_v14 = vld [vmem:[#allocation43_spill] sm:$0xff]  ;;  %v8726_v27 = vld [vmem:[#allocation45_spill] sm:$0xff] }
 0x72b   : > { %4354 = vmatmul.bf16.gmra.mxu3 %v8719_v35  ;;  %v6820_v35 = vld [vmem:[#allocation2 + $0x108] sm:$0xff] }
 0x72c   : > { %v5174_v60 = vadd.f32 %v5173_v21, %v4748_v25  ;;  %v4508_v21 = vunpack.c.h.bf16 %v6819_v13 }
 0x72d   : > { %v4146_v31 = vpop.f32.mrf.mxu2 }
 0x72e   : > { %v4147_v0 = vadd.f32 %v4146_v31, %v3978_v54  ;;  %v4315_v10 = vpop.f32.mrf.mxu3  ;;  %v3810_v56 = vpop.f32.mrf.mxu0  ;;  %v8727_v54 = vld [vmem:[#allocation46_spill] sm:$0xff] }
 0x72f   : > { %v3979_v40 = vpop.f32.mrf.mxu1 }
 0x730   : > { %v4316_v2 = vadd.f32 %v4315_v10, %v4147_v0  ;;  %v3980_v57 = vadd.f32 %v3979_v40, %v3810_v56 }
 0x732   : > { %v4752_v26 = vmul.f32 %v4496_v1, %v4316_v2 }
 0x734   : > { %v5175_v58 = vadd.f32 %v5174_v60, %v4752_v26  ;;  %v4512_v60 = vunpack.c.h.bf16 %v6820_v35  ;;  %v6821_v26 = vld [vmem:[#allocation2 + $0x118] sm:$0xff] }
 0x735   : > { %v4148_v3 = vpop.f32.mrf.mxu2 }
 0x736   : > { %v4149_v59 = vadd.f32 %v4148_v3, %v3980_v57  ;;  %v4317_v15 = vpop.f32.mrf.mxu3  ;;  %v3813_v4 = vpop.f32.mrf.mxu0 }
 0x737   : > { %v3982_v47 = vpop.f32.mrf.mxu1 }
 0x738   : > { %v4318_v5 = vadd.f32 %v4317_v15, %v4149_v59  ;;  %v3983_v37 = vadd.f32 %v3982_v47, %v3813_v4  ;;  %v8729_v47 = vld [vmem:[#allocation48_spill] sm:$0xff] }
 0x739   : > { %3852 = vmatmul.bf16.gmra.mxu0 %v8720_v6  ;;  %4021 = vmatmul.bf16.gmra.mxu1 %v8721_v7 }
 0x73a   : > { %v4756_v62 = vmul.f32 %v4500_v36, %v4318_v5  ;;  %4190 = vmatmul.bf16.gmra.mxu2 %v8722_v38  ;;  %v8728_v36 = vld [vmem:[#allocation47_spill] sm:$0xff]  ;;  %v8730_v5 = vld [vmem:[#allocation49_spill] sm:$0xff] }
 0x73b   : > { %4359 = vmatmul.bf16.gmra.mxu3 %v8723_v51  ;;  %v6822_v51 = vld [vmem:[#allocation2 + $0x128] sm:$0xff] }
 0x73c   : > { %v5176_v39 = vadd.f32 %v5175_v58, %v4756_v62  ;;  %v4516_v58 = vunpack.c.h.bf16 %v6821_v26 }
 0x73d   : > { %v4151_v30 = vpop.f32.mrf.mxu2 }
 0x73e   : > { %v4152_v52 = vadd.f32 %v4151_v30, %v3983_v37  ;;  %v4320_v16 = vpop.f32.mrf.mxu3  ;;  %v3815_v32 = vpop.f32.mrf.mxu0  ;;  %v8731_v37 = vld [vmem:[#allocation50_spill] sm:$0xff] }
 0x73f   : > { %v3984_v17 = vpop.f32.mrf.mxu1 }
 0x740   : > { %v4321_v34 = vadd.f32 %v4320_v16, %v4152_v52  ;;  %v3985_v44 = vadd.f32 %v3984_v17, %v3815_v32 }
 0x742   : > { %v4760_v18 = vmul.f32 %v4504_v53, %v4321_v34 }
 0x744   : > { %v5177_v12 = vadd.f32 %v5176_v39, %v4760_v18  ;;  %v4520_v39 = vunpack.c.h.bf16 %v6822_v51  ;;  %v6823_v18 = vld [vmem:[#allocation2 + $0x138] sm:$0xff] }
 0x745   : > { %v4153_v43 = vpop.f32.mrf.mxu2 }
 0x746   : > { %v4154_v20 = vadd.f32 %v4153_v43, %v3985_v44  ;;  %v4322_v46 = vpop.f32.mrf.mxu3  ;;  %v3818_v24 = vpop.f32.mrf.mxu0 }
 0x747   : > { %v3987_v22 = vpop.f32.mrf.mxu1 }
 0x748   : > { %v4323_v49 = vadd.f32 %v4322_v46, %v4154_v20  ;;  %v3988_v23 = vadd.f32 %v3987_v22, %v3818_v24  ;;  %v8733_v22 = vld [vmem:[#allocation52_spill] sm:$0xff] }
 0x749   : > { %3857 = vmatmul.bf16.gmra.mxu0 %v8724_v14  ;;  %4026 = vmatmul.bf16.gmra.mxu1 %v8725_v50 }
 0x74a   : > { %v4764_v28 = vmul.f32 %v4508_v21, %v4323_v49  ;;  %4195 = vmatmul.bf16.gmra.mxu2 %v8726_v27  ;;  %v8732_v21 = vld [vmem:[#allocation51_spill] sm:$0xff]  ;;  %v8734_v49 = vld [vmem:[#allocation53_spill] sm:$0xff] }
 0x74b   : > { %4364 = vmatmul.bf16.gmra.mxu3 %v8727_v54  ;;  %v6824_v54 = vld [vmem:[#allocation2 + $0x148] sm:$0xff] }
 0x74c   : > { %v5178_v48 = vadd.f32 %v5177_v12, %v4764_v28  ;;  %v4524_v12 = vunpack.c.h.bf16 %v6823_v18 }
 0x74d   : > { %v4156_v25 = vpop.f32.mrf.mxu2 }
 0x74e   : > { %v4157_v55 = vadd.f32 %v4156_v25, %v3988_v23  ;;  %v4325_v9 = vpop.f32.mrf.mxu3  ;;  %v3820_v31 = vpop.f32.mrf.mxu0  ;;  %v8735_v23 = vld [vmem:[#allocation54_spill] sm:$0xff] }
 0x74f   : > { %v3989_v0 = vpop.f32.mrf.mxu1 }
 0x750   : > { %v4326_v10 = vadd.f32 %v4325_v9, %v4157_v55  ;;  %v3990_v41 = vadd.f32 %v3989_v0, %v3820_v31 }
 0x752   : > { %v4768_v1 = vmul.f32 %v4512_v60, %v4326_v10 }
 0x754   : > { %v5179_v56 = vadd.f32 %v5178_v48, %v4768_v1  ;;  %v4528_v48 = vunpack.c.h.bf16 %v6824_v54  ;;  %v6825_v1 = vld [vmem:[#allocation2 + $0x158] sm:$0xff] }
 0x755   : > { %v4158_v40 = vpop.f32.mrf.mxu2 }
 0x756   : > { %v4159_v2 = vadd.f32 %v4158_v40, %v3990_v41  ;;  %v4327_v57 = vpop.f32.mrf.mxu3  ;;  %v3823_v3 = vpop.f32.mrf.mxu0 }
 0x757   : > { %v3992_v59 = vpop.f32.mrf.mxu1 }
 0x758   : > { %v4328_v15 = vadd.f32 %v4327_v57, %v4159_v2  ;;  %v3993_v45 = vadd.f32 %v3992_v59, %v3823_v3  ;;  %v8737_v59 = vld [vmem:[#allocation56_spill] sm:$0xff] }
 0x759   : > { %3862 = vmatmul.bf16.gmra.mxu0 %v8728_v36  ;;  %4031 = vmatmul.bf16.gmra.mxu1 %v8729_v47 }
 0x75a   : > { %v4772_v4 = vmul.f32 %v4516_v58, %v4328_v15  ;;  %4200 = vmatmul.bf16.gmra.mxu2 %v8730_v5  ;;  %v8736_v58 = vld [vmem:[#allocation55_spill] sm:$0xff]  ;;  %v8738_v15 = vld [vmem:[#allocation57_spill] sm:$0xff] }
 0x75b   : > { %4369 = vmatmul.bf16.gmra.mxu3 %v8731_v37  ;;  %v6826_v37 = vld [vmem:[#allocation2 + $0x168] sm:$0xff] }
 0x75c   : > { %v5180_v6 = vadd.f32 %v5179_v56, %v4772_v4  ;;  %v4532_v56 = vunpack.c.h.bf16 %v6825_v1 }
 0x75d   : > { %v4161_v62 = vpop.f32.mrf.mxu2 }
 0x75e   : > { %v4162_v7 = vadd.f32 %v4161_v62, %v3993_v45  ;;  %v4330_v38 = vpop.f32.mrf.mxu3  ;;  %v3825_v30 = vpop.f32.mrf.mxu0  ;;  %v8739_v45 = vld [vmem:[#allocation58_spill] sm:$0xff] }
 0x75f   : > { %v3994_v52 = vpop.f32.mrf.mxu1 }
 0x760   : > { %v4331_v16 = vadd.f32 %v4330_v38, %v4162_v7  ;;  %v3995_v19 = vadd.f32 %v3994_v52, %v3825_v30 }
 0x762   : > { %v4776_v53 = vmul.f32 %v4520_v39, %v4331_v16 }
 0x764   : > { %v5181_v32 = vadd.f32 %v5180_v6, %v4776_v53  ;;  %v4536_v6 = vunpack.c.h.bf16 %v6826_v37  ;;  %v6827_v53 = vld [vmem:[#allocation2 + $0x178] sm:$0xff] }
 0x765   : > { %v4163_v17 = vpop.f32.mrf.mxu2 }
 0x766   : > { %v4164_v34 = vadd.f32 %v4163_v17, %v3995_v19  ;;  %v4332_v44 = vpop.f32.mrf.mxu3  ;;  %v3828_v43 = vpop.f32.mrf.mxu0 }
 0x767   : > { %v3997_v20 = vpop.f32.mrf.mxu1 }
 0x768   : > { %v4333_v46 = vadd.f32 %v4332_v44, %v4164_v34  ;;  %v3998_v13 = vadd.f32 %v3997_v20, %v3828_v43  ;;  %v8741_v20 = vld [vmem:[#allocation60_spill] sm:$0xff] }
 0x769   : > { %3867 = vmatmul.bf16.gmra.mxu0 %v8732_v21  ;;  %4036 = vmatmul.bf16.gmra.mxu1 %v8733_v22 }
 0x76a   : > { %v4780_v24 = vmul.f32 %v4524_v12, %v4333_v46  ;;  %4205 = vmatmul.bf16.gmra.mxu2 %v8734_v49  ;;  %v8740_v12 = vld [vmem:[#allocation59_spill] sm:$0xff]  ;;  %v8742_v46 = vld [vmem:[#allocation61_spill] sm:$0xff] }
 0x76b   : > { %4374 = vmatmul.bf16.gmra.mxu3 %v8735_v23  ;;  %v6828_v23 = vld [vmem:[#allocation2 + $0x188] sm:$0xff] }
 0x76c   : > { %v5182_v14 = vadd.f32 %v5181_v32, %v4780_v24  ;;  %v4540_v32 = vunpack.c.h.bf16 %v6827_v53 }
 0x76d   : > { %v4166_v28 = vpop.f32.mrf.mxu2 }
 0x76e   : > { %v4167_v50 = vadd.f32 %v4166_v28, %v3998_v13  ;;  %v4335_v27 = vpop.f32.mrf.mxu3  ;;  %v3830_v25 = vpop.f32.mrf.mxu0  ;;  %v8743_v13 = vld [vmem:[#allocation62_spill] sm:$0xff] }
 0x76f   : > { %v3999_v55 = vpop.f32.mrf.mxu1 }
 0x770   : > { %v4336_v9 = vadd.f32 %v4335_v27, %v4167_v50  ;;  %v4000_v35 = vadd.f32 %v3999_v55, %v3830_v25 }
 0x772   : > { %v4784_v60 = vmul.f32 %v4528_v48, %v4336_v9 }
 0x774   : > { %v5183_v31 = vadd.f32 %v5182_v14, %v4784_v60  ;;  %v4544_v14 = vunpack.c.h.bf16 %v6828_v23  ;;  %v6829_v60 = vld [vmem:[#allocation2 + $0x198] sm:$0xff] }
 0x775   : > { %v4168_v0 = vpop.f32.mrf.mxu2 }
 0x776   : > { %v4169_v10 = vadd.f32 %v4168_v0, %v4000_v35  ;;  %v4337_v41 = vpop.f32.mrf.mxu3  ;;  %v3833_v40 = vpop.f32.mrf.mxu0 }
 0x777   : > { %v4002_v2 = vpop.f32.mrf.mxu1 }
 0x778   : > { %v4338_v57 = vadd.f32 %v4337_v41, %v4169_v10  ;;  %v4003_v26 = vadd.f32 %v4002_v2, %v3833_v40  ;;  %v8745_v2 = vld [vmem:[#allocation64_spill] sm:$0xff] }
 0x779   : > { %3872 = vmatmul.bf16.gmra.mxu0 %v8736_v58  ;;  %4041 = vmatmul.bf16.gmra.mxu1 %v8737_v59 }
 0x77a   : > { %v4788_v3 = vmul.f32 %v4532_v56, %v4338_v57  ;;  %4210 = vmatmul.bf16.gmra.mxu2 %v8738_v15  ;;  %v8744_v56 = vld [vmem:[#allocation63_spill] sm:$0xff]  ;;  %v8746_v57 = vld [vmem:[#allocation65_spill] sm:$0xff] }
 0x77b   : > { %4379 = vmatmul.bf16.gmra.mxu3 %v8739_v45  ;;  %v6830_v45 = vld [vmem:[#allocation2 + $0x1a8] sm:$0xff] }
 0x77c   : > { %v5184_v36 = vadd.f32 %v5183_v31, %v4788_v3  ;;  %v4548_v31 = vunpack.c.h.bf16 %v6829_v60 }
 0x77d   : > { %v4171_v4 = vpop.f32.mrf.mxu2 }
 0x77e   : > { %v4172_v47 = vadd.f32 %v4171_v4, %v4003_v26  ;;  %v4340_v5 = vpop.f32.mrf.mxu3  ;;  %v3835_v62 = vpop.f32.mrf.mxu0  ;;  %v8747_v26 = vld [vmem:[#allocation66_spill] sm:$0xff] }
 0x77f   : > { %v4004_v7 = vpop.f32.mrf.mxu1 }
 0x780   : > { %v4341_v38 = vadd.f32 %v4340_v5, %v4172_v47  ;;  %v4005_v51 = vadd.f32 %v4004_v7, %v3835_v62 }
 0x782   : > { %v4792_v39 = vmul.f32 %v4536_v6, %v4341_v38 }
 0x784   : > { %v5185_v30 = vadd.f32 %v5184_v36, %v4792_v39  ;;  %v4552_v36 = vunpack.c.h.bf16 %v6830_v45  ;;  %v6831_v39 = vld [vmem:[#allocation2 + $0x1b8] sm:$0xff] }
 0x785   : > { %v4173_v52 = vpop.f32.mrf.mxu2 }
 0x786   : > { %v4174_v16 = vadd.f32 %v4173_v52, %v4005_v51  ;;  %v4342_v19 = vpop.f32.mrf.mxu3  ;;  %v3838_v17 = vpop.f32.mrf.mxu0 }
 0x787   : > { %v4007_v34 = vpop.f32.mrf.mxu1 }
 0x788   : > { %v4343_v44 = vadd.f32 %v4342_v19, %v4174_v16  ;;  %v4008_v18 = vadd.f32 %v4007_v34, %v3838_v17  ;;  %v8749_v34 = vld [vmem:[#allocation68_spill] sm:$0xff] }
 0x789   : > { %3877 = vmatmul.bf16.gmra.mxu0 %v8740_v12  ;;  %4046 = vmatmul.bf16.gmra.mxu1 %v8741_v20 }
 0x78a   : > { %v4796_v43 = vmul.f32 %v4540_v32, %v4343_v44  ;;  %4215 = vmatmul.bf16.gmra.mxu2 %v8742_v46  ;;  %v8748_v32 = vld [vmem:[#allocation67_spill] sm:$0xff]  ;;  %v8750_v44 = vld [vmem:[#allocation69_spill] sm:$0xff] }
 0x78b   : > { %4384 = vmatmul.bf16.gmra.mxu3 %v8743_v13  ;;  %v6832_v13 = vld [vmem:[#allocation2 + $0x1c8] sm:$0xff] }
 0x78c   : > { %v5186_v21 = vadd.f32 %v5185_v30, %v4796_v43  ;;  %v4556_v30 = vunpack.c.h.bf16 %v6831_v39 }
 0x78d   : > { %v4176_v24 = vpop.f32.mrf.mxu2 }
 0x78e   : > { %v4177_v22 = vadd.f32 %v4176_v24, %v4008_v18  ;;  %v4345_v49 = vpop.f32.mrf.mxu3  ;;  %v3840_v28 = vpop.f32.mrf.mxu0  ;;  %v8751_v18 = vld [vmem:[#allocation70_spill] sm:$0xff] }
 0x78f   : > { %v4009_v50 = vpop.f32.mrf.mxu1 }
 0x790   : > { %v4346_v27 = vadd.f32 %v4345_v49, %v4177_v22  ;;  %v4010_v54 = vadd.f32 %v4009_v50, %v3840_v28 }
 0x792   : > { %v4800_v48 = vmul.f32 %v4544_v14, %v4346_v27 }
 0x794   : > { %v5187_v25 = vadd.f32 %v5186_v21, %v4800_v48  ;;  %v4560_v21 = vunpack.c.h.bf16 %v6832_v13  ;;  %v6833_v48 = vld [vmem:[#allocation2 + $0x1d8] sm:$0xff] }
 0x795   : > { %v4178_v55 = vpop.f32.mrf.mxu2 }
 0x796   : > { %v4179_v9 = vadd.f32 %v4178_v55, %v4010_v54  ;;  %v4347_v35 = vpop.f32.mrf.mxu3  ;;  %v3843_v0 = vpop.f32.mrf.mxu0 }
 0x797   : > { %v4012_v10 = vpop.f32.mrf.mxu1 }
 0x798   : > { %v4348_v41 = vadd.f32 %v4347_v35, %v4179_v9  ;;  %v4013_v1 = vadd.f32 %v4012_v10, %v3843_v0  ;;  %v8753_v10 = vld [vmem:[#allocation72_spill] sm:$0xff] }
 0x799   : > { %3882 = vmatmul.bf16.gmra.mxu0 %v8744_v56  ;;  %4051 = vmatmul.bf16.gmra.mxu1 %v8745_v2 }
 0x79a   : > { %v4804_v40 = vmul.f32 %v4548_v31, %v4348_v41  ;;  %4220 = vmatmul.bf16.gmra.mxu2 %v8746_v57  ;;  %v8752_v31 = vld [vmem:[#allocation71_spill] sm:$0xff]  ;;  %v8754_v41 = vld [vmem:[#allocation73_spill] sm:$0xff] }
 0x79b   : > { %4389 = vmatmul.bf16.gmra.mxu3 %v8747_v26  ;;  %v6834_v26 = vld [vmem:[#allocation2 + $0x1e8] sm:$0xff] }
 0x79c   : > { %v5188_v58 = vadd.f32 %v5187_v25, %v4804_v40  ;;  %v4564_v25 = vunpack.c.h.bf16 %v6833_v48 }
 0x79d   : > { %v4181_v3 = vpop.f32.mrf.mxu2 }
 0x79e   : > { %v4182_v59 = vadd.f32 %v4181_v3, %v4013_v1  ;;  %v4350_v15 = vpop.f32.mrf.mxu3  ;;  %v3845_v4 = vpop.f32.mrf.mxu0  ;;  %v8755_v1 = vld [vmem:[#allocation74_spill] sm:$0xff] }
 0x79f   : > { %v4014_v47 = vpop.f32.mrf.mxu1 }
 0x7a0   : > { %v4351_v5 = vadd.f32 %v4350_v15, %v4182_v59  ;;  %v4015_v37 = vadd.f32 %v4014_v47, %v3845_v4 }
 0x7a2   : > { %v4808_v6 = vmul.f32 %v4552_v36, %v4351_v5 }
 0x7a4   : > { %v5189_v62 = vadd.f32 %v5188_v58, %v4808_v6  ;;  %v4568_v58 = vunpack.c.h.bf16 %v6834_v26  ;;  %v6835_v6 = vld [vmem:[#allocation2 + $0x1f8] sm:$0xff] }
 0x7a5   : > { %v4183_v7 = vpop.f32.mrf.mxu2 }
 0x7a6   : > { %v4184_v38 = vadd.f32 %v4183_v7, %v4015_v37  ;;  %v4352_v51 = vpop.f32.mrf.mxu3  ;;  %v3848_v52 = vpop.f32.mrf.mxu0 }
 0x7a7   : > { %v4017_v16 = vpop.f32.mrf.mxu1 }
 0x7a8   : > { %v4353_v19 = vadd.f32 %v4352_v51, %v4184_v38  ;;  %v4018_v53 = vadd.f32 %v4017_v16, %v3848_v52  ;;  %v8757_v16 = vld [vmem:[#allocation76_spill] sm:$0xff] }
 0x7a9   : > { %3887 = vmatmul.bf16.gmra.mxu0 %v8748_v32  ;;  %4056 = vmatmul.bf16.gmra.mxu1 %v8749_v34 }
 0x7aa   : > { %v4812_v17 = vmul.f32 %v4556_v30, %v4353_v19  ;;  %4225 = vmatmul.bf16.gmra.mxu2 %v8750_v44  ;;  %v8756_v30 = vld [vmem:[#allocation75_spill] sm:$0xff]  ;;  %v8758_v19 = vld [vmem:[#allocation77_spill] sm:$0xff] }
 0x7ab   : > { %4394 = vmatmul.bf16.gmra.mxu3 %v8751_v18  ;;  %v6836_v18 = vld [vmem:[#allocation2 + $0x208] sm:$0xff] }
 0x7ac   : > { %v5190_v12 = vadd.f32 %v5189_v62, %v4812_v17  ;;  %v4572_v62 = vunpack.c.h.bf16 %v6835_v6 }
 0x7ad   : > { %v4186_v43 = vpop.f32.mrf.mxu2 }
 0x7ae   : > { %v4187_v20 = vadd.f32 %v4186_v43, %v4018_v53  ;;  %v4355_v46 = vpop.f32.mrf.mxu3  ;;  %v3850_v24 = vpop.f32.mrf.mxu0  ;;  %v8759_v53 = vld [vmem:[#allocation78_spill] sm:$0xff] }
 0x7af   : > { %v4019_v22 = vpop.f32.mrf.mxu1 }
 0x7b0   : > { %v4356_v49 = vadd.f32 %v4355_v46, %v4187_v20  ;;  %v4020_v23 = vadd.f32 %v4019_v22, %v3850_v24 }
 0x7b2   : > { %v4816_v14 = vmul.f32 %v4560_v21, %v4356_v49 }
 0x7b4   : > { %v5191_v28 = vadd.f32 %v5190_v12, %v4816_v14  ;;  %v4576_v12 = vunpack.c.h.bf16 %v6836_v18  ;;  %v6837_v14 = vld [vmem:[#allocation2 + $0x218] sm:$0xff] }
 0x7b5   : > { %v4188_v50 = vpop.f32.mrf.mxu2 }
 0x7b6   : > { %v4189_v27 = vadd.f32 %v4188_v50, %v4020_v23  ;;  %v4357_v54 = vpop.f32.mrf.mxu3  ;;  %v3853_v55 = vpop.f32.mrf.mxu0 }
 0x7b7   : > { %v4022_v9 = vpop.f32.mrf.mxu1 }
 0x7b8   : > { %v4358_v35 = vadd.f32 %v4357_v54, %v4189_v27  ;;  %v4023_v60 = vadd.f32 %v4022_v9, %v3853_v55  ;;  %v8761_v9 = vld [vmem:[#allocation80_spill] sm:$0xff] }
 0x7b9   : > { %3892 = vmatmul.bf16.gmra.mxu0 %v8752_v31  ;;  %4061 = vmatmul.bf16.gmra.mxu1 %v8753_v10 }
 0x7ba   : > { %v4820_v0 = vmul.f32 %v4564_v25, %v4358_v35  ;;  %4230 = vmatmul.bf16.gmra.mxu2 %v8754_v41  ;;  %v8760_v25 = vld [vmem:[#allocation79_spill] sm:$0xff]  ;;  %v8762_v35 = vld [vmem:[#allocation81_spill] sm:$0xff] }
 0x7bb   : > { %4399 = vmatmul.bf16.gmra.mxu3 %v8755_v1  ;;  %v6838_v1 = vld [vmem:[#allocation2 + $0x228] sm:$0xff] }
 0x7bc   : > { %v5192_v56 = vadd.f32 %v5191_v28, %v4820_v0  ;;  %v4580_v28 = vunpack.c.h.bf16 %v6837_v14 }
 0x7bd   : > { %v4191_v40 = vpop.f32.mrf.mxu2 }
 0x7be   : > { %v4192_v2 = vadd.f32 %v4191_v40, %v4023_v60  ;;  %v4360_v57 = vpop.f32.mrf.mxu3  ;;  %v3855_v3 = vpop.f32.mrf.mxu0  ;;  %v8763_v60 = vld [vmem:[#allocation82_spill] sm:$0xff] }
 0x7bf   : > { %v4024_v59 = vpop.f32.mrf.mxu1 }
 0x7c0   : > { %v4361_v15 = vadd.f32 %v4360_v57, %v4192_v2  ;;  %v4025_v45 = vadd.f32 %v4024_v59, %v3855_v3 }
 0x7c2   : > { %v4824_v36 = vmul.f32 %v4568_v58, %v4361_v15 }
 0x7c4   : > { %v5193_v4 = vadd.f32 %v5192_v56, %v4824_v36  ;;  %v4584_v56 = vunpack.c.h.bf16 %v6838_v1  ;;  %v6839_v36 = vld [vmem:[#allocation2 + $0x238] sm:$0xff] }
 0x7c5   : > { %v4193_v47 = vpop.f32.mrf.mxu2 }
 0x7c6   : > { %v4194_v5 = vadd.f32 %v4193_v47, %v4025_v45  ;;  %v4362_v37 = vpop.f32.mrf.mxu3  ;;  %v3858_v7 = vpop.f32.mrf.mxu0 }
 0x7c7   : > { %v4027_v38 = vpop.f32.mrf.mxu1 }
 0x7c8   : > { %v4363_v51 = vadd.f32 %v4362_v37, %v4194_v5  ;;  %v4028_v39 = vadd.f32 %v4027_v38, %v3858_v7  ;;  %v8765_v38 = vld [vmem:[#allocation84_spill] sm:$0xff] }
 0x7c9   : > { %3897 = vmatmul.bf16.gmra.mxu0 %v8756_v30  ;;  %4066 = vmatmul.bf16.gmra.mxu1 %v8757_v16 }
 0x7ca   : > { %v4828_v52 = vmul.f32 %v4572_v62, %v4363_v51  ;;  %4235 = vmatmul.bf16.gmra.mxu2 %v8758_v19  ;;  %v8764_v62 = vld [vmem:[#allocation83_spill] sm:$0xff]  ;;  %v8766_v51 = vld [vmem:[#allocation85_spill] sm:$0xff] }
 0x7cb   : > { %4404 = vmatmul.bf16.gmra.mxu3 %v8759_v53  ;;  %v6840_v53 = vld [vmem:[#allocation2 + $0x248] sm:$0xff] }
 0x7cc   : > { %v5194_v32 = vadd.f32 %v5193_v4, %v4828_v52  ;;  %v4588_v4 = vunpack.c.h.bf16 %v6839_v36  ;;  %v8772_v36 = vld [vmem:[#allocation93_spill] sm:$0xff] }
 0x7cd   : > { %v4196_v17 = vpop.f32.mrf.mxu2 }
 0x7ce   : > { %v4197_v34 = vadd.f32 %v4196_v17, %v4028_v39  ;;  %v4365_v44 = vpop.f32.mrf.mxu3  ;;  %v3860_v43 = vpop.f32.mrf.mxu0  ;;  %v8767_v39 = vld [vmem:[#allocation86_spill] sm:$0xff] }
 0x7cf   : > { %v4029_v20 = vpop.f32.mrf.mxu1 }
 0x7d0   : > { %v4366_v46 = vadd.f32 %v4365_v44, %v4197_v34  ;;  %v4030_v13 = vadd.f32 %v4029_v20, %v3860_v43 }
 0x7d2   : > { %v4832_v21 = vmul.f32 %v4576_v12, %v4366_v46 }
 0x7d4   : > { %v5195_v24 = vadd.f32 %v5194_v32, %v4832_v21  ;;  %v4592_v32 = vunpack.c.h.bf16 %v6840_v53  ;;  %v6841_v21 = vld [vmem:[#allocation2 + $0x258] sm:$0xff] }
 0x7d5   : > { %v4198_v22 = vpop.f32.mrf.mxu2 }
 0x7d6   : > { %v4199_v49 = vadd.f32 %v4198_v22, %v4030_v13  ;;  %v4367_v23 = vpop.f32.mrf.mxu3  ;;  %v3863_v50 = vpop.f32.mrf.mxu0 }
 0x7d7   : > { %v4032_v27 = vpop.f32.mrf.mxu1 }
 0x7d8   : > { %v4368_v54 = vadd.f32 %v4367_v23, %v4199_v49  ;;  %v4033_v48 = vadd.f32 %v4032_v27, %v3863_v50  ;;  %v8768_v50 = vld [vmem:[#allocation89_spill] sm:$0xff]  ;;  %v8769_v27 = vld [vmem:[#allocation90_spill] sm:$0xff] }
 0x7d9   : > { %3902 = vmatmul.bf16.gmra.mxu0 %v8760_v25  ;;  %4071 = vmatmul.bf16.gmra.mxu1 %v8761_v9  ;;  %v6842_v9 = vld [vmem:[#allocation2 + $0x268] sm:$0xff] }
 0x7da   : > { %v4836_v55 = vmul.f32 %v4580_v28, %v4368_v54  ;;  %4240 = vmatmul.bf16.gmra.mxu2 %v8762_v35  ;;  %v4600_v35 = vunpack.c.h.bf16 %v6842_v9 }
 0x7db   : > { %4409 = vmatmul.bf16.gmra.mxu3 %v8763_v60 }
 0x7dc   : > { %v5196_v31 = vadd.f32 %v5195_v24, %v4836_v55  ;;  %v4596_v24 = vunpack.c.h.bf16 %v6841_v21  ;;  %v8776_v21 = vld [vmem:[#allocation97_spill] sm:$0xff] }
 0x7dd   : > { %v4201_v0 = vpop.f32.mrf.mxu2 }
 0x7de   : > { %v4202_v10 = vadd.f32 %v4201_v0, %v4033_v48  ;;  %v4370_v41 = vpop.f32.mrf.mxu3  ;;  %v3865_v40 = vpop.f32.mrf.mxu0 }
 0x7df   : > { %v4034_v2 = vpop.f32.mrf.mxu1 }
 0x7e0   : > { %v4371_v57 = vadd.f32 %v4370_v41, %v4202_v10  ;;  %v4035_v26 = vadd.f32 %v4034_v2, %v3865_v40 }
 0x7e2   : > { %v4840_v58 = vmul.f32 %v4584_v56, %v4371_v57 }
 0x7e4   : > { %v5197_v3 = vadd.f32 %v5196_v31, %v4840_v58 }
 0x7e5   : > { %v4203_v59 = vpop.f32.mrf.mxu2 }
 0x7e6   : > { %v4204_v15 = vadd.f32 %v4203_v59, %v4035_v26  ;;  %v4372_v45 = vpop.f32.mrf.mxu3  ;;  %v3868_v47 = vpop.f32.mrf.mxu0  ;;  %v8770_v59 = vld [vmem:[#allocation91_spill] sm:$0xff] }
 0x7e7   : > { %v4037_v5 = vpop.f32.mrf.mxu1 }
 0x7e8   : > { %v4373_v37 = vadd.f32 %v4372_v45, %v4204_v15  ;;  %v4038_v6 = vadd.f32 %v4037_v5, %v3868_v47  ;;  %v8771_v45 = vld [vmem:[#allocation92_spill] sm:$0xff] }
 0x7e9   : > { %3907 = vmatmul.bf16.gmra.mxu0 %v8764_v62  ;;  %4076 = vmatmul.bf16.gmra.mxu1 %v8765_v38  ;;  %v6844_v62 = vld [vmem:[#allocation2 + $0x288] sm:$0xff] }
 0x7ea   : > { %v4844_v7 = vmul.f32 %v4588_v4, %v4373_v37  ;;  %4245 = vmatmul.bf16.gmra.mxu2 %v8766_v51  ;;  %v8773_v4 = vld [vmem:[#allocation94_spill] sm:$0xff] }
 0x7eb   : > { %4414 = vmatmul.bf16.gmra.mxu3 %v8767_v39 }
 0x7ec   : > { %v5198_v30 = vadd.f32 %v5197_v3, %v4844_v7  ;;  %v4608_v7 = vunpack.c.h.bf16 %v6844_v62 }
 0x7ed   : > { %v4206_v52 = vpop.f32.mrf.mxu2 }
 0x7ee   : > { %v4207_v16 = vadd.f32 %v4206_v52, %v4038_v6  ;;  %v4375_v19 = vpop.f32.mrf.mxu3  ;;  %v3870_v17 = vpop.f32.mrf.mxu0 }
 0x7ef   : > { %v4039_v34 = vpop.f32.mrf.mxu1 }
 0x7f0   : > { %v4376_v44 = vadd.f32 %v4375_v19, %v4207_v16  ;;  %v4040_v18 = vadd.f32 %v4039_v34, %v3870_v17  ;;  %v6845_v17 = vld [vmem:[#allocation2 + $0x298] sm:$0xff] }
 0x7f1   : > { %v4612_v34 = vunpack.c.h.bf16 %v6845_v17 }
 0x7f2   : > { %v4848_v12 = vmul.f32 %v4592_v32, %v4376_v44 }
 0x7f4   : > { %v5199_v43 = vadd.f32 %v5198_v30, %v4848_v12 }
 0x7f5   : > { %v4208_v20 = vpop.f32.mrf.mxu2 }
 0x7f6   : > { %v4209_v46 = vadd.f32 %v4208_v20, %v4040_v18  ;;  %v4377_v13 = vpop.f32.mrf.mxu3  ;;  %v3873_v22 = vpop.f32.mrf.mxu0  ;;  %v8774_v20 = vld [vmem:[#allocation95_spill] sm:$0xff] }
 0x7f7   : > { %v4042_v49 = vpop.f32.mrf.mxu1 }
 0x7f8   : > { %v4378_v23 = vadd.f32 %v4377_v13, %v4209_v46  ;;  %v4043_v14 = vadd.f32 %v4042_v49, %v3873_v22  ;;  %v8775_v13 = vld [vmem:[#allocation96_spill] sm:$0xff] }
 0x7f9   : > { %3912 = vmatmul.bf16.gmra.mxu0 %v8678_v29  ;;  %4081 = vmatmul.bf16.gmra.mxu1 %v8679_v63  ;;  %v6843_v63 = vld [vmem:[#allocation2 + $0x278] sm:$0xff] }
 0x7fa   : > { %v4852_v28 = vmul.f32 %v4596_v24, %v4378_v23  ;;  %4250 = vmatmul.bf16.gmra.mxu2 %v8768_v50  ;;  %v4604_v2 = vunpack.c.h.bf16 %v6843_v63  ;;  %v8777_v24 = vld [vmem:[#allocation98_spill] sm:$0xff] }
 0x7fb   : > { %4419 = vmatmul.bf16.gmra.mxu3 %v8769_v27 }
 0x7fc   : > { %v5200_v54 = vadd.f32 %v5199_v43, %v4852_v28  ;;  %v6846_v28 = vld [vmem:[#allocation2 + $0x2a8] sm:$0xff] }
 0x7fd   : > { %v4211_v48 = vpop.f32.mrf.mxu2  ;;  %v4616_v50 = vunpack.c.h.bf16 %v6846_v28 }
 0x7fe   : > { %v4212_v25 = vadd.f32 %v4211_v48, %v4043_v14  ;;  %v4380_v55 = vpop.f32.mrf.mxu3  ;;  %v3875_v60 = vpop.f32.mrf.mxu0 }
 0x7ff   : > { %v4044_v31 = vpop.f32.mrf.mxu1 }
 0x800   : > { %v4381_v0 = vadd.f32 %v4380_v55, %v4212_v25  ;;  %v4045_v10 = vadd.f32 %v4044_v31, %v3875_v60 }
 0x802   : > { %v4856_v41 = vmul.f32 %v4600_v35, %v4381_v0  ;;  %v6847_v0 = vld [vmem:[#allocation2 + $0x2b8] sm:$0xff] }
 0x804   : > { %v5201_v1 = vadd.f32 %v5200_v54, %v4856_v41 }
 0x805   : > { %v4213_v29 = vpop.f32.mrf.mxu2 }
 0x806   : > { %v4214_v56 = vadd.f32 %v4213_v29, %v4045_v10  ;;  %v4382_v40 = vpop.f32.mrf.mxu3  ;;  %v3878_v57 = vpop.f32.mrf.mxu0  ;;  %v4620_v10 = vunpack.c.h.bf16 %v6847_v0 }
 0x807   : > { %v4047_v26 = vpop.f32.mrf.mxu1 }
 0x808   : > { %v4383_v58 = vadd.f32 %v4382_v40, %v4214_v56  ;;  %v4048_v3 = vadd.f32 %v4047_v26, %v3878_v57  ;;  %v8778_v40 = vld [vmem:[#allocation99_spill] sm:$0xff]  ;;  %v8780_v57 = vld [vmem:[#allocation101_spill] sm:$0xff]  ;;  %v8781_v26 = vld [vmem:[#allocation102_spill] sm:$0xff] }
 0x809   : > { %3917 = vmatmul.bf16.gmra.mxu0 %v8770_v59  ;;  %4086 = vmatmul.bf16.gmra.mxu1 %v8771_v45  ;;  %v6848_v45 = vld [vmem:[#allocation2 + $0x2c8] sm:$0xff] }
 0x80a   : > { %v4860_v15 = vmul.f32 %v4604_v2, %v4383_v58  ;;  %4255 = vmatmul.bf16.gmra.mxu2 %v8772_v36  ;;  %v8779_v2 = vld [vmem:[#allocation100_spill] sm:$0xff]  ;;  %v4624_v36 = vunpack.c.h.bf16 %v6848_v45 }
 0x80b   : > { %4424 = vmatmul.bf16.gmra.mxu3 %v8773_v4 }
 0x80c   : > { %v5202_v47 = vadd.f32 %v5201_v1, %v4860_v15 }
 0x80d   : > { %v4216_v5 = vpop.f32.mrf.mxu2 }
 0x80e   : > { %v4217_v37 = vadd.f32 %v4216_v5, %v4048_v3  ;;  %v4385_v6 = vpop.f32.mrf.mxu3  ;;  %v3880_v38 = vpop.f32.mrf.mxu0 }
 0x80f   : > { %v4049_v51 = vpop.f32.mrf.mxu1 }
 0x810   : > { %v4386_v39 = vadd.f32 %v4385_v6, %v4217_v37  ;;  %v4050_v30 = vadd.f32 %v4049_v51, %v3880_v38 }
 0x812   : > { %v4864_v52 = vmul.f32 %v4608_v7, %v4386_v39  ;;  %v6849_v39 = vld [vmem:[#allocation2 + $0x2d8] sm:$0xff] }
 0x814   : > { %v5203_v16 = vadd.f32 %v5202_v47, %v4864_v52 }
 0x815   : > { %v4218_v19 = vpop.f32.mrf.mxu2 }
 0x816   : > { %v4219_v53 = vadd.f32 %v4218_v19, %v4050_v30  ;;  %v4387_v32 = vpop.f32.mrf.mxu3  ;;  %v3883_v44 = vpop.f32.mrf.mxu0  ;;  %v4628_v30 = vunpack.c.h.bf16 %v6849_v39 }
 0x817   : > { %v4052_v18 = vpop.f32.mrf.mxu1 }
 0x818   : > { %v4388_v12 = vadd.f32 %v4387_v32, %v4219_v53  ;;  %v4053_v43 = vadd.f32 %v4052_v18, %v3883_v44 }
 0x819   : > { %3922 = vmatmul.bf16.gmra.mxu0 %v8774_v20  ;;  %4091 = vmatmul.bf16.gmra.mxu1 %v8775_v13 }
 0x81a   : > { %v4868_v46 = vmul.f32 %v4612_v34, %v4388_v12  ;;  %4260 = vmatmul.bf16.gmra.mxu2 %v8776_v21  ;;  %v6850_v12 = vld [vmem:[#allocation2 + $0x2e8] sm:$0xff] }
 0x81b   : > { %4429 = vmatmul.bf16.gmra.mxu3 %v8777_v24 }
 0x81c   : > { %v5204_v22 = vadd.f32 %v5203_v16, %v4868_v46 }
 0x81d   : > { %v4221_v49 = vpop.f32.mrf.mxu2 }
 0x81e   : > { %v4222_v23 = vadd.f32 %v4221_v49, %v4053_v43  ;;  %v4390_v14 = vpop.f32.mrf.mxu3  ;;  %v3885_v27 = vpop.f32.mrf.mxu0  ;;  %v4632_v43 = vunpack.c.h.bf16 %v6850_v12 }
 0x81f   : > { %v4054_v54 = vpop.f32.mrf.mxu1 }
 0x820   : > { %v4391_v48 = vadd.f32 %v4390_v14, %v4222_v23  ;;  %v4055_v25 = vadd.f32 %v4054_v54, %v3885_v27 }
 0x822   : > { %v4872_v55 = vmul.f32 %v4616_v50, %v4391_v48 }
 0x824   : > { %v5205_v9 = vadd.f32 %v5204_v22, %v4872_v55 }
 0x825   : > { %v4223_v35 = vpop.f32.mrf.mxu2 }
 0x826   : > { %v4224_v60 = vadd.f32 %v4223_v35, %v4055_v25  ;;  %v4392_v31 = vpop.f32.mrf.mxu3  ;;  %v3888_v41 = vpop.f32.mrf.mxu0 }
 0x827   : > { %v4057_v1 = vpop.f32.mrf.mxu1 }
 0x828   : > { %v4393_v29 = vadd.f32 %v4392_v31, %v4224_v60  ;;  %v4058_v56 = vadd.f32 %v4057_v1, %v3888_v41 }
 0x829   : > { %3927 = vmatmul.bf16.gmra.mxu0 %v8778_v40  ;;  %4096 = vmatmul.bf16.gmra.mxu1 %v8779_v2 }
 0x82a   : > { %v4876_v63 = vmul.f32 %v4620_v10, %v4393_v29  ;;  %4265 = vmatmul.bf16.gmra.mxu2 %v8780_v57 }
 0x82b   : > { %4434 = vmatmul.bf16.gmra.mxu3 %v8781_v26 }
 0x82c   : > { %v5206_v58 = vadd.f32 %v5205_v9, %v4876_v63  ;;  %v6852_v9 = vld [vmem:[#allocation2 + $0x308] sm:$0xff]  ;;  %v6853_v63 = vld [vmem:[#allocation2 + $0x318] sm:$0xff] }
 0x82d   : > { %v4226_v3 = vpop.f32.mrf.mxu2  ;;  %v4640_v35 = vunpack.c.h.bf16 %v6852_v9  ;;  %v4644_v2 = vunpack.c.h.bf16 %v6853_v63 }
 0x82e   : > { %v4227_v59 = vadd.f32 %v4226_v3, %v4058_v56  ;;  %v4395_v15 = vpop.f32.mrf.mxu3  ;;  %v3890_v4 = vpop.f32.mrf.mxu0 }
 0x82f   : > { %v4059_v47 = vpop.f32.mrf.mxu1 }
 0x830   : > { %v4396_v5 = vadd.f32 %v4395_v15, %v4227_v59  ;;  %v4060_v37 = vadd.f32 %v4059_v47, %v3890_v4  ;;  %v6854_v47 = vld [vmem:[#allocation2 + $0x328] sm:$0xff] }
 0x832   : > { %v4880_v6 = vmul.f32 %v4624_v36, %v4396_v5  ;;  %v4648_v5 = vunpack.c.h.bf16 %v6854_v47 }
 0x834   : > { %v5207_v62 = vadd.f32 %v5206_v58, %v4880_v6 }
 0x835   : > { %v4228_v7 = vpop.f32.mrf.mxu2 }
 0x836   : > { %v4229_v38 = vadd.f32 %v4228_v7, %v4060_v37  ;;  %v4397_v51 = vpop.f32.mrf.mxu3  ;;  %v3893_v52 = vpop.f32.mrf.mxu0 }
 0x837   : > { %v4062_v16 = vpop.f32.mrf.mxu1 }
 0x838   : > { %v4398_v19 = vadd.f32 %v4397_v51, %v4229_v38  ;;  %v4063_v53 = vadd.f32 %v4062_v16, %v3893_v52  ;;  %v6855_v16 = vld [vmem:[#allocation2 + $0x338] sm:$0xff] }
 0x839   : > { %3932 = vmatmul.bf16.gmra.mxu0 %v7780_v33  ;;  %4101 = vmatmul.bf16.gmra.mxu1 %v7782_v61  ;;  %v6851_v61 = vld [vmem:[#allocation2 + $0x2f8] sm:$0xff] }
 0x83a   : > { %v4884_v32 = vmul.f32 %v4628_v30, %v4398_v19  ;;  %4270 = vmatmul.bf16.gmra.mxu2 %v7784_v11  ;;  %v4636_v14 = vunpack.c.h.bf16 %v6851_v61  ;;  %v4652_v19 = vunpack.c.h.bf16 %v6855_v16 }
 0x83b   : > { %4439 = vmatmul.bf16.gmra.mxu3 %v7786_v42 }
 0x83c   : > { %v5208_v17 = vadd.f32 %v5207_v62, %v4884_v32 }
 0x83d   : > { %v4231_v34 = vpop.f32.mrf.mxu2 }
 0x83e   : > { %v4232_v44 = vadd.f32 %v4231_v34, %v4063_v53  ;;  %v4400_v18 = vpop.f32.mrf.mxu3  ;;  %v3895_v20 = vpop.f32.mrf.mxu0 }
 0x83f   : > { %v4064_v46 = vpop.f32.mrf.mxu1 }
 0x840   : > { %v4401_v13 = vadd.f32 %v4400_v18, %v4232_v44  ;;  %v4065_v21 = vadd.f32 %v4064_v46, %v3895_v20  ;;  %v6856_v46 = vld [vmem:[#allocation2 + $0x348] sm:$0xff] }
 0x842   : > { %v4888_v24 = vmul.f32 %v4632_v43, %v4401_v13  ;;  %v4656_v13 = vunpack.c.h.bf16 %v6856_v46 }
 0x844   : > { %v5209_v22 = vadd.f32 %v5208_v17, %v4888_v24 }
 0x845   : > { %v4233_v33 = vpop.f32.mrf.mxu2 }
 0x846   : > { %v4234_v49 = vadd.f32 %v4233_v33, %v4065_v21  ;;  %v4402_v23 = vpop.f32.mrf.mxu3  ;;  %v3898_v11 = vpop.f32.mrf.mxu0 }
 0x847   : > { %v4067_v28 = vpop.f32.mrf.mxu1 }
 0x848   : > { %v4403_v42 = vadd.f32 %v4402_v23, %v4234_v49  ;;  %v4068_v50 = vadd.f32 %v4067_v28, %v3898_v11 }
 0x84a   : > { %v4892_v27 = vmul.f32 %v4636_v14, %v4403_v42 }
 0x84c   : > { %v5210_v54 = vadd.f32 %v5209_v22, %v4892_v27 }
 0x84d   : > { %v4236_v48 = vpop.f32.mrf.mxu2 }
 0x84e   : > { %v4237_v25 = vadd.f32 %v4236_v48, %v4068_v50  ;;  %v4405_v55 = vpop.f32.mrf.mxu3  ;;  %v3900_v60 = vpop.f32.mrf.mxu0 }
 0x84f   : > { %v4069_v31 = vpop.f32.mrf.mxu1 }
 0x850   : > { %v4406_v0 = vadd.f32 %v4405_v55, %v4237_v25  ;;  %v4070_v10 = vadd.f32 %v4069_v31, %v3900_v60 }
 0x852   : > { %v4896_v41 = vmul.f32 %v4640_v35, %v4406_v0 }
 0x854   : > { %v5211_v1 = vadd.f32 %v5210_v54, %v4896_v41 }
 0x855   : > { %v4238_v29 = vpop.f32.mrf.mxu2 }
 0x856   : > { %v4239_v56 = vadd.f32 %v4238_v29, %v4070_v10  ;;  %v4407_v40 = vpop.f32.mrf.mxu3  ;;  %v3903_v57 = vpop.f32.mrf.mxu0 }
 0x857   : > { %v4072_v26 = vpop.f32.mrf.mxu1 }
 0x858   : > { %v4408_v58 = vadd.f32 %v4407_v40, %v4239_v56  ;;  %v4073_v3 = vadd.f32 %v4072_v26, %v3903_v57 }
 0x85a   : > { %v4900_v59 = vmul.f32 %v4644_v2, %v4408_v58 }
 0x85c   : > { %v5212_v15 = vadd.f32 %v5211_v1, %v4900_v59 }
 0x85d   : > { %v4241_v45 = vpop.f32.mrf.mxu2 }
 0x85e   : > { %v4242_v36 = vadd.f32 %v4241_v45, %v4073_v3  ;;  %v4410_v4 = vpop.f32.mrf.mxu3  ;;  %v3905_v37 = vpop.f32.mrf.mxu0 }
 0x85f   : > { %v4074_v6 = vpop.f32.mrf.mxu1 }
 0x860   : > { %v4411_v62 = vadd.f32 %v4410_v4, %v4242_v36  ;;  %v4075_v7 = vadd.f32 %v4074_v6, %v3905_v37 }
 0x862   : > { %v4904_v38 = vmul.f32 %v4648_v5, %v4411_v62  ;;  %v6857_v62 = vld [vmem:[#allocation2 + $0x358] sm:$0xff] }
 0x864   : > { %v5213_v51 = vadd.f32 %v5212_v15, %v4904_v38 }
 0x865   : > { %v4243_v39 = vpop.f32.mrf.mxu2 }
 0x866   : > { %v4244_v30 = vadd.f32 %v4243_v39, %v4075_v7  ;;  %v4412_v52 = vpop.f32.mrf.mxu3  ;;  %v3908_v53 = vpop.f32.mrf.mxu0  ;;  %v4660_v7 = vunpack.c.h.bf16 %v6857_v62 }
 0x867   : > { %v4077_v32 = vpop.f32.mrf.mxu1 }
 0x868   : > { %v4413_v17 = vadd.f32 %v4412_v52, %v4244_v30  ;;  %v4078_v34 = vadd.f32 %v4077_v32, %v3908_v53  ;;  %v6858_v30 = vld [vmem:[#allocation2 + $0x368] sm:$0xff] }
 0x869   : > { %v4664_v52 = vunpack.c.h.bf16 %v6858_v30 }
 0x86a   : > { %v4908_v44 = vmul.f32 %v4652_v19, %v4413_v17 }
 0x86c   : > { %v5214_v18 = vadd.f32 %v5213_v51, %v4908_v44 }
 0x86d   : > { %v4246_v12 = vpop.f32.mrf.mxu2 }
 0x86e   : > { %v4247_v43 = vadd.f32 %v4246_v12, %v4078_v34  ;;  %v4415_v20 = vpop.f32.mrf.mxu3  ;;  %v3910_v21 = vpop.f32.mrf.mxu0  ;;  %v6859_v34 = vld [vmem:[#allocation2 + $0x378] sm:$0xff] }
 0x86f   : > { %v4079_v24 = vpop.f32.mrf.mxu1  ;;  %v4668_v44 = vunpack.c.h.bf16 %v6859_v34  ;;  %v6867_v34 = vld [vmem:[#allocation2 + $0x3f8] sm:$0xff] }
 0x870   : > { %v4416_v22 = vadd.f32 %v4415_v20, %v4247_v43  ;;  %v4080_v3 = vadd.f32 %v4079_v24, %v3910_v21  ;;  %v6860_v20 = vld [vmem:[#allocation2 + $0x388] sm:$0xff] }
 0x871   : > { %v4672_v46 = vunpack.c.h.bf16 %v6860_v20 }
 0x872   : > { %v4912_v33 = vmul.f32 %v4656_v13, %v4416_v22 }
 0x874   : > { %v8184_v49 = vadd.f32 %v5214_v18, %v4912_v33 }
 0x875   : > { %v4248_v23 = vpop.f32.mrf.mxu2 }
 0x876   : > { %v4417_v61 = vpop.f32.mrf.mxu3  ;;  %v3913_v14 = vpop.f32.mrf.mxu0  ;;  %v4249_v15 = vadd.f32 %v4248_v23, %v4080_v3 }
 0x877   : > { %v4082_v11 = vpop.f32.mrf.mxu1 }
 0x878   : > { %v4083_v59 = vadd.f32 %v4082_v11, %v3913_v14  ;;  %v4418_v6 = vadd.f32 %v4417_v61, %v4249_v15 }
 0x87a   : > { %v4916_v32 = vmul.f32 %v4660_v7, %v4418_v6 }
 0x87c   : > { %v5216_v23 = vadd.f32 %v8184_v49, %v4916_v32 }
 0x87d   : > { %v4251_v28 = vpop.f32.mrf.mxu2 }
 0x87e   : > { %v4420_v42 = vpop.f32.mrf.mxu3  ;;  %v3915_v50 = vpop.f32.mrf.mxu0  ;;  %v4252_v45 = vadd.f32 %v4251_v28, %v4083_v59 }
 0x87f   : > { %v4084_v27 = vpop.f32.mrf.mxu1 }
 0x880   : > { %v4085_v47 = vadd.f32 %v4084_v27, %v3915_v50  ;;  %v4421_v39 = vadd.f32 %v4420_v42, %v4252_v45  ;;  %v6861_v42 = vld [vmem:[#allocation2 + $0x398] sm:$0xff]  ;;  %v5158_v45 = vrot.slane %v8090_v8, 4 }
 0x881   : > { %v4676_v50 = vunpack.c.h.bf16 %v6861_v42 }
 0x882   : > { %v4920_v12 = vmul.f32 %v4664_v52, %v4421_v39  ;;  %v5159_v30 = vadd.f32 %v5158_v45, %v8090_v8 }
 0x885   : > { %v4253_v54 = vpop.f32.mrf.mxu2 }
 0x886   : > { %v4422_v48 = vpop.f32.mrf.mxu3  ;;  %v3918_v25 = vpop.f32.mrf.mxu0  ;;  %v4254_v51 = vadd.f32 %v4253_v54, %v4085_v47  ;;  %v5217_v54 = vadd.f32 %v5216_v23, %v4920_v12  ;;  %v6865_v47 = vld [vmem:[#allocation2 + $0x3d8] sm:$0xff]  ;;  %v5160_v12 = vrot.slane %v5159_v30, 2 }
 0x887   : > { %v4087_v55 = vpop.f32.mrf.mxu1 }
 0x888   : > { %v4088_v36 = vadd.f32 %v4087_v55, %v3918_v25  ;;  %v4423_v17 = vadd.f32 %v4422_v48, %v4254_v51  ;;  %v6862_v25 = vld [vmem:[#allocation2 + $0x3a8] sm:$0xff] }
 0x889   : > { %v4680_v55 = vunpack.c.h.bf16 %v6862_v25  ;;  %v6866_v51 = vld [vmem:[#allocation2 + $0x3e8] sm:$0xff] }
 0x88a   : > { %v4924_v11 = vmul.f32 %v4668_v44, %v4423_v17  ;;  %v4696_v39 = vunpack.c.h.bf16 %v6866_v51  ;;  %v4700_v44 = vunpack.c.h.bf16 %v6867_v34 }
 0x88d   : > { %v4256_v9 = vpop.f32.mrf.mxu2 }
 0x88e   : > { %v4425_v35 = vpop.f32.mrf.mxu3  ;;  %v3920_v60 = vpop.f32.mrf.mxu0  ;;  %v4257_v16 = vadd.f32 %v4256_v9, %v4088_v36 }
 0x88f   : > { %v4089_v31 = vpop.f32.mrf.mxu1 }
 0x890   : > { %v4090_v19 = vadd.f32 %v4089_v31, %v3920_v60  ;;  %v4426_v43 = vadd.f32 %v4425_v35, %v4257_v16 }
 0x892   : > { %v4928_v48 = vmul.f32 %v4672_v46, %v4426_v43 }
 0x895   : > { %v4258_v0 = vpop.f32.mrf.mxu2 }
 0x896   : > { %v4427_v10 = vpop.f32.mrf.mxu3  ;;  %v3923_v41 = vpop.f32.mrf.mxu0  ;;  %v4259_v18 = vadd.f32 %v4258_v0, %v4090_v19  ;;  %v6863_v0 = vld [vmem:[#allocation2 + $0x3b8] sm:$0xff] }
 0x897   : > { %v4092_v1 = vpop.f32.mrf.mxu1 }
 0x898   : > { %v4093_v53 = vadd.f32 %v4092_v1, %v3923_v41  ;;  %v4428_v28 = vadd.f32 %v4427_v10, %v4259_v18  ;;  %v4684_v41 = vunpack.c.h.bf16 %v6863_v0  ;;  %v5218_v1 = vadd.f32 %v5217_v54, %v4924_v11 }
 0x89d   : > { %v4261_v29 = vpop.f32.mrf.mxu2 }
 0x89e   : > { %v4430_v56 = vpop.f32.mrf.mxu3  ;;  %v3925_v40 = vpop.f32.mrf.mxu0  ;;  %v4262_v21 = vadd.f32 %v4261_v29, %v4093_v53  ;;  %v4932_v29 = vmul.f32 %v4676_v50, %v4428_v28  ;;  %v5251_v50 = vlaneseq }
 0x89f   : > { %v4094_v63 = vpop.f32.mrf.mxu1 }
 0x8a0   : > { %v4095_v24 = vadd.f32 %v4094_v63, %v3925_v40  ;;  %v4431_v9 = vadd.f32 %v4430_v56, %v4262_v21  ;;  %v6864_v63 = vld [vmem:[#allocation2 + $0x3c8] sm:$0xff]  ;;  %v5161_v21 = vadd.f32 %v5160_v12, %v5159_v30  ;;  %vm5253_vm3 = vcmp.lt.s32.totalorder %v5251_v50, 512 }
 0x8a2   : > { %v4936_v3 = vmul.f32 %v4680_v55, %v4431_v9  ;;  %v8782_v55 = vld [vmem:[#allocation15_spill] sm:$0xff] }
 0x8a5   : > { %v4263_v2 = vpop.f32.mrf.mxu2 }
 0x8a6   : > { %v4432_v57 = vpop.f32.mrf.mxu3  ;;  %v3928_v26 = vpop.f32.mrf.mxu0  ;;  %v4264_v27 = vadd.f32 %v4263_v2, %v4095_v24 }
 0x8a7   : > { %v4097_v58 = vpop.f32.mrf.mxu1 }
 0x8a8   : > { %v4098_v22 = vadd.f32 %v4097_v58, %v3928_v26  ;;  %v4433_v49 = vadd.f32 %v4432_v57, %v4264_v27  ;;  %v4688_v26 = vunpack.c.h.bf16 %v6864_v63  ;;  %v5219_v58 = vadd.f32 %v5218_v1, %v4928_v48 }
 0x8aa   : > { %v5220_v56 = vadd.f32 %v5219_v58, %v4932_v29  ;;  %v4940_v36 = vmul.f32 %v4684_v41, %v4433_v49 }
 0x8ac   : > { %v5221_v7 = vadd.f32 %v5220_v56, %v4936_v3 }
 0x8ad   : > { %v4266_v4 = vpop.f32.mrf.mxu2 }
 0x8ae   : > { %v4435_v5 = vpop.f32.mrf.mxu3  ;;  %v3930_v37 = vpop.f32.mrf.mxu0  ;;  %v4267_v35 = vadd.f32 %v4266_v4, %v4098_v22  ;;  %v5222_v52 = vadd.f32 %v5221_v7, %v4940_v36  ;;  %v5162_v22 = vrot.slane %v5161_v21, 1 }
 0x8af   : > { %v4099_v38 = vpop.f32.mrf.mxu1 }
 0x8b0   : > { %v4100_v60 = vadd.f32 %v4099_v38, %v3930_v37  ;;  %v4436_v2 = vadd.f32 %v4435_v5, %v4267_v35  ;;  %v4692_v37 = vunpack.c.h.bf16 %v6865_v47 }
 0x8b2   : > { %v4944_v57 = vmul.f32 %v4688_v26, %v4436_v2 }
 0x8b4   : > { %v5223_v53 = vadd.f32 %v5222_v52, %v4944_v57 }
 0x8b5   : > { %v4268_v13 = vpop.f32.mrf.mxu2 }
 0x8b6   : > { %v4437_v33 = vpop.f32.mrf.mxu3  ;;  %v3933_v61 = vpop.f32.mrf.mxu0  ;;  %v4269_v40 = vadd.f32 %v4268_v13, %v4100_v60 }
 0x8b7   : > { %v4102_v14 = vpop.f32.mrf.mxu1 }
 0x8b8   : > { %v4103_v31 = vadd.f32 %v4102_v14, %v3933_v61  ;;  %v4438_v4 = vadd.f32 %v4437_v33, %v4269_v40  ;;  %v5163_v61 = vadd.f32 %v5162_v22, %v5161_v21 }
 0x8ba   : > { %v4948_v5 = vmul.f32 %v4692_v37, %v4438_v4  ;;  %v5235_v28 = vmax.f32 %v5163_v61, 0.0 }
 0x8bc   : > { %v5224_v43 = vadd.f32 %v5223_v53, %v4948_v5  ;;  %v5242_v54 = vrot.slane %v5235_v28, 6 }
 0x8bd   : > { %v4271_v10 = vpop.f32.mrf.mxu2 }
 0x8be   : > { %v4272_v59 = vadd.f32 %v4271_v10, %v4103_v31  ;;  %v4440_v15 = vpop.f32.mrf.mxu3  ;;  %v3935_v6 = vpop.f32.mrf.mxu0 }
 0x8bf   : > { %v4104_v62 = vpop.f32.mrf.mxu1 }
 0x8c0   : > { %v4441_v38 = vadd.f32 %v4440_v15, %v4272_v59  ;;  %v4105_v16 = vadd.f32 %v4104_v62, %v3935_v6 }
 0x8c2   : > { %v4952_v32 = vmul.f32 %v4696_v39, %v4441_v38 }
 0x8c4   : > { %v5225_v46 = vadd.f32 %v5224_v43, %v4952_v32 }
 0x8c5   : > { %v4273_v19 = vpop.f32.mrf.mxu2 }
 0x8c6   : > { %v4274_v17 = vadd.f32 %v4273_v19, %v4105_v16  ;;  %v4442_v18 = vpop.f32.mrf.mxu3 }
 0x8c8   : > { %v4443_v20 = vadd.f32 %v4442_v18, %v4274_v17 }
 0x8ca   : > { %v4956_v13 = vmul.f32 %v4700_v44, %v4443_v20 }
 0x8cc   : > { %v5226_v24 = vadd.f32 %v5225_v46, %v4956_v13 }
 0x8ce   : > { %v5227_v8 = vrot.slane %v5226_v24, 4 }
 0x8d0   : > { %v5228_v33 = vadd.f32 %v5227_v8, %v5226_v24 }
 0x8d2   : > { %v5229_v23 = vrot.slane %v5228_v33, 2 }
 0x8d4   : > { %v5230_v14 = vadd.f32 %v5229_v23, %v5228_v33 }
 0x8d6   : > { %v5231_v11 = vrot.slane %v5230_v14, 1 }
 0x8d8   : > { %v5232_v42 = vadd.f32 %v5231_v11, %v5230_v14 }
 0x8da   : > { %v5236_v27 = vmax.f32 %v5232_v42, 0.0 }
 0x8dc   : > { %v5243_v48 = vrot.slane %v5236_v27, 5 }
 0x8de   : > { %v5247_v25 = vsel %vm5246_vm1, %v5242_v54, %v5243_v48 }
 0x8df   : > { %v5249_v9 = vsel %vm5248_vm2, %v8782_v55, %v5247_v25 }
 0x8e0   : > { %5255 = vst.msk [vmem:[%s202_s7] sm:$0xf] %vm5253_vm3, %v5249_v9 }
 0x8e1   : > { %6955 = shalt.err (!%p6952_p12)
}
 0x8e2   : > { %6671 = dma.vmem_to_hbm [thread:$0]  (%p7115_p3), %s5272_s15, 64, %s5274_s16, %s5257_s12  }
 0x8e3 PF: > { %p6688_p13 = scmp.ge.s32.totalorder %s7014_s14, 2  ;;  %s5285_s30 = sand.u32 1, %s6994_s9  }
 0x8e4   : > { %s5286_s5 = scalar_lea.sflag [#allocation4], %s5285_s30 }
 0x8e5   : > { %p6682_p0 = pnand %p6688_p13, %p7083_p6 }
 0x8e7   : > { %p6683_p5 = pneg %p6682_p0 }
 0x8e9   : > { %6989 = dma.done.wait (%p6683_p5), %s5286_s5, 64  }
 0x8ea   : > { %6991 = vsyncadd (%p6683_p5), %s5286_s5, 4294967232  ;;  %s19_s14 = sadd.s32 1, %s7014_s14   ;;  %s8783_s9 = smov %s6998_s10 }
 0x8eb   : > { %p16_p7 = scmp.ge.s32.totalorder %s19_s14, 12   ;;  %s8784_s10 = smov %s7002_s11 }
 0x8ec   : > { %s8785_s11 = smov %s7124_s8  ;;  %s8786_s12 = smov %s7010_s13 }
 0x8ed   : > { %s8787_s13 = smov %s8789_s29  ;;  %18 = sbr.rel (!%p16_p7) target bundleno = 7 (0x7), region = 79 }
 0x8f2   :  { %5292 = vsyncpa [#allocation3], 1 }
 0x8f3   :  { %5294 = vsyncpa [#allocation3 + $0x1], 1 }
 0x8f4   :  { %5295 = vsyncpa [#allocation6], 1 }
 0x8f5   :  { %5297 = vsyncpa [#allocation6 + $0x1], 1 }
 0x8f6   :  { %5298 = vsyncpa [#allocation4], 1 }
 0x8f7   :  { %5300 = vsyncpa [#allocation4 + $0x1], 1 }

</bundles_post_ra>
